<compile_context>
chip_gen: v7x
topology: tpu7x:2x2x1
jax: 0.10.0
libtpu: 0.0.40
codegen_flags: <defaults>
</compile_context>

<pallas_src>
import functools

import jax
import jax.numpy as jnp
from jax.experimental import pallas as pl
from jax.experimental.pallas import tpu as pltpu


def _round_up(x, m):
    return ((x + m - 1) // m) * m


# ----------------------------------------------------------------------------
# Pallas kernel: processes one tile of TN points.
# ----------------------------------------------------------------------------
def atten_fusion_kernel(
    img_ref,    # (TN, IC)     image features (input dtype)
    pts_ref,    # (TN, PC)     point features (input dtype)
    vec_ref,    # (8, MAXC)    packed f32 per-channel row parameters
    w1_ref,     # (IC, RC)     fc1 Linear weight (transposed), MXU dtype
    w2_ref,     # (PC, RC)     fc2 Linear weight (transposed), MXU dtype
    wc_ref,     # (IC, PC)     IA conv1 weight with BN scale folded in, MXU dtype
    wf_ref,     # (2*PC, OC)   fusion conv weight with BN folded in, MXU dtype
    out_ref,    # (TN, OC)
    *, ic, pc, rc, oc,
):
    wdt = w1_ref.dtype          # MXU operand dtype (f32 or bf16), static
    img_raw = img_ref[...]
    pts_raw = pts_ref[...]
    img = img_raw.astype(jnp.float32)
    pts_m = pts_raw if pts_raw.dtype == wdt else pts_raw.astype(wdt)
    img_m = img_raw if img_raw.dtype == wdt else img_raw.astype(wdt)

    vec = vec_ref[...]
    s_fc = vec[0:1, :ic]    # folded BN scale for fc1's BatchNorm1d(ic)
    t_fc = vec[1:2, :ic]    # folded BN bias  for fc1's BatchNorm1d(ic)
    b12 = vec[2:3, :rc]     # fc1.bias + fc2.bias
    w3 = vec[3:4, :rc]      # fc3 weight
    b3 = vec[4:5, 0:1]      # fc3 bias
    bc = vec[5:6, :pc]      # IA conv1 bias with BN folded in
    bf = vec[6:7, :oc]      # fusion conv bias with BN folded in

    # ---- IA_Layer attention branch -----------------------------------------
    # fc1 = BN(ic) -> ReLU -> Linear(ic, rc)   (BN affine + ReLU in f32)
    h = jnp.maximum(img * s_fc + t_fc, 0.0)
    ri = jnp.dot(h.astype(wdt), w1_ref[...], preferred_element_type=jnp.float32)
    # fc2 = Linear(pc, rc)
    rp = jnp.dot(pts_m, w2_ref[...], preferred_element_type=jnp.float32)
    t = jnp.tanh(ri + rp + b12)
    # fc3 = Linear(rc, 1) -> sigmoid attention (one scalar per point).
    # Lane-reduce (XLU) instead of a degenerate N=1 matmul.
    logit = jnp.sum(t * w3, axis=-1, keepdims=True) + b3
    att = jax.nn.sigmoid(logit)                                   # (TN, 1)

    # ---- IA_Layer image transform: Conv1d(ic, pc, 1) + BN + ReLU -----------
    y = jnp.dot(img_m, wc_ref[...], preferred_element_type=jnp.float32) + bc
    out_ia = jnp.maximum(y, 0.0) * att                            # (TN, PC) f32

    # ---- Fusion: Conv1d(2*pc, oc, 1) + BN + ReLU ----------------------------
    # Two accumulating dots against static sublane slices of Wf -- identical
    # MXU work to the K=2*pc contraction, but no lane-concat temp.
    fused = (
        jnp.dot(pts_m, wf_ref[pl.ds(0, pc), :], preferred_element_type=jnp.float32)
        + jnp.dot(out_ia.astype(wdt), wf_ref[pl.ds(pc, pc), :],
                  preferred_element_type=jnp.float32)
        + bf
    )
    out_ref[...] = jnp.maximum(fused, 0.0).astype(out_ref.dtype)


# ----------------------------------------------------------------------------
# Wrapper: parameter folding (glue) + pallas_call
# ----------------------------------------------------------------------------
def atten_fusion_conv(img_feats, point_feats, p, *, tn=2048, mxu_dtype=None):
    """img_feats: [N, IC]; point_feats: [N, PC]; returns [N, OC].

    Output dtype follows the input dtype (bf16 in -> bf16 out); all VPU/EUP
    arithmetic is f32.  MXU operands default to bf16 when the inputs are bf16
    (bf16-native MXU on v6e/v7x) and f32 otherwise.
    """
    N, ic = img_feats.shape
    _, pc = point_feats.shape
    oc = p["bf"].shape[0]
    rc = p["W1"].shape[1]
    eps = 1e-5
    out_dtype = img_feats.dtype
    if mxu_dtype is None:
        mxu_dtype = jnp.bfloat16 if out_dtype == jnp.bfloat16 else jnp.float32

    # ---- Fold BN (eval mode) into affine / adjacent conv weights ------------
    s_fc = p["bn_fc_g"] / jnp.sqrt(p["bn_fc_rv"] + eps)
    t_fc = p["bn_fc_b"] - p["bn_fc_rm"] * s_fc

    b12 = p["b1"] + p["b2"]

    s_c = p["bnc_g"] / jnp.sqrt(p["bnc_rv"] + eps)
    t_c = p["bnc_b"] - p["bnc_rm"] * s_c
    wc_f = (p["Wc"] * s_c[None, :]).astype(mxu_dtype)
    bc_f = p["bc"] * s_c + t_c

    s_f = p["bnf_g"] / jnp.sqrt(p["bnf_rv"] + eps)
    t_f = p["bnf_b"] - p["bnf_rm"] * s_f
    wf_f = (p["Wf"] * s_f[None, :]).astype(mxu_dtype)   # whole (2*pc, oc), BN folded
    bf_f = p["bf"] * s_f + t_f

    w1 = p["W1"].astype(mxu_dtype)
    w2 = p["W2"].astype(mxu_dtype)

    # Pack the 7 per-channel row vectors into one lane-aligned f32 slab so
    # they travel as a single DMA instead of 7 tiny ones.
    maxc = _round_up(max(ic, pc, oc, rc, 1), 128)
    slab = jnp.zeros((8, maxc), jnp.float32)
    slab = slab.at[0, :ic].set(s_fc)
    slab = slab.at[1, :ic].set(t_fc)
    slab = slab.at[2, :rc].set(b12)
    slab = slab.at[3, :rc].set(p["w3"])
    slab = slab.at[4, 0].set(p["b3"][0])
    slab = slab.at[5, :pc].set(bc_f)
    slab = slab.at[6, :oc].set(bf_f)

    # ---- Tile selection ------------------------------------------------------
    # Multiple of 8, shrunk for small N.  No input padding / output slicing:
    # the ragged last tile is handled by Pallas (row-wise math, OOB rows of
    # the output block are not committed).
    tn_eff = min(_round_up(tn, 8), _round_up(N, 8))
    num_tiles = pl.cdiv(N, tn_eff)
    if num_tiles > 1 and num_tiles % 2 == 1:
        # v7x megacore: prefer an even tile count so both TensorCores get
        # balanced work (no-op on single-TC v5e/v6e).
        num_tiles += 1
        tn_eff = _round_up(pl.cdiv(N, num_tiles), 8)
        num_tiles = pl.cdiv(N, tn_eff)

    # ---- Scoped-VMEM budget (lane-padded, double-buffered estimate) ---------
    it_in = jnp.dtype(out_dtype).itemsize
    it_w = jnp.dtype(mxu_dtype).itemsize
    act_bytes = 2 * tn_eff * 128 * it_in * 3                       # img + pts + out tiles
    wgt_bytes = 2 * (ic + pc + ic + 2 * pc) * 128 * it_w           # W1, W2, Wc, Wf
    slab_bytes = 2 * 8 * maxc * 4
    vmem_est = act_bytes + wgt_bytes + slab_bytes
    # 2x headroom + 4 MiB; floor at the v6e/v7x default (32 MiB).  For very
    # large tn on v5e/v6e this can exceed v7x's 64 MiB physical VMEM -- shrink
    # tn there instead.
    vmem_limit = int(max(vmem_est * 2 + (4 << 20), 32 << 20))

    const2d = lambda a, b: pl.BlockSpec((a, b), lambda i: (0, 0))

    grid_spec = pltpu.PrefetchScalarGridSpec(
        num_scalar_prefetch=0,
        grid=(num_tiles,),
        in_specs=[
            pl.BlockSpec((tn_eff, ic), lambda i: (i, 0)),   # img
            pl.BlockSpec((tn_eff, pc), lambda i: (i, 0)),   # pts
            const2d(8, maxc),                               # packed row params
            const2d(ic, rc),                                # W1
            const2d(pc, rc),                                # W2
            const2d(ic, pc),                                # Wc folded
            const2d(2 * pc, oc),                            # Wf folded (whole)
        ],
        out_specs=pl.BlockSpec((tn_eff, oc), lambda i: (i, 0)),
    )

    return pl.pallas_call(
        functools.partial(atten_fusion_kernel, ic=ic, pc=pc, rc=rc, oc=oc),
        out_shape=jax.ShapeDtypeStruct((N, oc), out_dtype),
        grid_spec=grid_spec,
        compiler_params=pltpu.CompilerParams(
            # Independent point tiles: shardable across v7x's two TensorCores.
            dimension_semantics=("parallel",),
            vmem_limit_bytes=vmem_limit,
        ),
    )(
        img_feats,
        point_feats,
        slab,
        w1,
        w2,
        wc_f,
        wf_f,
    )


# ----------------------------------------------------------------------------
# Pure-JAX reference (unfolded), mirrors the PyTorch forward in eval mode.
# ----------------------------------------------------------------------------
def reference(img, pts, p):
    eps = 1e-5
    bn = lambda x, g, b, rm, rv: (x - rm) / jnp.sqrt(rv + eps) * g + b
    # IA_Layer
    h = jnp.maximum(bn(img, p["bn_fc_g"], p["bn_fc_b"], p["bn_fc_rm"], p["bn_fc_rv"]), 0.0)
    ri = h @ p["W1"] + p["b1"]
    rp = pts @ p["W2"] + p["b2"]
    att = jax.nn.sigmoid(jnp.tanh(ri + rp) @ p["w3"][:, None] + p["b3"])      # [N,1]
    y = img @ p["Wc"] + p["bc"]
    y = jnp.maximum(bn(y, p["bnc_g"], p["bnc_b"], p["bnc_rm"], p["bnc_rv"]), 0.0)
    out_ia = y * att
    # Fusion conv + BN + ReLU
    fused = jnp.concatenate([pts, out_ia], axis=-1) @ p["Wf"] + p["bf"]
    fused = bn(fused, p["bnf_g"], p["bnf_b"], p["bnf_rm"], p["bnf_rv"])
    return jnp.maximum(fused, 0.0)


# ----------------------------------------------------------------------------
def init_params(key, ic, pc, oc):
    rc = pc // 4
    ks = jax.random.split(key, 16)
    u = lambda k, shape, s=0.1: jax.random.uniform(k, shape, jnp.float32, -s, s)
    return {
        # fc1: BN(ic) -> ReLU -> Linear(ic, rc)
        "bn_fc_g": 1.0 + u(ks[0], (ic,)),
        "bn_fc_b": u(ks[1], (ic,)),
        "bn_fc_rm": u(ks[2], (ic,)),
        "bn_fc_rv": 1.0 + jax.random.uniform(ks[3], (ic,), jnp.float32, 0.0, 0.5),
        "W1": u(ks[4], (ic, rc)),
        "b1": u(ks[5], (rc,)),
        # fc2 / fc3
        "W2": u(ks[6], (pc, rc)),
        "b2": u(ks[7], (rc,)),
        "w3": u(ks[8], (rc,)),
        "b3": u(ks[9], (1,)),
        # IA conv1: Conv1d(ic, pc, 1) + BN(pc) + ReLU
        "Wc": u(ks[10], (ic, pc)),
        "bc": u(ks[11], (pc,)),
        "bnc_g": 1.0 + u(ks[12], (pc,)),
        "bnc_b": u(ks[13], (pc,)),
        "bnc_rm": u(ks[14], (pc,)),
        "bnc_rv": 1.0 + jax.random.uniform(ks[15], (pc,), jnp.float32, 0.0, 0.5),
        # fusion conv1: Conv1d(2*pc, oc, 1) + BN(oc)
        "Wf": u(jax.random.fold_in(key, 100), (2 * pc, oc)),
        "bf": u(jax.random.fold_in(key, 101), (oc,)),
        "bnf_g": 1.0 + u(jax.random.fold_in(key, 102), (oc,)),
        "bnf_b": u(jax.random.fold_in(key, 103), (oc,)),
        "bnf_rm": u(jax.random.fold_in(key, 104), (oc,)),
        "bnf_rv": 1.0 + jax.random.uniform(jax.random.fold_in(key, 105), (oc,), jnp.float32, 0.0, 0.5),
    }


if __name__ == "__main__":
    # Small, module-consistent shapes:
    #   inplanes_I (ic) = 32, inplanes_P (pc) = 64, outplanes = 64.
    # N = 1200 points.
    N, IC, PC, OC = 1200, 32, 64, 64

    key = jax.random.PRNGKey(0)
    k_img, k_pts, k_par = jax.random.split(key, 3)

    img_feats = jax.random.normal(k_img, (N, IC), jnp.float32)    # [N, C_img]
    point_feats = jax.random.normal(k_pts, (N, PC), jnp.float32)  # [N, C_pt]
    params = init_params(k_par, IC, PC, OC)
    ref = reference(img_feats, point_feats, params)

    # ---- f32 I/O, default (large) tile: single-tile grid ---------------------
    out = atten_fusion_conv(img_feats, point_feats, params)
    out = jax.block_until_ready(out)
    assert out.shape == (N, OC), out.shape
    assert jnp.allclose(out, ref, rtol=1e-4, atol=1e-4), float(jnp.max(jnp.abs(out - ref)))

    # ---- f32 I/O, small tile: multi-tile grid, even-tile heuristic, ragged
    # last block (no input pad / output slice anywhere) -----------------------
    out_mt = atten_fusion_conv(img_feats, point_feats, params, tn=512)
    out_mt = jax.block_until_ready(out_mt)
    assert out_mt.shape == (N, OC), out_mt.shape
    assert jnp.allclose(out_mt, ref, rtol=1e-4, atol=1e-4), float(jnp.max(jnp.abs(out_mt - ref)))

    # ---- bf16 I/O (halves HBM traffic; bf16 MXU operands, f32 VPU/EUP math) --
    img_bf = img_feats.astype(jnp.bfloat16)
    pts_bf = point_feats.astype(jnp.bfloat16)
    out_bf = atten_fusion_conv(img_bf, pts_bf, params)
    out_bf = jax.block_until_ready(out_bf)
    ref_bf = reference(img_bf.astype(jnp.float32), pts_bf.astype(jnp.float32), params)
    assert out_bf.dtype == jnp.bfloat16
    assert out_bf.shape == (N, OC), out_bf.shape
    assert jnp.allclose(out_bf.astype(jnp.float32), ref_bf, rtol=3e-2, atol=3e-2), (
        float(jnp.max(jnp.abs(out_bf.astype(jnp.float32) - ref_bf))))

    print("KERNEL_OK")
</pallas_src>

<mosaic_0001>
module attributes {stable_mosaic.version = 11 : i64} {
  func.func @atten_fusion_kernel(%arg0: i32, %arg1: memref<1200x32xf32, #tpu.memory_space<vmem>>, %arg2: memref<1200x64xf32, #tpu.memory_space<vmem>>, %arg3: memref<8x128xf32, #tpu.memory_space<vmem>>, %arg4: memref<32x16xf32, #tpu.memory_space<vmem>>, %arg5: memref<64x16xf32, #tpu.memory_space<vmem>>, %arg6: memref<32x64xf32, #tpu.memory_space<vmem>>, %arg7: memref<128x64xf32, #tpu.memory_space<vmem>>, %arg8: memref<1200x64xf32, #tpu.memory_space<vmem>>) attributes {dimension_semantics = [#tpu.dimension_semantics<parallel>], iteration_bounds = array<i64: 1>, scalar_prefetch = 0 : i64, scratch_operands = 0 : i64, tpu.core_type = #tpu.core_type<tc>, window_params = [{transform_indices = @transform_0, window_bounds = array<i64: 1200, 32>}, {transform_indices = @transform_1, window_bounds = array<i64: 1200, 64>}, {pipeline_mode = #tpu.pipeline_mode<synchronous>, transform_indices = @transform_2, window_bounds = array<i64: 8, 128>}, {pipeline_mode = #tpu.pipeline_mode<synchronous>, transform_indices = @transform_3, window_bounds = array<i64: 32, 16>}, {pipeline_mode = #tpu.pipeline_mode<synchronous>, transform_indices = @transform_4, window_bounds = array<i64: 64, 16>}, {pipeline_mode = #tpu.pipeline_mode<synchronous>, transform_indices = @transform_5, window_bounds = array<i64: 32, 64>}, {pipeline_mode = #tpu.pipeline_mode<synchronous>, transform_indices = @transform_6, window_bounds = array<i64: 128, 64>}, {transform_indices = @transform_7, window_bounds = array<i64: 1200, 64>}]} {
    %c0 = arith.constant 0 : index
    %c0_0 = arith.constant 0 : index
    %0 = vector.load %arg1[%c0, %c0_0] : memref<1200x32xf32, #tpu.memory_space<vmem>>, vector<1200x32xf32>
    %c0_1 = arith.constant 0 : index
    %c0_2 = arith.constant 0 : index
    %1 = vector.load %arg2[%c0_1, %c0_2] : memref<1200x64xf32, #tpu.memory_space<vmem>>, vector<1200x64xf32>
    %c0_3 = arith.constant 0 : index
    %c0_4 = arith.constant 0 : index
    %2 = vector.load %arg3[%c0_3, %c0_4] : memref<8x128xf32, #tpu.memory_space<vmem>>, vector<8x128xf32>
    %3 = vector.extract_strided_slice %2 {offsets = [0, 0], sizes = [1, 32], strides = [1, 1]} : vector<8x128xf32> to vector<1x32xf32>
    %4 = vector.extract_strided_slice %2 {offsets = [1, 0], sizes = [1, 32], strides = [1, 1]} : vector<8x128xf32> to vector<1x32xf32>
    %5 = vector.extract_strided_slice %2 {offsets = [2, 0], sizes = [1, 16], strides = [1, 1]} : vector<8x128xf32> to vector<1x16xf32>
    %6 = vector.extract_strided_slice %2 {offsets = [3, 0], sizes = [1, 16], strides = [1, 1]} : vector<8x128xf32> to vector<1x16xf32>
    %7 = vector.extract_strided_slice %2 {offsets = [4, 0], sizes = [1, 1], strides = [1, 1]} : vector<8x128xf32> to vector<1x1xf32>
    %8 = vector.extract_strided_slice %2 {offsets = [5, 0], sizes = [1, 64], strides = [1, 1]} : vector<8x128xf32> to vector<1x64xf32>
    %9 = vector.extract_strided_slice %2 {offsets = [6, 0], sizes = [1, 64], strides = [1, 1]} : vector<8x128xf32> to vector<1x64xf32>
    %10 = vector.broadcast %3 : vector<1x32xf32> to vector<1200x32xf32>
    %11 = arith.mulf %0, %10 : vector<1200x32xf32>
    %12 = vector.broadcast %4 : vector<1x32xf32> to vector<1200x32xf32>
    %13 = arith.addf %11, %12 : vector<1200x32xf32>
    %cst = arith.constant 0.000000e+00 : f32
    %14 = vector.broadcast %cst : f32 to vector<1200x32xf32>
    %15 = arith.maximumf %13, %14 : vector<1200x32xf32>
    %c0_5 = arith.constant 0 : index
    %c0_6 = arith.constant 0 : index
    %16 = vector.load %arg4[%c0_5, %c0_6] : memref<32x16xf32, #tpu.memory_space<vmem>>, vector<32x16xf32>
    %cst_7 = arith.constant dense<0.000000e+00> : vector<1200x16xf32>
    %17 = tpu.matmul %15, %16, %cst_7 {dimension_numbers = #tpu.dot_dimension_numbers<[1], [0], [0], [1], [0, 0, 1, 1], [], []>} : vector<1200x32xf32>, vector<32x16xf32>, vector<1200x16xf32> -> vector<1200x16xf32>
    %c0_8 = arith.constant 0 : index
    %c0_9 = arith.constant 0 : index
    %18 = vector.load %arg5[%c0_8, %c0_9] : memref<64x16xf32, #tpu.memory_space<vmem>>, vector<64x16xf32>
    %cst_10 = arith.constant dense<0.000000e+00> : vector<1200x16xf32>
    %19 = tpu.matmul %1, %18, %cst_10 {dimension_numbers = #tpu.dot_dimension_numbers<[1], [0], [0], [1], [0, 0, 1, 1], [], []>} : vector<1200x64xf32>, vector<64x16xf32>, vector<1200x16xf32> -> vector<1200x16xf32>
    %20 = arith.addf %17, %19 : vector<1200x16xf32>
    %21 = vector.broadcast %5 : vector<1x16xf32> to vector<1200x16xf32>
    %22 = arith.addf %20, %21 : vector<1200x16xf32>
    %23 = math.tanh %22 : vector<1200x16xf32>
    %24 = vector.broadcast %6 : vector<1x16xf32> to vector<1200x16xf32>
    %25 = arith.mulf %23, %24 : vector<1200x16xf32>
    %cst_11 = arith.constant dense<0.000000e+00> : vector<1200xf32>
    %26 = vector.multi_reduction <add>, %25, %cst_11 [1] : vector<1200x16xf32> to vector<1200xf32>
    %27 = vector.shape_cast %26 : vector<1200xf32> to vector<1200x1xf32>
    %28 = vector.broadcast %7 : vector<1x1xf32> to vector<1200x1xf32>
    %29 = arith.addf %27, %28 : vector<1200x1xf32>
    %30 = arith.negf %29 : vector<1200x1xf32>
    %31 = math.exp %30 : vector<1200x1xf32>
    %cst_12 = arith.constant 1.000000e+00 : f32
    %32 = vector.broadcast %cst_12 : f32 to vector<1200x1xf32>
    %33 = arith.addf %32, %31 : vector<1200x1xf32>
    %34 = arith.divf %32, %33 : vector<1200x1xf32>
    %c0_13 = arith.constant 0 : index
    %c0_14 = arith.constant 0 : index
    %35 = vector.load %arg6[%c0_13, %c0_14] : memref<32x64xf32, #tpu.memory_space<vmem>>, vector<32x64xf32>
    %cst_15 = arith.constant dense<0.000000e+00> : vector<1200x64xf32>
    %36 = tpu.matmul %0, %35, %cst_15 {dimension_numbers = #tpu.dot_dimension_numbers<[1], [0], [0], [1], [0, 0, 1, 1], [], []>} : vector<1200x32xf32>, vector<32x64xf32>, vector<1200x64xf32> -> vector<1200x64xf32>
    %37 = vector.broadcast %8 : vector<1x64xf32> to vector<1200x64xf32>
    %38 = arith.addf %36, %37 : vector<1200x64xf32>
    %cst_16 = arith.constant 0.000000e+00 : f32
    %39 = vector.broadcast %cst_16 : f32 to vector<1200x64xf32>
    %40 = arith.maximumf %38, %39 : vector<1200x64xf32>
    %41 = vector.broadcast %34 : vector<1200x1xf32> to vector<1200x64xf32>
    %42 = arith.mulf %40, %41 : vector<1200x64xf32>
    %c0_17 = arith.constant 0 : index
    %c0_18 = arith.constant 0 : index
    %43 = vector.load %arg7[%c0_17, %c0_18] : memref<128x64xf32, #tpu.memory_space<vmem>>, vector<64x64xf32>
    %cst_19 = arith.constant dense<0.000000e+00> : vector<1200x64xf32>
    %44 = tpu.matmul %1, %43, %cst_19 {dimension_numbers = #tpu.dot_dimension_numbers<[1], [0], [0], [1], [0, 0, 1, 1], [], []>} : vector<1200x64xf32>, vector<64x64xf32>, vector<1200x64xf32> -> vector<1200x64xf32>
    %c64 = arith.constant 64 : index
    %c0_20 = arith.constant 0 : index
    %45 = vector.load %arg7[%c64, %c0_20] : memref<128x64xf32, #tpu.memory_space<vmem>>, vector<64x64xf32>
    %cst_21 = arith.constant dense<0.000000e+00> : vector<1200x64xf32>
    %46 = tpu.matmul %42, %45, %cst_21 {dimension_numbers = #tpu.dot_dimension_numbers<[1], [0], [0], [1], [0, 0, 1, 1], [], []>} : vector<1200x64xf32>, vector<64x64xf32>, vector<1200x64xf32> -> vector<1200x64xf32>
    %47 = arith.addf %44, %46 : vector<1200x64xf32>
    %48 = vector.broadcast %9 : vector<1x64xf32> to vector<1200x64xf32>
    %49 = arith.addf %47, %48 : vector<1200x64xf32>
    %cst_22 = arith.constant 0.000000e+00 : f32
    %50 = vector.broadcast %cst_22 : f32 to vector<1200x64xf32>
    %51 = arith.maximumf %49, %50 : vector<1200x64xf32>
    %c0_23 = arith.constant 0 : index
    %c0_24 = arith.constant 0 : index
    %52 = vector.load %arg8[%c0_23, %c0_24] : memref<1200x64xf32, #tpu.memory_space<vmem>>, vector<1200x64xf32>
    tpu.vector_store %arg8[%c0_23, %c0_24], %51 {strides = array<i32>} : memref<1200x64xf32, #tpu.memory_space<vmem>>, vector<1200x64xf32>,
    return
  }
  func.func @transform_0(%arg0: i32) -> (i32, i32) {
    %c0_i32 = arith.constant 0 : i32
    %c0_i32_0 = arith.constant 0 : i32
    return %arg0, %c0_i32 : i32, i32
  }
  func.func @transform_1(%arg0: i32) -> (i32, i32) {
    %c0_i32 = arith.constant 0 : i32
    %c0_i32_0 = arith.constant 0 : i32
    return %arg0, %c0_i32 : i32, i32
  }
  func.func @transform_2(%arg0: i32) -> (i32, i32) {
    %c0_i32 = arith.constant 0 : i32
    %c0_i32_0 = arith.constant 0 : i32
    %c0_i32_1 = arith.constant 0 : i32
    return %c0_i32, %c0_i32_0 : i32, i32
  }
  func.func @transform_3(%arg0: i32) -> (i32, i32) {
    %c0_i32 = arith.constant 0 : i32
    %c0_i32_0 = arith.constant 0 : i32
    %c0_i32_1 = arith.constant 0 : i32
    return %c0_i32, %c0_i32_0 : i32, i32
  }
  func.func @transform_4(%arg0: i32) -> (i32, i32) {
    %c0_i32 = arith.constant 0 : i32
    %c0_i32_0 = arith.constant 0 : i32
    %c0_i32_1 = arith.constant 0 : i32
    return %c0_i32, %c0_i32_0 : i32, i32
  }
  func.func @transform_5(%arg0: i32) -> (i32, i32) {
    %c0_i32 = arith.constant 0 : i32
    %c0_i32_0 = arith.constant 0 : i32
    %c0_i32_1 = arith.constant 0 : i32
    return %c0_i32, %c0_i32_0 : i32, i32
  }
  func.func @transform_6(%arg0: i32) -> (i32, i32) {
    %c0_i32 = arith.constant 0 : i32
    %c0_i32_0 = arith.constant 0 : i32
    %c0_i32_1 = arith.constant 0 : i32
    return %c0_i32, %c0_i32_0 : i32, i32
  }
  func.func @transform_7(%arg0: i32) -> (i32, i32) {
    %c0_i32 = arith.constant 0 : i32
    %c0_i32_0 = arith.constant 0 : i32
    return %arg0, %c0_i32 : i32, i32
  }
}

</mosaic_0001>

<bundles_post_ra>
// kernel: tpu_custom_call.1
= control target key start
LH: loop header
LB: loop body
LE: loop exit
PB: predicated region body
PF: predicated region fallthrough
CT: control target
= control target key end

     0   :  { %vm797_vm0 = vcmask 523264   ;;  %vm2063_vm1 = vcmask 261120   ;;  %vm3787_vm2 = vcmask 130048   ;;  %s20262_s4 = inlined_call_operand.vmem [shape: f32[64,16], index: 4, kind: input, shape index: {}]   ;;  %s20263_s1 = inlined_call_operand.vmem [shape: f32[1200,64], index: 1, kind: input, shape index: {}]   ;;  %s20264_s3 = inlined_call_operand.vmem [shape: f32[32,16], index: 3, kind: input, shape index: {}]   ;;  %s20265_s2 = inlined_call_operand.vmem [shape: f32[8,128], index: 2, kind: input, shape index: {}]   ;;  %s20266_s0 = inlined_call_operand.vmem [shape: f32[1200,32], index: 0, kind: input, shape index: {}]   ;;  %s20267_s5 = inlined_call_operand.vmem [shape: f32[32,64], index: 5, kind: input, shape index: {}]   ;;  %s20268_s6 = inlined_call_operand.vmem [shape: f32[128,64], index: 6, kind: input, shape index: {}]   ;;  %s20269_s7 = inlined_call_operand.vmem [shape: f32[1200,64], index: 7, kind: output, shape index: {}]  }
   0x1   :  { %v789_v0 = vld [vmem:[%s20262_s4] sm:$0xff]  ;;  %v790_v1 = vld [vmem:[%s20262_s4 + $0x8] sm:$0xff]  ;;  %v791_v2 = vld [vmem:[%s20262_s4 + $0x10] sm:$0xff] }
   0x2   :  { %v13040_v3 = vpack.c.bf16 %v790_v1, %v789_v0  ;;  %v792_v4 = vld [vmem:[%s20262_s4 + $0x18] sm:$0xff]  ;;  %v793_v6 = vld [vmem:[%s20262_s4 + $0x20] sm:$0xff]  ;;  %v794_v7 = vld [vmem:[%s20262_s4 + $0x28] sm:$0xff] }
   0x3   :  { %v13044_v5 = vpack.c.bf16 %v792_v4, %v791_v2  ;;  %v176_v8 = vld [vmem:[%s20263_s1] sm:$0xff]  ;;  %v13048_v9 = vpack.c.bf16 %v794_v7, %v793_v6  ;;  %v795_v10 = vld [vmem:[%s20262_s4 + $0x30] sm:$0xff]  ;;  %v796_v11 = vld [vmem:[%s20262_s4 + $0x38] sm:$0xff] }
   0x4   :  { %13041 = vmatprep.subr.bf16.mxu0 %v13040_v3  ;;  %11867 = vmatprep.mubr.msk.f32.mxu0 %vm797_vm0, %v176_v8  ;;  %v13052_v12 = vpack.c.bf16 %v796_v11, %v795_v10  ;;  %v785_v13 = vld [vmem:[%s20264_s3] sm:$0xff]  ;;  %v786_v14 = vld [vmem:[%s20264_s3 + $0x8] sm:$0xff]  ;;  %v178_v17 = vld [vmem:[%s20263_s1 + $0x10] sm:$0xff] }
   0x5   :  { %13043 = vmatpush3.bf16.msra.mxu0 %v13040_v3  ;;  %v13056_v15 = vpack.c.bf16 %v786_v14, %v785_v13  ;;  %v177_v16 = vld [vmem:[%s20263_s1 + $0x8] sm:$0xff]  ;;  %v179_v18 = vld [vmem:[%s20263_s1 + $0x18] sm:$0xff]  ;;  %v180_v19 = vld [vmem:[%s20263_s1 + $0x20] sm:$0xff] }
   0x6   :  { %13045 = vmatprep.subr.bf16.mxu0 %v13044_v5  ;;  %v181_v20 = vld [vmem:[%s20263_s1 + $0x28] sm:$0xff]  ;;  %v182_v21 = vld [vmem:[%s20263_s1 + $0x30] sm:$0xff]  ;;  %v183_v22 = vld [vmem:[%s20263_s1 + $0x38] sm:$0xff] }
   0x7   :  { %v184_v23 = vld [vmem:[%s20263_s1 + $0x40] sm:$0xff]  ;;  %v185_v24 = vld [vmem:[%s20263_s1 + $0x48] sm:$0xff]  ;;  %v186_v25 = vld [vmem:[%s20263_s1 + $0x50] sm:$0xff] }
   0x8   :  { %v187_v26 = vld [vmem:[%s20263_s1 + $0x58] sm:$0xff]  ;;  %v188_v27 = vld [vmem:[%s20263_s1 + $0x60] sm:$0xff]  ;;  %v787_v28 = vld [vmem:[%s20264_s3 + $0x10] sm:$0xff] }
   0x9   :  { %13047 = vmatpush3.bf16.msra.mxu0 %v13044_v5  ;;  %v788_v29 = vld [vmem:[%s20264_s3 + $0x18] sm:$0xff]  ;;  %v189_v30 = vld [vmem:[%s20263_s1 + $0x68] sm:$0xff]  ;;  %v190_v32 = vld [vmem:[%s20263_s1 + $0x70] sm:$0xff] }
   0xa   :  { %13049 = vmatprep.subr.bf16.mxu0 %v13048_v9  ;;  %v13060_v31 = vpack.c.bf16 %v788_v29, %v787_v28  ;;  %v191_v33 = vld [vmem:[%s20263_s1 + $0x78] sm:$0xff]  ;;  %v192_v34 = vld [vmem:[%s20263_s1 + $0x80] sm:$0xff]  ;;  %v193_v35 = vld [vmem:[%s20263_s1 + $0x88] sm:$0xff] }
   0xb   :  { %v194_v36 = vld [vmem:[%s20263_s1 + $0x90] sm:$0xff]  ;;  %v195_v37 = vld [vmem:[%s20263_s1 + $0x98] sm:$0xff]  ;;  %v196_v38 = vld [vmem:[%s20263_s1 + $0xa0] sm:$0xff] }
   0xc   :  { %v197_v39 = vld [vmem:[%s20263_s1 + $0xa8] sm:$0xff]  ;;  %v198_v40 = vld [vmem:[%s20263_s1 + $0xb0] sm:$0xff]  ;;  %v199_v41 = vld [vmem:[%s20263_s1 + $0xb8] sm:$0xff] }
   0xd   :  { %13051 = vmatpush3.bf16.msra.mxu0 %v13048_v9  ;;  %v200_v42 = vld [vmem:[%s20263_s1 + $0xc0] sm:$0xff]  ;;  %v201_v43 = vld [vmem:[%s20263_s1 + $0xc8] sm:$0xff]  ;;  %v202_v44 = vld [vmem:[%s20263_s1 + $0xd0] sm:$0xff] }
   0xe   :  { %13053 = vmatprep.subr.bf16.mxu0 %v13052_v12  ;;  %v203_v45 = vld [vmem:[%s20263_s1 + $0xd8] sm:$0xff]  ;;  %v204_v46 = vld [vmem:[%s20263_s1 + $0xe0] sm:$0xff]  ;;  %v205_v47 = vld [vmem:[%s20263_s1 + $0xe8] sm:$0xff] }
   0xf   :  { %v206_v48 = vld [vmem:[%s20263_s1 + $0xf0] sm:$0xff]  ;;  %v207_v49 = vld [vmem:[%s20263_s1 + $0xf8] sm:$0xff]  ;;  %v208_v50 = vld [vmem:[%s20263_s1 + $0x100] sm:$0xff] }
  0x10   :  { %v209_v51 = vld [vmem:[%s20263_s1 + $0x108] sm:$0xff]  ;;  %v210_v52 = vld [vmem:[%s20263_s1 + $0x110] sm:$0xff]  ;;  %v211_v53 = vld [vmem:[%s20263_s1 + $0x118] sm:$0xff] }
  0x11   :  { %13055 = vmatpush3.bf16.msra.mxu0 %v13052_v12  ;;  %v212_v54 = vld [vmem:[%s20263_s1 + $0x120] sm:$0xff]  ;;  %v213_v55 = vld [vmem:[%s20263_s1 + $0x128] sm:$0xff]  ;;  %v214_v56 = vld [vmem:[%s20263_s1 + $0x130] sm:$0xff] }
  0x12   :  { %13057 = vmatprep.subr.bf16.mxu0 %v13056_v15  ;;  %v215_v57 = vld [vmem:[%s20263_s1 + $0x138] sm:$0xff]  ;;  %v216_v58 = vld [vmem:[%s20263_s1 + $0x140] sm:$0xff]  ;;  %v217_v59 = vld [vmem:[%s20263_s1 + $0x148] sm:$0xff] }
  0x13   :  { %v218_v60 = vld [vmem:[%s20263_s1 + $0x150] sm:$0xff]  ;;  %v219_v61 = vld [vmem:[%s20263_s1 + $0x158] sm:$0xff]  ;;  %v220_v62 = vld [vmem:[%s20263_s1 + $0x160] sm:$0xff] }
  0x14   :  { %11868 = vmatmul.mubr.msk.f32.vlgmr.msra.gmra.mrb[0].mxu0 %vm797_vm0, %v177_v16  ;;  %v221_v63 = vld [vmem:[%s20263_s1 + $0x168] sm:$0xff]  ;;  %v222_v0 = vld [vmem:[%s20263_s1 + $0x170] sm:$0xff]  ;;  %v223_v1 = vld [vmem:[%s20263_s1 + $0x178] sm:$0xff] }
  0x15   :  { %13059 = vmatpush3.bf16.msra.mxu0 %v13056_v15  ;;  %11870 = vmatprep.mubr.msk.f32.mxu0 %vm797_vm0, %v178_v17  ;;  %v224_v2 = vld [vmem:[%s20263_s1 + $0x180] sm:$0xff]  ;;  %v225_v3 = vld [vmem:[%s20263_s1 + $0x188] sm:$0xff]  ;;  %v226_v4 = vld [vmem:[%s20263_s1 + $0x190] sm:$0xff] }
  0x16   :  { %13061 = vmatprep.subr.bf16.mxu0 %v13060_v31  ;;  %v227_v5 = vld [vmem:[%s20263_s1 + $0x198] sm:$0xff]  ;;  %v228_v6 = vld [vmem:[%s20263_s1 + $0x1a0] sm:$0xff]  ;;  %v229_v7 = vld [vmem:[%s20263_s1 + $0x1a8] sm:$0xff] }
  0x17   :  { %v230_v8 = vld [vmem:[%s20263_s1 + $0x1b0] sm:$0xff]  ;;  %v231_v9 = vld [vmem:[%s20263_s1 + $0x1b8] sm:$0xff]  ;;  %v232_v10 = vld [vmem:[%s20263_s1 + $0x1c0] sm:$0xff] }
  0x18   :  { %11871 = vmatmul.mubr.msk.f32.gmra.mrb[2].mxu0 %vm797_vm0, %v179_v18  ;;  %v233_v11 = vld [vmem:[%s20263_s1 + $0x1c8] sm:$0xff]  ;;  %v234_v12 = vld [vmem:[%s20263_s1 + $0x1d0] sm:$0xff]  ;;  %v235_v13 = vld [vmem:[%s20263_s1 + $0x1d8] sm:$0xff] }
  0x19   :  { %11873 = vmatprep.mubr.msk.f32.mxu0 %vm797_vm0, %v180_v19  ;;  %13063 = vmatpush3.bf16.msra.mxu0 %v13060_v31  ;;  %v236_v14 = vld [vmem:[%s20263_s1 + $0x1e0] sm:$0xff]  ;;  %v237_v15 = vld [vmem:[%s20263_s1 + $0x1e8] sm:$0xff]  ;;  %v238_v16 = vld [vmem:[%s20263_s1 + $0x1f0] sm:$0xff] }
  0x1a   :  { %v239_v17 = vld [vmem:[%s20263_s1 + $0x1f8] sm:$0xff]  ;;  %v240_v18 = vld [vmem:[%s20263_s1 + $0x200] sm:$0xff]  ;;  %v241_v19 = vld [vmem:[%s20263_s1 + $0x208] sm:$0xff] }
  0x1b   :  { %v250_v28 = vld [vmem:[%s20263_s1 + $0x250] sm:$0xff]  ;;  %v251_v29 = vld [vmem:[%s20263_s1 + $0x258] sm:$0xff]  ;;  %v253_v31 = vld [vmem:[%s20263_s1 + $0x268] sm:$0xff] }
  0x1c   :  { %11874 = vmatmul.mubr.msk.f32.gmra.mrb[4].mxu0 %vm797_vm0, %v181_v20  ;;  %v242_v20 = vld [vmem:[%s20263_s1 + $0x210] sm:$0xff] }
  0x1d   :  { %11876 = vmatprep.mubr.msk.f32.mxu0 %vm797_vm0, %v182_v21  ;;  %v243_v21 = vld [vmem:[%s20263_s1 + $0x218] sm:$0xff] }
  0x20   :  { %11877 = vmatmul.mubr.msk.f32.gmra.mrb[6].mxu0 %vm797_vm0, %v183_v22  ;;  %v244_v22 = vld [vmem:[%s20263_s1 + $0x220] sm:$0xff] }
  0x21   :  { %11879 = vmatprep.mubr.msk.f32.mxu0 %vm797_vm0, %v184_v23  ;;  %v245_v23 = vld [vmem:[%s20263_s1 + $0x228] sm:$0xff] }
  0x24   :  { %11880 = vmatmul.mubr.msk.f32.gmra.mrb[8].mxu0 %vm797_vm0, %v185_v24  ;;  %v246_v24 = vld [vmem:[%s20263_s1 + $0x230] sm:$0xff] }
  0x25   :  { %11882 = vmatprep.mubr.msk.f32.mxu0 %vm797_vm0, %v186_v25  ;;  %v247_v25 = vld [vmem:[%s20263_s1 + $0x238] sm:$0xff] }
  0x28   :  { %11883 = vmatmul.mubr.msk.f32.gmra.mrb[10].mxu0 %vm797_vm0, %v187_v26  ;;  %v248_v26 = vld [vmem:[%s20263_s1 + $0x240] sm:$0xff] }
  0x29   :  { %11885 = vmatprep.mubr.msk.f32.mxu0 %vm797_vm0, %v188_v27  ;;  %v249_v27 = vld [vmem:[%s20263_s1 + $0x248] sm:$0xff] }
  0x2c   :  { %11886 = vmatmul.mubr.msk.f32.gmra.mrb[12].mxu0 %vm797_vm0, %v189_v30  ;;  %v252_v30 = vld [vmem:[%s20263_s1 + $0x260] sm:$0xff] }
  0x2d   :  { %11888 = vmatprep.mubr.msk.f32.mxu0 %vm797_vm0, %v190_v32  ;;  %v254_v32 = vld [vmem:[%s20263_s1 + $0x270] sm:$0xff] }
  0x30   :  { %11889 = vmatmul.mubr.msk.f32.gmra.mrb[14].mxu0 %vm797_vm0, %v191_v33  ;;  %v255_v33 = vld [vmem:[%s20263_s1 + $0x278] sm:$0xff] }
  0x31   :  { %11891 = vmatprep.mubr.msk.f32.mxu0 %vm797_vm0, %v192_v34  ;;  %v256_v34 = vld [vmem:[%s20263_s1 + $0x280] sm:$0xff] }
  0x34   :  { %11892 = vmatmul.mubr.msk.f32.gmra.mrb[16].mxu0 %vm797_vm0, %v193_v35  ;;  %v257_v35 = vld [vmem:[%s20263_s1 + $0x288] sm:$0xff] }
  0x35   :  { %11894 = vmatprep.mubr.msk.f32.mxu0 %vm797_vm0, %v194_v36  ;;  %v258_v36 = vld [vmem:[%s20263_s1 + $0x290] sm:$0xff] }
  0x38   :  { %11895 = vmatmul.mubr.msk.f32.gmra.mrb[18].mxu0 %vm797_vm0, %v195_v37  ;;  %v259_v37 = vld [vmem:[%s20263_s1 + $0x298] sm:$0xff] }
  0x39   :  { %11897 = vmatprep.mubr.msk.f32.mxu0 %vm797_vm0, %v196_v38  ;;  %v260_v38 = vld [vmem:[%s20263_s1 + $0x2a0] sm:$0xff] }
  0x3c   :  { %11898 = vmatmul.mubr.msk.f32.gmra.mrb[20].mxu0 %vm797_vm0, %v197_v39  ;;  %v261_v39 = vld [vmem:[%s20263_s1 + $0x2a8] sm:$0xff] }
  0x3d   :  { %11900 = vmatprep.mubr.msk.f32.mxu0 %vm797_vm0, %v198_v40  ;;  %v262_v40 = vld [vmem:[%s20263_s1 + $0x2b0] sm:$0xff] }
  0x40   :  { %11901 = vmatmul.mubr.msk.f32.gmra.mrb[22].mxu0 %vm797_vm0, %v199_v41  ;;  %v263_v41 = vld [vmem:[%s20263_s1 + $0x2b8] sm:$0xff] }
  0x41   :  { %11903 = vmatprep.mubr.msk.f32.mxu0 %vm797_vm0, %v200_v42  ;;  %v264_v42 = vld [vmem:[%s20263_s1 + $0x2c0] sm:$0xff] }
  0x44   :  { %11904 = vmatmul.mubr.msk.f32.gmra.mrb[24].mxu0 %vm797_vm0, %v201_v43  ;;  %v265_v43 = vld [vmem:[%s20263_s1 + $0x2c8] sm:$0xff] }
  0x45   :  { %11906 = vmatprep.mubr.msk.f32.mxu0 %vm797_vm0, %v202_v44  ;;  %v266_v44 = vld [vmem:[%s20263_s1 + $0x2d0] sm:$0xff] }
  0x48   :  { %11907 = vmatmul.mubr.msk.f32.gmra.mrb[26].mxu0 %vm797_vm0, %v203_v45  ;;  %v267_v45 = vld [vmem:[%s20263_s1 + $0x2d8] sm:$0xff] }
  0x49   :  { %11909 = vmatprep.mubr.msk.f32.mxu0 %vm797_vm0, %v204_v46  ;;  %v268_v46 = vld [vmem:[%s20263_s1 + $0x2e0] sm:$0xff] }
  0x4c   :  { %11910 = vmatmul.mubr.msk.f32.gmra.mrb[28].mxu0 %vm797_vm0, %v205_v47  ;;  %v269_v47 = vld [vmem:[%s20263_s1 + $0x2e8] sm:$0xff] }
  0x4d   :  { %11912 = vmatprep.mubr.msk.f32.mxu0 %vm797_vm0, %v206_v48  ;;  %v270_v48 = vld [vmem:[%s20263_s1 + $0x2f0] sm:$0xff] }
  0x50   :  { %11913 = vmatmul.mubr.msk.f32.gmra.mrb[30].mxu0 %vm797_vm0, %v207_v49  ;;  %v271_v49 = vld [vmem:[%s20263_s1 + $0x2f8] sm:$0xff] }
  0x51   :  { %11915 = vmatprep.mubr.msk.f32.mxu0 %vm797_vm0, %v208_v50  ;;  %v272_v50 = vld [vmem:[%s20263_s1 + $0x300] sm:$0xff] }
  0x54   :  { %11916 = vmatmul.mubr.msk.f32.gmra.mrb[32].mxu0 %vm797_vm0, %v209_v51  ;;  %v273_v51 = vld [vmem:[%s20263_s1 + $0x308] sm:$0xff] }
  0x55   :  { %11918 = vmatprep.mubr.msk.f32.mxu0 %vm797_vm0, %v210_v52  ;;  %v274_v52 = vld [vmem:[%s20263_s1 + $0x310] sm:$0xff] }
  0x58   :  { %11919 = vmatmul.mubr.msk.f32.gmra.mrb[34].mxu0 %vm797_vm0, %v211_v53  ;;  %v275_v53 = vld [vmem:[%s20263_s1 + $0x318] sm:$0xff] }
  0x59   :  { %11921 = vmatprep.mubr.msk.f32.mxu0 %vm797_vm0, %v212_v54  ;;  %v276_v54 = vld [vmem:[%s20263_s1 + $0x320] sm:$0xff] }
  0x5c   :  { %11922 = vmatmul.mubr.msk.f32.gmra.mrb[36].mxu0 %vm797_vm0, %v213_v55  ;;  %v277_v55 = vld [vmem:[%s20263_s1 + $0x328] sm:$0xff] }
  0x5d   :  { %11924 = vmatprep.mubr.msk.f32.mxu0 %vm797_vm0, %v214_v56  ;;  %v278_v56 = vld [vmem:[%s20263_s1 + $0x330] sm:$0xff] }
  0x60   :  { %11925 = vmatmul.mubr.msk.f32.gmra.mrb[38].mxu0 %vm797_vm0, %v215_v57  ;;  %v279_v57 = vld [vmem:[%s20263_s1 + $0x338] sm:$0xff] }
  0x61   :  { %11927 = vmatprep.mubr.msk.f32.mxu0 %vm797_vm0, %v216_v58  ;;  %v280_v58 = vld [vmem:[%s20263_s1 + $0x340] sm:$0xff] }
  0x64   :  { %11928 = vmatmul.mubr.msk.f32.gmra.mrb[40].mxu0 %vm797_vm0, %v217_v59  ;;  %v281_v59 = vld [vmem:[%s20263_s1 + $0x348] sm:$0xff] }
  0x65   :  { %11930 = vmatprep.mubr.msk.f32.mxu0 %vm797_vm0, %v218_v60  ;;  %v282_v60 = vld [vmem:[%s20263_s1 + $0x350] sm:$0xff] }
  0x68   :  { %11931 = vmatmul.mubr.msk.f32.gmra.mrb[42].mxu0 %vm797_vm0, %v219_v61  ;;  %v283_v61 = vld [vmem:[%s20263_s1 + $0x358] sm:$0xff] }
  0x69   :  { %11933 = vmatprep.mubr.msk.f32.mxu0 %vm797_vm0, %v220_v62  ;;  %v284_v62 = vld [vmem:[%s20263_s1 + $0x360] sm:$0xff] }
  0x6c   :  { %11934 = vmatmul.mubr.msk.f32.gmra.mrb[44].mxu0 %vm797_vm0, %v221_v63  ;;  %v285_v63 = vld [vmem:[%s20263_s1 + $0x368] sm:$0xff] }
  0x6d   :  { %11936 = vmatprep.mubr.msk.f32.mxu0 %vm797_vm0, %v222_v0  ;;  %v286_v0 = vld [vmem:[%s20263_s1 + $0x370] sm:$0xff] }
  0x70   :  { %11937 = vmatmul.mubr.msk.f32.gmra.mrb[46].mxu0 %vm797_vm0, %v223_v1  ;;  %v287_v1 = vld [vmem:[%s20263_s1 + $0x378] sm:$0xff] }
  0x71   :  { %11939 = vmatprep.mubr.msk.f32.mxu0 %vm797_vm0, %v224_v2  ;;  %v288_v2 = vld [vmem:[%s20263_s1 + $0x380] sm:$0xff] }
  0x74   :  { %11940 = vmatmul.mubr.msk.f32.gmra.mrb[48].mxu0 %vm797_vm0, %v225_v3  ;;  %v289_v3 = vld [vmem:[%s20263_s1 + $0x388] sm:$0xff] }
  0x75   :  { %11942 = vmatprep.mubr.msk.f32.mxu0 %vm797_vm0, %v226_v4  ;;  %v290_v4 = vld [vmem:[%s20263_s1 + $0x390] sm:$0xff] }
  0x78   :  { %11943 = vmatmul.mubr.msk.f32.gmra.mrb[50].mxu0 %vm797_vm0, %v227_v5  ;;  %v291_v5 = vld [vmem:[%s20263_s1 + $0x398] sm:$0xff] }
  0x79   :  { %11945 = vmatprep.mubr.msk.f32.mxu0 %vm797_vm0, %v228_v6  ;;  %v292_v6 = vld [vmem:[%s20263_s1 + $0x3a0] sm:$0xff] }
  0x7c   :  { %11946 = vmatmul.mubr.msk.f32.gmra.mrb[52].mxu0 %vm797_vm0, %v229_v7  ;;  %v293_v7 = vld [vmem:[%s20263_s1 + $0x3a8] sm:$0xff] }
  0x7d   :  { %11948 = vmatprep.mubr.msk.f32.mxu0 %vm797_vm0, %v230_v8  ;;  %v294_v8 = vld [vmem:[%s20263_s1 + $0x3b0] sm:$0xff] }
  0x80   :  { %11949 = vmatmul.mubr.msk.f32.gmra.mrb[54].mxu0 %vm797_vm0, %v231_v9  ;;  %v295_v9 = vld [vmem:[%s20263_s1 + $0x3b8] sm:$0xff] }
  0x81   :  { %11951 = vmatprep.mubr.msk.f32.mxu0 %vm797_vm0, %v232_v10  ;;  %v296_v10 = vld [vmem:[%s20263_s1 + $0x3c0] sm:$0xff] }
  0x84   :  { %11952 = vmatmul.mubr.msk.f32.gmra.mrb[56].mxu0 %vm797_vm0, %v233_v11  ;;  %v297_v11 = vld [vmem:[%s20263_s1 + $0x3c8] sm:$0xff] }
  0x85   :  { %11954 = vmatprep.mubr.msk.f32.mxu0 %vm797_vm0, %v234_v12  ;;  %v298_v12 = vld [vmem:[%s20263_s1 + $0x3d0] sm:$0xff] }
  0x88   :  { %11955 = vmatmul.mubr.msk.f32.gmra.mrb[58].mxu0 %vm797_vm0, %v235_v13  ;;  %v299_v13 = vld [vmem:[%s20263_s1 + $0x3d8] sm:$0xff] }
  0x89   :  { %11957 = vmatprep.mubr.msk.f32.mxu0 %vm797_vm0, %v236_v14  ;;  %v300_v14 = vld [vmem:[%s20263_s1 + $0x3e0] sm:$0xff] }
  0x8c   :  { %11958 = vmatmul.mubr.msk.f32.gmra.mrb[60].mxu0 %vm797_vm0, %v237_v15  ;;  %v301_v15 = vld [vmem:[%s20263_s1 + $0x3e8] sm:$0xff] }
  0x8d   :  { %11960 = vmatprep.mubr.msk.f32.mxu0 %vm797_vm0, %v238_v16  ;;  %v302_v16 = vld [vmem:[%s20263_s1 + $0x3f0] sm:$0xff] }
  0x90   :  { %11961 = vmatmul.mubr.msk.f32.gmra.mrb[62].mxu0 %vm797_vm0, %v239_v17  ;;  %v303_v17 = vld [vmem:[%s20263_s1 + $0x3f8] sm:$0xff] }
  0x91   :  { %11963 = vmatprep.mubr.msk.f32.mxu0 %vm797_vm0, %v240_v18  ;;  %v304_v18 = vld [vmem:[%s20263_s1 + $0x400] sm:$0xff] }
  0x94   :  { %11964 = vmatmul.mubr.msk.f32.gmra.mrb[64].mxu0 %vm797_vm0, %v241_v19  ;;  %v305_v19 = vld [vmem:[%s20263_s1 + $0x408] sm:$0xff] }
  0x95   :  { %11966 = vmatprep.mubr.msk.f32.mxu0 %vm797_vm0, %v242_v20  ;;  %v306_v20 = vld [vmem:[%s20263_s1 + $0x410] sm:$0xff] }
  0x98   :  { %11967 = vmatmul.mubr.msk.f32.gmra.mrb[66].mxu0 %vm797_vm0, %v243_v21  ;;  %v307_v21 = vld [vmem:[%s20263_s1 + $0x418] sm:$0xff] }
  0x99   :  { %11969 = vmatprep.mubr.msk.f32.mxu0 %vm797_vm0, %v244_v22  ;;  %v308_v22 = vld [vmem:[%s20263_s1 + $0x420] sm:$0xff] }
  0x9c   :  { %11970 = vmatmul.mubr.msk.f32.gmra.mrb[68].mxu0 %vm797_vm0, %v245_v23  ;;  %v309_v23 = vld [vmem:[%s20263_s1 + $0x428] sm:$0xff] }
  0x9d   :  { %11972 = vmatprep.mubr.msk.f32.mxu0 %vm797_vm0, %v246_v24  ;;  %v310_v24 = vld [vmem:[%s20263_s1 + $0x430] sm:$0xff] }
  0xa0   :  { %11973 = vmatmul.mubr.msk.f32.gmra.mrb[70].mxu0 %vm797_vm0, %v247_v25  ;;  %v311_v25 = vld [vmem:[%s20263_s1 + $0x438] sm:$0xff] }
  0xa1   :  { %11975 = vmatprep.mubr.msk.f32.mxu0 %vm797_vm0, %v248_v26  ;;  %v312_v26 = vld [vmem:[%s20263_s1 + $0x440] sm:$0xff] }
  0xa4   :  { %11976 = vmatmul.mubr.msk.f32.gmra.mrb[72].mxu0 %vm797_vm0, %v249_v27  ;;  %v313_v27 = vld [vmem:[%s20263_s1 + $0x448] sm:$0xff] }
  0xa5   :  { %11978 = vmatprep.mubr.msk.f32.mxu0 %vm797_vm0, %v250_v28  ;;  %v327_v28 = vlaneseq }
  0xa8   :  { %11979 = vmatmul.mubr.msk.f32.gmra.mrb[74].mxu0 %vm797_vm0, %v251_v29  ;;  %v314_v29 = vld [vmem:[%s20263_s1 + $0x450] sm:$0xff] }
  0xa9   :  { %11981 = vmatprep.mubr.msk.f32.mxu0 %vm797_vm0, %v252_v30  ;;  %v315_v30 = vld [vmem:[%s20263_s1 + $0x458] sm:$0xff] }
  0xac   :  { %11982 = vmatmul.mubr.msk.f32.gmra.mrb[76].mxu0 %vm797_vm0, %v253_v31  ;;  %v15173_v31 = vshrl.u32 %v327_v28, 7 }
  0xad   :  { %11984 = vmatprep.mubr.msk.f32.mxu0 %vm797_vm0, %v254_v32  ;;  %v316_v32 = vld [vmem:[%s20263_s1 + $0x460] sm:$0xff] }
  0xae   :  { %20272 = vst [vmem:[#allocation2_spill] sm:$0xff] %v15173_v31 }
  0xb0   :  { %11985 = vmatmul.mubr.msk.f32.gmra.mrb[78].mxu0 %vm797_vm0, %v255_v33  ;;  %v317_v33 = vld [vmem:[%s20263_s1 + $0x468] sm:$0xff] }
  0xb1   :  { %11987 = vmatprep.mubr.msk.f32.mxu0 %vm797_vm0, %v256_v34  ;;  %v329_v34 = vsub.s32 0, %v15173_v31 }
  0xb4   :  { %11988 = vmatmul.mubr.msk.f32.gmra.mrb[80].mxu0 %vm797_vm0, %v257_v35  ;;  %v318_v35 = vld [vmem:[%s20263_s1 + $0x470] sm:$0xff] }
  0xb5   :  { %11990 = vmatprep.mubr.msk.f32.mxu0 %vm797_vm0, %v258_v36  ;;  %v326_v36 = vld [vmem:[%s20265_s2] sm:$0xff] }
  0xb8   :  { %11991 = vmatmul.mubr.msk.f32.gmra.mrb[82].mxu0 %vm797_vm0, %v259_v37  ;;  %v319_v37 = vld [vmem:[%s20263_s1 + $0x478] sm:$0xff] }
  0xb9   :  { %11993 = vmatprep.mubr.msk.f32.mxu0 %vm797_vm0, %v260_v38  ;;  %v15195_v38 = vrot.slane %v326_v36, %v329_v34 }
  0xbc   :  { %11994 = vmatmul.mubr.msk.f32.gmra.mrb[84].mxu0 %vm797_vm0, %v261_v39  ;;  %v483_v39 = vsub.s32 1, %v15173_v31 }
  0xbd   :  { %11996 = vmatprep.mubr.msk.f32.mxu0 %vm797_vm0, %v262_v40  ;;  %v320_v40 = vld [vmem:[%s20263_s1 + $0x480] sm:$0xff] }
  0xc0   :  { %11997 = vmatmul.mubr.msk.f32.gmra.mrb[86].mxu0 %vm797_vm0, %v263_v41  ;;  %v26_v41 = vld [vmem:[%s20266_s0] sm:$0xff] }
  0xc1   :  { %11999 = vmatprep.mubr.msk.f32.mxu0 %vm797_vm0, %v264_v42  ;;  %v321_v42 = vld [vmem:[%s20263_s1 + $0x488] sm:$0xff] }
  0xc4   :  { %12000 = vmatmul.mubr.msk.f32.gmra.mrb[88].mxu0 %vm797_vm0, %v265_v43  ;;  %v331_v43 = vmul.f32 %v15195_v38, %v26_v41  ;;  %v42_v41 = vld [vmem:[%s20266_s0 + $0x80] sm:$0xff] }
  0xc5   :  { %12002 = vmatprep.mubr.msk.f32.mxu0 %vm797_vm0, %v266_v44  ;;  %v15210_v44 = vrot.slane %v326_v36, %v483_v39 }
  0xc8   :  { %12003 = vmatmul.mubr.msk.f32.gmra.mrb[90].mxu0 %vm797_vm0, %v267_v45  ;;  %v27_v45 = vld [vmem:[%s20266_s0 + $0x8] sm:$0xff] }
  0xc9   :  { %12005 = vmatprep.mubr.msk.f32.mxu0 %vm797_vm0, %v268_v46  ;;  %v322_v46 = vld [vmem:[%s20263_s1 + $0x490] sm:$0xff] }
  0xcc   :  { %12006 = vmatmul.mubr.msk.f32.gmra.mrb[92].mxu0 %vm797_vm0, %v269_v47  ;;  %v28_v47 = vld [vmem:[%s20266_s0 + $0x10] sm:$0xff] }
  0xcd   :  { %12008 = vmatprep.mubr.msk.f32.mxu0 %vm797_vm0, %v270_v48  ;;  %v332_v48 = vmul.f32 %v15195_v38, %v27_v45 }
  0xd0   :  { %12009 = vmatmul.mubr.msk.f32.gmra.mrb[94].mxu0 %vm797_vm0, %v271_v49  ;;  %v323_v49 = vld [vmem:[%s20263_s1 + $0x498] sm:$0xff] }
  0xd1   :  { %12011 = vmatprep.mubr.msk.f32.mxu0 %vm797_vm0, %v272_v50  ;;  %v485_v50 = vadd.f32 %v15210_v44, %v331_v43 }
  0xd4   :  { %12012 = vmatmul.mubr.msk.f32.gmra.mrb[96].mxu0 %vm797_vm0, %v273_v51  ;;  %v333_v51 = vmul.f32 %v15195_v38, %v28_v47 }
  0xd5   :  { %12014 = vmatprep.mubr.msk.f32.mxu0 %vm797_vm0, %v274_v52  ;;  %v29_v52 = vld [vmem:[%s20266_s0 + $0x18] sm:$0xff] }
  0xd8   :  { %12015 = vmatmul.mubr.msk.f32.gmra.mrb[98].mxu0 %vm797_vm0, %v275_v53  ;;  %v324_v53 = vld [vmem:[%s20263_s1 + $0x4a0] sm:$0xff] }
  0xd9   :  { %12017 = vmatprep.mubr.msk.f32.mxu0 %vm797_vm0, %v276_v54  ;;  %v30_v54 = vld [vmem:[%s20266_s0 + $0x20] sm:$0xff] }
  0xdc   :  { %12018 = vmatmul.mubr.msk.f32.gmra.mrb[100].mxu0 %vm797_vm0, %v277_v55  ;;  %v486_v55 = vadd.f32 %v15210_v44, %v332_v48  ;;  %v347_v48 = vmul.f32 %v15195_v38, %v42_v41 }
  0xdd   :  { %12020 = vmatprep.mubr.msk.f32.mxu0 %vm797_vm0, %v278_v56  ;;  %v334_v56 = vmul.f32 %v15195_v38, %v29_v52 }
  0xe0   :  { %12021 = vmatmul.mubr.msk.f32.gmra.mrb[102].mxu0 %vm797_vm0, %v279_v57  ;;  %v325_v57 = vld [vmem:[%s20263_s1 + $0x4a8] sm:$0xff] }
  0xe1   :  { %12023 = vmatprep.mubr.msk.f32.mxu0 %vm797_vm0, %v280_v58  ;;  %v635_v58 = vmax.f32 %v485_v50, 0.0  ;;  %v44_v50 = vld [vmem:[%s20266_s0 + $0x90] sm:$0xff] }
  0xe4   :  { %12024 = vmatmul.mubr.msk.f32.gmra.mrb[104].mxu0 %vm797_vm0, %v281_v59  ;;  %v487_v59 = vadd.f32 %v15210_v44, %v333_v51 }
  0xe5   :  { %12026 = vmatprep.mubr.msk.f32.mxu0 %vm797_vm0, %v282_v60  ;;  %v335_v60 = vmul.f32 %v15195_v38, %v30_v54 }
  0xe8   :  { %12027 = vmatmul.mubr.msk.f32.gmra.mrb[106].mxu0 %vm797_vm0, %v283_v61  ;;  %v31_v61 = vld [vmem:[%s20266_s0 + $0x28] sm:$0xff] }
  0xe9   :  { %12029 = vmatprep.mubr.msk.f32.mxu0 %vm797_vm0, %v284_v62  ;;  %v32_v62 = vld [vmem:[%s20266_s0 + $0x30] sm:$0xff] }
  0xec   :  { %12030 = vmatmul.mubr.msk.f32.gmra.mrb[108].mxu0 %vm797_vm0, %v285_v63  ;;  %v636_v63 = vmax.f32 %v486_v55, 0.0  ;;  %v501_v55 = vadd.f32 %v15210_v44, %v347_v48 }
  0xed   :  { %12032 = vmatprep.mubr.msk.f32.mxu0 %vm797_vm0, %v286_v0  ;;  %v488_v0 = vadd.f32 %v15210_v44, %v334_v56  ;;  %v349_v56 = vmul.f32 %v15195_v38, %v44_v50 }
  0xf0   :  { %12033 = vmatmul.mubr.msk.f32.gmra.mrb[110].mxu0 %vm797_vm0, %v287_v1  ;;  %v336_v1 = vmul.f32 %v15195_v38, %v31_v61 }
  0xf1   :  { %12035 = vmatprep.mubr.msk.f32.mxu0 %vm797_vm0, %v288_v2  ;;  %v637_v2 = vmax.f32 %v487_v59, 0.0 }
  0xf4   :  { %12036 = vmatmul.mubr.msk.f32.gmra.mrb[112].mxu0 %vm797_vm0, %v289_v3  ;;  %v489_v3 = vadd.f32 %v15210_v44, %v335_v60 }
  0xf5   :  { %12038 = vmatprep.mubr.msk.f32.mxu0 %vm797_vm0, %v290_v4  ;;  %v337_v4 = vmul.f32 %v15195_v38, %v32_v62  ;;  %v651_v62 = vmax.f32 %v501_v55, 0.0 }
  0xf8   :  { %12039 = vmatmul.mubr.msk.f32.gmra.mrb[114].mxu0 %vm797_vm0, %v291_v5  ;;  %v33_v5 = vld [vmem:[%s20266_s0 + $0x38] sm:$0xff] }
  0xf9   :  { %12041 = vmatprep.mubr.msk.f32.mxu0 %vm797_vm0, %v292_v6  ;;  %v34_v6 = vld [vmem:[%s20266_s0 + $0x40] sm:$0xff] }
  0xfc   :  { %12042 = vmatmul.mubr.msk.f32.gmra.mrb[116].mxu0 %vm797_vm0, %v293_v7  ;;  %v638_v7 = vmax.f32 %v488_v0, 0.0 }
  0xfd   :  { %12044 = vmatprep.mubr.msk.f32.mxu0 %vm797_vm0, %v294_v8  ;;  %v490_v8 = vadd.f32 %v15210_v44, %v336_v1  ;;  %v47_v1 = vld [vmem:[%s20266_s0 + $0xa8] sm:$0xff] }
 0x100   :  { %12045 = vmatmul.mubr.msk.f32.gmra.mrb[118].mxu0 %vm797_vm0, %v295_v9  ;;  %v338_v9 = vmul.f32 %v15195_v38, %v33_v5  ;;  %v352_v5 = vmul.f32 %v15195_v38, %v47_v1 }
 0x101   :  { %12047 = vmatprep.mubr.msk.f32.mxu0 %vm797_vm0, %v296_v10  ;;  %v639_v10 = vmax.f32 %v489_v3, 0.0 }
 0x104   :  { %12048 = vmatmul.mubr.msk.f32.gmra.mrb[120].mxu0 %vm797_vm0, %v297_v11  ;;  %v491_v11 = vadd.f32 %v15210_v44, %v337_v4 }
 0x105   :  { %12050 = vmatprep.mubr.msk.f32.mxu0 %vm797_vm0, %v298_v12  ;;  %v339_v12 = vmul.f32 %v15195_v38, %v34_v6 }
 0x108   :  { %12051 = vmatmul.mubr.msk.f32.gmra.mrb[122].mxu0 %vm797_vm0, %v299_v13  ;;  %v35_v13 = vld [vmem:[%s20266_s0 + $0x48] sm:$0xff] }
 0x109   :  { %12053 = vmatprep.mubr.msk.f32.mxu0 %vm797_vm0, %v300_v14  ;;  %v36_v14 = vld [vmem:[%s20266_s0 + $0x50] sm:$0xff] }
 0x10c   :  { %12054 = vmatmul.mubr.msk.f32.gmra.mrb[124].mxu0 %vm797_vm0, %v301_v15  ;;  %v640_v15 = vmax.f32 %v490_v8, 0.0 }
 0x10d   :  { %12056 = vmatprep.mubr.msk.f32.mxu0 %vm797_vm0, %v302_v16  ;;  %v492_v16 = vadd.f32 %v15210_v44, %v338_v9  ;;  %v49_v9 = vld [vmem:[%s20266_s0 + $0xb8] sm:$0xff] }
 0x110   :  { %12057 = vmatmul.mubr.msk.f32.gmra.mrb[126].mxu0 %vm797_vm0, %v303_v17  ;;  %v340_v17 = vmul.f32 %v15195_v38, %v35_v13  ;;  %v354_v13 = vmul.f32 %v15195_v38, %v49_v9 }
 0x111   :  { %12059 = vmatprep.mubr.msk.f32.mxu0 %vm797_vm0, %v304_v18  ;;  %v641_v18 = vmax.f32 %v491_v11, 0.0 }
 0x114   :  { %12060 = vmatmul.mubr.msk.f32.gmra.mrb[128].mxu0 %vm797_vm0, %v305_v19  ;;  %v493_v19 = vadd.f32 %v15210_v44, %v339_v12  ;;  %v506_v12 = vadd.f32 %v15210_v44, %v352_v5  ;;  %v63_v5 = vld [vmem:[%s20266_s0 + $0x128] sm:$0xff] }
 0x115   :  { %12062 = vmatprep.mubr.msk.f32.mxu0 %vm797_vm0, %v306_v20  ;;  %v341_v20 = vmul.f32 %v15195_v38, %v36_v14  ;;  %v368_v9 = vmul.f32 %v15195_v38, %v63_v5 }
 0x117   :  { %v495_v28 = vadd.f32 %v15210_v44, %v341_v20  ;;  %v508_v20 = vadd.f32 %v15210_v44, %v354_v13  ;;  %v65_v13 = vld [vmem:[%s20266_s0 + $0x138] sm:$0xff] }
 0x118   :  { %12063 = vmatmul.mubr.msk.f32.gmra.mrb[130].mxu0 %vm797_vm0, %v307_v21  ;;  %v37_v21 = vld [vmem:[%s20266_s0 + $0x58] sm:$0xff] }
 0x119   :  { %12065 = vmatprep.mubr.msk.f32.mxu0 %vm797_vm0, %v308_v22  ;;  %v38_v22 = vld [vmem:[%s20266_s0 + $0x60] sm:$0xff]  ;;  %v645_v36 = vmax.f32 %v495_v28, 0.0  ;;  %v658_v28 = vmax.f32 %v508_v20, 0.0 }
 0x11c   :  { %12066 = vmatmul.mubr.msk.f32.gmra.mrb[132].mxu0 %vm797_vm0, %v309_v23  ;;  %v642_v23 = vmax.f32 %v492_v16, 0.0 }
 0x11d   :  { %12068 = vmatprep.mubr.msk.f32.mxu0 %vm797_vm0, %v310_v24  ;;  %v494_v24 = vadd.f32 %v15210_v44, %v340_v17  ;;  %v51_v17 = vld [vmem:[%s20266_s0 + $0xc8] sm:$0xff] }
 0x120   :  { %12069 = vmatmul.mubr.msk.f32.gmra.mrb[134].mxu0 %vm797_vm0, %v311_v25  ;;  %v342_v25 = vmul.f32 %v15195_v38, %v37_v21  ;;  %v356_v21 = vmul.f32 %v15195_v38, %v51_v17  ;;  %v370_v17 = vmul.f32 %v15195_v38, %v65_v13 }
 0x121   :  { %12071 = vmatprep.mubr.msk.f32.mxu0 %vm797_vm0, %v312_v26  ;;  %v15295_v26 = vld [vmem:[%s20266_s0 + $0x240] sm:$0xff] }
 0x122   :  { %12441 = vmatprep.mubr.msk.f32.mxu1 %vm2063_vm1, %v15295_v26  ;;  %v496_v34 = vadd.f32 %v15210_v44, %v342_v25  ;;  %v53_v25 = vld [vmem:[%s20266_s0 + $0xd8] sm:$0xff] }
 0x124   :  { %12072 = vmatmul.mubr.msk.f32.gmra.mrb[136].mxu0 %vm797_vm0, %v313_v27  ;;  %v643_v27 = vmax.f32 %v493_v19, 0.0  ;;  %v656_v19 = vmax.f32 %v506_v12, 0.0 }
 0x125   :  { %12074 = vmatprep.mubr.msk.f32.mxu0 %vm797_vm0, %v314_v29  ;;  %v343_v29 = vmul.f32 %v15195_v38, %v38_v22 }
 0x128   :  { %12075 = vmatmul.mubr.msk.f32.gmra.mrb[138].mxu0 %vm797_vm0, %v315_v30  ;;  %v39_v30 = vld [vmem:[%s20266_s0 + $0x68] sm:$0xff] }
 0x129   :  { %12077 = vmatprep.mubr.msk.f32.mxu0 %vm797_vm0, %v316_v32  ;;  %v40_v32 = vld [vmem:[%s20266_s0 + $0x70] sm:$0xff] }
 0x12a   :  { %v345_v39 = vmul.f32 %v15195_v38, %v40_v32 }
 0x12c   :  { %12078 = vmatmul.mubr.msk.f32.gmra.mrb[140].mxu0 %vm797_vm0, %v317_v33  ;;  %v644_v33 = vmax.f32 %v494_v24, 0.0  ;;  %v499_v47 = vadd.f32 %v15210_v44, %v345_v39 }
 0x12d   :  { %12080 = vmatprep.mubr.msk.f32.mxu0 %vm797_vm0, %v318_v35  ;;  %v344_v35 = vmul.f32 %v15195_v38, %v39_v30  ;;  %v358_v30 = vmul.f32 %v15195_v38, %v53_v25 }
 0x12e   :  { %v649_v54 = vmax.f32 %v499_v47, 0.0 }
 0x12f   :  { %v498_v43 = vadd.f32 %v15210_v44, %v344_v35  ;;  %v55_v35 = vld [vmem:[%s20266_s0 + $0xe8] sm:$0xff]  ;;  %v512_v39 = vadd.f32 %v15210_v44, %v358_v30  ;;  %v69_v30 = vld [vmem:[%s20266_s0 + $0x158] sm:$0xff] }
 0x130   :  { %12081 = vmatmul.mubr.msk.f32.gmra.mrb[142].mxu0 %vm797_vm0, %v319_v37  ;;  %v497_v37 = vadd.f32 %v15210_v44, %v343_v29  ;;  %v510_v29 = vadd.f32 %v15210_v44, %v356_v21  ;;  %v67_v21 = vld [vmem:[%s20266_s0 + $0x148] sm:$0xff] }
 0x131   :  { %12083 = vmatprep.mubr.msk.f32.mxu0 %vm797_vm0, %v320_v40  ;;  %v41_v40 = vld [vmem:[%s20266_s0 + $0x78] sm:$0xff]  ;;  %v648_v51 = vmax.f32 %v498_v43, 0.0  ;;  %v662_v47 = vmax.f32 %v512_v39, 0.0  ;;  %v372_v25 = vmul.f32 %v15195_v38, %v67_v21 }
 0x132   :  { %v346_v45 = vmul.f32 %v15195_v38, %v41_v40  ;;  %v360_v40 = vmul.f32 %v15195_v38, %v55_v35  ;;  %v374_v35 = vmul.f32 %v15195_v38, %v69_v30 }
 0x134   :  { %12084 = vmatmul.mubr.msk.f32.gmra.mrb[144].mxu0 %vm797_vm0, %v321_v42  ;;  %v646_v42 = vmax.f32 %v496_v34, 0.0  ;;  %v500_v52 = vadd.f32 %v15210_v44, %v346_v45  ;;  %v57_v45 = vld [vmem:[%s20266_s0 + $0xf8] sm:$0xff]  ;;  %v514_v48 = vadd.f32 %v15210_v44, %v360_v40  ;;  %v71_v40 = vld [vmem:[%s20266_s0 + $0x168] sm:$0xff] }
 0x135   :  { %12086 = vmatprep.mubr.msk.f32.mxu0 %vm797_vm0, %v322_v46  ;;  %v647_v46 = vmax.f32 %v497_v37, 0.0  ;;  %v660_v37 = vmax.f32 %v510_v29, 0.0 }
 0x136   :  { %v650_v59 = vmax.f32 %v500_v52, 0.0  ;;  %v664_v55 = vmax.f32 %v514_v48, 0.0 }
 0x138   :  { %12087 = vmatmul.mubr.msk.f32.gmra.mrb[146].mxu0 %vm797_vm0, %v323_v49  ;;  %v43_v49 = vld [vmem:[%s20266_s0 + $0x88] sm:$0xff] }
 0x139   :  { %12089 = vmatprep.mubr.msk.f32.mxu0 %vm797_vm0, %v324_v53  ;;  %v348_v53 = vmul.f32 %v15195_v38, %v43_v49  ;;  %v362_v49 = vmul.f32 %v15195_v38, %v57_v45  ;;  %v376_v45 = vmul.f32 %v15195_v38, %v71_v40 }
 0x13b   :  { %v502_v60 = vadd.f32 %v15210_v44, %v348_v53  ;;  %v59_v53 = vld [vmem:[%s20266_s0 + $0x108] sm:$0xff] }
 0x13c   :  { %12090 = vmatmul.mubr.msk.f32.gmra.mrb[148].mxu0 %vm797_vm0, %v325_v57  ;;  %v45_v57 = vld [vmem:[%s20266_s0 + $0x98] sm:$0xff] }
 0x13d   :  { %12100 = vmatprep.mubr.msk.f32.mxu0 %vm2063_vm1, %v635_v58  ;;  %v46_v58 = vld [vmem:[%s20266_s0 + $0xa0] sm:$0xff]  ;;  %v350_v61 = vmul.f32 %v15195_v38, %v45_v57  ;;  %v652_v3 = vmax.f32 %v502_v60, 0.0  ;;  %v364_v57 = vmul.f32 %v15195_v38, %v59_v53 }
 0x13e   :  { %v351_v0 = vmul.f32 %v15195_v38, %v46_v58 }
 0x13f   :  { %v504_v4 = vadd.f32 %v15210_v44, %v350_v61  ;;  %v61_v61 = vld [vmem:[%s20266_s0 + $0x118] sm:$0xff] }
 0x140   :  { %12101 = vmatmul.mubr.msk.f32.vlgmr.msra.gmra.mrb[0].mxu0 %vm2063_vm1, %v636_v63  ;;  %v503_v63 = vadd.f32 %v15210_v44, %v349_v56  ;;  %v516_v56 = vadd.f32 %v15210_v44, %v362_v49  ;;  %v366_v1 = vmul.f32 %v15195_v38, %v61_v61  ;;  %v73_v49 = vld [vmem:[%s20266_s0 + $0x178] sm:$0xff] }
 0x141   :  { %12103 = vmatprep.mubr.msk.f32.mxu0 %vm2063_vm1, %v637_v2  ;;  %v48_v2 = vld [vmem:[%s20266_s0 + $0xb0] sm:$0xff]  ;;  %v654_v11 = vmax.f32 %v504_v4, 0.0  ;;  %v378_v53 = vmul.f32 %v15195_v38, %v73_v49 }
 0x142   :  { %v653_v6 = vmax.f32 %v503_v63, 0.0  ;;  %v353_v8 = vmul.f32 %v15195_v38, %v48_v2  ;;  %v666_v63 = vmax.f32 %v516_v56, 0.0 }
 0x144   :  { %12104 = vmatmul.mubr.msk.f32.gmra.mrb[2].mxu0 %vm2063_vm1, %v638_v7  ;;  %v505_v7 = vadd.f32 %v15210_v44, %v351_v0  ;;  %v518_v0 = vadd.f32 %v15210_v44, %v364_v57  ;;  %v75_v57 = vld [vmem:[%s20266_s0 + $0x188] sm:$0xff] }
 0x145   :  { %12106 = vmatprep.mubr.msk.f32.mxu0 %vm2063_vm1, %v639_v10  ;;  %v50_v10 = vld [vmem:[%s20266_s0 + $0xc0] sm:$0xff]  ;;  %v380_v61 = vmul.f32 %v15195_v38, %v75_v57 }
 0x146   :  { %v655_v14 = vmax.f32 %v505_v7, 0.0  ;;  %v355_v16 = vmul.f32 %v15195_v38, %v50_v10  ;;  %v668_v7 = vmax.f32 %v518_v0, 0.0 }
 0x148   :  { %12107 = vmatmul.mubr.msk.f32.gmra.mrb[4].mxu0 %vm2063_vm1, %v640_v15  ;;  %v507_v15 = vadd.f32 %v15210_v44, %v353_v8  ;;  %v520_v8 = vadd.f32 %v15210_v44, %v366_v1  ;;  %v77_v1 = vld [vmem:[%s20266_s0 + $0x198] sm:$0xff] }
 0x149   :  { %12109 = vmatprep.mubr.msk.f32.mxu0 %vm2063_vm1, %v641_v18  ;;  %v52_v18 = vld [vmem:[%s20266_s0 + $0xd0] sm:$0xff]  ;;  %v382_v5 = vmul.f32 %v15195_v38, %v77_v1 }
 0x14a   :  { %v657_v22 = vmax.f32 %v507_v15, 0.0  ;;  %v357_v24 = vmul.f32 %v15195_v38, %v52_v18  ;;  %v670_v15 = vmax.f32 %v520_v8, 0.0 }
 0x14c   :  { %12110 = vmatmul.mubr.msk.f32.gmra.mrb[6].mxu0 %vm2063_vm1, %v642_v23  ;;  %v509_v23 = vadd.f32 %v15210_v44, %v355_v16  ;;  %v522_v16 = vadd.f32 %v15210_v44, %v368_v9  ;;  %v79_v9 = vld [vmem:[%s20266_s0 + $0x1a8] sm:$0xff] }
 0x14d   :  { %12112 = vmatprep.mubr.msk.f32.mxu0 %vm2063_vm1, %v643_v27  ;;  %v54_v27 = vld [vmem:[%s20266_s0 + $0xe0] sm:$0xff]  ;;  %v384_v13 = vmul.f32 %v15195_v38, %v79_v9 }
 0x14e   :  { %v659_v32 = vmax.f32 %v509_v23, 0.0  ;;  %v359_v34 = vmul.f32 %v15195_v38, %v54_v27  ;;  %v672_v23 = vmax.f32 %v522_v16, 0.0 }
 0x150   :  { %12113 = vmatmul.mubr.msk.f32.gmra.mrb[8].mxu0 %vm2063_vm1, %v644_v33  ;;  %v511_v33 = vadd.f32 %v15210_v44, %v357_v24  ;;  %v524_v24 = vadd.f32 %v15210_v44, %v370_v17  ;;  %v81_v17 = vld [vmem:[%s20266_s0 + $0x1b8] sm:$0xff] }
 0x151   :  { %12115 = vmatprep.mubr.msk.f32.mxu0 %vm2063_vm1, %v645_v36  ;;  %v56_v36 = vld [vmem:[%s20266_s0 + $0xf0] sm:$0xff]  ;;  %v386_v21 = vmul.f32 %v15195_v38, %v81_v17 }
 0x152   :  { %v661_v41 = vmax.f32 %v511_v33, 0.0  ;;  %v361_v43 = vmul.f32 %v15195_v38, %v56_v36  ;;  %v674_v33 = vmax.f32 %v524_v24, 0.0 }
 0x154   :  { %12116 = vmatmul.mubr.msk.f32.gmra.mrb[10].mxu0 %vm2063_vm1, %v646_v42  ;;  %v513_v42 = vadd.f32 %v15210_v44, %v359_v34  ;;  %v526_v34 = vadd.f32 %v15210_v44, %v372_v25  ;;  %v83_v25 = vld [vmem:[%s20266_s0 + $0x1c8] sm:$0xff] }
 0x155   :  { %12118 = vmatprep.mubr.msk.f32.mxu0 %vm2063_vm1, %v647_v46  ;;  %v58_v46 = vld [vmem:[%s20266_s0 + $0x100] sm:$0xff]  ;;  %v388_v30 = vmul.f32 %v15195_v38, %v83_v25 }
 0x156   :  { %v663_v50 = vmax.f32 %v513_v42, 0.0  ;;  %v363_v52 = vmul.f32 %v15195_v38, %v58_v46  ;;  %v676_v42 = vmax.f32 %v526_v34, 0.0  ;;  %v5292_v25 = vld [vmem:[%s20267_s5] sm:$0xff] }
 0x158   :  { %12119 = vmatmul.mubr.msk.f32.gmra.mrb[12].mxu0 %vm2063_vm1, %v648_v51  ;;  %v515_v51 = vadd.f32 %v15210_v44, %v361_v43  ;;  %v528_v43 = vadd.f32 %v15210_v44, %v374_v35  ;;  %v85_v35 = vld [vmem:[%s20266_s0 + $0x1d8] sm:$0xff] }
 0x159   :  { %12121 = vmatprep.mubr.msk.f32.mxu0 %vm2063_vm1, %v649_v54  ;;  %v60_v54 = vld [vmem:[%s20266_s0 + $0x110] sm:$0xff]  ;;  %v390_v40 = vmul.f32 %v15195_v38, %v85_v35 }
 0x15a   :  { %v665_v58 = vmax.f32 %v515_v51, 0.0  ;;  %v365_v60 = vmul.f32 %v15195_v38, %v60_v54  ;;  %v678_v51 = vmax.f32 %v528_v43, 0.0 }
 0x15c   :  { %12122 = vmatmul.mubr.msk.f32.gmra.mrb[14].mxu0 %vm2063_vm1, %v650_v59  ;;  %v517_v59 = vadd.f32 %v15210_v44, %v363_v52  ;;  %v530_v52 = vadd.f32 %v15210_v44, %v376_v45  ;;  %v87_v45 = vld [vmem:[%s20266_s0 + $0x1e8] sm:$0xff] }
 0x15d   :  { %12124 = vmatprep.mubr.msk.f32.mxu0 %vm2063_vm1, %v651_v62  ;;  %v62_v62 = vld [vmem:[%s20266_s0 + $0x120] sm:$0xff]  ;;  %v392_v49 = vmul.f32 %v15195_v38, %v87_v45 }
 0x15e   :  { %v667_v2 = vmax.f32 %v517_v59, 0.0  ;;  %v367_v4 = vmul.f32 %v15195_v38, %v62_v62  ;;  %v680_v59 = vmax.f32 %v530_v52, 0.0 }
 0x160   :  { %12125 = vmatmul.mubr.msk.f32.gmra.mrb[16].mxu0 %vm2063_vm1, %v652_v3  ;;  %v519_v3 = vadd.f32 %v15210_v44, %v365_v60  ;;  %v532_v60 = vadd.f32 %v15210_v44, %v378_v53  ;;  %v89_v53 = vld [vmem:[%s20266_s0 + $0x1f8] sm:$0xff] }
 0x161   :  { %12127 = vmatprep.mubr.msk.f32.mxu0 %vm2063_vm1, %v653_v6  ;;  %v64_v6 = vld [vmem:[%s20266_s0 + $0x130] sm:$0xff]  ;;  %v394_v57 = vmul.f32 %v15195_v38, %v89_v53 }
 0x162   :  { %v669_v10 = vmax.f32 %v519_v3, 0.0  ;;  %v369_v12 = vmul.f32 %v15195_v38, %v64_v6  ;;  %v682_v3 = vmax.f32 %v532_v60, 0.0 }
 0x164   :  { %12128 = vmatmul.mubr.msk.f32.gmra.mrb[18].mxu0 %vm2063_vm1, %v654_v11  ;;  %v521_v11 = vadd.f32 %v15210_v44, %v367_v4  ;;  %v534_v4 = vadd.f32 %v15210_v44, %v380_v61  ;;  %v91_v61 = vld [vmem:[%s20266_s0 + $0x208] sm:$0xff] }
 0x165   :  { %12130 = vmatprep.mubr.msk.f32.mxu0 %vm2063_vm1, %v655_v14  ;;  %v66_v14 = vld [vmem:[%s20266_s0 + $0x140] sm:$0xff]  ;;  %v396_v1 = vmul.f32 %v15195_v38, %v91_v61 }
 0x166   :  { %v671_v18 = vmax.f32 %v521_v11, 0.0  ;;  %v371_v20 = vmul.f32 %v15195_v38, %v66_v14  ;;  %v684_v11 = vmax.f32 %v534_v4, 0.0 }
 0x168   :  { %12131 = vmatmul.mubr.msk.f32.gmra.mrb[20].mxu0 %vm2063_vm1, %v656_v19  ;;  %v523_v19 = vadd.f32 %v15210_v44, %v369_v12  ;;  %v536_v12 = vadd.f32 %v15210_v44, %v382_v5  ;;  %v93_v5 = vld [vmem:[%s20266_s0 + $0x218] sm:$0xff] }
 0x169   :  { %12133 = vmatprep.mubr.msk.f32.mxu0 %vm2063_vm1, %v657_v22  ;;  %v68_v22 = vld [vmem:[%s20266_s0 + $0x150] sm:$0xff]  ;;  %v398_v9 = vmul.f32 %v15195_v38, %v93_v5 }
 0x16a   :  { %v673_v27 = vmax.f32 %v523_v19, 0.0  ;;  %v373_v29 = vmul.f32 %v15195_v38, %v68_v22  ;;  %v686_v19 = vmax.f32 %v536_v12, 0.0 }
 0x16c   :  { %12134 = vmatmul.mubr.msk.f32.gmra.mrb[22].mxu0 %vm2063_vm1, %v658_v28  ;;  %v525_v28 = vadd.f32 %v15210_v44, %v371_v20  ;;  %v538_v20 = vadd.f32 %v15210_v44, %v384_v13  ;;  %v95_v13 = vld [vmem:[%s20266_s0 + $0x228] sm:$0xff] }
 0x16d   :  { %12136 = vmatprep.mubr.msk.f32.mxu0 %vm2063_vm1, %v659_v32  ;;  %v70_v32 = vld [vmem:[%s20266_s0 + $0x160] sm:$0xff]  ;;  %v400_v17 = vmul.f32 %v15195_v38, %v95_v13 }
 0x16e   :  { %v675_v36 = vmax.f32 %v525_v28, 0.0  ;;  %v375_v39 = vmul.f32 %v15195_v38, %v70_v32  ;;  %v688_v28 = vmax.f32 %v538_v20, 0.0 }
 0x170   :  { %12137 = vmatmul.mubr.msk.f32.gmra.mrb[24].mxu0 %vm2063_vm1, %v660_v37  ;;  %v527_v37 = vadd.f32 %v15210_v44, %v373_v29  ;;  %v540_v29 = vadd.f32 %v15210_v44, %v386_v21  ;;  %v97_v21 = vld [vmem:[%s20266_s0 + $0x238] sm:$0xff] }
 0x171   :  { %12139 = vmatprep.mubr.msk.f32.mxu0 %vm2063_vm1, %v661_v41  ;;  %v72_v41 = vld [vmem:[%s20266_s0 + $0x170] sm:$0xff] }
 0x172   :  { %v677_v46 = vmax.f32 %v527_v37, 0.0  ;;  %v377_v48 = vmul.f32 %v15195_v38, %v72_v41  ;;  %v690_v37 = vmax.f32 %v540_v29, 0.0 }
 0x174   :  { %12140 = vmatmul.mubr.msk.f32.gmra.mrb[26].mxu0 %vm2063_vm1, %v662_v47  ;;  %v529_v47 = vadd.f32 %v15210_v44, %v375_v39  ;;  %v542_v39 = vadd.f32 %v15210_v44, %v388_v30  ;;  %v403_v30 = vmul.f32 %v15195_v38, %v15295_v26 }
 0x175   :  { %12142 = vmatprep.mubr.msk.f32.mxu0 %vm2063_vm1, %v663_v50  ;;  %v74_v50 = vld [vmem:[%s20266_s0 + $0x180] sm:$0xff] }
 0x176   :  { %v679_v54 = vmax.f32 %v529_v47, 0.0  ;;  %v379_v56 = vmul.f32 %v15195_v38, %v74_v50  ;;  %v692_v47 = vmax.f32 %v542_v39, 0.0  ;;  %v557_v39 = vadd.f32 %v15210_v44, %v403_v30 }
 0x178   :  { %12143 = vmatmul.mubr.msk.f32.gmra.mrb[28].mxu0 %vm2063_vm1, %v664_v55  ;;  %v531_v55 = vadd.f32 %v15210_v44, %v377_v48  ;;  %v544_v48 = vadd.f32 %v15210_v44, %v390_v40 }
 0x179   :  { %12145 = vmatprep.mubr.msk.f32.mxu0 %vm2063_vm1, %v665_v58  ;;  %v76_v58 = vld [vmem:[%s20266_s0 + $0x190] sm:$0xff] }
 0x17a   :  { %v681_v62 = vmax.f32 %v531_v55, 0.0  ;;  %v381_v0 = vmul.f32 %v15195_v38, %v76_v58  ;;  %v694_v55 = vmax.f32 %v544_v48, 0.0 }
 0x17c   :  { %12146 = vmatmul.mubr.msk.f32.gmra.mrb[30].mxu0 %vm2063_vm1, %v666_v63  ;;  %v533_v63 = vadd.f32 %v15210_v44, %v379_v56  ;;  %v546_v56 = vadd.f32 %v15210_v44, %v392_v49 }
 0x17d   :  { %12148 = vmatprep.mubr.msk.f32.mxu0 %vm2063_vm1, %v667_v2  ;;  %v78_v2 = vld [vmem:[%s20266_s0 + $0x1a0] sm:$0xff] }
 0x17e   :  { %v683_v6 = vmax.f32 %v533_v63, 0.0  ;;  %v383_v8 = vmul.f32 %v15195_v38, %v78_v2  ;;  %v696_v63 = vmax.f32 %v546_v56, 0.0 }
 0x180   :  { %12149 = vmatmul.mubr.msk.f32.gmra.mrb[32].mxu0 %vm2063_vm1, %v668_v7  ;;  %v535_v7 = vadd.f32 %v15210_v44, %v381_v0  ;;  %v548_v0 = vadd.f32 %v15210_v44, %v394_v57 }
 0x181   :  { %12151 = vmatprep.mubr.msk.f32.mxu0 %vm2063_vm1, %v669_v10  ;;  %v80_v10 = vld [vmem:[%s20266_s0 + $0x1b0] sm:$0xff] }
 0x182   :  { %v685_v14 = vmax.f32 %v535_v7, 0.0  ;;  %v385_v16 = vmul.f32 %v15195_v38, %v80_v10  ;;  %v698_v7 = vmax.f32 %v548_v0, 0.0 }
 0x184   :  { %12152 = vmatmul.mubr.msk.f32.gmra.mrb[34].mxu0 %vm2063_vm1, %v670_v15  ;;  %v537_v15 = vadd.f32 %v15210_v44, %v383_v8  ;;  %v550_v8 = vadd.f32 %v15210_v44, %v396_v1 }
 0x185   :  { %12154 = vmatprep.mubr.msk.f32.mxu0 %vm2063_vm1, %v671_v18  ;;  %v82_v18 = vld [vmem:[%s20266_s0 + $0x1c0] sm:$0xff] }
 0x186   :  { %v687_v22 = vmax.f32 %v537_v15, 0.0  ;;  %v387_v24 = vmul.f32 %v15195_v38, %v82_v18  ;;  %v700_v15 = vmax.f32 %v550_v8, 0.0 }
 0x188   :  { %12155 = vmatmul.mubr.msk.f32.gmra.mrb[36].mxu0 %vm2063_vm1, %v672_v23  ;;  %v539_v23 = vadd.f32 %v15210_v44, %v385_v16  ;;  %v552_v16 = vadd.f32 %v15210_v44, %v398_v9 }
 0x189   :  { %12157 = vmatprep.mubr.msk.f32.mxu0 %vm2063_vm1, %v673_v27  ;;  %v84_v27 = vld [vmem:[%s20266_s0 + $0x1d0] sm:$0xff] }
 0x18a   :  { %v689_v32 = vmax.f32 %v539_v23, 0.0  ;;  %v389_v34 = vmul.f32 %v15195_v38, %v84_v27  ;;  %v554_v23 = vadd.f32 %v15210_v44, %v400_v17  ;;  %v5293_v27 = vld [vmem:[%s20267_s5 + $0x8] sm:$0xff] }
 0x18c   :  { %12158 = vmatmul.mubr.msk.f32.gmra.mrb[38].mxu0 %vm2063_vm1, %v674_v33  ;;  %v541_v33 = vadd.f32 %v15210_v44, %v387_v24  ;;  %v402_v24 = vmul.f32 %v15195_v38, %v97_v21  ;;  %v704_v35 = vmax.f32 %v554_v23, 0.0 }
 0x18d   :  { %12160 = vmatprep.mubr.msk.f32.mxu0 %vm2063_vm1, %v675_v36  ;;  %v86_v36 = vld [vmem:[%s20266_s0 + $0x1e0] sm:$0xff] }
 0x18e   :  { %v691_v41 = vmax.f32 %v541_v33, 0.0  ;;  %v391_v43 = vmul.f32 %v15195_v38, %v86_v36  ;;  %v13064_v33 = vpack.c.bf16 %v5293_v27, %v5292_v25  ;;  %v556_v36 = vadd.f32 %v15210_v44, %v402_v24  ;;  %v15795_v27 = vld [vmem:[%s20266_s0 + $0x2b8] sm:$0xff] }
 0x190   :  { %12161 = vmatmul.mubr.msk.f32.gmra.mrb[40].mxu0 %vm2063_vm1, %v676_v42  ;;  %v543_v42 = vadd.f32 %v15210_v44, %v389_v34  ;;  %v15674_v34 = vld [vmem:[%s20266_s0 + $0x250] sm:$0xff]  ;;  %13065 = vmatprep.subr.bf16.mxu0 %v13064_v33 }
 0x191   :  { %12163 = vmatprep.mubr.msk.f32.mxu0 %vm2063_vm1, %v677_v46  ;;  %v88_v46 = vld [vmem:[%s20266_s0 + $0x1f0] sm:$0xff]  ;;  %13104 = vmatprep.subr.bf16.mxu1 %v13064_v33  ;;  %v405_v40 = vmul.f32 %v15195_v38, %v15674_v34 }
 0x192   :  { %v693_v50 = vmax.f32 %v543_v42, 0.0  ;;  %v393_v52 = vmul.f32 %v15195_v38, %v88_v46  ;;  %13106 = vmatpush3.bf16.msra.mxu1 %v13064_v33  ;;  %13067 = vmatpush3.bf16.msra.mxu0 %v13064_v33  ;;  %v15692_v42 = vld [vmem:[%s20266_s0 + $0x260] sm:$0xff]  ;;  %v418_v33 = vmul.f32 %v15195_v38, %v15795_v27 }
 0x193   :  { %v559_v48 = vadd.f32 %v15210_v44, %v405_v40  ;;  %v407_v49 = vmul.f32 %v15195_v38, %v15692_v42 }
 0x194   :  { %12164 = vmatmul.mubr.msk.f32.gmra.mrb[42].mxu0 %vm2063_vm1, %v678_v51  ;;  %v545_v51 = vadd.f32 %v15210_v44, %v391_v43  ;;  %v706_v43 = vmax.f32 %v556_v36, 0.0 }
 0x195   :  { %12166 = vmatprep.mubr.msk.f32.mxu0 %vm2063_vm1, %v679_v54  ;;  %v90_v54 = vld [vmem:[%s20266_s0 + $0x200] sm:$0xff]  ;;  %v561_v56 = vadd.f32 %v15210_v44, %v407_v49  ;;  %v15831_v49 = vld [vmem:[%s20266_s0 + $0x2d8] sm:$0xff] }
 0x196   :  { %v695_v58 = vmax.f32 %v545_v51, 0.0  ;;  %v395_v60 = vmul.f32 %v15195_v38, %v90_v54  ;;  %v15710_v51 = vld [vmem:[%s20266_s0 + $0x270] sm:$0xff] }
 0x197   :  { %v409_v57 = vmul.f32 %v15195_v38, %v15710_v51 }
 0x198   :  { %12167 = vmatmul.mubr.msk.f32.gmra.mrb[44].mxu0 %vm2063_vm1, %v680_v59  ;;  %v547_v59 = vadd.f32 %v15210_v44, %v393_v52 }
 0x199   :  { %12169 = vmatprep.mubr.msk.f32.mxu0 %vm2063_vm1, %v681_v62  ;;  %v92_v62 = vld [vmem:[%s20266_s0 + $0x210] sm:$0xff]  ;;  %v563_v0 = vadd.f32 %v15210_v44, %v409_v57 }
 0x19a   :  { %v697_v2 = vmax.f32 %v547_v59, 0.0  ;;  %v397_v4 = vmul.f32 %v15195_v38, %v92_v62  ;;  %v15728_v59 = vld [vmem:[%s20266_s0 + $0x280] sm:$0xff] }
 0x19b   :  { %v411_v1 = vmul.f32 %v15195_v38, %v15728_v59 }
 0x19c   :  { %12170 = vmatmul.mubr.msk.f32.gmra.mrb[46].mxu0 %vm2063_vm1, %v682_v3  ;;  %v549_v3 = vadd.f32 %v15210_v44, %v395_v60 }
 0x19d   :  { %12172 = vmatprep.mubr.msk.f32.mxu0 %vm2063_vm1, %v683_v6  ;;  %v94_v6 = vld [vmem:[%s20266_s0 + $0x220] sm:$0xff]  ;;  %v565_v8 = vadd.f32 %v15210_v44, %v411_v1 }
 0x19e   :  { %v699_v10 = vmax.f32 %v549_v3, 0.0  ;;  %v399_v12 = vmul.f32 %v15195_v38, %v94_v6  ;;  %v15746_v3 = vld [vmem:[%s20266_s0 + $0x290] sm:$0xff] }
 0x19f   :  { %v413_v9 = vmul.f32 %v15195_v38, %v15746_v3 }
 0x1a0   :  { %12173 = vmatmul.mubr.msk.f32.gmra.mrb[48].mxu0 %vm2063_vm1, %v684_v11  ;;  %v551_v11 = vadd.f32 %v15210_v44, %v397_v4 }
 0x1a1   :  { %12175 = vmatprep.mubr.msk.f32.mxu0 %vm2063_vm1, %v685_v14  ;;  %v96_v14 = vld [vmem:[%s20266_s0 + $0x230] sm:$0xff] }
 0x1a2   :  { %v701_v18 = vmax.f32 %v551_v11, 0.0  ;;  %v401_v20 = vmul.f32 %v15195_v38, %v96_v14  ;;  %v15764_v11 = vld [vmem:[%s20266_s0 + $0x2a0] sm:$0xff] }
 0x1a3   :  { %v415_v17 = vmul.f32 %v15195_v38, %v15764_v11 }
 0x1a4   :  { %12176 = vmatmul.mubr.msk.f32.gmra.mrb[50].mxu0 %vm2063_vm1, %v686_v19  ;;  %v553_v19 = vadd.f32 %v15210_v44, %v399_v12  ;;  %v555_v29 = vadd.f32 %v15210_v44, %v401_v20 }
 0x1a5   :  { %12178 = vmatprep.mubr.msk.f32.mxu0 %vm2063_vm1, %v687_v22  ;;  %v702_v22 = vmax.f32 %v552_v16, 0.0  ;;  %v567_v16 = vadd.f32 %v15210_v44, %v413_v9  ;;  %v569_v24 = vadd.f32 %v15210_v44, %v415_v17 }
 0x1a7   :  { %v717_v23 = vmax.f32 %v567_v16, 0.0 }
 0x1a8   :  { %12179 = vmatmul.mubr.msk.f32.gmra.mrb[52].mxu0 %vm2063_vm1, %v688_v28  ;;  %v703_v28 = vmax.f32 %v553_v19, 0.0  ;;  %v15782_v19 = vld [vmem:[%s20266_s0 + $0x2b0] sm:$0xff] }
 0x1a9   :  { %12181 = vmatprep.mubr.msk.f32.mxu0 %vm2063_vm1, %v689_v32  ;;  %v15669_v32 = vld [vmem:[%s20266_s0 + $0x248] sm:$0xff]  ;;  %v417_v25 = vmul.f32 %v15195_v38, %v15782_v19 }
 0x1aa   :  { %v404_v26 = vmul.f32 %v15195_v38, %v15669_v32 }
 0x1ab   :  { %v571_v36 = vadd.f32 %v15210_v44, %v417_v25 }
 0x1ac   :  { %12182 = vmatmul.mubr.msk.f32.gmra.mrb[54].mxu0 %vm2063_vm1, %v690_v37  ;;  %v705_v37 = vmax.f32 %v555_v29, 0.0  ;;  %v558_v45 = vadd.f32 %v15210_v44, %v404_v26 }
 0x1ad   :  { %12184 = vmatprep.mubr.msk.f32.mxu0 %vm2063_vm1, %v691_v41  ;;  %v15687_v41 = vld [vmem:[%s20266_s0 + $0x258] sm:$0xff] }
 0x1ae   :  { %v406_v46 = vmul.f32 %v15195_v38, %v15687_v41  ;;  %v708_v52 = vmax.f32 %v558_v45, 0.0 }
 0x1b0   :  { %12185 = vmatmul.mubr.msk.f32.gmra.mrb[56].mxu0 %vm2063_vm1, %v692_v47  ;;  %v707_v47 = vmax.f32 %v557_v39, 0.0  ;;  %v560_v53 = vadd.f32 %v15210_v44, %v406_v46  ;;  %v15818_v39 = vld [vmem:[%s20266_s0 + $0x2d0] sm:$0xff]  ;;  %v721_v46 = vmax.f32 %v571_v36, 0.0  ;;  %v15909_v36 = vld [vmem:[%s20266_s0 + $0x318] sm:$0xff] }
 0x1b1   :  { %12187 = vmatprep.mubr.msk.f32.mxu0 %vm2063_vm1, %v693_v50  ;;  %v15705_v50 = vld [vmem:[%s20266_s0 + $0x268] sm:$0xff] }
 0x1b2   :  { %v408_v54 = vmul.f32 %v15195_v38, %v15705_v50  ;;  %v710_v60 = vmax.f32 %v560_v53, 0.0 }
 0x1b4   :  { %12188 = vmatmul.mubr.msk.f32.gmra.mrb[58].mxu0 %vm2063_vm1, %v694_v55  ;;  %v709_v55 = vmax.f32 %v559_v48, 0.0  ;;  %v562_v61 = vadd.f32 %v15210_v44, %v408_v54  ;;  %v421_v48 = vmul.f32 %v15195_v38, %v15818_v39 }
 0x1b5   :  { %12190 = vmatprep.mubr.msk.f32.mxu0 %vm2063_vm1, %v695_v58  ;;  %v15723_v58 = vld [vmem:[%s20266_s0 + $0x278] sm:$0xff] }
 0x1b6   :  { %v410_v62 = vmul.f32 %v15195_v38, %v15723_v58  ;;  %v712_v4 = vmax.f32 %v562_v61, 0.0  ;;  %v575_v57 = vadd.f32 %v15210_v44, %v421_v48  ;;  %v15849_v61 = vld [vmem:[%s20266_s0 + $0x2e8] sm:$0xff] }
 0x1b7   :  { %v424_v1 = vmul.f32 %v15195_v38, %v15849_v61 }
 0x1b8   :  { %12191 = vmatmul.mubr.msk.f32.gmra.mrb[60].mxu0 %vm2063_vm1, %v696_v63  ;;  %v711_v63 = vmax.f32 %v561_v56, 0.0  ;;  %v564_v5 = vadd.f32 %v15210_v44, %v410_v62  ;;  %v15854_v62 = vld [vmem:[%s20266_s0 + $0x2f0] sm:$0xff] }
 0x1b9   :  { %12193 = vmatprep.mubr.msk.f32.mxu0 %vm2063_vm1, %v697_v2  ;;  %v15741_v2 = vld [vmem:[%s20266_s0 + $0x288] sm:$0xff] }
 0x1ba   :  { %v412_v6 = vmul.f32 %v15195_v38, %v15741_v2  ;;  %v714_v12 = vmax.f32 %v564_v5, 0.0 }
 0x1bc   :  { %12194 = vmatmul.mubr.msk.f32.gmra.mrb[62].mxu0 %vm2063_vm1, %v698_v7  ;;  %v713_v7 = vmax.f32 %v563_v0, 0.0  ;;  %v566_v13 = vadd.f32 %v15210_v44, %v412_v6  ;;  %v425_v6 = vmul.f32 %v15195_v38, %v15854_v62 }
 0x1bd   :  { %12196 = vmatprep.mubr.msk.f32.mxu0 %vm2063_vm1, %v699_v10  ;;  %v15759_v10 = vld [vmem:[%s20266_s0 + $0x298] sm:$0xff] }
 0x1be   :  { %v414_v14 = vmul.f32 %v15195_v38, %v15759_v10  ;;  %v716_v20 = vmax.f32 %v566_v13, 0.0  ;;  %v579_v17 = vadd.f32 %v15210_v44, %v425_v6 }
 0x1c0   :  { %12197 = vmatmul.mubr.msk.f32.gmra.mrb[64].mxu0 %vm2063_vm1, %v700_v15  ;;  %v715_v15 = vmax.f32 %v565_v8, 0.0  ;;  %v568_v21 = vadd.f32 %v15210_v44, %v414_v14  ;;  %v15872_v8 = vld [vmem:[%s20266_s0 + $0x300] sm:$0xff]  ;;  %v5294_v14 = vld [vmem:[%s20267_s5 + $0x10] sm:$0xff] }
 0x1c1   :  { %12199 = vmatprep.mubr.msk.f32.mxu0 %vm2063_vm1, %v701_v18  ;;  %v15777_v18 = vld [vmem:[%s20266_s0 + $0x2a8] sm:$0xff] }
 0x1c2   :  { %v718_v29 = vmax.f32 %v568_v21, 0.0  ;;  %v15891_v21 = vld [vmem:[%s20266_s0 + $0x308] sm:$0xff] }
 0x1c4   :  { %12200 = vmatmul.mubr.msk.f32.gmra.mrb[66].mxu0 %vm2063_vm1, %v702_v22  ;;  %v416_v22 = vmul.f32 %v15195_v38, %v15777_v18 }
 0x1c5   :  { %12202 = vmatprep.mubr.msk.f32.mxu0 %vm2063_vm1, %v703_v28  ;;  %v15800_v28 = vld [vmem:[%s20266_s0 + $0x2c0] sm:$0xff] }
 0x1c6   :  { %v570_v30 = vadd.f32 %v15210_v44, %v416_v22  ;;  %v419_v26 = vmul.f32 %v15195_v38, %v15800_v28 }
 0x1c8   :  { %12203 = vmatmul.mubr.msk.f32.gmra.mrb[68].mxu0 %vm2063_vm1, %v704_v35  ;;  %v719_v35 = vmax.f32 %v569_v24, 0.0  ;;  %v720_v40 = vmax.f32 %v570_v30, 0.0  ;;  %v729_v30 = vmax.f32 %v579_v17, 0.0  ;;  %v16002_v17 = vld [vmem:[%s20266_s0 + $0x360] sm:$0xff] }
 0x1c9   :  { %12205 = vmatprep.mubr.msk.f32.mxu0 %vm2063_vm1, %v705_v37  ;;  %v15813_v37 = vld [vmem:[%s20266_s0 + $0x2c8] sm:$0xff] }
 0x1ca   :  { %v420_v45 = vmul.f32 %v15195_v38, %v15813_v37 }
 0x1cc   :  { %12206 = vmatmul.mubr.msk.f32.gmra.mrb[70].mxu0 %vm2063_vm1, %v706_v43  ;;  %v572_v43 = vadd.f32 %v15210_v44, %v418_v33  ;;  %v574_v54 = vadd.f32 %v15210_v44, %v420_v45  ;;  %v430_v45 = vmul.f32 %v15195_v38, %v15909_v36 }
 0x1cd   :  { %12208 = vmatprep.mubr.msk.f32.mxu0 %vm2063_vm1, %v707_v47  ;;  %v573_v47 = vadd.f32 %v15210_v44, %v419_v26  ;;  %v15914_v26 = vld [vmem:[%s20266_s0 + $0x320] sm:$0xff] }
 0x1ce   :  { %v722_v53 = vmax.f32 %v572_v43, 0.0  ;;  %v431_v48 = vmul.f32 %v15195_v38, %v15914_v26 }
 0x1cf   :  { %v723_v56 = vmax.f32 %v573_v47, 0.0 }
 0x1d0   :  { %12209 = vmatmul.mubr.msk.f32.gmra.mrb[72].mxu0 %vm2063_vm1, %v708_v52  ;;  %v15836_v52 = vld [vmem:[%s20266_s0 + $0x2e0] sm:$0xff] }
 0x1d1   :  { %12211 = vmatprep.mubr.msk.f32.mxu0 %vm2063_vm1, %v709_v55  ;;  %v422_v55 = vmul.f32 %v15195_v38, %v15831_v49 }
 0x1d3   :  { %v576_v0 = vadd.f32 %v15210_v44, %v422_v55 }
 0x1d4   :  { %12212 = vmatmul.mubr.msk.f32.gmra.mrb[74].mxu0 %vm2063_vm1, %v710_v60  ;;  %v423_v60 = vmul.f32 %v15195_v38, %v15836_v52 }
 0x1d5   :  { %12214 = vmatprep.mubr.msk.f32.mxu0 %vm2063_vm1, %v711_v63  ;;  %v724_v63 = vmax.f32 %v574_v54, 0.0  ;;  %v726_v9 = vmax.f32 %v576_v0, 0.0  ;;  %v584_v54 = vadd.f32 %v15210_v44, %v430_v45 }
 0x1d6   :  { %v577_v5 = vadd.f32 %v15210_v44, %v423_v60 }
 0x1d8   :  { %12215 = vmatmul.mubr.msk.f32.gmra.mrb[76].mxu0 %vm2063_vm1, %v712_v4  ;;  %v725_v4 = vmax.f32 %v575_v57, 0.0  ;;  %v727_v16 = vmax.f32 %v577_v5, 0.0  ;;  %v585_v57 = vadd.f32 %v15210_v44, %v431_v48 }
 0x1d9   :  { %12217 = vmatprep.mubr.msk.f32.mxu0 %vm2063_vm1, %v713_v7  ;;  %v15867_v7 = vld [vmem:[%s20266_s0 + $0x2f8] sm:$0xff] }
 0x1da   :  { %v426_v13 = vmul.f32 %v15195_v38, %v15867_v7 }
 0x1dc   :  { %12218 = vmatmul.mubr.msk.f32.gmra.mrb[78].mxu0 %vm2063_vm1, %v714_v12  ;;  %v578_v12 = vadd.f32 %v15210_v44, %v424_v1  ;;  %v580_v25 = vadd.f32 %v15210_v44, %v426_v13 }
 0x1dd   :  { %12220 = vmatprep.mubr.msk.f32.mxu0 %vm2063_vm1, %v715_v15  ;;  %v5295_v15 = vld [vmem:[%s20267_s5 + $0x18] sm:$0xff] }
 0x1de   :  { %v13068_v22 = vpack.c.bf16 %v5295_v15, %v5294_v14  ;;  %v728_v24 = vmax.f32 %v578_v12, 0.0 }
 0x1e0   :  { %12221 = vmatmul.mubr.msk.f32.gmra.mrb[80].mxu0 %vm2063_vm1, %v716_v20  ;;  %v427_v20 = vmul.f32 %v15195_v38, %v15872_v8  ;;  %13069 = vmatprep.subr.bf16.mxu0 %v13068_v22 }
 0x1e1   :  { %12223 = vmatprep.mubr.msk.f32.mxu0 %vm2063_vm1, %v717_v23  ;;  %v15896_v23 = vld [vmem:[%s20266_s0 + $0x310] sm:$0xff]  ;;  %13105 = vmatprep.subr.bf16.mxu1 %v13068_v22 }
 0x1e2   :  { %13107 = vmatpush3.bf16.msra.mxu1 %v13068_v22  ;;  %v581_v33 = vadd.f32 %v15210_v44, %v427_v20  ;;  %13071 = vmatpush3.bf16.msra.mxu0 %v13068_v22 }
 0x1e4   :  { %12224 = vmatmul.mubr.msk.f32.gmra.mrb[82].mxu0 %vm2063_vm1, %v718_v29  ;;  %v428_v29 = vmul.f32 %v15195_v38, %v15891_v21 }
 0x1e5   :  { %12226 = vmatprep.mubr.msk.f32.mxu0 %vm2063_vm1, %v719_v35  ;;  %v429_v35 = vmul.f32 %v15195_v38, %v15896_v23  ;;  %12442 = vmatmul.mubr.msk.f32.vlgmr.msra.gmra.mrb[0].mxu1 %vm2063_vm1, %v15669_v32  ;;  %v15931_v32 = vld [vmem:[%s20266_s0 + $0x328] sm:$0xff] }
 0x1e6   :  { %v582_v43 = vadd.f32 %v15210_v44, %v428_v29  ;;  %12444 = vmatprep.mubr.msk.f32.mxu1 %vm2063_vm1, %v15674_v34  ;;  %v432_v55 = vmul.f32 %v15195_v38, %v15931_v32  ;;  %v439_v29 = vmul.f32 %v15195_v38, %v16002_v17 }
 0x1e7   :  { %v583_v47 = vadd.f32 %v15210_v44, %v429_v35 }
 0x1e8   :  { %12227 = vmatmul.mubr.msk.f32.gmra.mrb[84].mxu0 %vm2063_vm1, %v720_v40  ;;  %v730_v40 = vmax.f32 %v580_v25, 0.0  ;;  %v732_v34 = vmax.f32 %v582_v43, 0.0  ;;  %v586_v0 = vadd.f32 %v15210_v44, %v432_v55  ;;  %v593_v45 = vadd.f32 %v15210_v44, %v439_v29 }
 0x1e9   :  { %12229 = vmatprep.mubr.msk.f32.mxu0 %vm2063_vm1, %v721_v46  ;;  %v731_v46 = vmax.f32 %v581_v33, 0.0  ;;  %12445 = vmatmul.mubr.msk.f32.gmra.mrb[2].mxu1 %vm2063_vm1, %v15687_v41  ;;  %v15953_v41 = vld [vmem:[%s20266_s0 + $0x338] sm:$0xff]  ;;  %v3331_v33 = vsub.s32 2, %v15173_v31 }
 0x1ea   :  { %12447 = vmatprep.mubr.msk.f32.mxu1 %vm2063_vm1, %v15692_v42  ;;  %v734_v42 = vmax.f32 %v584_v54, 0.0  ;;  %v434_v1 = vmul.f32 %v15195_v38, %v15953_v41 }
 0x1ec   :  { %12230 = vmatmul.mubr.msk.f32.gmra.mrb[86].mxu0 %vm2063_vm1, %v722_v53  ;;  %v15936_v53 = vld [vmem:[%s20266_s0 + $0x330] sm:$0xff]  ;;  %v588_v12 = vadd.f32 %v15210_v44, %v434_v1 }
 0x1ed   :  { %12232 = vmatprep.mubr.msk.f32.mxu0 %vm2063_vm1, %v723_v56  ;;  %v733_v56 = vmax.f32 %v583_v47, 0.0  ;;  %v433_v60 = vmul.f32 %v15195_v38, %v15936_v53  ;;  %12448 = vmatmul.mubr.msk.f32.gmra.mrb[4].mxu1 %vm2063_vm1, %v15705_v50  ;;  %v15975_v50 = vld [vmem:[%s20266_s0 + $0x348] sm:$0xff]  ;;  %v16047_v47 = vld [vmem:[%s20266_s0 + $0x380] sm:$0xff] }
 0x1ee   :  { %12450 = vmatprep.mubr.msk.f32.mxu1 %vm2063_vm1, %v15710_v51  ;;  %v736_v51 = vmax.f32 %v586_v0, 0.0  ;;  %v436_v13 = vmul.f32 %v15195_v38, %v15975_v50 }
 0x1ef   :  { %v587_v5 = vadd.f32 %v15210_v44, %v433_v60  ;;  %v16069_v60 = vld [vmem:[%s20266_s0 + $0x388] sm:$0xff] }
 0x1f0   :  { %12233 = vmatmul.mubr.msk.f32.gmra.mrb[88].mxu0 %vm2063_vm1, %v724_v63  ;;  %v15958_v63 = vld [vmem:[%s20266_s0 + $0x340] sm:$0xff]  ;;  %v590_v20 = vadd.f32 %v15210_v44, %v436_v13 }
 0x1f1   :  { %12235 = vmatprep.mubr.msk.f32.mxu0 %vm2063_vm1, %v725_v4  ;;  %v735_v4 = vmax.f32 %v585_v57, 0.0  ;;  %v435_v6 = vmul.f32 %v15195_v38, %v15958_v63  ;;  %12451 = vmatmul.mubr.msk.f32.gmra.mrb[6].mxu1 %vm2063_vm1, %v15723_v58  ;;  %v737_v14 = vmax.f32 %v587_v5, 0.0  ;;  %v15997_v58 = vld [vmem:[%s20266_s0 + $0x358] sm:$0xff]  ;;  %v443_v57 = vmul.f32 %v15195_v38, %v16047_v47 }
 0x1f2   :  { %12453 = vmatprep.mubr.msk.f32.mxu1 %vm2063_vm1, %v15728_v59  ;;  %v738_v59 = vmax.f32 %v588_v12, 0.0  ;;  %v438_v22 = vmul.f32 %v15195_v38, %v15997_v58 }
 0x1f3   :  { %v589_v15 = vadd.f32 %v15210_v44, %v435_v6  ;;  %v444_v6 = vmul.f32 %v15195_v38, %v16069_v60  ;;  %v597_v13 = vadd.f32 %v15210_v44, %v443_v57 }
 0x1f4   :  { %12236 = vmatmul.mubr.msk.f32.gmra.mrb[90].mxu0 %vm2063_vm1, %v726_v9  ;;  %v15980_v9 = vld [vmem:[%s20266_s0 + $0x350] sm:$0xff]  ;;  %v592_v35 = vadd.f32 %v15210_v44, %v438_v22 }
 0x1f5   :  { %12238 = vmatprep.mubr.msk.f32.mxu0 %vm2063_vm1, %v727_v16  ;;  %v437_v16 = vmul.f32 %v15195_v38, %v15980_v9  ;;  %12454 = vmatmul.mubr.msk.f32.gmra.mrb[8].mxu1 %vm2063_vm1, %v15741_v2  ;;  %v16019_v2 = vld [vmem:[%s20266_s0 + $0x368] sm:$0xff] }
 0x1f6   :  { %12456 = vmatprep.mubr.msk.f32.mxu1 %vm2063_vm1, %v15746_v3  ;;  %v740_v3 = vmax.f32 %v590_v20, 0.0 }
 0x1f7   :  { %v591_v25 = vadd.f32 %v15210_v44, %v437_v16 }
 0x1f8   :  { %12239 = vmatmul.mubr.msk.f32.gmra.mrb[92].mxu0 %vm2063_vm1, %v728_v24  ;;  %v739_v24 = vmax.f32 %v589_v15, 0.0  ;;  %v16098_v15 = vld [vmem:[%s20266_s0 + $0x3a0] sm:$0xff] }
 0x1f9   :  { %12241 = vmatprep.mubr.msk.f32.mxu0 %vm2063_vm1, %v729_v30  ;;  %v16024_v30 = vld [vmem:[%s20266_s0 + $0x370] sm:$0xff]  ;;  %12457 = vmatmul.mubr.msk.f32.gmra.mrb[10].mxu1 %vm2063_vm1, %v15759_v10  ;;  %v741_v43 = vmax.f32 %v591_v25, 0.0  ;;  %v447_v25 = vmul.f32 %v15195_v38, %v16098_v15 }
 0x1fa   :  { %12459 = vmatprep.mubr.msk.f32.mxu1 %vm2063_vm1, %v15764_v11  ;;  %v441_v10 = vmul.f32 %v15195_v38, %v16024_v30  ;;  %v14311_v11 = vld [vmem:[%s20265_s2] sm:$0xff] }
 0x1fb   :  { %v16055_v48 = vrot.slane %v14311_v11, %v3331_v33  ;;  %v3635_v33 = vsub.s32 3, %v15173_v31 }
 0x1fc   :  { %12242 = vmatmul.mubr.msk.f32.gmra.mrb[94].mxu0 %vm2063_vm1, %v730_v40  ;;  %v440_v40 = vmul.f32 %v15195_v38, %v16019_v2 }
 0x1fd   :  { %12244 = vmatprep.mubr.msk.f32.mxu0 %vm2063_vm1, %v731_v46  ;;  %v16042_v46 = vld [vmem:[%s20266_s0 + $0x378] sm:$0xff]  ;;  %12460 = vmatmul.mubr.msk.f32.gmra.mrb[12].mxu1 %vm2063_vm1, %v15777_v18  ;;  %v743_v18 = vmax.f32 %v593_v45, 0.0 }
 0x1fe   :  { %v594_v54 = vadd.f32 %v15210_v44, %v440_v40  ;;  %v442_v55 = vmul.f32 %v15195_v38, %v16042_v46  ;;  %12462 = vmatprep.mubr.msk.f32.mxu1 %vm2063_vm1, %v15782_v19  ;;  %v16123_v40 = vld [vmem:[%s20266_s0 + $0x3b0] sm:$0xff] }
 0x1ff   :  { %v449_v57 = vmul.f32 %v15195_v38, %v16123_v40 }
 0x200   :  { %12245 = vmatmul.mubr.msk.f32.gmra.mrb[96].mxu0 %vm2063_vm1, %v732_v34  ;;  %v742_v34 = vmax.f32 %v592_v35, 0.0  ;;  %v596_v5 = vadd.f32 %v15210_v44, %v442_v55  ;;  %v16118_v35 = vld [vmem:[%s20266_s0 + $0x3a8] sm:$0xff] }
 0x201   :  { %12247 = vmatprep.mubr.msk.f32.mxu0 %vm2063_vm1, %v733_v56  ;;  %v595_v56 = vadd.f32 %v15210_v44, %v441_v10  ;;  %12463 = vmatmul.mubr.msk.f32.gmra.mrb[14].mxu1 %vm2063_vm1, %v15795_v27  ;;  %v448_v55 = vmul.f32 %v15195_v38, %v16118_v35 }
 0x202   :  { %12465 = vmatprep.mubr.msk.f32.mxu1 %vm2063_vm1, %v15800_v28  ;;  %v746_v22 = vmax.f32 %v596_v5, 0.0 }
 0x203   :  { %v745_v12 = vmax.f32 %v595_v56, 0.0 }
 0x204   :  { %12248 = vmatmul.mubr.msk.f32.gmra.mrb[98].mxu0 %vm2063_vm1, %v734_v42  ;;  %v16074_v42 = vld [vmem:[%s20266_s0 + $0x390] sm:$0xff] }
 0x205   :  { %12250 = vmatprep.mubr.msk.f32.mxu0 %vm2063_vm1, %v735_v4  ;;  %v744_v4 = vmax.f32 %v594_v54, 0.0  ;;  %12466 = vmatmul.mubr.msk.f32.gmra.mrb[16].mxu1 %vm2063_vm1, %v15813_v37  ;;  %v601_v54 = vadd.f32 %v15210_v44, %v447_v25  ;;  %v16178_v25 = vld [vmem:[%s20266_s0 + $0x3d0] sm:$0xff] }
 0x206   :  { %12468 = vmatprep.mubr.msk.f32.mxu1 %vm2063_vm1, %v15818_v39 }
 0x208   :  { %12251 = vmatmul.mubr.msk.f32.gmra.mrb[100].mxu0 %vm2063_vm1, %v736_v51  ;;  %v16086_v51 = vld [vmem:[%s20266_s0 + $0x398] sm:$0xff] }
 0x209   :  { %12253 = vmatprep.mubr.msk.f32.mxu0 %vm2063_vm1, %v737_v14  ;;  %v445_v14 = vmul.f32 %v15195_v38, %v16074_v42  ;;  %v446_v28 = vmul.f32 %v15195_v38, %v16086_v51  ;;  %12469 = vmatmul.mubr.msk.f32.gmra.mrb[18].mxu1 %vm2063_vm1, %v15831_v49  ;;  %v16137_v49 = vrot.slane %v14311_v11, %v3635_v33  ;;  %v16154_v11 = vld [vmem:[%s20266_s0 + $0x3c8] sm:$0xff] }
 0x20a   :  { %12471 = vmatprep.mubr.msk.f32.mxu1 %vm2063_vm1, %v15836_v52  ;;  %v16149_v52 = vld [vmem:[%s20266_s0 + $0x3c0] sm:$0xff] }
 0x20b   :  { %v599_v37 = vadd.f32 %v15210_v44, %v445_v14 }
 0x20c   :  { %12254 = vmatmul.mubr.msk.f32.gmra.mrb[102].mxu0 %vm2063_vm1, %v738_v59 }
 0x20d   :  { %12256 = vmatprep.mubr.msk.f32.mxu0 %vm2063_vm1, %v739_v24  ;;  %v598_v24 = vadd.f32 %v15210_v44, %v444_v6  ;;  %v749_v56 = vmax.f32 %v599_v37, 0.0  ;;  %12472 = vmatmul.mubr.msk.f32.gmra.mrb[20].mxu1 %vm2063_vm1, %v15849_v61 }
 0x20e   :  { %12474 = vmatprep.mubr.msk.f32.mxu1 %vm2063_vm1, %v15854_v62 }
 0x210   :  { %12257 = vmatmul.mubr.msk.f32.gmra.mrb[104].mxu0 %vm2063_vm1, %v740_v3  ;;  %v747_v3 = vmax.f32 %v597_v13, 0.0 }
 0x211   :  { %12259 = vmatprep.mubr.msk.f32.mxu0 %vm2063_vm1, %v741_v43  ;;  %v600_v43 = vadd.f32 %v15210_v44, %v446_v28  ;;  %v603_v28 = vadd.f32 %v15210_v44, %v449_v57  ;;  %12475 = vmatmul.mubr.msk.f32.gmra.mrb[22].mxu1 %vm2063_vm1, %v15867_v7 }
 0x212   :  { %12477 = vmatprep.mubr.msk.f32.mxu1 %vm2063_vm1, %v15872_v8  ;;  %v16208_v8 = vld [vmem:[%s20266_s0 + $0x3e0] sm:$0xff] }
 0x213   :  { %v12102_v0 = vpop.f32.mrb[0].mxu0 }
 0x214   :  { %v3334_v19 = vadd.f32 %v12102_v0, %v16055_v48  ;;  %v2580_v1 = vpop.f32.mrb[1].mxu0  ;;  %12260 = vmatmul.mubr.msk.f32.gmra.mrb[106].mxu0 %vm2063_vm1, %v742_v34  ;;  %v748_v34 = vmax.f32 %v598_v24, 0.0  ;;  %v16144_v0 = vld [vmem:[%s20266_s0 + $0x3b8] sm:$0xff] }
 0x215   :  { %v3333_v27 = vadd.f32 %v16055_v48, %v2580_v1  ;;  %12262 = vmatprep.mubr.msk.f32.mxu0 %vm2063_vm1, %v743_v18  ;;  %v750_v1 = vmax.f32 %v600_v43, 0.0  ;;  %v450_v13 = vmul.f32 %v15195_v38, %v16144_v0  ;;  %v16188_v43 = vld [vmem:[%s20266_s0 + $0x3d8] sm:$0xff]  ;;  %12478 = vmatmul.mubr.msk.f32.gmra.mrb[24].mxu1 %vm2063_vm1, %v15891_v21 }
 0x216   :  { %13411 = vtanh.f32 %v3334_v19  ;;  %12480 = vmatprep.mubr.msk.f32.mxu1 %vm2063_vm1, %v15896_v23 }
 0x217   :  { %13413 = vtanh.f32 %v3333_v27  ;;  %v12105_v16 = vpop.f32.mrb[2].mxu0  ;;  %v751_v27 = vmax.f32 %v601_v54, 0.0 }
 0x218   :  { %v3336_v59 = vadd.f32 %v12105_v16, %v16055_v48  ;;  %v2590_v20 = vpop.f32.mrb[3].mxu0  ;;  %12263 = vmatmul.mubr.msk.f32.gmra.mrb[108].mxu0 %vm2063_vm1, %v744_v4 }
 0x219   :  { %v3335_v29 = vadd.f32 %v16055_v48, %v2590_v20  ;;  %12265 = vmatprep.mubr.msk.f32.mxu0 %vm2063_vm1, %v745_v12  ;;  %v602_v12 = vadd.f32 %v15210_v44, %v448_v55  ;;  %v452_v20 = vmul.f32 %v15195_v38, %v16154_v11  ;;  %12481 = vmatmul.mubr.msk.f32.gmra.mrb[26].mxu1 %vm2063_vm1, %v15909_v36 }
 0x21a   :  { %13415 = vtanh.f32 %v3336_v59  ;;  %v451_v59 = vmul.f32 %v15195_v38, %v16149_v52  ;;  %12483 = vmatprep.mubr.msk.f32.mxu1 %vm2063_vm1, %v15914_v26 }
 0x21b   :  { %13417 = vtanh.f32 %v3335_v29  ;;  %v12108_v39 = vpop.f32.mrb[4].mxu0  ;;  %v752_v33 = vmax.f32 %v602_v12, 0.0  ;;  %v16197_v55 = vadd.f32 %v15210_v44, %v452_v20  ;;  %v16229_v20 = vld [vmem:[%s20266_s0 + $0x3f0] sm:$0xff] }
 0x21c   :  { %v3338_v45 = vadd.f32 %v12108_v39, %v16055_v48  ;;  %v2600_v10 = vpop.f32.mrb[5].mxu0  ;;  %12266 = vmatmul.mubr.msk.f32.gmra.mrb[110].mxu0 %vm2063_vm1, %v746_v22  ;;  %v604_v39 = vadd.f32 %v15210_v44, %v450_v13  ;;  %v605_v54 = vadd.f32 %v15210_v44, %v451_v59  ;;  %v16218_v13 = vld [vmem:[%s20266_s0 + $0x3e8] sm:$0xff]  ;;  %v455_v59 = vmul.f32 %v15195_v38, %v16208_v8 }
 0x21d   :  { %v3337_v18 = vadd.f32 %v16055_v48, %v2600_v10  ;;  %12268 = vmatprep.mubr.msk.f32.mxu0 %vm2063_vm1, %v747_v3  ;;  %12484 = vmatmul.mubr.msk.f32.gmra.mrb[28].mxu1 %vm2063_vm1, %v15931_v32 }
 0x21e   :  { %13419 = vtanh.f32 %v3338_v45  ;;  %v755_v21 = vmax.f32 %v605_v54, 0.0  ;;  %12486 = vmatprep.mubr.msk.f32.mxu1 %vm2063_vm1, %v15936_v53 }
 0x21f   :  { %13421 = vtanh.f32 %v3337_v18  ;;  %v12111_v19 = vpop.f32.mrb[6].mxu0  ;;  %v453_v18 = vmul.f32 %v15195_v38, %v16178_v25 }
 0x220   :  { %v13412_v4 = vpop.eup %13411  ;;  %v3340_v5 = vadd.f32 %v12111_v19, %v16055_v48  ;;  %v2610_v6 = vpop.f32.mrb[7].mxu0  ;;  %12269 = vmatmul.mubr.msk.f32.gmra.mrb[112].mxu0 %vm2063_vm1, %v748_v34  ;;  %v753_v34 = vmax.f32 %v603_v28, 0.0 }
 0x221   :  { %v13414_v14 = vpop.eup %13413  ;;  %v3339_v16 = vadd.f32 %v16055_v48, %v2610_v6  ;;  %12271 = vmatprep.mubr.msk.f32.mxu0 %vm2063_vm1, %v749_v56  ;;  %v3638_v61 = vmul.f32 %v13412_v4, %v16137_v49  ;;  %v607_v28 = vadd.f32 %v15210_v44, %v453_v18  ;;  %v609_v18 = vadd.f32 %v15210_v44, %v455_v59 }
 0x222   :  { %13423 = vtanh.f32 %v3340_v5  ;;  %v3637_v24 = vmul.f32 %v13414_v14, %v16137_v49  ;;  %12487 = vmatmul.mubr.msk.f32.gmra.mrb[30].mxu1 %vm2063_vm1, %v15953_v41 }
 0x223   :  { %13425 = vtanh.f32 %v3339_v16  ;;  %v12114_v22 = vpop.f32.mrb[8].mxu0  ;;  %v3791_v62 = vsel %vm3787_vm2, %v3638_v61, 0.0  ;;  %v759_v59 = vmax.f32 %v609_v18, 0.0  ;;  %12489 = vmatprep.mubr.msk.f32.mxu1 %vm2063_vm1, %v15958_v63  ;;  %v16316_v63 = vld [vmem:[%s20266_s0 + $0x420] sm:$0xff] }
 0x224   :  { %v13416_v29 = vpop.eup %13415  ;;  %v3342_v3 = vadd.f32 %v12114_v22, %v16055_v48  ;;  %12272 = vmatmul.mubr.msk.f32.gmra.mrb[114].mxu0 %vm2063_vm1, %v750_v1  ;;  %3792 = vadd.xlane.f32.xlu0 %v3791_v62  ;;  %v2620_v37 = vpop.f32.mrb[9].mxu0  ;;  %v3788_v57 = vsel %vm3787_vm2, %v3637_v24, 0.0  ;;  %v454_v1 = vmul.f32 %v15195_v38, %v16188_v43  ;;  %v756_v62 = vmax.f32 %v16197_v55, 0.0 }
 0x225   :  { %v13418_v45 = vpop.eup %13417  ;;  %v3341_v10 = vadd.f32 %v16055_v48, %v2620_v37  ;;  %12274 = vmatprep.mubr.msk.f32.mxu0 %vm2063_vm1, %v751_v27  ;;  %v3640_v7 = vmul.f32 %v13416_v29, %v16137_v49  ;;  %v754_v27 = vmax.f32 %v604_v39, 0.0  ;;  %v456_v29 = vmul.f32 %v15195_v38, %v16218_v13 }
 0x226   :  { %13427 = vtanh.f32 %v3342_v3  ;;  %v3639_v12 = vmul.f32 %v13418_v45, %v16137_v49  ;;  %v608_v24 = vadd.f32 %v15210_v44, %v454_v1  ;;  %v757_v55 = vmax.f32 %v607_v28, 0.0  ;;  %v16263_v1 = vld [vmem:[%s20266_s0 + $0x400] sm:$0xff]  ;;  %12490 = vmatmul.mubr.msk.f32.gmra.mrb[32].mxu1 %vm2063_vm1, %v15975_v50 }
 0x227   :  { %13429 = vtanh.f32 %v3341_v10  ;;  %v12117_v56 = vpop.f32.mrb[10].mxu0  ;;  %v3797_v19 = vsel %vm3787_vm2, %v3640_v7, 0.0  ;;  %v16247_v10 = vld [vmem:[%s20266_s0 + $0x3f8] sm:$0xff]  ;;  %v610_v26 = vadd.f32 %v15210_v44, %v456_v29  ;;  %12492 = vmatprep.mubr.msk.f32.mxu1 %vm2063_vm1, %v15980_v9 }
 0x228   :  { %v13420_v4 = vpop.eup %13419  ;;  %v3344_v5 = vadd.f32 %v12117_v56, %v16055_v48  ;;  %12275 = vmatmul.mubr.msk.f32.gmra.mrb[116].mxu0 %vm2063_vm1, %v752_v33  ;;  %3789 = vadd.xlane.f32.xlu0 %v3788_v57  ;;  %v2630_v6 = vpop.f32.mrb[11].mxu0  ;;  %v3794_v33 = vsel %vm3787_vm2, %v3639_v12, 0.0  ;;  %v758_v57 = vmax.f32 %v608_v24, 0.0 }
 0x229   :  { %v13422_v14 = vpop.eup %13421  ;;  %3798 = vadd.xlane.f32.xlu1 %v3797_v19  ;;  %v3343_v16 = vadd.f32 %v16055_v48, %v2630_v6  ;;  %12277 = vmatprep.mubr.msk.f32.mxu0 %vm2063_vm1, %v753_v34  ;;  %v3642_v45 = vmul.f32 %v13420_v4, %v16137_v49  ;;  %v457_v34 = vmul.f32 %v15195_v38, %v16229_v20  ;;  %v760_v24 = vmax.f32 %v610_v26, 0.0 }
 0x22a   :  { %13431 = vtanh.f32 %v3344_v5  ;;  %v3641_v61 = vmul.f32 %v13422_v14, %v16137_v49  ;;  %v458_v19 = vmul.f32 %v15195_v38, %v16247_v10  ;;  %12493 = vmatmul.mubr.msk.f32.gmra.mrb[34].mxu1 %vm2063_vm1, %v15997_v58 }
 0x22b   :  { %13433 = vtanh.f32 %v3343_v16  ;;  %v12120_v22 = vpop.f32.mrb[12].mxu0  ;;  %v3803_v6 = vsel %vm3787_vm2, %v3642_v45, 0.0  ;;  %v16275_v16 = vld [vmem:[%s20266_s0 + $0x408] sm:$0xff]  ;;  %12495 = vmatprep.mubr.msk.f32.mxu1 %vm2063_vm1, %v16002_v17 }
 0x22c   :  { %v13424_v3 = vpop.eup %13423  ;;  %v3346_v37 = vadd.f32 %v12120_v22, %v16055_v48  ;;  %12278 = vmatmul.mubr.msk.f32.gmra.mrb[118].mxu0 %vm2063_vm1, %v754_v27  ;;  %v2640_v23 = vpop.f32.mrb[13].mxu0  ;;  %v3800_v39 = vsel %vm3787_vm2, %v3641_v61, 0.0  ;;  %v611_v61 = vadd.f32 %v15210_v44, %v457_v34  ;;  %v459_v22 = vmul.f32 %v15195_v38, %v16263_v1 }
 0x22d   :  { %v13426_v36 = vpop.eup %13425  ;;  %3795 = vadd.xlane.f32.xlu1 %v3794_v33  ;;  %v3345_v7 = vadd.f32 %v16055_v48, %v2640_v23  ;;  %3801 = vadd.xlane.f32.xlu0 %v3800_v39  ;;  %v3644_v14 = vmul.f32 %v13424_v3, %v16137_v49  ;;  %v612_v53 = vadd.f32 %v15210_v44, %v458_v19  ;;  %v16291_v3 = vld [vmem:[%s20266_s0 + $0x410] sm:$0xff] }
 0x22e   :  { %13435 = vtanh.f32 %v3346_v37  ;;  %12280 = vmatprep.mubr.msk.f32.mxu0 %vm2063_vm1, %v755_v21  ;;  %v3643_v54 = vmul.f32 %v13426_v36, %v16137_v49  ;;  %v460_v29 = vmul.f32 %v15195_v38, %v16275_v16  ;;  %v613_v18 = vadd.f32 %v15210_v44, %v459_v22  ;;  %12496 = vmatmul.mubr.msk.f32.gmra.mrb[36].mxu1 %vm2063_vm1, %v16019_v2 }
 0x22f   :  { %13437 = vtanh.f32 %v3345_v7  ;;  %v12123_v56 = vpop.f32.mrb[14].mxu0  ;;  %v3809_v23 = vsel %vm3787_vm2, %v3644_v14, 0.0  ;;  %v16303_v7 = vld [vmem:[%s20266_s0 + $0x418] sm:$0xff]  ;;  %v762_v26 = vmax.f32 %v612_v53, 0.0  ;;  %12498 = vmatprep.mubr.msk.f32.mxu1 %vm2063_vm1, %v16024_v30  ;;  %v16400_v30 = vld [vmem:[%s20266_s0 + $0x450] sm:$0xff] }
 0x230   :  { %v13428_v4 = vpop.eup %13427  ;;  %v3348_v5 = vadd.f32 %v12123_v56, %v16055_v48  ;;  %12281 = vmatmul.mubr.msk.f32.gmra.mrb[120].mxu0 %vm2063_vm1, %v756_v62  ;;  %v2650_v27 = vpop.f32.mrb[15].mxu0  ;;  %v3806_v12 = vsel %vm3787_vm2, %v3643_v54, 0.0  ;;  %v761_v54 = vmax.f32 %v611_v61, 0.0  ;;  %v461_v56 = vmul.f32 %v15195_v38, %v16291_v3 }
 0x231   :  { %v13430_v32 = vpop.eup %13429  ;;  %3804 = vadd.xlane.f32.xlu1 %v3803_v6  ;;  %v3347_v21 = vadd.f32 %v16055_v48, %v2650_v27  ;;  %3807 = vadd.xlane.f32.xlu0 %v3806_v12  ;;  %v3646_v36 = vmul.f32 %v13428_v4, %v16137_v49  ;;  %v614_v19 = vadd.f32 %v15210_v44, %v460_v29  ;;  %v763_v22 = vmax.f32 %v613_v18, 0.0 }
 0x232   :  { %13439 = vtanh.f32 %v3348_v5  ;;  %12283 = vmatprep.mubr.msk.f32.mxu0 %vm2063_vm1, %v757_v55  ;;  %v3645_v28 = vmul.f32 %v13430_v32, %v16137_v49  ;;  %v462_v4 = vmul.f32 %v15195_v38, %v16303_v7  ;;  %12499 = vmatmul.mubr.msk.f32.gmra.mrb[38].mxu1 %vm2063_vm1, %v16042_v46 }
 0x233   :  { %13441 = vtanh.f32 %v3347_v21  ;;  %v12126_v62 = vpop.f32.mrb[16].mxu0  ;;  %v3815_v27 = vsel %vm3787_vm2, %v3646_v36, 0.0  ;;  %v16331_v21 = vld [vmem:[%s20266_s0 + $0x428] sm:$0xff]  ;;  %v764_v53 = vmax.f32 %v614_v19, 0.0  ;;  %12501 = vmatprep.mubr.msk.f32.mxu1 %vm2063_vm1, %v16047_v47 }
 0x234   :  { %v13432_v37 = vpop.eup %13431  ;;  %v3350_v33 = vadd.f32 %v12126_v62, %v16055_v48  ;;  %12284 = vmatmul.mubr.msk.f32.gmra.mrb[122].mxu0 %vm2063_vm1, %v758_v57  ;;  %v2660_v39 = vpop.f32.mrb[17].mxu0  ;;  %v3812_v45 = vsel %vm3787_vm2, %v3645_v28, 0.0  ;;  %v463_v28 = vmul.f32 %v15195_v38, %v16316_v63  ;;  %v615_v62 = vadd.f32 %v15210_v44, %v461_v56 }
 0x235   :  { %v13434_v41 = vpop.eup %13433  ;;  %3810 = vadd.xlane.f32.xlu1 %v3809_v23  ;;  %v3349_v34 = vadd.f32 %v16055_v48, %v2660_v39  ;;  %3813 = vadd.xlane.f32.xlu0 %v3812_v45  ;;  %v3648_v32 = vmul.f32 %v13432_v37, %v16137_v49  ;;  %v616_v9 = vadd.f32 %v15210_v44, %v462_v4  ;;  %v16347_v37 = vld [vmem:[%s20266_s0 + $0x430] sm:$0xff] }
 0x236   :  { %13443 = vtanh.f32 %v3350_v33  ;;  %12286 = vmatprep.mubr.msk.f32.mxu0 %vm2063_vm1, %v759_v59  ;;  %v3647_v55 = vmul.f32 %v13434_v41, %v16137_v49  ;;  %v464_v29 = vmul.f32 %v15195_v38, %v16331_v21  ;;  %v765_v56 = vmax.f32 %v615_v62, 0.0  ;;  %12502 = vmatmul.mubr.msk.f32.gmra.mrb[40].mxu1 %vm2063_vm1, %v16069_v60 }
 0x237   :  { %13445 = vtanh.f32 %v3349_v34  ;;  %v12129_v57 = vpop.f32.mrb[18].mxu0  ;;  %v3821_v39 = vsel %vm3787_vm2, %v3648_v32, 0.0  ;;  %v16359_v34 = vld [vmem:[%s20266_s0 + $0x438] sm:$0xff]  ;;  %v766_v19 = vmax.f32 %v616_v9, 0.0  ;;  %12504 = vmatprep.mubr.msk.f32.mxu1 %vm2063_vm1, %v16074_v42  ;;  %v16456_v42 = vld [vmem:[%s20266_s0 + $0x470] sm:$0xff] }
 0x238   :  { %v13436_v5 = vpop.eup %13435  ;;  %v3352_v6 = vadd.f32 %v12129_v57, %v16055_v48  ;;  %12287 = vmatmul.mubr.msk.f32.gmra.mrb[124].mxu0 %vm2063_vm1, %v760_v24  ;;  %v2670_v12 = vpop.f32.mrb[19].mxu0  ;;  %v3818_v14 = vsel %vm3787_vm2, %v3647_v55, 0.0  ;;  %v617_v55 = vadd.f32 %v15210_v44, %v463_v28  ;;  %v465_v57 = vmul.f32 %v15195_v38, %v16347_v37 }
 0x239   :  { %v13438_v50 = vpop.eup %13437  ;;  %3816 = vadd.xlane.f32.xlu1 %v3815_v27  ;;  %v3351_v61 = vadd.f32 %v16055_v48, %v2670_v12  ;;  %3819 = vadd.xlane.f32.xlu0 %v3818_v14  ;;  %v3650_v41 = vmul.f32 %v13436_v5, %v16137_v49  ;;  %v618_v17 = vadd.f32 %v15210_v44, %v464_v29  ;;  %v16375_v5 = vld [vmem:[%s20266_s0 + $0x440] sm:$0xff] }
 0x23a   :  { %13447 = vtanh.f32 %v3352_v6  ;;  %12289 = vmatprep.mubr.msk.f32.mxu0 %vm2063_vm1, %v761_v54  ;;  %v3649_v59 = vmul.f32 %v13438_v50, %v16137_v49  ;;  %v466_v4 = vmul.f32 %v15195_v38, %v16359_v34  ;;  %v619_v62 = vadd.f32 %v15210_v44, %v465_v57  ;;  %12505 = vmatmul.mubr.msk.f32.gmra.mrb[42].mxu1 %vm2063_vm1, %v16086_v51 }
 0x23b   :  { %13449 = vtanh.f32 %v3351_v61  ;;  %v12132_v24 = vpop.f32.mrb[20].mxu0  ;;  %v3827_v12 = vsel %vm3787_vm2, %v3650_v41, 0.0  ;;  %v16387_v61 = vld [vmem:[%s20266_s0 + $0x448] sm:$0xff]  ;;  %v768_v9 = vmax.f32 %v618_v17, 0.0  ;;  %12507 = vmatprep.mubr.msk.f32.mxu1 %vm2063_vm1, %v16098_v15  ;;  %v16486_v15 = vld [vmem:[%s20266_s0 + $0x480] sm:$0xff] }
 0x23c   :  { %v13440_v33 = vpop.eup %13439  ;;  %v3354_v23 = vadd.f32 %v12132_v24, %v16055_v48  ;;  %12290 = vmatmul.mubr.msk.f32.gmra.mrb[126].mxu0 %vm2063_vm1, %v762_v26  ;;  %v2680_v45 = vpop.f32.mrb[21].mxu0  ;;  %v3824_v36 = vsel %vm3787_vm2, %v3649_v59, 0.0  ;;  %v767_v59 = vmax.f32 %v617_v55, 0.0  ;;  %v467_v24 = vmul.f32 %v15195_v38, %v16375_v5 }
 0x23d   :  { %v13442_v58 = vpop.eup %13441  ;;  %3822 = vadd.xlane.f32.xlu1 %v3821_v39  ;;  %v3353_v54 = vadd.f32 %v16055_v48, %v2680_v45  ;;  %3825 = vadd.xlane.f32.xlu0 %v3824_v36  ;;  %v3652_v50 = vmul.f32 %v13440_v33, %v16137_v49  ;;  %v620_v29 = vadd.f32 %v15210_v44, %v466_v4  ;;  %v769_v57 = vmax.f32 %v619_v62, 0.0 }
 0x23e   :  { %13451 = vtanh.f32 %v3354_v23  ;;  %12292 = vmatprep.mubr.msk.f32.mxu0 %vm2063_vm1, %v763_v22  ;;  %v3651_v18 = vmul.f32 %v13442_v58, %v16137_v49  ;;  %v468_v33 = vmul.f32 %v15195_v38, %v16387_v61  ;;  %12508 = vmatmul.mubr.msk.f32.gmra.mrb[44].mxu1 %vm2063_vm1, %v16118_v35 }
 0x23f   :  { %13453 = vtanh.f32 %v3353_v54  ;;  %v12135_v26 = vpop.f32.mrb[22].mxu0  ;;  %v3833_v45 = vsel %vm3787_vm2, %v3652_v50, 0.0  ;;  %v16415_v54 = vld [vmem:[%s20266_s0 + $0x458] sm:$0xff]  ;;  %v770_v17 = vmax.f32 %v620_v29, 0.0  ;;  %12510 = vmatprep.mubr.msk.f32.mxu1 %vm2063_vm1, %v16123_v40 }
 0x240   :  { %v13444_v6 = vpop.eup %13443  ;;  %v3356_v27 = vadd.f32 %v12135_v26, %v16055_v48  ;;  %12293 = vmatmul.mubr.msk.f32.gmra.mrb[128].mxu0 %vm2063_vm1, %v764_v53  ;;  %v2690_v14 = vpop.f32.mrb[23].mxu0  ;;  %v3830_v32 = vsel %vm3787_vm2, %v3651_v18, 0.0  ;;  %v469_v18 = vmul.f32 %v15195_v38, %v16400_v30  ;;  %v621_v26 = vadd.f32 %v15210_v44, %v467_v24 }
 0x241   :  { %v13446_v2 = vpop.eup %13445  ;;  %3828 = vadd.xlane.f32.xlu1 %v3827_v12  ;;  %v3355_v28 = vadd.f32 %v16055_v48, %v2690_v14  ;;  %3831 = vadd.xlane.f32.xlu0 %v3830_v32  ;;  %v3654_v58 = vmul.f32 %v13444_v6, %v16137_v49  ;;  %v622_v47 = vadd.f32 %v15210_v44, %v468_v33  ;;  %v16431_v6 = vld [vmem:[%s20266_s0 + $0x460] sm:$0xff] }
 0x242   :  { %13455 = vtanh.f32 %v3356_v27  ;;  %12295 = vmatprep.mubr.msk.f32.mxu0 %vm2063_vm1, %v765_v56  ;;  %v3653_v22 = vmul.f32 %v13446_v2, %v16137_v49  ;;  %v470_v4 = vmul.f32 %v15195_v38, %v16415_v54  ;;  %v771_v24 = vmax.f32 %v621_v26, 0.0  ;;  %12511 = vmatmul.mubr.msk.f32.gmra.mrb[46].mxu1 %vm2063_vm1, %v16144_v0 }
 0x243   :  { %13457 = vtanh.f32 %v3355_v28  ;;  %v12138_v53 = vpop.f32.mrb[24].mxu0  ;;  %v3839_v14 = vsel %vm3787_vm2, %v3654_v58, 0.0  ;;  %v16443_v28 = vld [vmem:[%s20266_s0 + $0x468] sm:$0xff]  ;;  %v772_v29 = vmax.f32 %v622_v47, 0.0  ;;  %12513 = vmatprep.mubr.msk.f32.mxu1 %vm2063_vm1, %v16149_v52 }
 0x244   :  { %v13448_v23 = vpop.eup %13447  ;;  %v3358_v39 = vadd.f32 %v12138_v53, %v16055_v48  ;;  %12296 = vmatmul.mubr.msk.f32.gmra.mrb[130].mxu0 %vm2063_vm1, %v766_v19  ;;  %v2700_v36 = vpop.f32.mrb[25].mxu0  ;;  %v3836_v41 = vsel %vm3787_vm2, %v3653_v22, 0.0  ;;  %v623_v22 = vadd.f32 %v15210_v44, %v469_v18  ;;  %v471_v53 = vmul.f32 %v15195_v38, %v16431_v6 }
 0x245   :  { %v13450_v46 = vpop.eup %13449  ;;  %3834 = vadd.xlane.f32.xlu1 %v3833_v45  ;;  %v3357_v55 = vadd.f32 %v16055_v48, %v2700_v36  ;;  %3837 = vadd.xlane.f32.xlu0 %v3836_v41  ;;  %v3656_v2 = vmul.f32 %v13448_v23, %v16137_v49  ;;  %v624_v33 = vadd.f32 %v15210_v44, %v470_v4 }
 0x246   :  { %13459 = vtanh.f32 %v3358_v39  ;;  %12298 = vmatprep.mubr.msk.f32.mxu0 %vm2063_vm1, %v767_v59  ;;  %v3655_v56 = vmul.f32 %v13450_v46, %v16137_v49  ;;  %v472_v23 = vmul.f32 %v15195_v38, %v16443_v28  ;;  %v16464_v39 = vld [vmem:[%s20266_s0 + $0x478] sm:$0xff]  ;;  %v773_v51 = vmax.f32 %v623_v22, 0.0  ;;  %12514 = vmatmul.mubr.msk.f32.gmra.mrb[48].mxu1 %vm2063_vm1, %v16154_v11 }
 0x247   :  { %13461 = vtanh.f32 %v3357_v55  ;;  %v12141_v19 = vpop.f32.mrb[26].mxu0  ;;  %v3845_v41 = vsel %vm3787_vm2, %v3656_v2, 0.0  ;;  %v774_v4 = vmax.f32 %v624_v33, 0.0  ;;  %12516 = vmatprep.mubr.msk.f32.mxu1 %vm2063_vm1, %v16178_v25 }
 0x248   :  { %v13452_v27 = vpop.eup %13451  ;;  %v3360_v12 = vadd.f32 %v12141_v19, %v16055_v48  ;;  %12299 = vmatmul.mubr.msk.f32.gmra.mrb[132].mxu0 %vm2063_vm1, %v768_v9  ;;  %v2710_v32 = vpop.f32.mrb[27].mxu0  ;;  %v3842_v50 = vsel %vm3787_vm2, %v3655_v56, 0.0  ;;  %v625_v19 = vadd.f32 %v15210_v44, %v471_v53 }
 0x249   :  { %v13454_v60 = vpop.eup %13453  ;;  %3840 = vadd.xlane.f32.xlu1 %v3839_v14  ;;  %v3359_v59 = vadd.f32 %v16055_v48, %v2710_v32  ;;  %3843 = vadd.xlane.f32.xlu0 %v3842_v50  ;;  %v3658_v55 = vmul.f32 %v13452_v27, %v16137_v49  ;;  %v626_v27 = vadd.f32 %v15210_v44, %v472_v23 }
 0x24a   :  { %13463 = vtanh.f32 %v3360_v12  ;;  %12301 = vmatprep.mubr.msk.f32.mxu0 %vm2063_vm1, %v769_v57  ;;  %v3657_v62 = vmul.f32 %v13454_v60, %v16137_v49  ;;  %v473_v57 = vmul.f32 %v15195_v38, %v16456_v42  ;;  %12517 = vmatmul.mubr.msk.f32.gmra.mrb[50].mxu1 %vm2063_vm1, %v16188_v43 }
 0x24b   :  { %13465 = vtanh.f32 %v3359_v59  ;;  %v12144_v9 = vpop.f32.mrb[28].mxu0  ;;  %v3851_v32 = vsel %vm3787_vm2, %v3658_v55, 0.0  ;;  %v16499_v59 = vld [vmem:[%s20266_s0 + $0x488] sm:$0xff]  ;;  %v776_v33 = vmax.f32 %v626_v27, 0.0  ;;  %12519 = vmatprep.mubr.msk.f32.mxu1 %vm2063_vm1, %v16208_v8 }
 0x24c   :  { %v13456_v45 = vpop.eup %13455  ;;  %v3362_v36 = vadd.f32 %v12144_v9, %v16055_v48  ;;  %12302 = vmatmul.mubr.msk.f32.gmra.mrb[134].mxu0 %vm2063_vm1, %v770_v17  ;;  %v2720_v58 = vpop.f32.mrb[29].mxu0  ;;  %v3848_v46 = vsel %vm3787_vm2, %v3657_v62, 0.0  ;;  %v474_v17 = vmul.f32 %v15195_v38, %v16464_v39  ;;  %v627_v62 = vadd.f32 %v15210_v44, %v473_v57 }
 0x24d   :  { %v13458_v18 = vpop.eup %13457  ;;  %3846 = vadd.xlane.f32.xlu1 %v3845_v41  ;;  %v3361_v56 = vadd.f32 %v16055_v48, %v2720_v58  ;;  %3849 = vadd.xlane.f32.xlu0 %v3848_v46  ;;  %v3660_v60 = vmul.f32 %v13456_v45, %v16137_v49  ;;  %v775_v9 = vmax.f32 %v625_v19, 0.0  ;;  %v476_v23 = vmul.f32 %v15195_v38, %v16499_v59  ;;  %v16517_v45 = vld [vmem:[%s20266_s0 + $0x490] sm:$0xff] }
 0x24e   :  { %13467 = vtanh.f32 %v3362_v36  ;;  %12304 = vmatprep.mubr.msk.f32.mxu0 %vm2063_vm1, %v771_v24  ;;  %v3659_v26 = vmul.f32 %v13458_v18, %v16137_v49  ;;  %v475_v24 = vmul.f32 %v15195_v38, %v16486_v15  ;;  %v777_v57 = vmax.f32 %v627_v62, 0.0  ;;  %12520 = vmatmul.mubr.msk.f32.gmra.mrb[52].mxu1 %vm2063_vm1, %v16218_v13 }
 0x24f   :  { %13469 = vtanh.f32 %v3361_v56  ;;  %v12147_v47 = vpop.f32.mrb[30].mxu0  ;;  %v3857_v58 = vsel %vm3787_vm2, %v3660_v60, 0.0  ;;  %v16529_v56 = vld [vmem:[%s20266_s0 + $0x498] sm:$0xff]  ;;  %v14537_v62 = vmov 0   ;;  %12522 = vmatprep.mubr.msk.f32.mxu1 %vm2063_vm1, %v16229_v20 }
 0x250   :  { %v13460_v12 = vpop.eup %13459  ;;  %v3364_v14 = vadd.f32 %v12147_v47, %v16055_v48  ;;  %12305 = vmatmul.mubr.msk.f32.gmra.mrb[136].mxu0 %vm2063_vm1, %v772_v29  ;;  %v2730_v50 = vpop.f32.mrb[31].mxu0  ;;  %v3854_v2 = vsel %vm3787_vm2, %v3659_v26, 0.0  ;;  %v16510_v29 = vadd.f32 %v15210_v44, %v474_v17  ;;  %v629_v26 = vadd.f32 %v15210_v44, %v475_v24  ;;  %13409 = vset.pattern.permute.xlu0 %v14537_v62 }
 0x251   :  { %v13462_v35 = vpop.eup %13461  ;;  %3852 = vadd.xlane.f32.xlu1 %v3851_v32  ;;  %v3363_v22 = vadd.f32 %v16055_v48, %v2730_v50  ;;  %3855 = vadd.xlane.f32.xlu0 %v3854_v2  ;;  %v3662_v18 = vmul.f32 %v13460_v12, %v16137_v49  ;;  %v477_v47 = vmul.f32 %v15195_v38, %v16517_v45  ;;  %v16546_v12 = vld [vmem:[%s20266_s0 + $0x4a0] sm:$0xff] }
 0x252   :  { %13471 = vtanh.f32 %v3364_v14  ;;  %12307 = vmatprep.mubr.msk.f32.mxu0 %vm2063_vm1, %v773_v51  ;;  %v3661_v53 = vmul.f32 %v13462_v35, %v16137_v49  ;;  %v778_v17 = vmax.f32 %v16510_v29, 0.0  ;;  %v478_v27 = vmul.f32 %v15195_v38, %v16529_v56  ;;  %13410 = vset.pattern.permute.xlu1 %v14537_v62 }
 0x253   :  { %13473 = vtanh.f32 %v3363_v22  ;;  %v12150_v40 = vpop.f32.mrb[32].mxu0  ;;  %v3863_v50 = vsel %vm3787_vm2, %v3662_v18, 0.0  ;;  %v16558_v22 = vld [vmem:[%s20266_s0 + $0x4a8] sm:$0xff]  ;;  %v631_v29 = vadd.f32 %v15210_v44, %v477_v47  ;;  %12523 = vmatmul.mubr.msk.f32.gmra.mrb[54].mxu1 %vm2063_vm1, %v16247_v10 }
 0x254   :  { %v13464_v36 = vpop.eup %13463  ;;  %v3366_v41 = vadd.f32 %v12150_v40, %v16055_v48  ;;  %12308 = vmatmul.mubr.msk.f32.gmra.mrb[138].mxu0 %vm2063_vm1, %v774_v4  ;;  %v2740_v46 = vpop.f32.mrb[33].mxu0  ;;  %v3860_v55 = vsel %vm3787_vm2, %v3661_v53, 0.0  ;;  %v630_v4 = vadd.f32 %v15210_v44, %v476_v23  ;;  %v779_v53 = vmax.f32 %v629_v26, 0.0  ;;  %12525 = vmatprep.mubr.msk.f32.mxu1 %vm2063_vm1, %v16263_v1 }
 0x255   :  { %v13466_v0 = vpop.eup %13465  ;;  %3858 = vadd.xlane.f32.xlu1 %v3857_v58  ;;  %v3365_v51 = vadd.f32 %v16055_v48, %v2740_v46  ;;  %3861 = vadd.xlane.f32.xlu0 %v3860_v55  ;;  %v3664_v35 = vmul.f32 %v13464_v36, %v16137_v49  ;;  %v479_v40 = vmul.f32 %v15195_v38, %v16546_v12  ;;  %v781_v26 = vmax.f32 %v631_v29, 0.0 }
 0x256   :  { %13475 = vtanh.f32 %v3366_v41  ;;  %12310 = vmatprep.mubr.msk.f32.mxu0 %vm2063_vm1, %v775_v9  ;;  %v3663_v19 = vmul.f32 %v13466_v0, %v16137_v49  ;;  %v780_v23 = vmax.f32 %v630_v4, 0.0  ;;  %v632_v36 = vadd.f32 %v15210_v44, %v478_v27 }
 0x257   :  { %13477 = vtanh.f32 %v3365_v51  ;;  %v12153_v52 = vpop.f32.mrb[34].mxu0  ;;  %v480_v41 = vmul.f32 %v15195_v38, %v16558_v22  ;;  %v3869_v55 = vsel %vm3787_vm2, %v3664_v35, 0.0  ;;  %12526 = vmatmul.mubr.msk.f32.gmra.mrb[56].mxu1 %vm2063_vm1, %v16275_v16 }
 0x258   :  { %v13468_v14 = vpop.eup %13467  ;;  %v3368_v32 = vadd.f32 %v12153_v52, %v16055_v48  ;;  %12311 = vmatmul.mubr.msk.f32.gmra.mrb[140].mxu0 %vm2063_vm1, %v776_v33  ;;  %v2750_v2 = vpop.f32.mrb[35].mxu0  ;;  %v3866_v60 = vsel %vm3787_vm2, %v3663_v19, 0.0  ;;  %v633_v19 = vadd.f32 %v15210_v44, %v479_v40  ;;  %v782_v47 = vmax.f32 %v632_v36, 0.0  ;;  %12528 = vmatprep.mubr.msk.f32.mxu1 %vm2063_vm1, %v16291_v3 }
 0x259   :  { %v13470_v11 = vpop.eup %13469  ;;  %3864 = vadd.xlane.f32.xlu1 %v3863_v50  ;;  %v3367_v24 = vadd.f32 %v16055_v48, %v2750_v2  ;;  %3867 = vadd.xlane.f32.xlu0 %v3866_v60  ;;  %v3666_v51 = vmul.f32 %v13468_v14, %v16137_v49  ;;  %v634_v43 = vadd.f32 %v15210_v44, %v480_v41 }
 0x25a   :  { %13479 = vtanh.f32 %v3368_v32  ;;  %12313 = vmatprep.mubr.msk.f32.mxu0 %vm2063_vm1, %v777_v57  ;;  %v3665_v9 = vmul.f32 %v13470_v11, %v16137_v49  ;;  %v783_v60 = vmax.f32 %v633_v19, 0.0 }
 0x25b   :  { %13481 = vtanh.f32 %v3367_v24  ;;  %v12156_v33 = vpop.f32.mrb[36].mxu0  ;;  %v3875_v27 = vsel %vm3787_vm2, %v3666_v51, 0.0  ;;  %v784_v62 = vmax.f32 %v634_v43, 0.0  ;;  %v14312_v51 = vld [vmem:[%s20266_s0] sm:$0xff]  ;;  %12529 = vmatmul.mubr.msk.f32.gmra.mrb[58].mxu1 %vm2063_vm1, %v16303_v7 }
 0x25c   :  { %v13472_v58 = vpop.eup %13471  ;;  %v3370_v46 = vadd.f32 %v12156_v33, %v16055_v48  ;;  %12314 = vmatmul.mubr.msk.f32.gmra.mrb[142].mxu0 %vm2063_vm1, %v778_v17  ;;  %v2760_v18 = vpop.f32.mrb[37].mxu0  ;;  %v3872_v0 = vsel %vm3787_vm2, %v3665_v9, 0.0  ;;  %12531 = vmatprep.mubr.msk.f32.mxu1 %vm2063_vm1, %v16316_v63 }
 0x25d   :  { %v13474_v57 = vpop.eup %13473  ;;  %3870 = vadd.xlane.f32.xlu1 %v3869_v55  ;;  %v3369_v38 = vadd.f32 %v16055_v48, %v2760_v18  ;;  %3873 = vadd.xlane.f32.xlu0 %v3872_v0  ;;  %v3668_v50 = vmul.f32 %v13472_v58, %v16137_v49 }
 0x25e   :  { %13483 = vtanh.f32 %v3370_v46  ;;  %12316 = vmatprep.mubr.msk.f32.mxu0 %vm2063_vm1, %v779_v53  ;;  %v3667_v25 = vmul.f32 %v13474_v57, %v16137_v49 }
 0x25f   :  { %13485 = vtanh.f32 %v3369_v38  ;;  %v12159_v17 = vpop.f32.mrb[38].mxu0  ;;  %v3881_v24 = vsel %vm3787_vm2, %v3668_v50, 0.0  ;;  %12532 = vmatmul.mubr.msk.f32.gmra.mrb[60].mxu1 %vm2063_vm1, %v16331_v21 }
 0x260   :  { %v13476_v52 = vpop.eup %13475  ;;  %v3372_v4 = vadd.f32 %v12159_v17, %v16055_v48  ;;  %12317 = vmatmul.mubr.msk.f32.gmra.mrb[144].mxu0 %vm2063_vm1, %v780_v23  ;;  %v2770_v14 = vpop.f32.mrb[39].mxu0  ;;  %v3878_v32 = vsel %vm3787_vm2, %v3667_v25, 0.0  ;;  %12534 = vmatprep.mubr.msk.f32.mxu1 %vm2063_vm1, %v16347_v37 }
 0x261   :  { %v13478_v8 = vpop.eup %13477  ;;  %3876 = vadd.xlane.f32.xlu1 %v3875_v27  ;;  %v3371_v2 = vadd.f32 %v16055_v48, %v2770_v14  ;;  %3879 = vadd.xlane.f32.xlu0 %v3878_v32  ;;  %v3670_v29 = vmul.f32 %v13476_v52, %v16137_v49 }
 0x262   :  { %13487 = vtanh.f32 %v3372_v4  ;;  %12319 = vmatprep.mubr.msk.f32.mxu0 %vm2063_vm1, %v781_v26  ;;  %v3669_v44 = vmul.f32 %v13478_v8, %v16137_v49  ;;  %v14314_v4 = vld [vmem:[%s20266_s0 + $0x10] sm:$0xff] }
 0x263   :  { %13489 = vtanh.f32 %v3371_v2  ;;  %v12162_v35 = vpop.f32.mrb[40].mxu0  ;;  %v3887_v10 = vsel %vm3787_vm2, %v3670_v29, 0.0  ;;  %12535 = vmatmul.mubr.msk.f32.gmra.mrb[62].mxu1 %vm2063_vm1, %v16359_v34 }
 0x264   :  { %v13480_v11 = vpop.eup %13479  ;;  %v3374_v13 = vadd.f32 %v12162_v35, %v16055_v48  ;;  %12320 = vmatmul.mubr.msk.f32.gmra.mrb[146].mxu0 %vm2063_vm1, %v782_v47  ;;  %v2780_v53 = vpop.f32.mrb[41].mxu0  ;;  %v3884_v9 = vsel %vm3787_vm2, %v3669_v44, 0.0  ;;  %v14313_v47 = vld [vmem:[%s20266_s0 + $0x8] sm:$0xff]  ;;  %v14315_v44 = vld [vmem:[%s20266_s0 + $0x18] sm:$0xff]  ;;  %12537 = vmatprep.mubr.msk.f32.mxu1 %vm2063_vm1, %v16375_v5 }
 0x265   :  { %v13482_v40 = vpop.eup %13481  ;;  %3882 = vadd.xlane.f32.xlu1 %v3881_v24  ;;  %v3373_v20 = vadd.f32 %v16055_v48, %v2780_v53  ;;  %3885 = vadd.xlane.f32.xlu0 %v3884_v9  ;;  %v3672_v55 = vmul.f32 %v13480_v11, %v16137_v49 }
 0x266   :  { %13491 = vtanh.f32 %v3374_v13  ;;  %12322 = vmatprep.mubr.msk.f32.mxu0 %vm2063_vm1, %v783_v60  ;;  %v3671_v33 = vmul.f32 %v13482_v40, %v16137_v49  ;;  %v14317_v40 = vld [vmem:[%s20266_s0 + $0x28] sm:$0xff] }
 0x267   :  { %13493 = vtanh.f32 %v3373_v20  ;;  %v12165_v23 = vpop.f32.mrb[42].mxu0  ;;  %v3893_v25 = vsel %vm3787_vm2, %v3672_v55, 0.0  ;;  %12538 = vmatmul.mubr.msk.f32.gmra.mrb[64].mxu1 %vm2063_vm1, %v16387_v61 }
 0x268   :  { %v13484_v36 = vpop.eup %13483  ;;  %v3376_v41 = vadd.f32 %v12165_v23, %v16055_v48  ;;  %12323 = vmatmul.mubr.msk.f32.gmra.mrb[148].mxu0 %vm2063_vm1, %v784_v62  ;;  %v2790_v58 = vpop.f32.mrb[43].mxu0  ;;  %v3890_v46 = vsel %vm3787_vm2, %v3671_v33, 0.0  ;;  %v14316_v62 = vld [vmem:[%s20266_s0 + $0x20] sm:$0xff]  ;;  %v14318_v23 = vld [vmem:[%s20266_s0 + $0x30] sm:$0xff]  ;;  %12540 = vmatprep.mubr.msk.f32.mxu1 %vm2063_vm1, %v16400_v30 }
 0x269   :  { %v13486_v18 = vpop.eup %13485  ;;  %3888 = vadd.xlane.f32.xlu1 %v3887_v10  ;;  %v3375_v1 = vadd.f32 %v16055_v48, %v2790_v58  ;;  %3891 = vadd.xlane.f32.xlu0 %v3890_v46  ;;  %v3674_v17 = vmul.f32 %v13484_v36, %v16137_v49 }
 0x26a   :  { %13495 = vtanh.f32 %v3376_v41  ;;  %v3673_v0 = vmul.f32 %v13486_v18, %v16137_v49  ;;  %12333 = vmatprep.mubr.msk.f32.mxu0 %vm2063_vm1, %v14312_v51  ;;  %v14319_v18 = vld [vmem:[%s20266_s0 + $0x38] sm:$0xff]  ;;  %v14320_v51 = vld [vmem:[%s20266_s0 + $0x40] sm:$0xff] }
 0x26b   :  { %13497 = vtanh.f32 %v3375_v1  ;;  %v12168_v57 = vpop.f32.mrb[44].mxu0  ;;  %v3899_v32 = vsel %vm3787_vm2, %v3674_v17, 0.0  ;;  %v14321_v17 = vld [vmem:[%s20266_s0 + $0x48] sm:$0xff]  ;;  %12541 = vmatmul.mubr.msk.f32.gmra.mrb[66].mxu1 %vm2063_vm1, %v16415_v54 }
 0x26c   :  { %v13488_v16 = vpop.eup %13487  ;;  %v3378_v38 = vadd.f32 %v12168_v57, %v16055_v48  ;;  %v2800_v26 = vpop.f32.mrb[45].mxu0  ;;  %v3896_v19 = vsel %vm3787_vm2, %v3673_v0, 0.0  ;;  %12334 = vmatmul.mubr.msk.f32.vlgmr.msra.gmra.mrb[150].mxu0 %vm2063_vm1, %v14313_v47  ;;  %12543 = vmatprep.mubr.msk.f32.mxu1 %vm2063_vm1, %v16431_v6 }
 0x26d   :  { %v13490_v3 = vpop.eup %13489  ;;  %3894 = vadd.xlane.f32.xlu1 %v3893_v25  ;;  %v3377_v43 = vadd.f32 %v16055_v48, %v2800_v26  ;;  %3897 = vadd.xlane.f32.xlu0 %v3896_v19  ;;  %v3676_v2 = vmul.f32 %v13488_v16, %v16137_v49 }
 0x26e   :  { %13499 = vtanh.f32 %v3378_v38  ;;  %v3675_v52 = vmul.f32 %v13490_v3, %v16137_v49  ;;  %12336 = vmatprep.mubr.msk.f32.mxu0 %vm2063_vm1, %v14314_v4 }
 0x26f   :  { %13501 = vtanh.f32 %v3377_v43  ;;  %v12171_v27 = vpop.f32.mrb[46].mxu0  ;;  %v3905_v24 = vsel %vm3787_vm2, %v3676_v2, 0.0  ;;  %v14322_v43 = vld [vmem:[%s20266_s0 + $0x50] sm:$0xff]  ;;  %12544 = vmatmul.mubr.msk.f32.gmra.mrb[68].mxu1 %vm2063_vm1, %v16443_v28  ;;  %v14324_v2 = vld [vmem:[%s20266_s0 + $0x60] sm:$0xff] }
 0x270   :  { %v13492_v7 = vpop.eup %13491  ;;  %v3380_v14 = vadd.f32 %v12171_v27, %v16055_v48  ;;  %v2810_v50 = vpop.f32.mrb[47].mxu0  ;;  %v3902_v8 = vsel %vm3787_vm2, %v3675_v52, 0.0  ;;  %12337 = vmatmul.mubr.msk.f32.gmra.mrb[152].mxu0 %vm2063_vm1, %v14315_v44  ;;  %12546 = vmatprep.mubr.msk.f32.mxu1 %vm2063_vm1, %v16456_v42 }
 0x271   :  { %v13494_v63 = vpop.eup %13493  ;;  %3900 = vadd.xlane.f32.xlu1 %v3899_v32  ;;  %v3379_v60 = vadd.f32 %v16055_v48, %v2810_v50  ;;  %3903 = vadd.xlane.f32.xlu0 %v3902_v8  ;;  %v3678_v29 = vmul.f32 %v13492_v7, %v16137_v49  ;;  %v14323_v50 = vld [vmem:[%s20266_s0 + $0x58] sm:$0xff] }
 0x272   :  { %13503 = vtanh.f32 %v3380_v14  ;;  %v3677_v35 = vmul.f32 %v13494_v63, %v16137_v49  ;;  %12339 = vmatprep.mubr.msk.f32.mxu0 %vm2063_vm1, %v14316_v62 }
 0x273   :  { %13505 = vtanh.f32 %v3379_v60  ;;  %v12174_v11 = vpop.f32.mrb[48].mxu0  ;;  %v3911_v10 = vsel %vm3787_vm2, %v3678_v29, 0.0  ;;  %12547 = vmatmul.mubr.msk.f32.gmra.mrb[70].mxu1 %vm2063_vm1, %v16464_v39 }
 0x274   :  { %v13496_v21 = vpop.eup %13495  ;;  %v3382_v13 = vadd.f32 %v12174_v11, %v16055_v48  ;;  %v2820_v53 = vpop.f32.mrb[49].mxu0  ;;  %v3908_v9 = vsel %vm3787_vm2, %v3677_v35, 0.0  ;;  %12340 = vmatmul.mubr.msk.f32.gmra.mrb[154].mxu0 %vm2063_vm1, %v14317_v40  ;;  %12549 = vmatprep.mubr.msk.f32.mxu1 %vm2063_vm1, %v16486_v15 }
 0x275   :  { %v13498_v37 = vpop.eup %13497  ;;  %3906 = vadd.xlane.f32.xlu1 %v3905_v24  ;;  %v3381_v20 = vadd.f32 %v16055_v48, %v2820_v53  ;;  %3909 = vadd.xlane.f32.xlu0 %v3908_v9  ;;  %v3680_v55 = vmul.f32 %v13496_v21, %v16137_v49  ;;  %v14325_v21 = vld [vmem:[%s20266_s0 + $0x68] sm:$0xff]  ;;  %v14326_v24 = vld [vmem:[%s20266_s0 + $0x70] sm:$0xff] }
 0x276   :  { %13507 = vtanh.f32 %v3382_v13  ;;  %v3679_v33 = vmul.f32 %v13498_v37, %v16137_v49  ;;  %12342 = vmatprep.mubr.msk.f32.mxu0 %vm2063_vm1, %v14318_v23 }
 0x277   :  { %13509 = vtanh.f32 %v3381_v20  ;;  %v12177_v36 = vpop.f32.mrb[50].mxu0  ;;  %v3917_v38 = vsel %vm3787_vm2, %v3680_v55, 0.0  ;;  %12550 = vmatmul.mubr.msk.f32.gmra.mrb[72].mxu1 %vm2063_vm1, %v16499_v59  ;;  %v14329_v55 = vld [vmem:[%s20266_s0 + $0x88] sm:$0xff] }
 0x278   :  { %v13500_v34 = vpop.eup %13499  ;;  %v3384_v41 = vadd.f32 %v12177_v36, %v16055_v48  ;;  %v2830_v58 = vpop.f32.mrb[51].mxu0  ;;  %v3914_v46 = vsel %vm3787_vm2, %v3679_v33, 0.0  ;;  %12343 = vmatmul.mubr.msk.f32.gmra.mrb[156].mxu0 %vm2063_vm1, %v14319_v18  ;;  %v14327_v33 = vld [vmem:[%s20266_s0 + $0x78] sm:$0xff]  ;;  %v14328_v36 = vld [vmem:[%s20266_s0 + $0x80] sm:$0xff]  ;;  %12552 = vmatprep.mubr.msk.f32.mxu1 %vm2063_vm1, %v16517_v45  ;;  %v14330_v18 = vld [vmem:[%s20266_s0 + $0x90] sm:$0xff] }
 0x279   :  { %v13502_v5 = vpop.eup %13501  ;;  %3912 = vadd.xlane.f32.xlu1 %v3911_v10  ;;  %v3383_v1 = vadd.f32 %v16055_v48, %v2830_v58  ;;  %3915 = vadd.xlane.f32.xlu0 %v3914_v46  ;;  %v3682_v19 = vmul.f32 %v13500_v34, %v16137_v49 }
 0x27a   :  { %13511 = vtanh.f32 %v3384_v41  ;;  %v3681_v0 = vmul.f32 %v13502_v5, %v16137_v49  ;;  %12345 = vmatprep.mubr.msk.f32.mxu0 %vm2063_vm1, %v14320_v51 }
 0x27b   :  { %13513 = vtanh.f32 %v3383_v1  ;;  %v12180_v57 = vpop.f32.mrb[52].mxu0  ;;  %v3923_v27 = vsel %vm3787_vm2, %v3682_v19, 0.0  ;;  %12553 = vmatmul.mubr.msk.f32.gmra.mrb[74].mxu1 %vm2063_vm1, %v16529_v56 }
 0x27c   :  { %v13504_v61 = vpop.eup %13503  ;;  %v3386_v16 = vadd.f32 %v12180_v57, %v16055_v48  ;;  %v2840_v25 = vpop.f32.mrb[53].mxu0  ;;  %v3920_v26 = vsel %vm3787_vm2, %v3681_v0, 0.0  ;;  %12346 = vmatmul.mubr.msk.f32.gmra.mrb[158].mxu0 %vm2063_vm1, %v14321_v17  ;;  %12555 = vmatprep.mubr.msk.f32.mxu1 %vm2063_vm1, %v16546_v12  ;;  %v14331_v57 = vld [vmem:[%s20266_s0 + $0x98] sm:$0xff]  ;;  %v14332_v12 = vld [vmem:[%s20266_s0 + $0xa0] sm:$0xff] }
 0x27d   :  { %v13506_v30 = vpop.eup %13505  ;;  %3918 = vadd.xlane.f32.xlu1 %v3917_v38  ;;  %v3385_v47 = vadd.f32 %v16055_v48, %v2840_v25  ;;  %3921 = vadd.xlane.f32.xlu0 %v3920_v26  ;;  %v3684_v32 = vmul.f32 %v13504_v61, %v16137_v49 }
 0x27e   :  { %13515 = vtanh.f32 %v3386_v16  ;;  %v3683_v3 = vmul.f32 %v13506_v30, %v16137_v49  ;;  %12348 = vmatprep.mubr.msk.f32.mxu0 %vm2063_vm1, %v14322_v43  ;;  %v14334_v30 = vld [vmem:[%s20266_s0 + $0xb0] sm:$0xff] }
 0x27f   :  { %13517 = vtanh.f32 %v3385_v47  ;;  %v12183_v52 = vpop.f32.mrb[54].mxu0  ;;  %v3929_v28 = vsel %vm3787_vm2, %v3684_v32, 0.0  ;;  %12556 = vmatmul.mubr.msk.f32.gmra.mrb[76].mxu1 %vm2063_vm1, %v16558_v22  ;;  %v14333_v22 = vld [vmem:[%s20266_s0 + $0xa8] sm:$0xff] }
 0x280   :  { %v13508_v54 = vpop.eup %13507  ;;  %v3388_v4 = vadd.f32 %v12183_v52, %v16055_v48  ;;  %v2850_v7 = vpop.f32.mrb[55].mxu0  ;;  %v3926_v14 = vsel %vm3787_vm2, %v3683_v3, 0.0  ;;  %12349 = vmatmul.mubr.msk.f32.gmra.mrb[160].mxu0 %vm2063_vm1, %v14323_v50 }
 0x281   :  { %v13510_v6 = vpop.eup %13509  ;;  %3924 = vadd.xlane.f32.xlu1 %v3923_v27  ;;  %3927 = vadd.xlane.f32.xlu0 %v3926_v14  ;;  %v3387_v44 = vadd.f32 %v16055_v48, %v2850_v7  ;;  %v3686_v11 = vmul.f32 %v13508_v54, %v16137_v49  ;;  %v14336_v7 = vld [vmem:[%s20266_s0 + $0xc0] sm:$0xff] }
 0x282   :  { %v3685_v8 = vmul.f32 %v13510_v6, %v16137_v49  ;;  %12351 = vmatprep.mubr.msk.f32.mxu0 %vm2063_vm1, %v14324_v2  ;;  %13519 = vtanh.f32 %v3388_v4  ;;  %v14335_v4 = vld [vmem:[%s20266_s0 + $0xb8] sm:$0xff]  ;;  %v14337_v2 = vld [vmem:[%s20266_s0 + $0xc8] sm:$0xff] }
 0x283   :  { %v12186_v63 = vpop.f32.mrb[56].mxu0  ;;  %13521 = vtanh.f32 %v3387_v44  ;;  %v3935_v40 = vsel %vm3787_vm2, %v3686_v11, 0.0 }
 0x284   :  { %v13512_v60 = vpop.eup %13511  ;;  %v2860_v35 = vpop.f32.mrb[57].mxu0  ;;  %v3932_v62 = vsel %vm3787_vm2, %v3685_v8, 0.0  ;;  %12352 = vmatmul.mubr.msk.f32.gmra.mrb[162].mxu0 %vm2063_vm1, %v14325_v21  ;;  %v3390_v53 = vadd.f32 %v12186_v63, %v16055_v48  ;;  %v14338_v63 = vld [vmem:[%s20266_s0 + $0xd0] sm:$0xff]  ;;  %v14339_v21 = vld [vmem:[%s20266_s0 + $0xd8] sm:$0xff] }
 0x285   :  { %v13514_v42 = vpop.eup %13513  ;;  %3930 = vadd.xlane.f32.xlu1 %v3929_v28  ;;  %3933 = vadd.xlane.f32.xlu0 %v3932_v62  ;;  %v3688_v13 = vmul.f32 %v13512_v60, %v16137_v49  ;;  %v3389_v34 = vadd.f32 %v16055_v48, %v2860_v35 }
 0x286   :  { %12354 = vmatprep.mubr.msk.f32.mxu0 %vm2063_vm1, %v14326_v24  ;;  %v3687_v20 = vmul.f32 %v13514_v42, %v16137_v49  ;;  %13523 = vtanh.f32 %v3390_v53 }
 0x287   :  { %v12189_v9 = vpop.f32.mrb[58].mxu0  ;;  %v3941_v39 = vsel %vm3787_vm2, %v3688_v13, 0.0  ;;  %13525 = vtanh.f32 %v3389_v34  ;;  %v14340_v13 = vld [vmem:[%s20266_s0 + $0xe0] sm:$0xff] }
 0x288   :  { %v13516_v29 = vpop.eup %13515  ;;  %v2870_v37 = vpop.f32.mrb[59].mxu0  ;;  %12355 = vmatmul.mubr.msk.f32.gmra.mrb[164].mxu0 %vm2063_vm1, %v14327_v33  ;;  %v3938_v58 = vsel %vm3787_vm2, %v3687_v20, 0.0  ;;  %v3392_v5 = vadd.f32 %v12189_v9, %v16055_v48  ;;  %v14342_v20 = vld [vmem:[%s20266_s0 + $0xf0] sm:$0xff] }
 0x289   :  { %v13518_v15 = vpop.eup %13517  ;;  %3936 = vadd.xlane.f32.xlu1 %v3935_v40  ;;  %3942 = vadd.xlane.f32.xlu0 %v3941_v39  ;;  %v3690_v23 = vmul.f32 %v13516_v29, %v16137_v49  ;;  %v3391_v16 = vadd.f32 %v16055_v48, %v2870_v37  ;;  %v14341_v40 = vld [vmem:[%s20266_s0 + $0xe8] sm:$0xff] }
 0x28a   :  { %12357 = vmatprep.mubr.msk.f32.mxu0 %vm2063_vm1, %v14328_v36  ;;  %v3689_v46 = vmul.f32 %v13518_v15, %v16137_v49  ;;  %13527 = vtanh.f32 %v3392_v5 }
 0x28b   :  { %v12192_v41 = vpop.f32.mrb[60].mxu0  ;;  %v3947_v59 = vsel %vm3787_vm2, %v3690_v23, 0.0  ;;  %13529 = vtanh.f32 %v3391_v16 }
 0x28c   :  { %v2880_v10 = vpop.f32.mrb[61].mxu0  ;;  %12358 = vmatmul.mubr.msk.f32.gmra.mrb[166].mxu0 %vm2063_vm1, %v14329_v55  ;;  %v13520_v45 = vpop.eup %13519  ;;  %v3944_v0 = vsel %vm3787_vm2, %v3689_v46, 0.0  ;;  %v3394_v47 = vadd.f32 %v12192_v41, %v16055_v48  ;;  %v14343_v41 = vld [vmem:[%s20266_s0 + $0xf8] sm:$0xff] }
 0x28d   :  { %3948 = vadd.xlane.f32.xlu1 %v3947_v59  ;;  %3939 = vadd.xlane.f32.xlu0 %v3938_v58  ;;  %v3692_v56 = vmul.f32 %v13520_v45, %v16137_v49  ;;  %v13522_v61 = vpop.eup %13521  ;;  %v3393_v14 = vadd.f32 %v16055_v48, %v2880_v10  ;;  %v14344_v10 = vld [vmem:[%s20266_s0 + $0x100] sm:$0xff]  ;;  %v4240_v58 = vsub.s32 4, %v15173_v31 }
 0x28e   :  { %12360 = vmatprep.mubr.msk.f32.mxu0 %vm2063_vm1, %v14330_v18  ;;  %v3691_v19 = vmul.f32 %v13522_v61, %v16137_v49  ;;  %13531 = vtanh.f32 %v3394_v47 }
 0x28f   :  { %v12195_v1 = vpop.f32.mrb[62].mxu0  ;;  %v3953_v25 = vsel %vm3787_vm2, %v3692_v56, 0.0  ;;  %13533 = vtanh.f32 %v3393_v14  ;;  %v14347_v56 = vld [vmem:[%s20265_s2] sm:$0xff] }
 0x290   :  { %v2890_v51 = vpop.f32.mrb[63].mxu0  ;;  %12361 = vmatmul.mubr.msk.f32.gmra.mrb[168].mxu0 %vm2063_vm1, %v14331_v57  ;;  %v13524_v17 = vpop.eup %13523  ;;  %v3950_v43 = vsel %vm3787_vm2, %v3691_v19, 0.0  ;;  %v3396_v60 = vadd.f32 %v12195_v1, %v16055_v48  ;;  %v14345_v1 = vld [vmem:[%s20266_s0 + $0x108] sm:$0xff]  ;;  %v16902_v57 = vrot.slane %v14347_v56, %v4240_v58  ;;  %v14355_v58 = vld [vmem:[%s20266_s0 + $0x150] sm:$0xff] }
 0x291   :  { %3945 = vadd.xlane.f32.xlu1 %v3944_v0  ;;  %12363 = vmatprep.mubr.msk.f32.mxu0 %vm2063_vm1, %v14332_v12  ;;  %v3694_v54 = vmul.f32 %v13524_v17, %v16137_v49  ;;  %v13526_v27 = vpop.eup %13525  ;;  %v3395_v24 = vadd.f32 %v16055_v48, %v2890_v51  ;;  %v14346_v51 = vld [vmem:[%s20266_s0 + $0x110] sm:$0xff]  ;;  %v14349_v17 = vld [vmem:[%s20266_s0 + $0x120] sm:$0xff] }
 0x292   :  { %v3693_v8 = vmul.f32 %v13526_v27, %v16137_v49  ;;  %13535 = vtanh.f32 %v3396_v60 }
 0x293   :  { %v12198_v38 = vpop.f32.mrb[64].mxu0  ;;  %v3959_v50 = vsel %vm3787_vm2, %v3694_v54, 0.0  ;;  %13537 = vtanh.f32 %v3395_v24 }
 0x294   :  { %v16796_v26 = vpop.f32.mrb[65].mxu0  ;;  %12364 = vmatmul.mubr.msk.f32.gmra.mrb[170].mxu0 %vm2063_vm1, %v14333_v22  ;;  %v13528_v44 = vpop.eup %13527  ;;  %v3956_v35 = vsel %vm3787_vm2, %v3693_v8, 0.0  ;;  %v3398_v33 = vadd.f32 %v12198_v38, %v16055_v48 }
 0x295   :  { %3954 = vadd.xlane.f32.xlu1 %v3953_v25  ;;  %12366 = vmatprep.mubr.msk.f32.mxu0 %vm2063_vm1, %v14334_v30  ;;  %v3696_v11 = vmul.f32 %v13528_v44, %v16137_v49  ;;  %v13530_v42 = vpop.eup %13529  ;;  %v3397_v46 = vadd.f32 %v16055_v48, %v16796_v26  ;;  %v14348_v26 = vld [vmem:[%s20266_s0 + $0x118] sm:$0xff] }
 0x296   :  { %v3695_v29 = vmul.f32 %v13530_v42, %v16137_v49  ;;  %13539 = vtanh.f32 %v3398_v33 }
 0x297   :  { %v16808_v3 = vpop.f32.mrb[66].mxu0  ;;  %v3965_v9 = vsel %vm3787_vm2, %v3696_v11, 0.0  ;;  %13541 = vtanh.f32 %v3397_v46 }
 0x298   :  { %v16811_v52 = vpop.f32.mrb[67].mxu0  ;;  %12367 = vmatmul.mubr.msk.f32.gmra.mrb[172].mxu0 %vm2063_vm1, %v14335_v4  ;;  %v13532_v37 = vpop.eup %13531  ;;  %v3962_v23 = vsel %vm3787_vm2, %v3695_v29, 0.0  ;;  %v3400_v61 = vadd.f32 %v16808_v3, %v16055_v48 }
 0x299   :  { %3951 = vadd.xlane.f32.xlu1 %v3950_v43  ;;  %12369 = vmatprep.mubr.msk.f32.mxu0 %vm2063_vm1, %v14336_v7  ;;  %v3698_v34 = vmul.f32 %v13532_v37, %v16137_v49  ;;  %v13534_v59 = vpop.eup %13533  ;;  %v3399_v47 = vadd.f32 %v16055_v48, %v16811_v52  ;;  %v14350_v7 = vld [vmem:[%s20266_s0 + $0x128] sm:$0xff]  ;;  %v14351_v52 = vld [vmem:[%s20266_s0 + $0x130] sm:$0xff] }
 0x29a   :  { %v3697_v5 = vmul.f32 %v13534_v59, %v16137_v49  ;;  %13543 = vtanh.f32 %v3400_v61 }
 0x29b   :  { %v16823_v32 = vpop.f32.mrb[68].mxu0  ;;  %v3971_v45 = vsel %vm3787_vm2, %v3698_v34, 0.0 }
 0x29c   :  { %v16826_v6 = vpop.f32.mrb[69].mxu0  ;;  %12370 = vmatmul.mubr.msk.f32.gmra.mrb[174].mxu0 %vm2063_vm1, %v14337_v2  ;;  %v13536_v0 = vpop.eup %13535  ;;  %v3968_v16 = vsel %vm3787_vm2, %v3697_v5, 0.0  ;;  %v3402_v8 = vadd.f32 %v16823_v32, %v16055_v48 }
 0x29d   :  { %3960 = vadd.xlane.f32.xlu1 %v3959_v50  ;;  %12372 = vmatprep.mubr.msk.f32.mxu0 %vm2063_vm1, %v14338_v63  ;;  %v3700_v25 = vmul.f32 %v13536_v0, %v16137_v49  ;;  %v13538_v19 = vpop.eup %13537  ;;  %v3401_v24 = vadd.f32 %v16055_v48, %v16826_v6 }
 0x29e   :  { %v3699_v27 = vmul.f32 %v13538_v19, %v16137_v49 }
 0x29f   :  { %v16838_v28 = vpop.f32.mrb[70].mxu0  ;;  %v3977_v54 = vsel %vm3787_vm2, %v3700_v25, 0.0 }
 0x2a0   :  { %v16841_v62 = vpop.f32.mrb[71].mxu0  ;;  %12373 = vmatmul.mubr.msk.f32.gmra.mrb[176].mxu0 %vm2063_vm1, %v14339_v21  ;;  %v13540_v14 = vpop.eup %13539  ;;  %v3974_v60 = vsel %vm3787_vm2, %v3699_v27, 0.0  ;;  %v14352_v21 = vld [vmem:[%s20266_s0 + $0x138] sm:$0xff]  ;;  %v3404_v59 = vadd.f32 %v16838_v28, %v16055_v48 }
 0x2a1   :  { %3957 = vadd.xlane.f32.xlu1 %v3956_v35  ;;  %12375 = vmatprep.mubr.msk.f32.mxu0 %vm2063_vm1, %v14340_v13  ;;  %v3702_v11 = vmul.f32 %v13540_v14, %v16137_v49  ;;  %v13542_v32 = vpop.eup %13541  ;;  %v14353_v13 = vld [vmem:[%s20266_s0 + $0x140] sm:$0xff] }
 0x2a2   :  { %v3701_v34 = vmul.f32 %v13542_v32, %v16137_v49 }
 0x2a3   :  { %v16853_v53 = vpop.f32.mrb[72].mxu0  ;;  %v3983_v33 = vsel %vm3787_vm2, %v3702_v11, 0.0 }
 0x2a4   :  { %v16856_v39 = vpop.f32.mrb[73].mxu0  ;;  %12376 = vmatmul.mubr.msk.f32.gmra.mrb[178].mxu0 %vm2063_vm1, %v14341_v40  ;;  %v13544_v6 = vpop.eup %13543  ;;  %v3980_v28 = vsel %vm3787_vm2, %v3701_v34, 0.0  ;;  %v3406_v11 = vadd.f32 %v16853_v53, %v16055_v48  ;;  %v14361_v34 = vld [vmem:[%s20266_s0 + $0x180] sm:$0xff] }
 0x2a5   :  { %3966 = vadd.xlane.f32.xlu1 %v3965_v9  ;;  %12378 = vmatprep.mubr.msk.f32.mxu0 %vm2063_vm1, %v14342_v20  ;;  %v3704_v61 = vmul.f32 %v13544_v6, %v16137_v49 }
 0x2a7   :  { %v16868_v15 = vpop.f32.mrb[74].mxu0 }
 0x2a8   :  { %v16871_v36 = vpop.f32.mrb[75].mxu0  ;;  %12379 = vmatmul.mubr.msk.f32.gmra.mrb[180].mxu0 %vm2063_vm1, %v14343_v41  ;;  %v14354_v41 = vld [vmem:[%s20266_s0 + $0x148] sm:$0xff] }
 0x2a9   :  { %3963 = vadd.xlane.f32.xlu1 %v3962_v23  ;;  %12381 = vmatprep.mubr.msk.f32.mxu0 %vm2063_vm1, %v14344_v10 }
 0x2ab   :  { %v16885_v55 = vpop.f32.mrb[76].mxu0 }
 0x2ac   :  { %v16888_v18 = vpop.f32.mrb[77].mxu0  ;;  %12382 = vmatmul.mubr.msk.f32.gmra.mrb[182].mxu0 %vm2063_vm1, %v14345_v1 }
 0x2ad   :  { %3972 = vadd.xlane.f32.xlu1 %v3971_v45  ;;  %12384 = vmatprep.mubr.msk.f32.mxu0 %vm2063_vm1, %v14346_v51 }
 0x2af   :  { %v16906_v12 = vpop.f32.mrb[78].mxu0 }
 0x2b0   :  { %v16909_v38 = vpop.f32.mrb[79].mxu0  ;;  %12385 = vmatmul.mubr.msk.f32.gmra.mrb[184].mxu0 %vm2063_vm1, %v14348_v26 }
 0x2b1   :  { %3969 = vadd.xlane.f32.xlu1 %v3968_v16  ;;  %v3793_v22 = vpop.xlane.xlu0 %3792  ;;  %12387 = vmatprep.mubr.msk.f32.mxu0 %vm2063_vm1, %v14349_v17  ;;  %v14356_v16 = vld [vmem:[%s20266_s0 + $0x158] sm:$0xff]  ;;  %v3403_v17 = vadd.f32 %v16055_v48, %v16841_v62  ;;  %v14358_v62 = vld [vmem:[%s20266_s0 + $0x168] sm:$0xff] }
 0x2b2   :  { %v4243_v30 = vadd.f32 %v16902_v57, %v3793_v22  ;;  %v14357_v22 = vld [vmem:[%s20266_s0 + $0x160] sm:$0xff] }
 0x2b3   :  { %v16923_v3 = vpop.f32.mrb[80].mxu0 }
 0x2b4   :  { %v10470_v43 = vmul.f32 -1.442695, %v4243_v30  ;;  %v16926_v4 = vpop.f32.mrb[81].mxu0  ;;  %12388 = vmatmul.mubr.msk.f32.gmra.mrb[186].mxu0 %vm2063_vm1, %v14350_v7  ;;  %v3989_v7 = vsel %vm3787_vm2, %v3704_v61, 0.0 }
 0x2b5   :  { %3978 = vadd.xlane.f32.xlu1 %v3977_v54  ;;  %v16933_v50 = vpop.xlane.xlu0 %3789  ;;  %12390 = vmatprep.mubr.msk.f32.mxu0 %vm2063_vm1, %v14351_v52 }
 0x2b6   :  { %13545 = vpow2.f32 %v10470_v43  ;;  %v3799_v2 = vpop.xlane.xlu1 %3798 }
 0x2b7   :  { %13547 = vtanh.f32 %v3399_v47  ;;  %v4245_v44 = vadd.f32 %v16902_v57, %v3799_v2  ;;  %v16942_v63 = vpop.f32.mrb[82].mxu0 }
 0x2b8   :  { %v16945_v35 = vpop.f32.mrb[83].mxu0  ;;  %12391 = vmatmul.mubr.msk.f32.gmra.mrb[188].mxu0 %vm2063_vm1, %v14352_v21  ;;  %13549 = vtanh.f32 %v3402_v8 }
 0x2b9   :  { %v10472_v42 = vmul.f32 -1.442695, %v4245_v44  ;;  %3975 = vadd.xlane.f32.xlu1 %v3974_v60  ;;  %12393 = vmatprep.mubr.msk.f32.mxu0 %vm2063_vm1, %v14353_v13  ;;  %v14359_v60 = vld [vmem:[%s20266_s0 + $0x170] sm:$0xff] }
 0x2ba   :  { %v3796_v9 = vpop.xlane.xlu1 %3795  ;;  %v3802_v29 = vpop.xlane.xlu0 %3801 }
 0x2bb   :  { %13551 = vpow2.f32 %v10472_v42  ;;  %v4244_v40 = vadd.f32 %v16902_v57, %v3796_v9  ;;  %v4246_v37 = vadd.f32 %v16902_v57, %v3802_v29  ;;  %v16960_v20 = vpop.f32.mrb[84].mxu0 }
 0x2bc   :  { %v16963_v23 = vpop.f32.mrb[85].mxu0  ;;  %12394 = vmatmul.mubr.msk.f32.gmra.mrb[190].mxu0 %vm2063_vm1, %v14354_v41  ;;  %13553 = vtanh.f32 %v3401_v24  ;;  %v3405_v41 = vadd.f32 %v16055_v48, %v16856_v39  ;;  %v14362_v39 = vld [vmem:[%s20266_s0 + $0x188] sm:$0xff] }
 0x2bd   :  { %v10471_v10 = vmul.f32 -1.442695, %v4244_v40  ;;  %3984 = vadd.xlane.f32.xlu1 %v3983_v33  ;;  %12396 = vmatprep.mubr.msk.f32.mxu0 %vm2063_vm1, %v14355_v58  ;;  %v10473_v46 = vmul.f32 -1.442695, %v4246_v37  ;;  %v14360_v33 = vld [vmem:[%s20266_s0 + $0x178] sm:$0xff] }
 0x2be   :  { %v3805_v45 = vpop.xlane.xlu1 %3804  ;;  %v3808_v1 = vpop.xlane.xlu0 %3807 }
 0x2bf   :  { %13555 = vpow2.f32 %v10471_v10  ;;  %v4247_v5 = vadd.f32 %v16902_v57, %v3805_v45  ;;  %v16977_v0 = vpop.f32.mrb[86].mxu0  ;;  %v4248_v47 = vadd.f32 %v16902_v57, %v3808_v1 }
 0x2c0   :  { %v13546_v51 = vpop.eup %13545  ;;  %v16980_v56 = vpop.f32.mrb[87].mxu0  ;;  %12397 = vmatmul.mubr.msk.f32.gmra.mrb[192].mxu0 %vm2063_vm1, %v14356_v16  ;;  %13557 = vtanh.f32 %v3404_v59 }
 0x2c1   :  { %v13548_v25 = vpop.eup %13547  ;;  %v4843_v26 = vadd.f32 1.0, %v13546_v51  ;;  %v10474_v19 = vmul.f32 -1.442695, %v4247_v5  ;;  %3981 = vadd.xlane.f32.xlu1 %v3980_v28  ;;  %12399 = vmatprep.mubr.msk.f32.mxu0 %vm2063_vm1, %v14357_v22  ;;  %13559 = vpow2.f32 %v10473_v46  ;;  %v10475_v42 = vmul.f32 -1.442695, %v4248_v47 }
 0x2c2   :  { %v3811_v30 = vpop.xlane.xlu1 %3810  ;;  %v13550_v27 = vpop.eup %13549  ;;  %v3703_v52 = vmul.f32 %v13548_v25, %v16137_v49  ;;  %v14363_v25 = vld [vmem:[%s20266_s0 + $0x190] sm:$0xff]  ;;  %v3408_v22 = vadd.f32 %v16868_v15, %v16055_v48 }
 0x2c3   :  { %13561 = vrcp.f32 %v4843_v26  ;;  %v4249_v43 = vadd.f32 %v16902_v57, %v3811_v30  ;;  %v16995_v54 = vpop.f32.mrb[88].mxu0  ;;  %v3814_v44 = vpop.xlane.xlu0 %3813  ;;  %v3706_v37 = vmul.f32 %v13550_v27, %v16137_v49 }
 0x2c4   :  { %13563 = vpow2.f32 %v10474_v19  ;;  %v16998_v14 = vpop.f32.mrb[89].mxu0  ;;  %12400 = vmatmul.mubr.msk.f32.gmra.mrb[194].mxu0 %vm2063_vm1, %v14358_v62  ;;  %v3986_v29 = vsel %vm3787_vm2, %v3703_v52, 0.0  ;;  %v4250_v1 = vadd.f32 %v16902_v57, %v3814_v44  ;;  %v14365_v44 = vld [vmem:[%s20266_s0 + $0x1a0] sm:$0xff] }
 0x2c5   :  { %v13552_v8 = vpop.eup %13551  ;;  %v10476_v2 = vmul.f32 -1.442695, %v4249_v43  ;;  %3990 = vadd.xlane.f32.xlu1 %v3989_v7  ;;  %12402 = vmatprep.mubr.msk.f32.mxu0 %vm2063_vm1, %v14359_v60  ;;  %13565 = vtanh.f32 %v3403_v17  ;;  %v3995_v28 = vsel %vm3787_vm2, %v3706_v37, 0.0 }
 0x2c6   :  { %v4845_v21 = vadd.f32 1.0, %v13552_v8  ;;  %v3817_v32 = vpop.xlane.xlu1 %3816  ;;  %v13554_v24 = vpop.eup %13553  ;;  %v10477_v27 = vmul.f32 -1.442695, %v4250_v1  ;;  %v14364_v8 = vld [vmem:[%s20266_s0 + $0x198] sm:$0xff] }
 0x2c7   :  { %v17011_v13 = vpop.f32.mrb[90].mxu0  ;;  %v4251_v9 = vadd.f32 %v16902_v57, %v3817_v32  ;;  %v3820_v58 = vpop.xlane.xlu0 %3819  ;;  %v3705_v45 = vmul.f32 %v13554_v24, %v16137_v49 }
 0x2c8   :  { %13567 = vrcp.f32 %v4845_v21  ;;  %v17015_v40 = vpop.f32.mrb[91].mxu0  ;;  %12403 = vmatmul.mubr.msk.f32.gmra.mrb[196].mxu0 %vm2063_vm1, %v14360_v33 }
 0x2c9   :  { %v13556_v53 = vpop.eup %13555  ;;  %13569 = vpow2.f32 %v10476_v2  ;;  %3987 = vadd.xlane.f32.xlu1 %v3986_v29  ;;  %12405 = vmatprep.mubr.msk.f32.mxu0 %vm2063_vm1, %v14361_v34  ;;  %v10478_v51 = vmul.f32 -1.442695, %v4251_v9  ;;  %v3992_v47 = vsel %vm3787_vm2, %v3705_v45, 0.0  ;;  %v4252_v29 = vadd.f32 %v16902_v57, %v3820_v58 }
 0x2ca   :  { %13571 = vtanh.f32 %v3406_v11  ;;  %v4844_v6 = vadd.f32 1.0, %v13556_v53  ;;  %v3823_v59 = vpop.xlane.xlu1 %3822  ;;  %v13558_v10 = vpop.eup %13557  ;;  %v3407_v11 = vadd.f32 %v16055_v48, %v16871_v36  ;;  %v14366_v36 = vld [vmem:[%s20266_s0 + $0x1a8] sm:$0xff]  ;;  %v3410_v58 = vadd.f32 %v16885_v55, %v16055_v48  ;;  %v14368_v55 = vld [vmem:[%s20266_s0 + $0x1b8] sm:$0xff] }
 0x2cb   :  { %13573 = vpow2.f32 %v10475_v42  ;;  %v17028_v46 = vpop.f32.mrb[92].mxu0  ;;  %v13560_v5 = vpop.eup %13559  ;;  %v4253_v7 = vadd.f32 %v16902_v57, %v3823_v59  ;;  %v3708_v62 = vmul.f32 %v13558_v10, %v16137_v49 }
 0x2cc   :  { %13575 = vrcp.f32 %v4844_v6  ;;  %v17033_v61 = vpop.f32.mrb[93].mxu0  ;;  %12406 = vmatmul.mubr.msk.f32.gmra.mrb[198].mxu0 %vm2063_vm1, %v14362_v39  ;;  %v4846_v15 = vadd.f32 1.0, %v13560_v5  ;;  %v3826_v2 = vpop.xlane.xlu0 %3825  ;;  %v14367_v6 = vld [vmem:[%s20266_s0 + $0x1b0] sm:$0xff] }
 0x2cd   :  { %v13562_v16 = vpop.eup %13561  ;;  %3996 = vadd.xlane.f32.xlu1 %v3995_v28  ;;  %12408 = vmatprep.mubr.msk.f32.mxu0 %vm2063_vm1, %v14363_v25  ;;  %13577 = vtanh.f32 %v3405_v41  ;;  %v10480_v37 = vmul.f32 -1.442695, %v4253_v7  ;;  %v4001_v33 = vsel %vm3787_vm2, %v3708_v62, 0.0  ;;  %v10479_v28 = vmul.f32 -1.442695, %v4252_v29 }
 0x2ce   :  { %v13564_v26 = vpop.eup %13563  ;;  %v3829_v19 = vpop.xlane.xlu1 %3828  ;;  %6722 = vperm.xlu0 %13409, %v13562_v16   ;;  %13579 = vpow2.f32 %v10478_v51  ;;  %v4254_v62 = vadd.f32 %v16902_v57, %v3826_v2  ;;  %v14371_v2 = vld [vmem:[%s20266_s0 + $0x1d0] sm:$0xff] }
 0x2cf   :  { %v4847_v17 = vadd.f32 1.0, %v13564_v26  ;;  %v17045_v30 = vpop.f32.mrb[94].mxu0  ;;  %v13566_v43 = vpop.eup %13565  ;;  %v4255_v39 = vadd.f32 %v16902_v57, %v3829_v19 }
 0x2d0   :  { %v17049_v52 = vpop.f32.mrb[95].mxu0  ;;  %12409 = vmatmul.mubr.msk.f32.gmra.mrb[200].mxu0 %vm2063_vm1, %v14364_v8  ;;  %v3707_v24 = vmul.f32 %v13566_v43, %v16137_v49  ;;  %v17083_v45 = vpop.xlane.xlu0 %3831 }
 0x2d1   :  { %13581 = vrcp.f32 %v4847_v17  ;;  %3993 = vadd.xlane.f32.xlu1 %v3992_v47  ;;  %12411 = vmatprep.mubr.msk.f32.mxu0 %vm2063_vm1, %v14365_v44  ;;  %v3409_v17 = vadd.f32 %v16055_v48, %v16888_v18  ;;  %v10482_v8 = vmul.f32 -1.442695, %v4255_v39  ;;  %v14370_v18 = vld [vmem:[%s20266_s0 + $0x1c8] sm:$0xff] }
 0x2d2   :  { %v13568_v60 = vpop.eup %13567  ;;  %v17062_v21 = vpop.xlane.xlu1 %3834  ;;  %13583 = vtanh.f32 %v3408_v22  ;;  %v3998_v1 = vsel %vm3787_vm2, %v3707_v24, 0.0  ;;  %v14369_v22 = vld [vmem:[%s20266_s0 + $0x1c0] sm:$0xff] }
 0x2d3   :  { %v13570_v32 = vpop.eup %13569  ;;  %6732 = vperm.xlu0 %13409, %v13568_v60   ;;  %v17064_v42 = vpop.f32.mrb[96].mxu0  ;;  %13585 = vpow2.f32 %v10477_v27 }
 0x2d4   :  { %v13572_v9 = vpop.eup %13571  ;;  %v17069_v53 = vpop.f32.mrb[97].mxu0  ;;  %12412 = vmatmul.mubr.msk.f32.gmra.mrb[202].mxu0 %vm2063_vm1, %v14366_v36  ;;  %13587 = vrcp.f32 %v4846_v15  ;;  %v4849_v41 = vadd.f32 1.0, %v13570_v32 }
 0x2d5   :  { %v13574_v34 = vpop.eup %13573  ;;  %4002 = vadd.xlane.f32.xlu1 %v4001_v33  ;;  %12414 = vmatprep.mubr.msk.f32.mxu0 %vm2063_vm1, %v14367_v6  ;;  %13589 = vtanh.f32 %v3407_v11  ;;  %v3710_v25 = vmul.f32 %v13572_v9, %v16137_v49  ;;  %v17115_v32 = vpop.xlane.xlu0 %3837  ;;  %v4257_v6 = vadd.f32 %v16902_v57, %v17062_v21 }
 0x2d6   :  { %v13576_v59 = vpop.eup %13575  ;;  %v17079_v10 = vpop.xlane.xlu1 %3840  ;;  %13591 = vpow2.f32 %v10480_v37  ;;  %v4848_v26 = vadd.f32 1.0, %v13574_v34  ;;  %v3412_v37 = vadd.f32 %v16906_v12, %v16055_v48 }
 0x2d7   :  { %6727 = vperm.xlu0 %13409, %v13576_v59   ;;  %v17085_v5 = vpop.f32.mrb[98].mxu0  ;;  %v13578_v51 = vpop.eup %13577  ;;  %13593 = vrcp.f32 %v4849_v41  ;;  %v4007_v15 = vsel %vm3787_vm2, %v3710_v25, 0.0  ;;  %v10481_v41 = vmul.f32 -1.442695, %v4254_v62 }
 0x2d8   :  { %v17089_v16 = vpop.f32.mrb[99].mxu0  ;;  %12415 = vmatmul.mubr.msk.f32.gmra.mrb[204].mxu0 %vm2063_vm1, %v14368_v55  ;;  %v13580_v19 = vpop.eup %13579  ;;  %13595 = vtanh.f32 %v3410_v58  ;;  %v3709_v7 = vmul.f32 %v13578_v51, %v16137_v49  ;;  %v14373_v51 = vld [vmem:[%s20266_s0 + $0x1e0] sm:$0xff] }
 0x2d9   :  { %3999 = vadd.xlane.f32.xlu1 %v3998_v1  ;;  %12417 = vmatprep.mubr.msk.f32.mxu0 %vm2063_vm1, %v14369_v22  ;;  %13597 = vpow2.f32 %v10479_v28  ;;  %v4851_v11 = vadd.f32 1.0, %v13580_v19  ;;  %v14372_v1 = vld [vmem:[%s20266_s0 + $0x1d8] sm:$0xff]  ;;  %v3411_v28 = vadd.f32 %v16055_v48, %v16909_v38  ;;  %v17145_v55 = vpop.xlane.xlu0 %3843  ;;  %v4256_v19 = vadd.f32 %v16902_v57, %v17083_v45  ;;  %v14374_v38 = vld [vmem:[%s20266_s0 + $0x1e8] sm:$0xff]  ;;  %v14375_v45 = vld [vmem:[%s20266_s0 + $0x1f0] sm:$0xff] }
 0x2da   :  { %v17102_v47 = vpop.xlane.xlu1 %3846  ;;  %13599 = vrcp.f32 %v4848_v26  ;;  %v4004_v36 = vsel %vm3787_vm2, %v3709_v7, 0.0 }
 0x2db   :  { %v13582_v43 = vpop.eup %13581  ;;  %v17104_v27 = vpop.f32.mrb[100].mxu0  ;;  %13601 = vtanh.f32 %v3409_v17  ;;  %v10484_v17 = vmul.f32 -1.442695, %v4257_v6  ;;  %v14376_v6 = vld [vmem:[%s20266_s0 + $0x1f8] sm:$0xff] }
 0x2dc   :  { %6742 = vperm.xlu0 %13409, %v13582_v43   ;;  %v17109_v44 = vpop.f32.mrb[101].mxu0  ;;  %12418 = vmatmul.mubr.msk.f32.gmra.mrb[206].mxu0 %vm2063_vm1, %v14370_v18  ;;  %v13584_v60 = vpop.eup %13583  ;;  %13603 = vpow2.f32 %v10482_v8 }
 0x2dd   :  { %4008 = vadd.xlane.f32.xlu1 %v4007_v15  ;;  %12420 = vmatprep.mubr.msk.f32.mxu0 %vm2063_vm1, %v14371_v2  ;;  %v13586_v24 = vpop.eup %13585  ;;  %v3712_v58 = vmul.f32 %v13584_v60, %v16137_v49  ;;  %13605 = vrcp.f32 %v4851_v11  ;;  %v3414_v11 = vadd.f32 %v16923_v3, %v16055_v48 }
 0x2de   :  { %v17121_v9 = vpop.xlane.xlu1 %3852  ;;  %v13588_v29 = vpop.eup %13587  ;;  %v4850_v12 = vadd.f32 1.0, %v13586_v24  ;;  %13607 = vtanh.f32 %v3412_v37  ;;  %v10483_v37 = vmul.f32 -1.442695, %v4256_v19 }
 0x2df   :  { %v17125_v33 = vpop.f32.mrb[102].mxu0  ;;  %v13590_v34 = vpop.eup %13589  ;;  %13609 = vpow2.f32 %v10481_v41  ;;  %v4013_v43 = vsel %vm3787_vm2, %v3712_v58, 0.0 }
 0x2e0   :  { %6737 = vperm.xlu0 %13409, %v13588_v29   ;;  %v17130_v59 = vpop.f32.mrb[103].mxu0  ;;  %12421 = vmatmul.mubr.msk.f32.gmra.mrb[208].mxu0 %vm2063_vm1, %v14372_v1  ;;  %v13592_v21 = vpop.eup %13591  ;;  %v3711_v22 = vmul.f32 %v13590_v34, %v16137_v49  ;;  %13611 = vrcp.f32 %v4850_v12  ;;  %v3413_v12 = vadd.f32 %v16055_v48, %v16926_v4  ;;  %v14378_v4 = vld [vmem:[%s20266_s0 + $0x208] sm:$0xff] }
 0x2e1   :  { %4005 = vadd.xlane.f32.xlu1 %v4004_v36  ;;  %12423 = vmatprep.mubr.msk.f32.mxu0 %vm2063_vm1, %v14373_v51  ;;  %v13594_v25 = vpop.eup %13593  ;;  %v4853_v8 = vadd.f32 1.0, %v13592_v21  ;;  %13613 = vtanh.f32 %v3411_v28  ;;  %v4259_v36 = vadd.f32 %v16902_v57, %v17079_v10  ;;  %v17179_v58 = vpop.xlane.xlu0 %3849  ;;  %v14377_v10 = vld [vmem:[%s20266_s0 + $0x200] sm:$0xff] }
 0x2e2   :  { %v17143_v39 = vpop.xlane.xlu1 %3858  ;;  %v13596_v62 = vpop.eup %13595  ;;  %v4010_v24 = vsel %vm3787_vm2, %v3711_v22, 0.0  ;;  %13615 = vpow2.f32 %v10484_v17  ;;  %v4258_v22 = vadd.f32 %v16902_v57, %v17115_v32  ;;  %v14379_v32 = vld [vmem:[%s20266_s0 + $0x210] sm:$0xff] }
 0x2e3   :  { %v17147_v26 = vpop.f32.mrb[104].mxu0  ;;  %v13598_v15 = vpop.eup %13597  ;;  %v3714_v41 = vmul.f32 %v13596_v62, %v16137_v49  ;;  %13617 = vrcp.f32 %v4853_v8  ;;  %v10486_v19 = vmul.f32 -1.442695, %v4259_v36 }
 0x2e4   :  { %6752 = vperm.xlu0 %13409, %v13594_v25   ;;  %v17153_v7 = vpop.f32.mrb[105].mxu0  ;;  %12424 = vmatmul.mubr.msk.f32.gmra.mrb[210].mxu0 %vm2063_vm1, %v14374_v38  ;;  %v13600_v60 = vpop.eup %13599  ;;  %v4852_v3 = vadd.f32 1.0, %v13598_v15  ;;  %13619 = vtanh.f32 %v3414_v11  ;;  %v10485_v36 = vmul.f32 -1.442695, %v4258_v22 }
 0x2e5   :  { %4014 = vadd.xlane.f32.xlu1 %v4013_v43  ;;  %12426 = vmatprep.mubr.msk.f32.mxu0 %vm2063_vm1, %v14375_v45  ;;  %v13602_v29 = vpop.eup %13601  ;;  %13621 = vpow2.f32 %v10483_v37  ;;  %v4019_v17 = vsel %vm3787_vm2, %v3714_v41, 0.0  ;;  %v17209_v11 = vpop.xlane.xlu0 %3855  ;;  %v4261_v41 = vadd.f32 %v16902_v57, %v17102_v47 }
 0x2e6   :  { %v17163_v18 = vpop.xlane.xlu1 %3864  ;;  %v13604_v1 = vpop.eup %13603  ;;  %v3713_v25 = vmul.f32 %v13602_v29, %v16137_v49  ;;  %13623 = vrcp.f32 %v4852_v3 }
 0x2e7   :  { %v17167_v2 = vpop.f32.mrb[106].mxu0  ;;  %v13606_v21 = vpop.eup %13605  ;;  %v4855_v62 = vadd.f32 1.0, %v13604_v1  ;;  %13625 = vtanh.f32 %v3413_v12  ;;  %v14381_v1 = vld [vmem:[%s20266_s0 + $0x220] sm:$0xff]  ;;  %v3415_v12 = vadd.f32 %v16055_v48, %v16945_v35  ;;  %v14382_v35 = vld [vmem:[%s20266_s0 + $0x228] sm:$0xff] }
 0x2e8   :  { %6747 = vperm.xlu0 %13409, %v13600_v60   ;;  %v17172_v34 = vpop.f32.mrb[107].mxu0  ;;  %12427 = vmatmul.mubr.msk.f32.gmra.mrb[212].mxu0 %vm2063_vm1, %v14376_v6  ;;  %v13608_v38 = vpop.eup %13607  ;;  %v3416_v60 = vadd.f32 %v16942_v63, %v16055_v48  ;;  %v4016_v29 = vsel %vm3787_vm2, %v3713_v25, 0.0  ;;  %13627 = vpow2.f32 %v10486_v19  ;;  %v14380_v63 = vld [vmem:[%s20266_s0 + $0x218] sm:$0xff] }
 0x2e9   :  { %4011 = vadd.xlane.f32.xlu1 %v4010_v24  ;;  %12429 = vmatprep.mubr.msk.f32.mxu0 %vm2063_vm1, %v14377_v10  ;;  %v13610_v8 = vpop.eup %13609  ;;  %v3716_v3 = vmul.f32 %v13608_v38, %v16137_v49  ;;  %13629 = vrcp.f32 %v4855_v62 }
 0x2ea   :  { %v17187_v51 = vpop.xlane.xlu1 %3870  ;;  %v13612_v15 = vpop.eup %13611  ;;  %v4854_v10 = vadd.f32 1.0, %v13610_v8  ;;  %13631 = vtanh.f32 %v3416_v60 }
 0x2eb   :  { %v17189_v28 = vpop.f32.mrb[108].mxu0  ;;  %v13614_v37 = vpop.eup %13613  ;;  %13633 = vpow2.f32 %v10485_v36  ;;  %v4025_v38 = vsel %vm3787_vm2, %v3716_v3, 0.0  ;;  %v3418_v36 = vadd.f32 %v16960_v20, %v16055_v48 }
 0x2ec   :  { %6762 = vperm.xlu0 %13409, %v13606_v21   ;;  %v17195_v43 = vpop.f32.mrb[109].mxu0  ;;  %12430 = vmatmul.mubr.msk.f32.gmra.mrb[214].mxu0 %vm2063_vm1, %v14378_v4  ;;  %v13616_v47 = vpop.eup %13615  ;;  %v3715_v19 = vmul.f32 %v13614_v37, %v16137_v49  ;;  %v10488_v4 = vmul.f32 -1.442695, %v4261_v41  ;;  %13635 = vrcp.f32 %v4854_v10 }
 0x2ed   :  { %4020 = vadd.xlane.f32.xlu1 %v4019_v17  ;;  %12432 = vmatprep.mubr.msk.f32.mxu0 %vm2063_vm1, %v14379_v32  ;;  %v13618_v25 = vpop.eup %13617  ;;  %v4260_v17 = vadd.f32 %v16902_v57, %v17145_v55  ;;  %v4857_v8 = vadd.f32 1.0, %v13616_v47  ;;  %v14383_v55 = vld [vmem:[%s20266_s0 + $0x230] sm:$0xff]  ;;  %13637 = vtanh.f32 %v3415_v12 }
 0x2ee   :  { %v17205_v45 = vpop.xlane.xlu1 %3876  ;;  %v13620_v32 = vpop.eup %13619  ;;  %v4022_v3 = vsel %vm3787_vm2, %v3715_v19, 0.0  ;;  %13639 = vpow2.f32 %v10488_v4 }
 0x2ef   :  { %v17211_v24 = vpop.f32.mrb[110].mxu0  ;;  %v13622_v60 = vpop.eup %13621  ;;  %v10487_v10 = vmul.f32 -1.442695, %v4260_v17  ;;  %v3718_v12 = vmul.f32 %v13620_v32, %v16137_v49  ;;  %13641 = vrcp.f32 %v4857_v8  ;;  %v3417_v17 = vadd.f32 %v16055_v48, %v16963_v23 }
 0x2f0   :  { %6757 = vperm.xlu0 %13409, %v13612_v15   ;;  %v17216_v6 = vpop.f32.mrb[111].mxu0  ;;  %12433 = vmatmul.mubr.msk.f32.gmra.mrb[216].mxu0 %vm2063_vm1, %v14380_v63  ;;  %v17243_v15 = vpop.xlane.xlu0 %3861  ;;  %v4856_v20 = vadd.f32 1.0, %v13622_v60  ;;  %13643 = vtanh.f32 %v3418_v36 }
 0x2f1   :  { %4017 = vadd.xlane.f32.xlu1 %v4016_v29  ;;  %12435 = vmatprep.mubr.msk.f32.mxu0 %vm2063_vm1, %v14381_v1  ;;  %v13624_v37 = vpop.eup %13623  ;;  %v4263_v1 = vadd.f32 %v16902_v57, %v17121_v9  ;;  %13645 = vpow2.f32 %v10487_v10  ;;  %v4031_v60 = vsel %vm3787_vm2, %v3718_v12, 0.0 }
 0x2f2   :  { %v17229_v21 = vpop.xlane.xlu1 %3882  ;;  %v13626_v63 = vpop.eup %13625  ;;  %13647 = vrcp.f32 %v4856_v20  ;;  %v4265_v20 = vadd.f32 %v16902_v57, %v17143_v39  ;;  %v4264_v39 = vadd.f32 %v16902_v57, %v17209_v11 }
 0x2f3   :  { %v17231_v22 = vpop.f32.mrb[112].mxu0  ;;  %v13628_v19 = vpop.eup %13627  ;;  %v3717_v32 = vmul.f32 %v13626_v63, %v16137_v49  ;;  %v10490_v8 = vmul.f32 -1.442695, %v4263_v1  ;;  %13649 = vtanh.f32 %v3417_v17 }
 0x2f4   :  { %20273 = vst [vmem:[#allocation3_spill] sm:$0xff] %v17231_v22  ;;  %6772 = vperm.xlu0 %13409, %v13618_v25   ;;  %v17237_v62 = vpop.f32.mrb[113].mxu0  ;;  %12436 = vmatmul.mubr.msk.f32.gmra.mrb[218].mxu0 %vm2063_vm1, %v14382_v35  ;;  %v14384_v25 = vld [vmem:[%s20266_s0 + $0x238] sm:$0xff]  ;;  %v13630_v9 = vpop.eup %13629 }
 0x2f5   :  { %20274 = vst [vmem:[#allocation4_spill] sm:$0xff] %v17237_v62  ;;  %4026 = vadd.xlane.f32.xlu1 %v4025_v38  ;;  %12438 = vmatprep.mubr.msk.f32.mxu0 %vm2063_vm1, %v14383_v55  ;;  %v17269_v38 = vpop.xlane.xlu0 %3867  ;;  %v4262_v55 = vadd.f32 %v16902_v57, %v17179_v58  ;;  %v13632_v23 = vpop.eup %13631  ;;  %v4028_v58 = vsel %vm3787_vm2, %v3717_v32, 0.0  ;;  %13651 = vpow2.f32 %v10490_v8 }
 0x2f6   :  { %v17249_v29 = vpop.xlane.xlu1 %3888  ;;  %v13634_v36 = vpop.eup %13633 }
 0x2f7   :  { %v17253_v41 = vpop.f32.mrb[114].mxu0  ;;  %v13636_v10 = vpop.eup %13635  ;;  %v10489_v12 = vmul.f32 -1.442695, %v4262_v55 }
 0x2f8   :  { %20275 = vst [vmem:[#allocation5_spill] sm:$0xff] %v17253_v41  ;;  %6767 = vperm.xlu0 %13409, %v13624_v37   ;;  %v17258_v47 = vpop.f32.mrb[115].mxu0  ;;  %12439 = vmatmul.mubr.msk.f32.gmra.mrb[220].mxu0 %vm2063_vm1, %v14384_v25  ;;  %v4242_v25 = vadd.f32 %v16902_v57, %v16933_v50  ;;  %v13638_v1 = vpop.eup %13637  ;;  %v4858_v50 = vadd.f32 1.0, %v13634_v36 }
 0x2f9   :  { %20276 = vst [vmem:[#allocation6_spill] sm:$0xff] %v17258_v47  ;;  %4023 = vadd.xlane.f32.xlu1 %v4022_v3  ;;  %v4859_v3 = vadd.f32 1.0, %v13628_v19  ;;  %v17291_v17 = vpop.xlane.xlu0 %3873  ;;  %v3719_v8 = vmul.f32 %v13638_v1, %v16137_v49 }
 0x2fa   :  { %v17267_v4 = vpop.xlane.xlu1 %3894 }
 0x2fb   :  { %v17271_v35 = vpop.f32.mrb[116].mxu0  ;;  %13653 = vrcp.f32 %v4859_v3  ;;  %v4034_v11 = vsel %vm3787_vm2, %v3719_v8, 0.0 }
 0x2fc   :  { %20277 = vst [vmem:[#allocation7_spill] sm:$0xff] %v17271_v35  ;;  %6782 = vperm.xlu0 %13409, %v13630_v9   ;;  %v17277_v37 = vpop.f32.mrb[117].mxu0  ;;  %v3720_v9 = vmul.f32 %v13632_v23, %v16137_v49  ;;  %13655 = vpow2.f32 %v10489_v12 }
 0x2fd   :  { %20278 = vst [vmem:[#allocation8_spill] sm:$0xff] %v17277_v37  ;;  %4032 = vadd.xlane.f32.xlu1 %v4031_v60  ;;  %v13640_v60 = vpop.eup %13639  ;;  %13657 = vrcp.f32 %v4858_v50  ;;  %v17305_v1 = vpop.xlane.xlu0 %3879 }
 0x2fe   :  { %v17281_v63 = vpop.xlane.xlu1 %3900  ;;  %v13642_v32 = vpop.eup %13641  ;;  %v4037_v23 = vsel %vm3787_vm2, %v3720_v9, 0.0  ;;  %v4267_v9 = vadd.f32 %v16902_v57, %v17163_v18  ;;  %v4266_v18 = vadd.f32 %v16902_v57, %v17243_v15  ;;  %v4269_v15 = vadd.f32 %v16902_v57, %v17187_v51 }
 0x2ff   :  { %v17283_v35 = vpop.f32.mrb[118].mxu0  ;;  %v13644_v36 = vpop.eup %13643  ;;  %v4268_v51 = vadd.f32 %v16902_v57, %v17269_v38 }
 0x300   :  { %20279 = vst [vmem:[#allocation9_spill] sm:$0xff] %v17283_v35  ;;  %6777 = vperm.xlu0 %13409, %v13636_v10   ;;  %v17288_v19 = vpop.f32.mrb[119].mxu0  ;;  %v10469_v35 = vmul.f32 -1.442695, %v4242_v25  ;;  %v10492_v10 = vmul.f32 -1.442695, %v4265_v20 }
 0x301   :  { %20280 = vst [vmem:[#allocation10_spill] sm:$0xff] %v17288_v19  ;;  %4029 = vadd.xlane.f32.xlu1 %v4028_v58  ;;  %v4861_v25 = vadd.f32 1.0, %v13640_v60  ;;  %v13646_v58 = vpop.eup %13645 }
 0x302   :  { %v17293_v37 = vpop.xlane.xlu1 %3906  ;;  %13659 = vpow2.f32 %v10469_v35  ;;  %v3722_v35 = vmul.f32 %v13644_v36, %v16137_v49  ;;  %v4860_v60 = vadd.f32 1.0, %v13646_v58 }
 0x303   :  { %v17295_v55 = vpop.f32.mrb[120].mxu0  ;;  %13661 = vpow2.f32 %v10492_v10 }
 0x304   :  { %20281 = vst [vmem:[#allocation11_spill] sm:$0xff] %v17295_v55  ;;  %6792 = vperm.xlu0 %13409, %v13642_v32   ;;  %v17301_v3 = vpop.f32.mrb[121].mxu0  ;;  %v13648_v55 = vpop.eup %13647  ;;  %v10491_v32 = vmul.f32 -1.442695, %v4264_v39  ;;  %13663 = vrcp.f32 %v4861_v25  ;;  %v4043_v39 = vsel %vm3787_vm2, %v3722_v35, 0.0 }
 0x305   :  { %20282 = vst [vmem:[#allocation12_spill] sm:$0xff] %v17301_v3  ;;  %4038 = vadd.xlane.f32.xlu1 %v4037_v23  ;;  %v13650_v20 = vpop.eup %13649  ;;  %v17325_v25 = vpop.xlane.xlu0 %3885 }
 0x306   :  { %v17303_v19 = vpop.xlane.xlu1 %3912  ;;  %v13652_v23 = vpop.eup %13651  ;;  %v3721_v8 = vmul.f32 %v13650_v20, %v16137_v49  ;;  %13665 = vpow2.f32 %v10491_v32 }
 0x307   :  { %v17307_v12 = vpop.f32.mrb[122].mxu0  ;;  %13667 = vrcp.f32 %v4860_v60  ;;  %v4863_v36 = vadd.f32 1.0, %v13652_v23 }
 0x308   :  { %20283 = vst [vmem:[#allocation13_spill] sm:$0xff] %v17307_v12  ;;  %6787 = vperm.xlu0 %13409, %v13648_v55   ;;  %v17312_v50 = vpop.f32.mrb[123].mxu0  ;;  %v13654_v12 = vpop.eup %13653  ;;  %v10494_v55 = vmul.f32 -1.442695, %v4267_v9 }
 0x309   :  { %20284 = vst [vmem:[#allocation14_spill] sm:$0xff] %v17312_v50  ;;  %4035 = vadd.xlane.f32.xlu1 %v4034_v11  ;;  %v13656_v58 = vpop.eup %13655  ;;  %v10493_v50 = vmul.f32 -1.442695, %v4266_v18 }
 0x30a   :  { %v17315_v3 = vpop.xlane.xlu1 %3918  ;;  %13669 = vpow2.f32 %v10494_v55  ;;  %v4862_v35 = vadd.f32 1.0, %v13656_v58 }
 0x30b   :  { %v17317_v47 = vpop.f32.mrb[124].mxu0  ;;  %13671 = vrcp.f32 %v4863_v36 }
 0x30c   :  { %20285 = vst [vmem:[#allocation15_spill] sm:$0xff] %v17317_v47  ;;  %6802 = vperm.xlu0 %13409, %v13654_v12   ;;  %v17323_v10 = vpop.f32.mrb[125].mxu0  ;;  %v13658_v47 = vpop.eup %13657  ;;  %v4040_v12 = vsel %vm3787_vm2, %v3721_v8, 0.0  ;;  %13673 = vpow2.f32 %v10493_v50  ;;  %v4271_v50 = vadd.f32 %v16902_v57, %v17205_v45 }
 0x30d   :  { %20286 = vst [vmem:[#allocation16_spill] sm:$0xff] %v17323_v10  ;;  %4044 = vadd.xlane.f32.xlu1 %v4043_v39  ;;  %v13660_v32 = vpop.eup %13659  ;;  %13675 = vrcp.f32 %v4862_v35 }
 0x30e   :  { %v17327_v11 = vpop.xlane.xlu1 %3924  ;;  %v13662_v60 = vpop.eup %13661  ;;  %v4842_v10 = vadd.f32 1.0, %v13660_v32 }
 0x30f   :  { %v17329_v20 = vpop.f32.mrb[126].mxu0  ;;  %v13664_v39 = vpop.eup %13663  ;;  %v4865_v55 = vadd.f32 1.0, %v13662_v60 }
 0x310   :  { %20287 = vst [vmem:[#allocation17_spill] sm:$0xff] %v17329_v20  ;;  %6797 = vperm.xlu0 %13409, %v13658_v47   ;;  %v17334_v9 = vpop.f32.mrb[127].mxu0  ;;  %v17338_v20 = vpop.xlane.xlu0 %3891  ;;  %v10496_v47 = vmul.f32 -1.442695, %v4269_v15  ;;  %13677 = vrcp.f32 %v4842_v10  ;;  %v4270_v10 = vadd.f32 %v16902_v57, %v17291_v17 }
 0x311   :  { %20288 = vst [vmem:[#allocation18_spill] sm:$0xff] %v17334_v9  ;;  %4041 = vadd.xlane.f32.xlu1 %v4040_v12  ;;  %v13666_v36 = vpop.eup %13665  ;;  %v10495_v9 = vmul.f32 -1.442695, %v4268_v51  ;;  %v10498_v51 = vmul.f32 -1.442695, %v4271_v50 }
 0x312   :  { %v17336_v23 = vpop.xlane.xlu1 %3930  ;;  %v13668_v12 = vpop.eup %13667  ;;  %13679 = vpow2.f32 %v10496_v47  ;;  %v4864_v15 = vadd.f32 1.0, %v13666_v36  ;;  %v10497_v41 = vmul.f32 -1.442695, %v4270_v10  ;;  %v4272_v10 = vadd.f32 %v16902_v57, %v17305_v1  ;;  %v7624_v1 = vld [vmem:[%s20268_s6 + $0x48] sm:$0xff] }
 0x313   :  { %v17340_v18 = vpop.f32.mrb[128].mxu0  ;;  %13681 = vrcp.f32 %v4865_v55 }
 0x314   :  { %20289 = vst [vmem:[#allocation19_spill] sm:$0xff] %v17340_v18  ;;  %6812 = vperm.xlu0 %13409, %v13664_v39   ;;  %v17344_v8 = vpop.f32.mrb[129].mxu0  ;;  %v17354_v39 = vpop.xlane.xlu0 %3897  ;;  %13683 = vpow2.f32 %v10495_v9  ;;  %v4273_v9 = vadd.f32 %v16902_v57, %v17229_v21 }
 0x315   :  { %20290 = vst [vmem:[#allocation20_spill] sm:$0xff] %v17344_v8  ;;  %v13670_v35 = vpop.eup %13669  ;;  %13685 = vrcp.f32 %v4864_v15 }
 0x316   :  { %v17346_v58 = vpop.xlane.xlu1 %3936  ;;  %v13672_v8 = vpop.eup %13671  ;;  %v4867_v47 = vadd.f32 1.0, %v13670_v35  ;;  %13687 = vpow2.f32 %v10498_v51  ;;  %v10500_v51 = vmul.f32 -1.442695, %v4273_v9  ;;  %v4275_v9 = vadd.f32 %v16902_v57, %v17249_v29 }
 0x317   :  { %v17348_v32 = vpop.f32.mrb[130].mxu0  ;;  %v13674_v36 = vpop.eup %13673 }
 0x318   :  { %20291 = vst [vmem:[#allocation21_spill] sm:$0xff] %v17348_v32  ;;  %6807 = vperm.xlu0 %13409, %v13668_v12   ;;  %v17352_v38 = vpop.f32.mrb[131].mxu0  ;;  %v13676_v12 = vpop.eup %13675  ;;  %v4866_v50 = vadd.f32 1.0, %v13674_v36  ;;  %13689 = vrcp.f32 %v4867_v47 }
 0x319   :  { %20292 = vst [vmem:[#allocation22_spill] sm:$0xff] %v17352_v38  ;;  %v17366_v38 = vpop.xlane.xlu0 %3903  ;;  %13691 = vpow2.f32 %v10497_v41  ;;  %v7623_v41 = vld [vmem:[%s20268_s6 + $0x40] sm:$0xff] }
 0x31a   :  { %v17356_v60 = vpop.xlane.xlu1 %3948  ;;  %13693 = vrcp.f32 %v4866_v50 }
 0x31b   :  { %v17358_v18 = vpop.f32.mrb[132].mxu0  ;;  %13695 = vpow2.f32 %v10500_v51 }
 0x31c   :  { %20293 = vst [vmem:[#allocation23_spill] sm:$0xff] %v17358_v18  ;;  %6822 = vperm.xlu0 %13409, %v13672_v8   ;;  %v17362_v45 = vpop.f32.mrb[133].mxu0  ;;  %v13678_v8 = vpop.eup %13677 }
 0x31d   :  { %20294 = vst [vmem:[#allocation24_spill] sm:$0xff] %v17362_v45  ;;  %v13680_v15 = vpop.eup %13679 }
 0x31e   :  { %v17364_v55 = vpop.xlane.xlu1 %3945  ;;  %v13682_v45 = vpop.eup %13681 }
 0x31f   :  { %v17368_v32 = vpop.f32.mrb[134].mxu0  ;;  %v13684_v47 = vpop.eup %13683 }
 0x320   :  { %20295 = vst [vmem:[#allocation25_spill] sm:$0xff] %v17368_v32  ;;  %6817 = vperm.xlu0 %13409, %v13676_v12   ;;  %v17372_v17 = vpop.f32.mrb[135].mxu0  ;;  %v4869_v12 = vadd.f32 1.0, %v13680_v15  ;;  %v13686_v32 = vpop.eup %13685  ;;  %v13072_v15 = vpack.c.bf16 %v7624_v1, %v7623_v41 }
 0x321   :  { %20296 = vst [vmem:[#allocation26_spill] sm:$0xff] %v17372_v17  ;;  %v17382_v17 = vpop.xlane.xlu0 %3909  ;;  %v13688_v62 = vpop.eup %13687 }
 0x322   :  { %v17374_v35 = vpop.xlane.xlu1 %3954  ;;  %6717 = vperm.xlu1 %13410, %v13678_v8   ;;  %13697 = vrcp.f32 %v4869_v12  ;;  %13073 = vmatprep.subr.bf16.mxu1 %v13072_v15  ;;  %v13690_v29 = vpop.eup %13689  ;;  %v4274_v12 = vadd.f32 %v16902_v57, %v17325_v25  ;;  %v4871_v1 = vadd.f32 1.0, %v13688_v62 }
 0x323   :  { %v17376_v18 = vpop.f32.mrb[136].mxu0  ;;  %13075 = vmatpush3.bf16.msra.mxu1 %v13072_v15  ;;  %v13692_v15 = vpop.eup %13691 }
 0x324   :  { %20297 = vst [vmem:[#allocation27_spill] sm:$0xff] %v17376_v18  ;;  %6832 = vperm.xlu0 %13409, %v13682_v45   ;;  %v17380_v21 = vpop.f32.mrb[137].mxu0  ;;  %v10499_v45 = vmul.f32 -1.442695, %v4272_v10  ;;  %v7626_v18 = vld [vmem:[%s20268_s6 + $0x58] sm:$0xff]  ;;  %v13694_v25 = vpop.eup %13693  ;;  %v4870_v31 = vadd.f32 1.0, %v13692_v15  ;;  %v4276_v15 = vadd.f32 %v16902_v57, %v17338_v20 }
 0x325   :  { %20298 = vst [vmem:[#allocation28_spill] sm:$0xff] %v17380_v21  ;;  %v4868_v21 = vadd.f32 1.0, %v13684_v47  ;;  %v10502_v47 = vmul.f32 -1.442695, %v4275_v9  ;;  %v3420_v9 = vadd.f32 %v16977_v0, %v16055_v48  ;;  %v10501_v62 = vmul.f32 -1.442695, %v4274_v12  ;;  %v13696_v12 = vpop.eup %13695 }
 0x326   :  { %v17384_v36 = vpop.xlane.xlu1 %3951  ;;  %13699 = vpow2.f32 %v10499_v45  ;;  %v7629_v0 = vld [vmem:[%s20268_s6 + $0x70] sm:$0xff]  ;;  %v10503_v20 = vmul.f32 -1.442695, %v4276_v15 }
 0x327   :  { %v17386_v8 = vpop.f32.mrb[138].mxu0  ;;  %13701 = vrcp.f32 %v4868_v21  ;;  %v4277_v21 = vadd.f32 %v16902_v57, %v17267_v4 }
 0x328   :  { %20299 = vst [vmem:[#allocation29_spill] sm:$0xff] %v17386_v8  ;;  %6827 = vperm.xlu0 %13409, %v13686_v32   ;;  %v17396_v50 = vpop.f32.mrb[139].mxu0  ;;  %v7625_v8 = vld [vmem:[%s20268_s6 + $0x50] sm:$0xff]  ;;  %v17406_v32 = vpop.xlane.xlu0 %3915  ;;  %13703 = vpow2.f32 %v10502_v47 }
 0x329   :  { %20300 = vst [vmem:[#allocation30_spill] sm:$0xff] %v17396_v50  ;;  %v13076_v51 = vpack.c.bf16 %v7626_v18, %v7625_v8  ;;  %v7627_v18 = vld [vmem:[%s20268_s6 + $0x60] sm:$0xff]  ;;  %v7628_v8 = vld [vmem:[%s20268_s6 + $0x68] sm:$0xff]  ;;  %13705 = vrcp.f32 %v4871_v1 }
 0x32a   :  { %v17404_v10 = vpop.xlane.xlu1 %3960  ;;  %13707 = vtanh.f32 %v3420_v9 }
 0x32b   :  { %v17408_v50 = vpop.f32.mrb[140].mxu0  ;;  %13077 = vmatprep.subr.bf16.mxu1 %v13076_v51  ;;  %13709 = vpow2.f32 %v10501_v62 }
 0x32c   :  { %20301 = vst [vmem:[#allocation31_spill] sm:$0xff] %v17408_v50  ;;  %6842 = vperm.xlu0 %13409, %v13690_v29   ;;  %v17412_v41 = vpop.f32.mrb[141].mxu0  ;;  %v13080_v50 = vpack.c.bf16 %v7628_v8, %v7627_v18  ;;  %13079 = vmatpush3.bf16.msra.mxu1 %v13076_v51  ;;  %v17430_v22 = vpop.xlane.xlu0 %3921  ;;  %v7630_v51 = vld [vmem:[%s20268_s6 + $0x78] sm:$0xff]  ;;  %v3419_v8 = vadd.f32 %v16055_v48, %v16980_v56  ;;  %13711 = vrcp.f32 %v4870_v31 }
 0x32d   :  { %20302 = vst [vmem:[#allocation32_spill] sm:$0xff] %v17412_v41  ;;  %v13084_v4 = vpack.c.bf16 %v7630_v51, %v7629_v0  ;;  %v13698_v18 = vpop.eup %13697  ;;  %v3422_v56 = vadd.f32 %v16995_v54, %v16055_v48  ;;  %v3421_v54 = vadd.f32 %v16055_v48, %v16998_v14  ;;  %v3424_v14 = vadd.f32 %v17011_v13, %v16055_v48 }
 0x32e   :  { %v17420_v45 = vpop.xlane.xlu1 %3957  ;;  %13081 = vmatprep.subr.bf16.mxu1 %v13080_v50  ;;  %13713 = vtanh.f32 %v3419_v8  ;;  %v3423_v13 = vadd.f32 %v16055_v48, %v17015_v40 }
 0x32f   :  { %v17424_v29 = vpop.f32.mrb[142].mxu0 }
 0x330   :  { %20303 = vst [vmem:[#allocation33_spill] sm:$0xff] %v17424_v29  ;;  %6837 = vperm.xlu0 %13409, %v13694_v25   ;;  %v17428_v41 = vpop.f32.mrb[143].mxu0  ;;  %13083 = vmatpush3.bf16.msra.mxu1 %v13080_v50  ;;  %v10504_v25 = vmul.f32 -1.442695, %v4277_v21  ;;  %v4873_v29 = vadd.f32 1.0, %v13696_v12  ;;  %v13700_v0 = vpop.eup %13699  ;;  %v4279_v21 = vadd.f32 %v16902_v57, %v17281_v63 }
 0x331   :  { %20304 = vst [vmem:[#allocation34_spill] sm:$0xff] %v17428_v41  ;;  %13085 = vmatprep.subr.bf16.mxu1 %v13084_v4  ;;  %v13702_v9 = vpop.eup %13701  ;;  %v17452_v50 = vpop.xlane.xlu0 %3927  ;;  %v4872_v12 = vadd.f32 1.0, %v13700_v0 }
 0x332   :  { %v17438_v47 = vpop.xlane.xlu1 %3966  ;;  %13715 = vpow2.f32 %v10504_v25  ;;  %v10506_v63 = vmul.f32 -1.442695, %v4279_v21 }
 0x333   :  { %v17442_v1 = vpop.f32.mrb[144].mxu0  ;;  %13717 = vrcp.f32 %v4873_v29 }
 0x334   :  { %20305 = vst [vmem:[#allocation35_spill] sm:$0xff] %v17442_v1  ;;  %6852 = vperm.xlu0 %13409, %v13698_v18   ;;  %v17446_v41 = vpop.f32.mrb[145].mxu0  ;;  %13087 = vmatpush3.bf16.msra.mxu1 %v13084_v4  ;;  %v13704_v18 = vpop.eup %13703  ;;  %13719 = vtanh.f32 %v3422_v56  ;;  %v4278_v4 = vadd.f32 %v16902_v57, %v17354_v39 }
 0x335   :  { %20306 = vst [vmem:[#allocation36_spill] sm:$0xff] %v17446_v41  ;;  %v13706_v41 = vpop.eup %13705  ;;  %13721 = vpow2.f32 %v10503_v20  ;;  %v4875_v29 = vadd.f32 1.0, %v13704_v18  ;;  %v17470_v0 = vpop.xlane.xlu0 %3933 }
 0x336   :  { %v17448_v51 = vpop.xlane.xlu1 %3963  ;;  %v13708_v25 = vpop.eup %13707  ;;  %13723 = vrcp.f32 %v4872_v12  ;;  %v10505_v39 = vmul.f32 -1.442695, %v4278_v4 }
 0x337   :  { %v17454_v62 = vpop.f32.mrb[146].mxu0  ;;  %13725 = vtanh.f32 %v3421_v54 }
 0x338   :  { %20307 = vst [vmem:[#allocation37_spill] sm:$0xff] %v17454_v62  ;;  %6847 = vperm.xlu0 %13409, %v13702_v9   ;;  %v17458_v31 = vpop.f32.mrb[147].mxu0  ;;  %v13710_v9 = vpop.eup %13709  ;;  %13727 = vpow2.f32 %v10506_v63 }
 0x339   :  { %20308 = vst [vmem:[#allocation38_spill] sm:$0xff] %v17458_v31  ;;  %v13712_v31 = vpop.eup %13711  ;;  %v4874_v18 = vadd.f32 1.0, %v13710_v9  ;;  %13729 = vrcp.f32 %v4875_v29  ;;  %v17487_v4 = vpop.xlane.xlu0 %3942 }
 0x33a   :  { %v17460_v8 = vpop.xlane.xlu1 %3972  ;;  %v13714_v12 = vpop.eup %13713  ;;  %13731 = vtanh.f32 %v3424_v14 }
 0x33b   :  { %v17464_v62 = vpop.f32.mrb[148].mxu0  ;;  %13733 = vpow2.f32 %v10505_v39 }
 0x33c   :  { %20309 = vst [vmem:[#allocation39_spill] sm:$0xff] %v17464_v62  ;;  %6862 = vperm.xlu0 %13409, %v13706_v41   ;;  %v17468_v15 = vpop.f32.mrb[149].mxu0  ;;  %v4281_v41 = vadd.f32 %v16902_v57, %v17293_v37  ;;  %v13716_v62 = vpop.eup %13715  ;;  %v4280_v37 = vadd.f32 %v16902_v57, %v17366_v38  ;;  %13735 = vrcp.f32 %v4874_v18  ;;  %v3426_v38 = vadd.f32 %v17028_v46, %v16055_v48 }
 0x33d   :  { %20310 = vst [vmem:[#allocation40_spill] sm:$0xff] %v17468_v15  ;;  %v3724_v15 = vmul.f32 %v13708_v25, %v16137_v49  ;;  %v13718_v1 = vpop.eup %13717  ;;  %v4877_v9 = vadd.f32 1.0, %v13716_v62  ;;  %13737 = vtanh.f32 %v3423_v13  ;;  %v4283_v62 = vadd.f32 %v16902_v57, %v17303_v19  ;;  %v17507_v18 = vpop.xlane.xlu0 %3939 }
 0x33e   :  { %v17472_v56 = vpop.xlane.xlu1 %3969  ;;  %v13720_v25 = vpop.eup %13719  ;;  %v3425_v19 = vadd.f32 %v16055_v48, %v17033_v61 }
 0x33f   :  { %v17476_v20 = vpop.f32.mrb[150].mxu0  ;;  %v4049_v14 = vsel %vm3787_vm2, %v3724_v15, 0.0  ;;  %v13722_v40 = vpop.eup %13721 }
 0x340   :  { %20311 = vst [vmem:[#allocation41_spill] sm:$0xff] %v17476_v20  ;;  %6857 = vperm.xlu0 %13409, %v13712_v31   ;;  %v17480_v21 = vpop.f32.mrb[151].mxu0  ;;  %v10508_v31 = vmul.f32 -1.442695, %v4281_v41 }
 0x342   :  { %v17483_v54 = vpop.xlane.xlu1 %3978  ;;  %13739 = vpow2.f32 %v10508_v31  ;;  %v4282_v31 = vadd.f32 %v16902_v57, %v17382_v17  ;;  %v3428_v17 = vadd.f32 %v17045_v30, %v16055_v48 }
 0x343   :  { %20312 = vst [vmem:[#allocation42_spill] sm:$0xff] %v17483_v54  ;;  %v17489_v63 = vpop.f32.mrb[152].mxu0  ;;  %v3723_v54 = vmul.f32 %v13714_v12, %v16137_v49  ;;  %v4876_v12 = vadd.f32 1.0, %v13722_v40  ;;  %13741 = vrcp.f32 %v4877_v9  ;;  %v10510_v9 = vmul.f32 -1.442695, %v4283_v62 }
 0x344   :  { %20313 = vst [vmem:[#allocation43_spill] sm:$0xff] %v17489_v63  ;;  %6872 = vperm.xlu0 %13409, %v13718_v1   ;;  %v17493_v29 = vpop.f32.mrb[153].mxu0  ;;  %v13724_v63 = vpop.eup %13723  ;;  %v10507_v1 = vmul.f32 -1.442695, %v4280_v37  ;;  %13743 = vtanh.f32 %v3426_v38 }
 0x345   :  { %v13726_v41 = vpop.eup %13725  ;;  %v4046_v13 = vsel %vm3787_vm2, %v3723_v54, 0.0 }
 0x346   :  { %v17497_v20 = vpop.xlane.xlu1 %3975  ;;  %4050 = vadd.xlane.f32.xlu1 %v4049_v14  ;;  %v3726_v14 = vmul.f32 %v13720_v25, %v16137_v49  ;;  %v13728_v46 = vpop.eup %13727  ;;  %13745 = vpow2.f32 %v10507_v1 }
 0x347   :  { %20314 = vst [vmem:[#allocation44_spill] sm:$0xff] %v17497_v20  ;;  %v17501_v39 = vpop.f32.mrb[154].mxu0  ;;  %v13730_v37 = vpop.eup %13729  ;;  %13747 = vrcp.f32 %v4876_v12  ;;  %v4879_v40 = vadd.f32 1.0, %v13728_v46  ;;  %v4285_v12 = vadd.f32 %v16902_v57, %v17315_v3  ;;  %v3427_v3 = vadd.f32 %v16055_v48, %v17049_v52 }
 0x348   :  { %20315 = vst [vmem:[#allocation45_spill] sm:$0xff] %v17501_v39  ;;  %6867 = vperm.xlu0 %13409, %v13724_v63   ;;  %v17505_v15 = vpop.f32.mrb[155].mxu0  ;;  %v13732_v25 = vpop.eup %13731  ;;  %v4055_v38 = vsel %vm3787_vm2, %v3726_v14, 0.0  ;;  %13749 = vtanh.f32 %v3425_v19 }
 0x349   :  { %v13734_v61 = vpop.eup %13733  ;;  %13751 = vpow2.f32 %v10510_v9  ;;  %v3728_v19 = vmul.f32 %v13732_v25, %v16137_v49 }
 0x34a   :  { %v17511_v20 = vpop.xlane.xlu1 %3984  ;;  %4047 = vadd.xlane.f32.xlu1 %v4046_v13  ;;  %v3725_v13 = vmul.f32 %v13726_v41, %v16137_v49  ;;  %v13736_v1 = vpop.eup %13735  ;;  %v4878_v46 = vadd.f32 1.0, %v13734_v61  ;;  %13753 = vrcp.f32 %v4879_v40  ;;  %v4284_v40 = vadd.f32 %v16902_v57, %v17406_v32 }
 0x34b   :  { %20316 = vst [vmem:[#allocation46_spill] sm:$0xff] %v17511_v20  ;;  %v17515_v63 = vpop.f32.mrb[156].mxu0  ;;  %v13738_v41 = vpop.eup %13737  ;;  %13755 = vtanh.f32 %v3428_v17  ;;  %v3430_v32 = vadd.f32 %v17064_v42, %v16055_v48 }
 0x34c   :  { %20317 = vst [vmem:[#allocation47_spill] sm:$0xff] %v17515_v63  ;;  %6882 = vperm.xlu0 %13409, %v13730_v37   ;;  %v17519_v54 = vpop.f32.mrb[157].mxu0  ;;  %v10509_v37 = vmul.f32 -1.442695, %v4282_v31  ;;  %v3727_v17 = vmul.f32 %v13738_v41, %v16137_v49 }
 0x34d   :  { %v17521_v20 = vpop.permute.xlu0 %6722 }
 0x34e   :  { %v17525_v39 = vpop.xlane.xlu1 %3981  ;;  %4056 = vadd.xlane.f32.xlu1 %v4055_v38  ;;  %v4052_v38 = vsel %vm3787_vm2, %v3725_v13, 0.0  ;;  %13757 = vpow2.f32 %v10509_v37  ;;  %v10512_v13 = vmul.f32 -1.442695, %v4285_v12 }
 0x34f   :  { %20318 = vst [vmem:[#allocation48_spill] sm:$0xff] %v17525_v39  ;;  %v17529_v62 = vpop.f32.mrb[158].mxu0  ;;  %v13740_v39 = vpop.eup %13739  ;;  %13759 = vrcp.f32 %v4878_v46 }
 0x350   :  { %20319 = vst [vmem:[#allocation49_spill] sm:$0xff] %v17529_v62  ;;  %6877 = vperm.xlu0 %13409, %v13736_v1   ;;  %v17533_v14 = vpop.f32.mrb[159].mxu0  ;;  %v13742_v31 = vpop.eup %13741  ;;  %v4881_v1 = vadd.f32 1.0, %v13740_v39  ;;  %13761 = vtanh.f32 %v3427_v3  ;;  %v4287_v39 = vadd.f32 %v16902_v57, %v17327_v11 }
 0x351   :  { %v13744_v61 = vpop.eup %13743  ;;  %13763 = vpow2.f32 %v10512_v13 }
 0x352   :  { %v17537_v63 = vpop.permute.xlu0 %6732  ;;  %v17539_v30 = vpop.xlane.xlu1 %3990  ;;  %4053 = vadd.xlane.f32.xlu1 %v4052_v38  ;;  %v4061_v38 = vsel %vm3787_vm2, %v3728_v19, 0.0  ;;  %13765 = vrcp.f32 %v4881_v1  ;;  %v3730_v3 = vmul.f32 %v13744_v61, %v16137_v49  ;;  %v10514_v1 = vmul.f32 -1.442695, %v4287_v39 }
 0x353   :  { %20320 = vst [vmem:[#allocation50_spill] sm:$0xff] %v17539_v30  ;;  %v17543_v9 = vpop.f32.mrb[160].mxu0  ;;  %v13746_v30 = vpop.eup %13745  ;;  %13767 = vtanh.f32 %v3430_v32 }
 0x354   :  { %20321 = vst [vmem:[#allocation51_spill] sm:$0xff] %v17543_v9  ;;  %6892 = vperm.xlu0 %13409, %v13742_v31   ;;  %v17547_v25 = vpop.f32.mrb[161].mxu0  ;;  %v13748_v37 = vpop.eup %13747  ;;  %v10511_v31 = vmul.f32 -1.442695, %v4284_v40  ;;  %v4880_v19 = vadd.f32 1.0, %v13746_v30  ;;  %v3429_v40 = vadd.f32 %v16055_v48, %v17069_v53  ;;  %v4286_v30 = vadd.f32 %v16902_v57, %v17430_v22 }
 0x355   :  { %v13750_v46 = vpop.eup %13749  ;;  %v4067_v32 = vsel %vm3787_vm2, %v3730_v3, 0.0  ;;  %v3432_v22 = vadd.f32 %v17085_v5, %v16055_v48 }
 0x356   :  { %v17551_v62 = vpop.permute.xlu0 %6727  ;;  %v17553_v52 = vpop.xlane.xlu1 %3987  ;;  %4062 = vadd.xlane.f32.xlu1 %v4061_v38  ;;  %v4058_v38 = vsel %vm3787_vm2, %v3727_v17, 0.0  ;;  %13769 = vpow2.f32 %v10511_v31 }
 0x357   :  { %20322 = vst [vmem:[#allocation52_spill] sm:$0xff] %v17553_v52  ;;  %v17557_v12 = vpop.f32.mrb[162].mxu0  ;;  %v13752_v52 = vpop.eup %13751  ;;  %13771 = vrcp.f32 %v4880_v19 }
 0x358   :  { %6887 = vperm.xlu0 %13409, %v13748_v37   ;;  %v17561_v41 = vpop.f32.mrb[163].mxu0  ;;  %v13754_v42 = vpop.eup %13753  ;;  %v4883_v37 = vadd.f32 1.0, %v13752_v52  ;;  %13773 = vtanh.f32 %v3429_v40  ;;  %v4289_v52 = vadd.f32 %v16902_v57, %v17336_v23 }
 0x359   :  { %v13756_v17 = vpop.eup %13755  ;;  %13775 = vpow2.f32 %v10514_v1  ;;  %v4288_v1 = vadd.f32 %v16902_v57, %v17452_v50  ;;  %v3434_v50 = vadd.f32 %v17104_v27, %v16055_v48 }
 0x35a   :  { %v17565_v9 = vpop.xlane.xlu1 %3996  ;;  %4059 = vadd.xlane.f32.xlu1 %v4058_v38  ;;  %v3729_v38 = vmul.f32 %v13750_v46, %v16137_v49  ;;  %v13758_v53 = vpop.eup %13757  ;;  %13777 = vrcp.f32 %v4883_v37  ;;  %v10516_v37 = vmul.f32 -1.442695, %v4289_v52 }
 0x35b   :  { %20323 = vst [vmem:[#allocation53_spill] sm:$0xff] %v17565_v9  ;;  %v17569_v11 = vpop.permute.xlu0 %6742  ;;  %v17571_v13 = vpop.f32.mrb[164].mxu0  ;;  %v4882_v3 = vadd.f32 1.0, %v13758_v53  ;;  %13779 = vtanh.f32 %v3432_v22  ;;  %v10515_v52 = vmul.f32 -1.442695, %v4288_v1  ;;  %v3433_v1 = vadd.f32 %v16055_v48, %v17109_v44 }
 0x35c   :  { %20324 = vst [vmem:[#allocation54_spill] sm:$0xff] %v17571_v13  ;;  %6902 = vperm.xlu0 %13409, %v13754_v42   ;;  %v17575_v61 = vpop.f32.mrb[165].mxu0  ;;  %v13760_v13 = vpop.eup %13759  ;;  %v10513_v42 = vmul.f32 -1.442695, %v4286_v30  ;;  %v4064_v40 = vsel %vm3787_vm2, %v3729_v38, 0.0  ;;  %v3431_v30 = vadd.f32 %v16055_v48, %v17089_v16 }
 0x35d   :  { %v13762_v19 = vpop.eup %13761 }
 0x35e   :  { %v17579_v9 = vpop.xlane.xlu1 %3993  ;;  %4068 = vadd.xlane.f32.xlu1 %v4067_v32  ;;  %v3732_v32 = vmul.f32 %v13756_v17, %v16137_v49  ;;  %v13764_v5 = vpop.eup %13763  ;;  %13781 = vpow2.f32 %v10513_v42 }
 0x35f   :  { %20325 = vst [vmem:[#allocation55_spill] sm:$0xff] %v17579_v9  ;;  %v17583_v31 = vpop.permute.xlu0 %6737  ;;  %v17585_v39 = vpop.f32.mrb[166].mxu0  ;;  %13783 = vrcp.f32 %v4882_v3  ;;  %v4885_v53 = vadd.f32 1.0, %v13764_v5  ;;  %v4291_v3 = vadd.f32 %v16902_v57, %v17346_v58 }
 0x360   :  { %20326 = vst [vmem:[#allocation56_spill] sm:$0xff] %v17585_v39  ;;  %6897 = vperm.xlu0 %13409, %v13760_v13   ;;  %v17589_v46 = vpop.f32.mrb[167].mxu0  ;;  %v13766_v39 = vpop.eup %13765  ;;  %v4073_v22 = vsel %vm3787_vm2, %v3732_v32, 0.0  ;;  %13785 = vtanh.f32 %v3431_v30 }
 0x361   :  { %v13768_v38 = vpop.eup %13767  ;;  %13787 = vpow2.f32 %v10516_v37  ;;  %v4290_v37 = vadd.f32 %v16902_v57, %v17470_v0  ;;  %v3436_v0 = vadd.f32 %v17125_v33, %v16055_v48 }
 0x362   :  { %v17593_v9 = vpop.xlane.xlu1 %4002  ;;  %4065 = vadd.xlane.f32.xlu1 %v4064_v40  ;;  %v3731_v40 = vmul.f32 %v13762_v19, %v16137_v49  ;;  %v13770_v16 = vpop.eup %13769  ;;  %13789 = vrcp.f32 %v4885_v53  ;;  %v10518_v53 = vmul.f32 -1.442695, %v4291_v3 }
 0x363   :  { %20327 = vst [vmem:[#allocation57_spill] sm:$0xff] %v17593_v9  ;;  %v17597_v23 = vpop.permute.xlu0 %6752  ;;  %v17599_v13 = vpop.f32.mrb[168].mxu0  ;;  %v4884_v5 = vadd.f32 1.0, %v13770_v16  ;;  %13791 = vtanh.f32 %v3434_v50  ;;  %v10517_v3 = vmul.f32 -1.442695, %v4290_v37  ;;  %v3435_v37 = vadd.f32 %v16055_v48, %v17130_v59 }
 0x364   :  { %20328 = vst [vmem:[#allocation58_spill] sm:$0xff] %v17599_v13  ;;  %6912 = vperm.xlu0 %13409, %v13766_v39   ;;  %v17603_v17 = vpop.f32.mrb[169].mxu0  ;;  %v13772_v13 = vpop.eup %13771  ;;  %v4070_v30 = vsel %vm3787_vm2, %v3731_v40, 0.0  ;;  %13793 = vpow2.f32 %v10515_v52 }
 0x365   :  { %v13774_v32 = vpop.eup %13773  ;;  %13795 = vrcp.f32 %v4884_v5  ;;  %v4293_v5 = vadd.f32 %v16902_v57, %v17487_v4 }
 0x366   :  { %v17607_v9 = vpop.xlane.xlu1 %3999  ;;  %4074 = vadd.xlane.f32.xlu1 %v4073_v22  ;;  %v3734_v22 = vmul.f32 %v13768_v38, %v16137_v49  ;;  %v13776_v27 = vpop.eup %13775  ;;  %13797 = vtanh.f32 %v3433_v1 }
 0x367   :  { %20329 = vst [vmem:[#allocation59_spill] sm:$0xff] %v17607_v9  ;;  %v17611_v42 = vpop.permute.xlu0 %6747  ;;  %v17613_v39 = vpop.f32.mrb[170].mxu0  ;;  %v4887_v16 = vadd.f32 1.0, %v13776_v27  ;;  %13799 = vpow2.f32 %v10518_v53  ;;  %v10520_v53 = vmul.f32 -1.442695, %v4293_v5  ;;  %v4295_v5 = vadd.f32 %v16902_v57, %v17356_v60 }
 0x368   :  { %20330 = vst [vmem:[#allocation60_spill] sm:$0xff] %v17613_v39  ;;  %6907 = vperm.xlu0 %13409, %v13772_v13   ;;  %v17617_v19 = vpop.f32.mrb[171].mxu0  ;;  %v13778_v39 = vpop.eup %13777  ;;  %v4079_v50 = vsel %vm3787_vm2, %v3734_v22, 0.0  ;;  %v3437_v60 = vadd.f32 %v16055_v48, %v17153_v7 }
 0x369   :  { %v13780_v40 = vpop.eup %13779  ;;  %13801 = vrcp.f32 %v4887_v16  ;;  %v4292_v16 = vadd.f32 %v16902_v57, %v17507_v18 }
 0x36a   :  { %v17621_v9 = vpop.xlane.xlu1 %4008  ;;  %4071 = vadd.xlane.f32.xlu1 %v4070_v30  ;;  %v3733_v30 = vmul.f32 %v13774_v32, %v16137_v49  ;;  %v13782_v44 = vpop.eup %13781  ;;  %13803 = vtanh.f32 %v3436_v0 }
 0x36b   :  { %20331 = vst [vmem:[#allocation61_spill] sm:$0xff] %v17621_v9  ;;  %v17625_v58 = vpop.permute.xlu0 %6762  ;;  %v17627_v13 = vpop.f32.mrb[172].mxu0  ;;  %v4886_v27 = vadd.f32 1.0, %v13782_v44  ;;  %13805 = vpow2.f32 %v10517_v3  ;;  %v3438_v3 = vadd.f32 %v17147_v26, %v16055_v48 }
 0x36c   :  { %20332 = vst [vmem:[#allocation62_spill] sm:$0xff] %v17627_v13  ;;  %6922 = vperm.xlu0 %13409, %v13778_v39   ;;  %v17631_v38 = vpop.f32.mrb[173].mxu0  ;;  %v13784_v13 = vpop.eup %13783  ;;  %v4076_v1 = vsel %vm3787_vm2, %v3733_v30, 0.0 }
 0x36d   :  { %v13786_v22 = vpop.eup %13785  ;;  %13807 = vrcp.f32 %v4886_v27  ;;  %v10519_v27 = vmul.f32 -1.442695, %v4292_v16  ;;  %v10522_v16 = vmul.f32 -1.442695, %v4295_v5  ;;  %v3440_v5 = vadd.f32 %v17167_v2, %v16055_v48 }
 0x36e   :  { %v17635_v9 = vpop.xlane.xlu1 %4005  ;;  %4080 = vadd.xlane.f32.xlu1 %v4079_v50  ;;  %v3736_v50 = vmul.f32 %v13780_v40, %v16137_v49  ;;  %v13788_v33 = vpop.eup %13787  ;;  %13809 = vtanh.f32 %v3435_v37 }
 0x36f   :  { %20333 = vst [vmem:[#allocation63_spill] sm:$0xff] %v17635_v9  ;;  %v17639_v52 = vpop.permute.xlu0 %6757  ;;  %v17641_v39 = vpop.f32.mrb[174].mxu0  ;;  %v4889_v44 = vadd.f32 1.0, %v13788_v33  ;;  %13811 = vpow2.f32 %v10520_v53 }
 0x370   :  { %20334 = vst [vmem:[#allocation64_spill] sm:$0xff] %v17641_v39  ;;  %6917 = vperm.xlu0 %13409, %v13784_v13   ;;  %v17645_v32 = vpop.f32.mrb[175].mxu0  ;;  %v13790_v39 = vpop.eup %13789  ;;  %v4085_v0 = vsel %vm3787_vm2, %v3736_v50, 0.0 }
 0x371   :  { %v13792_v30 = vpop.eup %13791  ;;  %13813 = vrcp.f32 %v4889_v44  ;;  %v4294_v44 = vadd.f32 %v16902_v57, %v17364_v55 }
 0x372   :  { %v17649_v9 = vpop.xlane.xlu1 %4014  ;;  %4077 = vadd.xlane.f32.xlu1 %v4076_v1  ;;  %v3735_v1 = vmul.f32 %v13786_v22, %v16137_v49  ;;  %v13794_v59 = vpop.eup %13793  ;;  %13815 = vtanh.f32 %v3438_v3 }
 0x373   :  { %20335 = vst [vmem:[#allocation65_spill] sm:$0xff] %v17649_v9  ;;  %v17653_v4 = vpop.permute.xlu0 %6772  ;;  %v17655_v13 = vpop.f32.mrb[176].mxu0  ;;  %v4888_v33 = vadd.f32 1.0, %v13794_v59  ;;  %13817 = vpow2.f32 %v10519_v27  ;;  %v10521_v27 = vmul.f32 -1.442695, %v4294_v44 }
 0x374   :  { %20336 = vst [vmem:[#allocation66_spill] sm:$0xff] %v17655_v13  ;;  %6932 = vperm.xlu0 %13409, %v13790_v39   ;;  %v17659_v40 = vpop.f32.mrb[177].mxu0  ;;  %v13796_v13 = vpop.eup %13795  ;;  %v4082_v37 = vsel %vm3787_vm2, %v3735_v1, 0.0 }
 0x375   :  { %20337 = vst [vmem:[#allocation67_spill] sm:$0xff] %v17659_v40  ;;  %v13798_v50 = vpop.eup %13797  ;;  %13819 = vrcp.f32 %v4888_v33  ;;  %v4297_v33 = vadd.f32 %v16902_v57, %v17374_v35 }
 0x376   :  { %v17663_v9 = vpop.xlane.xlu1 %4011  ;;  %4086 = vadd.xlane.f32.xlu1 %v4085_v0  ;;  %v3738_v0 = vmul.f32 %v13792_v30, %v16137_v49  ;;  %v13800_v26 = vpop.eup %13799  ;;  %13821 = vtanh.f32 %v3437_v60 }
 0x377   :  { %20338 = vst [vmem:[#allocation68_spill] sm:$0xff] %v17663_v9  ;;  %v17667_v18 = vpop.permute.xlu0 %6767  ;;  %v17669_v39 = vpop.f32.mrb[178].mxu0  ;;  %v4891_v59 = vadd.f32 1.0, %v13800_v26  ;;  %13823 = vpow2.f32 %v10522_v16  ;;  %v3439_v16 = vadd.f32 %v16055_v48, %v17172_v34  ;;  %v10524_v44 = vmul.f32 -1.442695, %v4297_v33 }
 0x378   :  { %20339 = vst [vmem:[#allocation69_spill] sm:$0xff] %v17669_v39  ;;  %6927 = vperm.xlu0 %13409, %v13796_v13   ;;  %v17673_v22 = vpop.f32.mrb[179].mxu0  ;;  %v13802_v39 = vpop.eup %13801  ;;  %v4091_v3 = vsel %vm3787_vm2, %v3738_v0, 0.0 }
 0x379   :  { %20340 = vst [vmem:[#allocation70_spill] sm:$0xff] %v17673_v22  ;;  %v13804_v1 = vpop.eup %13803  ;;  %13825 = vrcp.f32 %v4891_v59  ;;  %v4296_v59 = vadd.f32 %v16902_v57, %v17384_v36 }
 0x37a   :  { %v17677_v9 = vpop.xlane.xlu1 %4020  ;;  %4083 = vadd.xlane.f32.xlu1 %v4082_v37  ;;  %v3737_v37 = vmul.f32 %v13798_v50, %v16137_v49  ;;  %v13806_v7 = vpop.eup %13805  ;;  %13827 = vtanh.f32 %v3440_v5 }
 0x37b   :  { %20341 = vst [vmem:[#allocation71_spill] sm:$0xff] %v17677_v9  ;;  %v17681_v53 = vpop.permute.xlu0 %6782  ;;  %v17683_v13 = vpop.f32.mrb[180].mxu0  ;;  %v4890_v26 = vadd.f32 1.0, %v13806_v7  ;;  %13829 = vpow2.f32 %v10521_v27  ;;  %v3442_v27 = vadd.f32 %v17189_v28, %v16055_v48  ;;  %v10523_v33 = vmul.f32 -1.442695, %v4296_v59 }
 0x37c   :  { %20342 = vst [vmem:[#allocation72_spill] sm:$0xff] %v17683_v13  ;;  %6942 = vperm.xlu0 %13409, %v13802_v39   ;;  %v17687_v30 = vpop.f32.mrb[181].mxu0  ;;  %v13808_v13 = vpop.eup %13807  ;;  %v4088_v60 = vsel %vm3787_vm2, %v3737_v37, 0.0 }
 0x37d   :  { %20343 = vst [vmem:[#allocation73_spill] sm:$0xff] %v17687_v30  ;;  %v13810_v0 = vpop.eup %13809  ;;  %13831 = vrcp.f32 %v4890_v26  ;;  %v4299_v26 = vadd.f32 %v16902_v57, %v17404_v10  ;;  %v3444_v10 = vadd.f32 %v17211_v24, %v16055_v48 }
 0x37e   :  { %v17691_v9 = vpop.xlane.xlu1 %4017  ;;  %4092 = vadd.xlane.f32.xlu1 %v4091_v3  ;;  %v3740_v3 = vmul.f32 %v13804_v1, %v16137_v49  ;;  %v13812_v2 = vpop.eup %13811  ;;  %13833 = vtanh.f32 %v3439_v16 }
 0x37f   :  { %20344 = vst [vmem:[#allocation74_spill] sm:$0xff] %v17691_v9  ;;  %v17695_v55 = vpop.permute.xlu0 %6777  ;;  %v17697_v39 = vpop.f32.mrb[182].mxu0  ;;  %v4893_v7 = vadd.f32 1.0, %v13812_v2  ;;  %13835 = vpow2.f32 %v10524_v44 }
 0x380   :  { %20345 = vst [vmem:[#allocation75_spill] sm:$0xff] %v17697_v39  ;;  %6937 = vperm.xlu0 %13409, %v13808_v13   ;;  %v17701_v50 = vpop.f32.mrb[183].mxu0  ;;  %v13814_v39 = vpop.eup %13813  ;;  %v4097_v5 = vsel %vm3787_vm2, %v3740_v3, 0.0 }
 0x381   :  { %20346 = vst [vmem:[#allocation76_spill] sm:$0xff] %v17701_v50  ;;  %v13816_v37 = vpop.eup %13815  ;;  %13837 = vrcp.f32 %v4893_v7  ;;  %v10526_v7 = vmul.f32 -1.442695, %v4299_v26 }
 0x382   :  { %v17705_v9 = vpop.xlane.xlu1 %4026  ;;  %4089 = vadd.xlane.f32.xlu1 %v4088_v60  ;;  %v3739_v60 = vmul.f32 %v13810_v0, %v16137_v49  ;;  %v13818_v34 = vpop.eup %13817  ;;  %13839 = vtanh.f32 %v3442_v27 }
 0x383   :  { %20347 = vst [vmem:[#allocation77_spill] sm:$0xff] %v17705_v9  ;;  %v17709_v35 = vpop.permute.xlu0 %6792  ;;  %v17711_v13 = vpop.f32.mrb[184].mxu0  ;;  %v4892_v2 = vadd.f32 1.0, %v13818_v34  ;;  %13841 = vpow2.f32 %v10523_v33 }
 0x384   :  { %20348 = vst [vmem:[#allocation78_spill] sm:$0xff] %v17711_v13  ;;  %6952 = vperm.xlu0 %13409, %v13814_v39   ;;  %v17715_v1 = vpop.f32.mrb[185].mxu0  ;;  %v13820_v13 = vpop.eup %13819  ;;  %v4094_v16 = vsel %vm3787_vm2, %v3739_v60, 0.0 }
 0x385   :  { %20349 = vst [vmem:[#allocation79_spill] sm:$0xff] %v17715_v1  ;;  %v13822_v3 = vpop.eup %13821  ;;  %13843 = vrcp.f32 %v4892_v2 }
 0x386   :  { %v17719_v9 = vpop.xlane.xlu1 %4023  ;;  %4098 = vadd.xlane.f32.xlu1 %v4097_v5  ;;  %v3742_v5 = vmul.f32 %v13816_v37, %v16137_v49  ;;  %v13824_v28 = vpop.eup %13823  ;;  %v4298_v37 = vadd.f32 %v16902_v57, %v17420_v45  ;;  %v3443_v45 = vadd.f32 %v16055_v48, %v17216_v6 }
 0x387   :  { %20350 = vst [vmem:[#allocation80_spill] sm:$0xff] %v17719_v9  ;;  %v17723_v36 = vpop.permute.xlu0 %6787  ;;  %v17725_v39 = vpop.f32.mrb[186].mxu0  ;;  %v3441_v9 = vadd.f32 %v16055_v48, %v17195_v43  ;;  %v4895_v34 = vadd.f32 1.0, %v13824_v28 }
 0x388   :  { %20351 = vst [vmem:[#allocation81_spill] sm:$0xff] %v17725_v39  ;;  %6947 = vperm.xlu0 %13409, %v13820_v13   ;;  %v17729_v0 = vpop.f32.mrb[187].mxu0  ;;  %v13826_v44 = vpop.eup %13825  ;;  %v4103_v27 = vsel %vm3787_vm2, %v3742_v5, 0.0  ;;  %v10525_v2 = vmul.f32 -1.442695, %v4298_v37  ;;  %v4301_v5 = vadd.f32 %v16902_v57, %v17438_v47 }
 0x389   :  { %20352 = vst [vmem:[#allocation82_spill] sm:$0xff] %v17729_v0  ;;  %v13828_v43 = vpop.eup %13827  ;;  %13845 = vtanh.f32 %v3441_v9 }
 0x38a   :  { %v17735_v39 = vpop.xlane.xlu1 %4032  ;;  %4095 = vadd.xlane.f32.xlu1 %v4094_v16  ;;  %v3741_v16 = vmul.f32 %v13822_v3, %v16137_v49  ;;  %v13830_v24 = vpop.eup %13829  ;;  %13847 = vtanh.f32 %v3444_v10 }
 0x38b   :  { %20353 = vst [vmem:[#allocation83_spill] sm:$0xff] %v17735_v39  ;;  %v17739_v13 = vpop.permute.xlu0 %6802  ;;  %v17741_v59 = vpop.f32.mrb[188].mxu0  ;;  %13849 = vpow2.f32 %v10526_v7  ;;  %v4894_v28 = vadd.f32 1.0, %v13830_v24  ;;  %v20360_v7 = vld [vmem:[#allocation3_spill] sm:$0xff]  ;;  %v20362_v24 = vld [vmem:[#allocation2_spill] sm:$0xff] }
 0x38c   :  { %20354 = vst [vmem:[#allocation84_spill] sm:$0xff] %v17741_v59  ;;  %6962 = vperm.xlu0 %13409, %v13826_v44   ;;  %v17745_v60 = vpop.f32.mrb[189].mxu0  ;;  %v13832_v33 = vpop.eup %13831  ;;  %13851 = vrcp.f32 %v4895_v34  ;;  %v4100_v10 = vsel %vm3787_vm2, %v3741_v16, 0.0  ;;  %v3446_v37 = vadd.f32 %v20360_v7, %v16055_v48  ;;  %v10528_v34 = vmul.f32 -1.442695, %v4301_v5  ;;  %v20365_v5 = vld [vmem:[#allocation4_spill] sm:$0xff] }
 0x38d   :  { %20355 = vst [vmem:[#allocation85_spill] sm:$0xff] %v17745_v60  ;;  %v13834_v9 = vpop.eup %13833  ;;  %13853 = vtanh.f32 %v3443_v45  ;;  %v4300_v16 = vadd.f32 %v16902_v57, %v17448_v51  ;;  %v3445_v51 = vadd.f32 %v16055_v48, %v20365_v5 }
 0x38e   :  { %v17749_v39 = vpop.xlane.xlu1 %4029  ;;  %4104 = vadd.xlane.f32.xlu1 %v4103_v27  ;;  %v3744_v27 = vmul.f32 %v13828_v43, %v16137_v49  ;;  %v13836_v6 = vpop.eup %13835  ;;  %13855 = vpow2.f32 %v10525_v2  ;;  %v5298_v43 = vsub.s32 5, %v20362_v24  ;;  %v3743_v7 = vmul.f32 %v13834_v9, %v16137_v49  ;;  %v14385_v9 = vld [vmem:[%s20265_s2] sm:$0xff] }
 0x38f   :  { %20356 = vst [vmem:[#allocation86_spill] sm:$0xff] %v17749_v39  ;;  %v17753_v26 = vpop.permute.xlu0 %6797  ;;  %v17755_v44 = vpop.f32.mrb[190].mxu0  ;;  %13857 = vrcp.f32 %v4894_v28  ;;  %v4897_v45 = vadd.f32 1.0, %v13836_v6  ;;  %v10527_v28 = vmul.f32 -1.442695, %v4300_v16 }
 0x390   :  { %20357 = vst [vmem:[#allocation87_spill] sm:$0xff] %v17755_v44  ;;  %6957 = vperm.xlu0 %13409, %v13832_v33   ;;  %v17759_v3 = vpop.f32.mrb[191].mxu0  ;;  %v13838_v44 = vpop.eup %13837  ;;  %13859 = vtanh.f32 %v3446_v37 }
 0x391   :  { %20358 = vst [vmem:[#allocation88_spill] sm:$0xff] %v17759_v3  ;;  %13861 = vpow2.f32 %v10528_v34 }
 0x392   :  { %v17763_v39 = vpop.xlane.xlu1 %4038  ;;  %4101 = vadd.xlane.f32.xlu1 %v4100_v10  ;;  %v13840_v10 = vpop.eup %13839  ;;  %13863 = vrcp.f32 %v4897_v45 }
 0x393   :  { %20359 = vst [vmem:[#allocation89_spill] sm:$0xff] %v17763_v39  ;;  %v17767_v47 = vpop.permute.xlu0 %6812  ;;  %v17769_v33 = vpop.f32.mrb[192].mxu0  ;;  %v4109_v39 = vsel %vm3787_vm2, %v3744_v27, 0.0  ;;  %v4303_v27 = vadd.f32 %v16902_v57, %v17460_v8  ;;  %v3746_v34 = vmul.f32 %v13840_v10, %v16137_v49  ;;  %13865 = vtanh.f32 %v3445_v51 }
 0x394   :  { %20361 = vst [vmem:[#allocation3_spill] sm:$0xff] %v17769_v33  ;;  %6972 = vperm.xlu0 %13409, %v13838_v44   ;;  %v17774_v3 = vpop.f32.mrb[193].mxu0  ;;  %v13842_v59 = vpop.eup %13841  ;;  %13867 = vpow2.f32 %v10527_v28  ;;  %v20373_v28 = vld [vmem:[#allocation6_spill] sm:$0xff] }
 0x395   :  { %20363 = vst [vmem:[#allocation90_spill] sm:$0xff] %v17774_v3  ;;  %v13844_v2 = vpop.eup %13843  ;;  %v4896_v5 = vadd.f32 1.0, %v13842_v59  ;;  %v20369_v3 = vld [vmem:[#allocation5_spill] sm:$0xff]  ;;  %v10530_v10 = vmul.f32 -1.442695, %v4303_v27  ;;  %v3447_v27 = vadd.f32 %v16055_v48, %v20373_v28 }
 0x396   :  { %v17778_v60 = vpop.xlane.xlu1 %4035  ;;  %4110 = vadd.xlane.f32.xlu1 %v4109_v39  ;;  %v13846_v33 = vpop.eup %13845  ;;  %v17791_v39 = vrot.slane %v14385_v9, %v5298_v43  ;;  %v3448_v43 = vadd.f32 %v20369_v3, %v16055_v48 }
 0x397   :  { %20364 = vst [vmem:[#allocation91_spill] sm:$0xff] %v17778_v60  ;;  %v17782_v24 = vpop.permute.xlu0 %6807  ;;  %v17784_v44 = vpop.f32.mrb[194].mxu0  ;;  %v3745_v59 = vmul.f32 %v13846_v33, %v16137_v49  ;;  %13869 = vrcp.f32 %v4896_v5  ;;  %v4115_v33 = vsel %vm3787_vm2, %v3746_v34, 0.0 }
 0x398   :  { %20366 = vst [vmem:[#allocation4_spill] sm:$0xff] %v17784_v44  ;;  %6967 = vperm.xlu0 %13409, %v13844_v2   ;;  %v17793_v6 = vpop.f32.mrb[195].mxu0  ;;  %v13848_v37 = vpop.eup %13847  ;;  %v4106_v44 = vsel %vm3787_vm2, %v3743_v7, 0.0  ;;  %v5817_v2 = vadd.f32 %v17480_v21, %v17791_v39  ;;  %v4302_v7 = vadd.f32 %v16902_v57, %v17472_v56  ;;  %13871 = vtanh.f32 %v3448_v43 }
 0x399   :  { %20367 = vst [vmem:[#allocation92_spill] sm:$0xff] %v17793_v6  ;;  %v13850_v16 = vpop.eup %13849  ;;  %v3748_v56 = vmul.f32 %v13848_v37, %v16137_v49  ;;  %13873 = vpow2.f32 %v10530_v10 }
 0x39a   :  { %v17797_v60 = vpop.xlane.xlu1 %4044  ;;  %4107 = vadd.xlane.f32.xlu1 %v4106_v44  ;;  %v13852_v8 = vpop.eup %13851  ;;  %v20371_v44 = vld [vmem:[#allocation41_spill] sm:$0xff]  ;;  %v4899_v21 = vadd.f32 1.0, %v13850_v16  ;;  %v6565_v16 = vmax.f32 %v5817_v2, 0.0  ;;  %v10529_v1 = vmul.f32 -1.442695, %v4302_v7  ;;  %v5837_v2 = vadd.f32 %v17505_v15, %v17791_v39 }
 0x39b   :  { %20368 = vst [vmem:[#allocation93_spill] sm:$0xff] %v17797_v60  ;;  %v17803_v9 = vpop.permute.xlu0 %6822  ;;  %v17806_v45 = vpop.f32.mrb[196].mxu0  ;;  %v5822_v51 = vadd.f32 %v20371_v44, %v17791_v39  ;;  %v5827_v60 = vadd.f32 %v17493_v29, %v17791_v39  ;;  %v20375_v44 = vld [vmem:[#allocation42_spill] sm:$0xff]  ;;  %v4112_v29 = vsel %vm3787_vm2, %v3745_v59, 0.0  ;;  %v20379_v59 = vld [vmem:[#allocation7_spill] sm:$0xff] }
 0x39c   :  { %20370 = vst [vmem:[#allocation5_spill] sm:$0xff] %v17806_v45  ;;  %6982 = vperm.xlu0 %13409, %v13852_v8   ;;  %v17812_v6 = vpop.f32.mrb[197].mxu0  ;;  %v13854_v3 = vpop.eup %13853  ;;  %v4305_v5 = vadd.f32 %v16902_v57, %v20375_v44  ;;  %13875 = vrcp.f32 %v4899_v21  ;;  %v3450_v10 = vadd.f32 %v20379_v59, %v16055_v48  ;;  %v6569_v40 = vmax.f32 %v5837_v2, 0.0 }
 0x39d   :  { %20372 = vst [vmem:[#allocation41_spill] sm:$0xff] %v17812_v6  ;;  %v13856_v45 = vpop.eup %13855  ;;  %v6566_v28 = vmax.f32 %v5822_v51, 0.0  ;;  %v6567_v44 = vmax.f32 %v5827_v60, 0.0  ;;  %13877 = vtanh.f32 %v3447_v27  ;;  %v4121_v51 = vsel %vm3787_vm2, %v3748_v56, 0.0  ;;  %v20381_v60 = vld [vmem:[#allocation45_spill] sm:$0xff] }
 0x39e   :  { %v17819_v0 = vpop.xlane.xlu1 %4041  ;;  %4116 = vadd.xlane.f32.xlu1 %v4115_v33  ;;  %v13858_v8 = vpop.eup %13857  ;;  %v4898_v50 = vadd.f32 1.0, %v13856_v45  ;;  %v5842_v21 = vadd.f32 %v20381_v60, %v17791_v39  ;;  %13879 = vpow2.f32 %v10529_v1 }
 0x39f   :  { %20374 = vst [vmem:[#allocation6_spill] sm:$0xff] %v17819_v0  ;;  %v17824_v6 = vpop.permute.xlu0 %6817  ;;  %v17827_v34 = vpop.f32.mrb[198].mxu0  ;;  %v20377_v0 = vld [vmem:[#allocation43_spill] sm:$0xff]  ;;  %v7467_v60 = vmul.f32 %v17551_v62, %v6567_v44 }
 0x3a0   :  { %20376 = vst [vmem:[#allocation42_spill] sm:$0xff] %v17827_v34  ;;  %v5832_v33 = vadd.f32 %v20377_v0, %v17791_v39  ;;  %6977 = vperm.xlu0 %13409, %v13858_v8   ;;  %v17831_v37 = vpop.f32.mrb[199].mxu0  ;;  %v13860_v43 = vpop.eup %13859  ;;  %v3747_v0 = vmul.f32 %v13854_v3, %v16137_v49  ;;  %v10532_v34 = vmul.f32 -1.442695, %v4305_v5  ;;  %v5847_v3 = vadd.f32 %v17519_v54, %v17791_v39 }
 0x3a1   :  { %20378 = vst [vmem:[#allocation43_spill] sm:$0xff] %v17831_v37  ;;  %v13862_v30 = vpop.eup %13861  ;;  %v20380_v37 = vld [vmem:[#allocation44_spill] sm:$0xff]  ;;  %13881 = vrcp.f32 %v4898_v50  ;;  %v3750_v54 = vmul.f32 %v13860_v43, %v16137_v49 }
 0x3a2   :  { %v6718_v7 = vpop.permute.xlu1 %6717  ;;  %4113 = vadd.xlane.f32.xlu1 %v4112_v29  ;;  %v13864_v8 = vpop.eup %13863  ;;  %v4304_v45 = vadd.f32 %v16902_v57, %v20380_v37  ;;  %v7466_v29 = vmul.f32 %v17521_v20, %v6566_v28  ;;  %v6568_v59 = vmax.f32 %v5832_v33, 0.0  ;;  %v4901_v37 = vadd.f32 1.0, %v13862_v30  ;;  %v20383_v30 = vld [vmem:[#allocation46_spill] sm:$0xff] }
 0x3a3   :  { %v17843_v15 = vpop.permute.xlu0 %6832  ;;  %v7465_v27 = vmul.f32 %v6718_v7, %v6565_v16  ;;  %v17845_v22 = vpop.f32.mrb[200].mxu0  ;;  %v20382_v7 = vld [vmem:[#allocation8_spill] sm:$0xff]  ;;  %v4118_v20 = vsel %vm3787_vm2, %v3747_v0, 0.0  ;;  %13883 = vtanh.f32 %v3450_v10  ;;  %v4307_v62 = vadd.f32 %v16902_v57, %v20383_v30  ;;  %v20384_v0 = vld [vmem:[#allocation47_spill] sm:$0xff] }
 0x3a4   :  { %6992 = vperm.xlu0 %13409, %v13864_v8   ;;  %v17850_v56 = vpop.f32.mrb[201].mxu0  ;;  %v13866_v5 = vpop.eup %13865  ;;  %v3449_v1 = vadd.f32 %v16055_v48, %v20382_v7  ;;  %v10531_v50 = vmul.f32 -1.442695, %v4304_v45  ;;  %v6570_v33 = vmax.f32 %v5842_v21, 0.0  ;;  %13885 = vpow2.f32 %v10532_v34  ;;  %v20385_v34 = vld [vmem:[#allocation9_spill] sm:$0xff] }
 0x3a5   :  { %12574 = vmatprep.mubr.msk.f32.mxu1 %vm797_vm0, %v7465_v27  ;;  %v13868_v16 = vpop.eup %13867  ;;  %v5852_v8 = vadd.f32 %v20384_v0, %v17791_v39  ;;  %v6571_v43 = vmax.f32 %v5847_v3, 0.0  ;;  %13887 = vrcp.f32 %v4901_v37  ;;  %v7469_v27 = vmul.f32 %v17583_v31, %v6569_v40  ;;  %v20387_v40 = vld [vmem:[#allocation49_spill] sm:$0xff] }
 0x3a6   :  { %4122 = vadd.xlane.f32.xlu1 %v4121_v51  ;;  %12575 = vmatmul.mubr.msk.f32.vlgmr.msra.gmra.mrb[78].mxu1 %vm797_vm0, %v7466_v29  ;;  %v13870_v28 = vpop.eup %13869  ;;  %v7468_v51 = vmul.f32 %v17537_v63, %v6568_v59  ;;  %v4900_v45 = vadd.f32 1.0, %v13868_v16  ;;  %v5857_v21 = vadd.f32 %v17533_v14, %v17791_v39  ;;  %13889 = vtanh.f32 %v3449_v1  ;;  %v20386_v16 = vld [vmem:[#allocation48_spill] sm:$0xff] }
 0x3a7   :  { %v17861_v44 = vpop.permute.xlu0 %6827  ;;  %12577 = vmatprep.mubr.msk.f32.mxu1 %vm797_vm0, %v7467_v60  ;;  %v17864_v2 = vpop.f32.mrb[202].mxu0  ;;  %v3452_v63 = vadd.f32 %v20385_v34, %v16055_v48  ;;  %v3749_v59 = vmul.f32 %v13866_v5, %v16137_v49  ;;  %v10534_v37 = vmul.f32 -1.442695, %v4307_v62  ;;  %v4306_v31 = vadd.f32 %v16902_v57, %v20386_v16 }
 0x3a8   :  { %6987 = vperm.xlu0 %13409, %v13870_v28   ;;  %v13872_v10 = vpop.eup %13871  ;;  %v17872_v29 = vpop.f32.mrb[203].mxu0  ;;  %v5862_v14 = vadd.f32 %v20387_v40, %v17791_v39  ;;  %v4127_v1 = vsel %vm3787_vm2, %v3750_v54, 0.0  ;;  %13891 = vpow2.f32 %v10531_v50  ;;  %v6572_v30 = vmax.f32 %v5852_v8, 0.0  ;;  %v20389_v8 = vld [vmem:[#allocation50_spill] sm:$0xff] }
 0x3a9   :  { %v13874_v60 = vpop.eup %13873  ;;  %v5867_v5 = vadd.f32 %v17547_v25, %v17791_v39  ;;  %13893 = vrcp.f32 %v4900_v45  ;;  %v6573_v0 = vmax.f32 %v5857_v21, 0.0  ;;  %v3752_v50 = vmul.f32 %v13872_v10, %v16137_v49 }
 0x3aa   :  { %4119 = vadd.xlane.f32.xlu1 %v4118_v20  ;;  %12578 = vmatmul.mubr.msk.f32.gmra.mrb[80].mxu1 %vm797_vm0, %v7468_v51  ;;  %v13876_v3 = vpop.eup %13875  ;;  %v7470_v20 = vmul.f32 %v17569_v11, %v6570_v33  ;;  %v4903_v62 = vadd.f32 1.0, %v13874_v60  ;;  %v7471_v51 = vmul.f32 %v17611_v42, %v6571_v43  ;;  %v4124_v11 = vsel %vm3787_vm2, %v3749_v59, 0.0  ;;  %v20390_v60 = vld [vmem:[#allocation51_spill] sm:$0xff] }
 0x3ab   :  { %v17882_v7 = vpop.permute.xlu0 %6842  ;;  %12580 = vmatprep.mubr.msk.f32.mxu1 %vm797_vm0, %v7469_v27  ;;  %v13878_v28 = vpop.eup %13877  ;;  %v20388_v27 = vld [vmem:[#allocation10_spill] sm:$0xff]  ;;  %13895 = vtanh.f32 %v3452_v63  ;;  %v10533_v33 = vmul.f32 -1.442695, %v4306_v31  ;;  %v4309_v42 = vadd.f32 %v16902_v57, %v20389_v8  ;;  %v6574_v43 = vmax.f32 %v5862_v14, 0.0 }
 0x3ac   :  { %7002 = vperm.xlu0 %13409, %v13876_v3   ;;  %v17890_v34 = vpop.f32.mrb[204].mxu0  ;;  %v13880_v16 = vpop.eup %13879  ;;  %v3451_v54 = vadd.f32 %v16055_v48, %v20388_v27  ;;  %13897 = vpow2.f32 %v10534_v37  ;;  %v7472_v21 = vmul.f32 %v17597_v23, %v6572_v30  ;;  %v5872_v3 = vadd.f32 %v20390_v60, %v17791_v39  ;;  %v20391_v37 = vld [vmem:[#allocation11_spill] sm:$0xff]  ;;  %v20394_v60 = vld [vmem:[#allocation53_spill] sm:$0xff] }
 0x3ad   :  { %v13882_v25 = vpop.eup %13881  ;;  %v6575_v59 = vmax.f32 %v5867_v5, 0.0  ;;  %13899 = vrcp.f32 %v4903_v62  ;;  %v4902_v63 = vadd.f32 1.0, %v13880_v16  ;;  %v7473_v31 = vmul.f32 %v17639_v52, %v6573_v0  ;;  %v17908_v14 = vpop.f32.mrb[205].mxu0  ;;  %v20392_v62 = vld [vmem:[#allocation52_spill] sm:$0xff] }
 0x3ae   :  { %4128 = vadd.xlane.f32.xlu1 %v4127_v1  ;;  %12581 = vmatmul.mubr.msk.f32.gmra.mrb[82].mxu1 %vm797_vm0, %v7470_v20  ;;  %v13884_v10 = vpop.eup %13883  ;;  %v5877_v40 = vadd.f32 %v17561_v41, %v17791_v39  ;;  %13901 = vtanh.f32 %v3451_v54  ;;  %v3454_v23 = vadd.f32 %v20391_v37, %v16055_v48  ;;  %v3751_v20 = vmul.f32 %v13878_v28, %v16137_v49 }
 0x3af   :  { %v17899_v45 = vpop.permute.xlu0 %6837  ;;  %12583 = vmatprep.mubr.msk.f32.mxu1 %vm797_vm0, %v7471_v51  ;;  %v13886_v1 = vpop.eup %13885  ;;  %v10536_v5 = vmul.f32 -1.442695, %v4309_v42  ;;  %v4308_v52 = vadd.f32 %v16902_v57, %v20392_v62  ;;  %v5882_v41 = vadd.f32 %v17557_v12, %v17791_v39  ;;  %v4133_v0 = vsel %vm3787_vm2, %v3752_v50, 0.0 }
 0x3b0   :  { %6997 = vperm.xlu0 %13409, %v13882_v25   ;;  %v13888_v30 = vpop.eup %13887  ;;  %13903 = vpow2.f32 %v10533_v33  ;;  %v7474_v27 = vmul.f32 %v17625_v58, %v6574_v43  ;;  %v6576_v54 = vmax.f32 %v5872_v3, 0.0  ;;  %v5887_v28 = vadd.f32 %v17575_v61, %v17791_v39  ;;  %v17926_v8 = vpop.f32.mrb[206].mxu0 }
 0x3b1   :  { %v13890_v16 = vpop.eup %13889  ;;  %13905 = vrcp.f32 %v4902_v63  ;;  %v7475_v25 = vmul.f32 %v17667_v18, %v6575_v59  ;;  %v6577_v12 = vmax.f32 %v5877_v40, 0.0  ;;  %v4130_v58 = vsel %vm3787_vm2, %v3751_v20, 0.0 }
 0x3b2   :  { %4125 = vadd.xlane.f32.xlu1 %v4124_v11  ;;  %12584 = vmatmul.mubr.msk.f32.gmra.mrb[84].mxu1 %vm797_vm0, %v7472_v21  ;;  %v4905_v11 = vadd.f32 1.0, %v13886_v1  ;;  %v13892_v42 = vpop.eup %13891  ;;  %v20393_v21 = vld [vmem:[#allocation12_spill] sm:$0xff]  ;;  %v3754_v33 = vmul.f32 %v13884_v10, %v16137_v49  ;;  %13907 = vtanh.f32 %v3454_v23  ;;  %v10535_v43 = vmul.f32 -1.442695, %v4308_v52 }
 0x3b3   :  { %v17918_v51 = vpop.permute.xlu0 %6852  ;;  %12586 = vmatprep.mubr.msk.f32.mxu1 %vm797_vm0, %v7473_v31  ;;  %v3453_v50 = vadd.f32 %v16055_v48, %v20393_v21  ;;  %v13894_v61 = vpop.eup %13893  ;;  %v4311_v18 = vadd.f32 %v16902_v57, %v20394_v60  ;;  %v6578_v3 = vmax.f32 %v5882_v41, 0.0  ;;  %13909 = vpow2.f32 %v10536_v5  ;;  %v20395_v31 = vld [vmem:[#allocation54_spill] sm:$0xff]  ;;  %v20396_v5 = vld [vmem:[#allocation13_spill] sm:$0xff] }
 0x3b4   :  { %7012 = vperm.xlu0 %13409, %v13888_v30   ;;  %v7476_v63 = vmul.f32 %v17653_v4, %v6576_v54  ;;  %v5892_v40 = vadd.f32 %v20395_v31, %v17791_v39  ;;  %v6579_v1 = vmax.f32 %v5887_v28, 0.0  ;;  %13911 = vrcp.f32 %v4905_v11  ;;  %v17944_v30 = vpop.f32.mrb[207].mxu0  ;;  %v20398_v54 = vld [vmem:[#allocation56_spill] sm:$0xff] }
 0x3b5   :  { %v13896_v10 = vpop.eup %13895  ;;  %v4904_v37 = vadd.f32 1.0, %v13892_v42  ;;  %v7477_v23 = vmul.f32 %v17695_v55, %v6577_v12  ;;  %v5897_v20 = vadd.f32 %v17589_v46, %v17791_v39  ;;  %13913 = vtanh.f32 %v3453_v50 }
 0x3b6   :  { %4134 = vadd.xlane.f32.xlu1 %v4133_v0  ;;  %12587 = vmatmul.mubr.msk.f32.gmra.mrb[86].mxu1 %vm797_vm0, %v7474_v27  ;;  %v13898_v62 = vpop.eup %13897  ;;  %v3456_v4 = vadd.f32 %v20396_v5, %v16055_v48  ;;  %v3753_v52 = vmul.f32 %v13890_v16, %v16137_v49  ;;  %v10538_v0 = vmul.f32 -1.442695, %v4311_v18  ;;  %v20397_v27 = vld [vmem:[#allocation55_spill] sm:$0xff]  ;;  %v5902_v46 = vadd.f32 %v20398_v54, %v17791_v39  ;;  %v20399_v18 = vld [vmem:[#allocation14_spill] sm:$0xff] }
 0x3b7   :  { %v17935_v59 = vpop.permute.xlu0 %6847  ;;  %12589 = vmatprep.mubr.msk.f32.mxu1 %vm797_vm0, %v7475_v25  ;;  %v13900_v41 = vpop.eup %13899  ;;  %v4310_v55 = vadd.f32 %v16902_v57, %v20397_v27  ;;  %v4139_v11 = vsel %vm3787_vm2, %v3754_v33, 0.0  ;;  %13915 = vpow2.f32 %v10535_v43  ;;  %v7478_v12 = vmul.f32 %v17681_v53, %v6578_v3 }
 0x3b8   :  { %7007 = vperm.xlu0 %13409, %v13894_v61   ;;  %v13902_v25 = vpop.eup %13901  ;;  %v6580_v42 = vmax.f32 %v5892_v40, 0.0  ;;  %v5907_v16 = vadd.f32 %v17603_v17, %v17791_v39  ;;  %13917 = vrcp.f32 %v4904_v37  ;;  %v4907_v21 = vadd.f32 1.0, %v13898_v62  ;;  %v17962_v61 = vpop.f32.mrb[208].mxu0  ;;  %v20401_v37 = vld [vmem:[#allocation58_spill] sm:$0xff] }
 0x3b9   :  { %v7479_v50 = vmul.f32 %v17723_v36, %v6579_v1  ;;  %v3455_v33 = vadd.f32 %v16055_v48, %v20399_v18  ;;  %v4136_v53 = vsel %vm3787_vm2, %v3753_v52, 0.0  ;;  %v3756_v43 = vmul.f32 %v13896_v10, %v16137_v49  ;;  %v17980_v52 = vpop.f32.mrb[209].mxu0 }
 0x3ba   :  { %4131 = vadd.xlane.f32.xlu1 %v4130_v58  ;;  %12590 = vmatmul.mubr.msk.f32.gmra.mrb[88].mxu1 %vm797_vm0, %v7476_v63  ;;  %v6581_v58 = vmax.f32 %v5897_v20, 0.0  ;;  %v13904_v60 = vpop.eup %13903  ;;  %13919 = vtanh.f32 %v3456_v4  ;;  %v10537_v3 = vmul.f32 -1.442695, %v4310_v55  ;;  %v20400_v63 = vld [vmem:[#allocation57_spill] sm:$0xff]  ;;  %v6582_v31 = vmax.f32 %v5902_v46, 0.0  ;;  %v20403_v46 = vld [vmem:[#allocation59_spill] sm:$0xff] }
 0x3bb   :  { %v17954_v28 = vpop.permute.xlu0 %6862  ;;  %12592 = vmatprep.mubr.msk.f32.mxu1 %vm797_vm0, %v7477_v23  ;;  %v13906_v17 = vpop.eup %13905  ;;  %v4313_v36 = vadd.f32 %v16902_v57, %v20400_v63  ;;  %13921 = vpow2.f32 %v10538_v0  ;;  %v7480_v1 = vmul.f32 %v17709_v35, %v6580_v42  ;;  %v5912_v23 = vadd.f32 %v20401_v37, %v17791_v39  ;;  %v20402_v0 = vld [vmem:[#allocation15_spill] sm:$0xff] }
 0x3bc   :  { %7022 = vperm.xlu0 %13409, %v13900_v41   ;;  %v6583_v20 = vmax.f32 %v5907_v16, 0.0  ;;  %v13908_v10 = vpop.eup %13907  ;;  %13923 = vrcp.f32 %v4907_v21  ;;  %v4906_v62 = vadd.f32 1.0, %v13904_v60  ;;  %v7481_v5 = vmul.f32 %v17753_v26, %v6581_v58 }
 0x3bd   :  { %v5917_v4 = vadd.f32 %v17617_v19, %v17791_v39  ;;  %v13910_v41 = vpop.eup %13909  ;;  %13925 = vtanh.f32 %v3455_v33  ;;  %v3458_v35 = vadd.f32 %v20402_v0, %v16055_v48  ;;  %v3755_v27 = vmul.f32 %v13902_v25, %v16137_v49  ;;  %v17998_v33 = vpop.f32.mrb[210].mxu0 }
 0x3be   :  { %4140 = vadd.xlane.f32.xlu1 %v4139_v11  ;;  %12593 = vmatmul.mubr.msk.f32.gmra.mrb[90].mxu1 %vm797_vm0, %v7478_v12  ;;  %v13912_v55 = vpop.eup %13911  ;;  %v10540_v54 = vmul.f32 -1.442695, %v4313_v36  ;;  %v4312_v26 = vadd.f32 %v16902_v57, %v20403_v46  ;;  %v20404_v11 = vld [vmem:[#allocation60_spill] sm:$0xff]  ;;  %v4145_v42 = vsel %vm3787_vm2, %v3756_v43, 0.0  ;;  %13927 = vpow2.f32 %v10537_v3  ;;  %v20406_v36 = vld [vmem:[#allocation61_spill] sm:$0xff]  ;;  %v18016_v0 = vpop.f32.mrb[211].mxu0 }
 0x3bf   :  { %v17971_v40 = vpop.permute.xlu0 %6857  ;;  %12595 = vmatprep.mubr.msk.f32.mxu1 %vm797_vm0, %v7479_v50  ;;  %v5922_v19 = vadd.f32 %v20404_v11, %v17791_v39  ;;  %v13914_v16 = vpop.eup %13913  ;;  %v7482_v21 = vmul.f32 %v17739_v13, %v6582_v31  ;;  %v6584_v50 = vmax.f32 %v5912_v23, 0.0  ;;  %v5927_v25 = vadd.f32 %v17631_v38, %v17791_v39  ;;  %v20407_v23 = vld [vmem:[#allocation62_spill] sm:$0xff]  ;;  %v20410_v11 = vld [vmem:[#allocation64_spill] sm:$0xff] }
 0x3c0   :  { %7017 = vperm.xlu0 %13409, %v13906_v17   ;;  %13929 = vrcp.f32 %v4906_v62  ;;  %v4909_v58 = vadd.f32 1.0, %v13910_v41  ;;  %v7483_v60 = vmul.f32 %v17782_v24, %v6583_v20  ;;  %v6585_v18 = vmax.f32 %v5917_v4, 0.0  ;;  %v20405_v17 = vld [vmem:[#allocation16_spill] sm:$0xff] }
 0x3c1   :  { %v3457_v43 = vadd.f32 %v16055_v48, %v20405_v17  ;;  %v4142_v13 = vsel %vm3787_vm2, %v3755_v27, 0.0  ;;  %v3758_v3 = vmul.f32 %v13908_v10, %v16137_v49  ;;  %13931 = vtanh.f32 %v3458_v35  ;;  %v20408_v27 = vld [vmem:[#allocation17_spill] sm:$0xff]  ;;  %v18034_v17 = vpop.f32.mrb[212].mxu0 }
 0x3c2   :  { %4137 = vadd.xlane.f32.xlu1 %v4136_v53  ;;  %12596 = vmatmul.mubr.msk.f32.gmra.mrb[92].mxu1 %vm797_vm0, %v7480_v1  ;;  %v13916_v53 = vpop.eup %13915  ;;  %v10539_v63 = vmul.f32 -1.442695, %v4312_v26  ;;  %v4315_v24 = vadd.f32 %v16902_v57, %v20406_v36  ;;  %v6586_v31 = vmax.f32 %v5922_v19, 0.0  ;;  %13933 = vpow2.f32 %v10540_v54  ;;  %v20409_v26 = vld [vmem:[#allocation63_spill] sm:$0xff] }
 0x3c3   :  { %v17990_v12 = vpop.permute.xlu0 %6872  ;;  %12598 = vmatprep.mubr.msk.f32.mxu1 %vm797_vm0, %v7481_v5  ;;  %v13918_v38 = vpop.eup %13917  ;;  %v7484_v37 = vmul.f32 %v17767_v47, %v6584_v50  ;;  %v5932_v20 = vadd.f32 %v20407_v23, %v17791_v39  ;;  %v6587_v62 = vmax.f32 %v5927_v25, 0.0  ;;  %13935 = vrcp.f32 %v4909_v58 }
 0x3c4   :  { %7032 = vperm.xlu0 %13409, %v13912_v55   ;;  %v13920_v10 = vpop.eup %13919  ;;  %v4908_v5 = vadd.f32 1.0, %v13916_v53  ;;  %v7485_v4 = vmul.f32 %v17824_v6, %v6585_v18  ;;  %v5937_v41 = vadd.f32 %v17645_v32, %v17791_v39  ;;  %13937 = vtanh.f32 %v3457_v43 }
 0x3c5   :  { %v13922_v35 = vpop.eup %13921  ;;  %v3460_v47 = vadd.f32 %v20408_v27, %v16055_v48  ;;  %v3757_v55 = vmul.f32 %v13914_v16, %v16137_v49  ;;  %v10542_v46 = vmul.f32 -1.442695, %v4315_v24  ;;  %v4314_v6 = vadd.f32 %v16902_v57, %v20409_v26  ;;  %v20411_v16 = vld [vmem:[#allocation67_spill] sm:$0xff]  ;;  %v20413_v24 = vld [vmem:[#allocation65_spill] sm:$0xff]  ;;  %v20416_v26 = vld [vmem:[#allocation68_spill] sm:$0xff] }
 0x3c6   :  { %4146 = vadd.xlane.f32.xlu1 %v4145_v42  ;;  %12599 = vmatmul.mubr.msk.f32.gmra.mrb[94].mxu1 %vm797_vm0, %v7482_v21  ;;  %v13924_v54 = vpop.eup %13923  ;;  %v5942_v32 = vadd.f32 %v20410_v11, %v17791_v39  ;;  %v4151_v42 = vsel %vm3787_vm2, %v3758_v3, 0.0  ;;  %13939 = vpow2.f32 %v10539_v63  ;;  %v7486_v50 = vmul.f32 %v17803_v9, %v6586_v31  ;;  %v20417_v11 = vld [vmem:[#allocation69_spill] sm:$0xff] }
 0x3c7   :  { %v18007_v1 = vpop.permute.xlu0 %6867  ;;  %12601 = vmatprep.mubr.msk.f32.mxu1 %vm797_vm0, %v7483_v60  ;;  %v13926_v21 = vpop.eup %13925  ;;  %v6588_v25 = vmax.f32 %v5932_v20, 0.0  ;;  %v5947_v58 = vadd.f32 %v20411_v16, %v17791_v39  ;;  %13941 = vrcp.f32 %v4908_v5  ;;  %v4911_v60 = vadd.f32 1.0, %v13922_v35  ;;  %v20414_v20 = vld [vmem:[#allocation66_spill] sm:$0xff] }
 0x3c8   :  { %7027 = vperm.xlu0 %13409, %v13918_v38   ;;  %v7487_v18 = vmul.f32 %v17861_v44, %v6587_v62  ;;  %v6589_v53 = vmax.f32 %v5937_v41, 0.0  ;;  %v13928_v43 = vpop.eup %13927  ;;  %v4148_v9 = vsel %vm3787_vm2, %v3757_v55, 0.0  ;;  %v3760_v38 = vmul.f32 %v13920_v10, %v16137_v49  ;;  %v20415_v35 = vld [vmem:[#allocation70_spill] sm:$0xff] }
 0x3c9   :  { %13943 = vtanh.f32 %v3460_v47  ;;  %v10541_v36 = vmul.f32 -1.442695, %v4314_v6  ;;  %v4317_v44 = vadd.f32 %v16902_v57, %v20413_v24  ;;  %v6590_v31 = vmax.f32 %v5942_v32, 0.0  ;;  %v18052_v47 = vpop.f32.mrb[213].mxu0 }
 0x3ca   :  { %4143 = vadd.xlane.f32.xlu1 %v4142_v13  ;;  %12602 = vmatmul.mubr.msk.f32.gmra.mrb[96].mxu1 %vm797_vm0, %v7484_v37  ;;  %v20412_v13 = vld [vmem:[#allocation18_spill] sm:$0xff]  ;;  %v13930_v63 = vpop.eup %13929  ;;  %13945 = vpow2.f32 %v10542_v46  ;;  %v7488_v23 = vmul.f32 %v17843_v15, %v6588_v25  ;;  %v5952_v62 = vadd.f32 %v20414_v20, %v17791_v39  ;;  %v6591_v5 = vmax.f32 %v5947_v58, 0.0  ;;  %v20418_v58 = vld [vmem:[#allocation73_spill] sm:$0xff] }
 0x3cb   :  { %v18026_v19 = vpop.permute.xlu0 %6882  ;;  %12604 = vmatprep.mubr.msk.f32.mxu1 %vm797_vm0, %v7485_v4  ;;  %v3459_v3 = vadd.f32 %v16055_v48, %v20412_v13  ;;  %v13932_v10 = vpop.eup %13931  ;;  %13947 = vrcp.f32 %v4911_v60  ;;  %v4910_v4 = vadd.f32 1.0, %v13928_v43  ;;  %v7489_v41 = vmul.f32 %v17899_v45, %v6589_v53 }
 0x3cc   :  { %7042 = vperm.xlu0 %13409, %v13924_v54   ;;  %v5957_v27 = vadd.f32 %v20415_v35, %v17791_v39  ;;  %v13934_v55 = vpop.eup %13933  ;;  %v3759_v15 = vmul.f32 %v13926_v21, %v16137_v49  ;;  %v10544_v46 = vmul.f32 -1.442695, %v4317_v44  ;;  %v4316_v6 = vadd.f32 %v16902_v57, %v20416_v26  ;;  %v18070_v13 = vpop.f32.mrb[214].mxu0  ;;  %v20421_v35 = vld [vmem:[#allocation72_spill] sm:$0xff] }
 0x3cd   :  { %13949 = vtanh.f32 %v3459_v3  ;;  %v13936_v54 = vpop.eup %13935  ;;  %v5962_v45 = vadd.f32 %v20417_v11, %v17791_v39  ;;  %v7490_v21 = vmul.f32 %v17882_v7, %v6590_v31  ;;  %v6592_v16 = vmax.f32 %v5952_v62, 0.0  ;;  %v7615_v3 = vld [vmem:[%s20268_s6] sm:$0xff]  ;;  %v7616_v7 = vld [vmem:[%s20268_s6 + $0x8] sm:$0xff] }
 0x3ce   :  { %4152 = vadd.xlane.f32.xlu1 %v4151_v42  ;;  %12605 = vmatmul.mubr.msk.f32.gmra.mrb[98].mxu1 %vm797_vm0, %v7486_v50  ;;  %v4157_v50 = vsel %vm3787_vm2, %v3760_v38, 0.0  ;;  %v13938_v25 = vpop.eup %13937  ;;  %13951 = vpow2.f32 %v10541_v36  ;;  %v5967_v60 = vadd.f32 %v20418_v58, %v17791_v39  ;;  %v7491_v53 = vmul.f32 %v17935_v59, %v6591_v5  ;;  %v20419_v38 = vld [vmem:[#allocation19_spill] sm:$0xff]  ;;  %v20424_v58 = vld [vmem:[#allocation74_spill] sm:$0xff] }
 0x3cf   :  { %v18043_v37 = vpop.permute.xlu0 %6877  ;;  %12607 = vmatprep.mubr.msk.f32.mxu1 %vm797_vm0, %v7487_v18  ;;  %13953 = vrcp.f32 %v4910_v4  ;;  %v4913_v18 = vadd.f32 1.0, %v13934_v55  ;;  %v6593_v43 = vmax.f32 %v5957_v27, 0.0  ;;  %v4154_v59 = vsel %vm3787_vm2, %v3759_v15, 0.0  ;;  %v20420_v31 = vld [vmem:[#allocation71_spill] sm:$0xff] }
 0x3d0   :  { %7037 = vperm.xlu0 %13409, %v13930_v63   ;;  %v3462_v63 = vadd.f32 %v20419_v38, %v16055_v48  ;;  %v13088_v36 = vpack.c.bf16 %v7616_v7, %v7615_v3  ;;  %v10543_v44 = vmul.f32 -1.442695, %v4316_v6  ;;  %v6594_v20 = vmax.f32 %v5962_v45, 0.0  ;;  %v20422_v6 = vld [vmem:[#allocation76_spill] sm:$0xff]  ;;  %v18096_v45 = vpop.f32.mrb[215].mxu0  ;;  %v20426_v38 = vld [vmem:[#allocation79_spill] sm:$0xff] }
 0x3d1   :  { %v3762_v4 = vmul.f32 %v13932_v10, %v16137_v49  ;;  %13955 = vpow2.f32 %v10544_v46  ;;  %v5972_v27 = vadd.f32 %v20421_v35, %v17791_v39  ;;  %v6595_v55 = vmax.f32 %v5967_v60, 0.0  ;;  %v20425_v60 = vld [vmem:[#allocation75_spill] sm:$0xff]  ;;  %v20428_v35 = vld [vmem:[#allocation77_spill] sm:$0xff] }
 0x3d2   :  { %4149 = vadd.xlane.f32.xlu1 %v4148_v9  ;;  %12608 = vmatmul.mubr.msk.f32.gmra.mrb[100].mxu1 %vm797_vm0, %v7488_v23  ;;  %v13940_v9 = vpop.eup %13939  ;;  %v4319_v23 = vadd.f32 %v16902_v57, %v20420_v31  ;;  %13957 = vrcp.f32 %v4913_v18  ;;  %v7493_v26 = vmul.f32 %v17971_v40, %v6593_v43  ;;  %v5977_v11 = vadd.f32 %v20422_v6, %v17791_v39  ;;  %v18116_v31 = vpop.f32.mrb[216].mxu0 }
 0x3d3   :  { %v18060_v32 = vpop.permute.xlu0 %6892  ;;  %v18062_v42 = vpop.xlane.xlu1 %4050  ;;  %12610 = vmatprep.mubr.msk.f32.mxu1 %vm797_vm0, %v7489_v41  ;;  %v7492_v41 = vmul.f32 %v17918_v51, %v6592_v16  ;;  %13089 = vmatprep.subr.bf16.mxu1 %v13088_v36  ;;  %13959 = vtanh.f32 %v3462_v63  ;;  %v20423_v51 = vld [vmem:[#allocation20_spill] sm:$0xff]  ;;  %v4318_v40 = vadd.f32 %v16902_v57, %v20424_v58  ;;  %v5982_v18 = vadd.f32 %v20425_v60, %v17791_v39 }
 0x3d4   :  { %7052 = vperm.xlu0 %13409, %v13936_v54   ;;  %v13942_v24 = vpop.eup %13941  ;;  %v4912_v54 = vadd.f32 1.0, %v13940_v9  ;;  %13091 = vmatpush3.bf16.msra.mxu1 %v13088_v36  ;;  %v3461_v46 = vadd.f32 %v16055_v48, %v20423_v51  ;;  %v10546_v16 = vmul.f32 -1.442695, %v4319_v23  ;;  %v4163_v3 = vsel %vm3787_vm2, %v3762_v4, 0.0  ;;  %v20427_v4 = vld [vmem:[#allocation21_spill] sm:$0xff] }
 0x3d5   :  { %v13944_v15 = vpop.eup %13943  ;;  %13961 = vpow2.f32 %v10543_v44  ;;  %v6596_v9 = vmax.f32 %v5972_v27, 0.0  ;;  %v5987_v63 = vadd.f32 %v20426_v38, %v17791_v39  ;;  %v7495_v36 = vmul.f32 %v18007_v1, %v6595_v55 }
 0x3d6   :  { %4158 = vadd.xlane.f32.xlu1 %v4157_v50  ;;  %12611 = vmatmul.mubr.msk.f32.gmra.mrb[102].mxu1 %vm797_vm0, %v7490_v21  ;;  %v13946_v10 = vpop.eup %13945  ;;  %v3761_v50 = vmul.f32 %v13938_v25, %v16137_v49  ;;  %v7494_v25 = vmul.f32 %v17954_v28, %v6594_v20  ;;  %13963 = vrcp.f32 %v4912_v54  ;;  %v10545_v20 = vmul.f32 -1.442695, %v4318_v40  ;;  %v18134_v40 = vpop.f32.mrb[217].mxu0 }
 0x3d7   :  { %v18084_v62 = vpop.permute.xlu0 %6887  ;;  %v18086_v5 = vpop.xlane.xlu1 %4047  ;;  %12613 = vmatprep.mubr.msk.f32.mxu1 %vm797_vm0, %v7491_v53  ;;  %13965 = vtanh.f32 %v3461_v46  ;;  %v4321_v27 = vadd.f32 %v16902_v57, %v20428_v35  ;;  %v6598_v54 = vmax.f32 %v5982_v18, 0.0  ;;  %v7496_v6 = vmul.f32 %v17990_v12, %v6596_v9  ;;  %v20433_v9 = vld [vmem:[#allocation81_spill] sm:$0xff] }
 0x3d8   :  { %7047 = vperm.xlu0 %13409, %v13942_v24   ;;  %v13948_v21 = vpop.eup %13947  ;;  %v6597_v24 = vmax.f32 %v5977_v11, 0.0  ;;  %v4160_v28 = vsel %vm3787_vm2, %v3761_v50, 0.0  ;;  %13967 = vpow2.f32 %v10546_v16  ;;  %v20429_v11 = vld [vmem:[#allocation78_spill] sm:$0xff]  ;;  %v6599_v51 = vmax.f32 %v5987_v63, 0.0 }
 0x3d9   :  { %v13950_v7 = vpop.eup %13949  ;;  %v6002_v38 = vadd.f32 %v20433_v9, %v17791_v39 }
 0x3da   :  { %4155 = vadd.xlane.f32.xlu1 %v4154_v59  ;;  %12614 = vmatmul.mubr.msk.f32.gmra.mrb[104].mxu1 %vm797_vm0, %v7492_v41  ;;  %v4915_v59 = vadd.f32 1.0, %v13946_v10  ;;  %v13952_v23 = vpop.eup %13951  ;;  %v3464_v41 = vadd.f32 %v20427_v4, %v16055_v48  ;;  %v5992_v10 = vadd.f32 %v20429_v11, %v17791_v39  ;;  %v7497_v50 = vmul.f32 %v18043_v37, %v6597_v24  ;;  %v20434_v4 = vld [vmem:[#allocation85_spill] sm:$0xff] }
 0x3db   :  { %v18106_v53 = vpop.permute.xlu0 %6902  ;;  %v18108_v43 = vpop.xlane.xlu1 %4056  ;;  %12616 = vmatprep.mubr.msk.f32.mxu1 %vm797_vm0, %v7493_v26  ;;  %v3764_v26 = vmul.f32 %v13944_v15, %v16137_v49  ;;  %v4914_v46 = vadd.f32 1.0, %v13952_v23  ;;  %v20431_v15 = vld [vmem:[#allocation22_spill] sm:$0xff]  ;;  %v3763_v12 = vmul.f32 %v13950_v7, %v16137_v49  ;;  %v7498_v7 = vmul.f32 %v18026_v19, %v6598_v54 }
 0x3dc   :  { %7062 = vperm.xlu0 %13409, %v13948_v21   ;;  %v13954_v44 = vpop.eup %13953  ;;  %13969 = vrcp.f32 %v4915_v59  ;;  %v20430_v21 = vld [vmem:[#allocation82_spill] sm:$0xff]  ;;  %v3463_v16 = vadd.f32 %v16055_v48, %v20431_v15  ;;  %v6600_v23 = vmax.f32 %v5992_v10, 0.0  ;;  %v20436_v10 = vld [vmem:[#allocation83_spill] sm:$0xff]  ;;  %v20437_v15 = vld [vmem:[#allocation84_spill] sm:$0xff] }
 0x3dd   :  { %v5997_v58 = vadd.f32 %v20430_v21, %v17791_v39  ;;  %v13956_v60 = vpop.eup %13955  ;;  %13971 = vtanh.f32 %v3464_v41  ;;  %v6007_v41 = vadd.f32 %v20434_v4, %v17791_v39  ;;  %v4166_v19 = vsel %vm3787_vm2, %v3763_v12, 0.0 }
 0x3de   :  { %4164 = vadd.xlane.f32.xlu1 %v4163_v3  ;;  %12617 = vmatmul.mubr.msk.f32.gmra.mrb[106].mxu1 %vm797_vm0, %v7494_v25  ;;  %v13958_v18 = vpop.eup %13957  ;;  %v10548_v3 = vmul.f32 -1.442695, %v4321_v27  ;;  %v20432_v25 = vld [vmem:[#allocation80_spill] sm:$0xff]  ;;  %13973 = vpow2.f32 %v10545_v20  ;;  %v18154_v27 = vpop.f32.mrb[218].mxu0 }
 0x3df   :  { %v6898_v1 = vpop.permute.xlu0 %6897  ;;  %v18124_v55 = vpop.xlane.xlu1 %4053  ;;  %12619 = vmatprep.mubr.msk.f32.mxu1 %vm797_vm0, %v7495_v36  ;;  %v4320_v37 = vadd.f32 %v16902_v57, %v20432_v25  ;;  %v4169_v36 = vsel %vm3787_vm2, %v3764_v26, 0.0  ;;  %13975 = vrcp.f32 %v4914_v46  ;;  %v6601_v35 = vmax.f32 %v5997_v58, 0.0  ;;  %v20435_v26 = vld [vmem:[#allocation23_spill] sm:$0xff] }
 0x3e0   :  { %7057 = vperm.xlu0 %13409, %v13954_v44   ;;  %v13960_v24 = vpop.eup %13959  ;;  %v7499_v44 = vmul.f32 %v18084_v62, %v6599_v51  ;;  %13977 = vtanh.f32 %v3463_v16  ;;  %v3466_v11 = vadd.f32 %v20435_v26, %v16055_v48  ;;  %v4323_v46 = vadd.f32 %v16902_v57, %v20436_v10 }
 0x3e1   :  { %v10547_v54 = vmul.f32 -1.442695, %v4320_v37  ;;  %v3766_v21 = vmul.f32 %v13960_v24, %v16137_v49  ;;  %13979 = vpow2.f32 %v10548_v3  ;;  %v6012_v16 = vadd.f32 %v20437_v15, %v17791_v39  ;;  %v20438_v37 = vld [vmem:[#allocation88_spill] sm:$0xff] }
 0x3e2   :  { %4161 = vadd.xlane.f32.xlu1 %v4160_v28  ;;  %12620 = vmatmul.mubr.msk.f32.gmra.mrb[108].mxu1 %vm797_vm0, %v7496_v6  ;;  %v4917_v28 = vadd.f32 1.0, %v13956_v60  ;;  %v13962_v6 = vpop.eup %13961  ;;  %v7500_v60 = vmul.f32 %v18060_v32, %v6600_v23  ;;  %v6603_v12 = vmax.f32 %v6007_v41, 0.0  ;;  %v7501_v25 = vmul.f32 %v6898_v1, %v6601_v35  ;;  %v20439_v24 = vld [vmem:[#allocation24_spill] sm:$0xff]  ;;  %v20440_v23 = vld [vmem:[#allocation86_spill] sm:$0xff] }
 0x3e3   :  { %v18144_v63 = vpop.permute.xlu0 %6912  ;;  %v18146_v59 = vpop.xlane.xlu1 %4062  ;;  %12622 = vmatprep.mubr.msk.f32.mxu1 %vm797_vm0, %v7497_v50  ;;  %v6602_v50 = vmax.f32 %v6002_v38, 0.0  ;;  %v6017_v9 = vadd.f32 %v20438_v37, %v17791_v39  ;;  %v3465_v3 = vadd.f32 %v16055_v48, %v20439_v24  ;;  %v4322_v4 = vadd.f32 %v16902_v57, %v20440_v23  ;;  %v20444_v24 = vld [vmem:[#allocation90_spill] sm:$0xff] }
 0x3e4   :  { %7072 = vperm.xlu0 %13409, %v13958_v18   ;;  %v13964_v20 = vpop.eup %13963  ;;  %13981 = vrcp.f32 %v4917_v28  ;;  %v4916_v18 = vadd.f32 1.0, %v13962_v6  ;;  %v18171_v38 = vpop.f32.mrb[219].mxu0  ;;  %v4175_v28 = vsel %vm3787_vm2, %v3766_v21, 0.0  ;;  %v6604_v26 = vmax.f32 %v6012_v16, 0.0  ;;  %v20442_v21 = vld [vmem:[#allocation25_spill] sm:$0xff] }
 0x3e5   :  { %v13966_v58 = vpop.eup %13965  ;;  %13983 = vtanh.f32 %v3466_v11  ;;  %v7502_v6 = vmul.f32 %v18106_v53, %v6602_v50  ;;  %v20441_v11 = vld [vmem:[#allocation87_spill] sm:$0xff]  ;;  %v20443_v50 = vld [vmem:[#allocation89_spill] sm:$0xff] }
 0x3e6   :  { %4170 = vadd.xlane.f32.xlu1 %v4169_v36  ;;  %12623 = vmatmul.mubr.msk.f32.gmra.mrb[110].mxu1 %vm797_vm0, %v7498_v7  ;;  %v13968_v36 = vpop.eup %13967  ;;  %v10550_v7 = vmul.f32 -1.442695, %v4323_v46  ;;  %13985 = vpow2.f32 %v10547_v54  ;;  %v6605_v46 = vmax.f32 %v6017_v9, 0.0  ;;  %v10549_v54 = vmul.f32 -1.442695, %v4322_v4  ;;  %v20445_v4 = vld [vmem:[#allocation3_spill] sm:$0xff] }
 0x3e7   :  { %v6908_v62 = vpop.permute.xlu0 %6907  ;;  %v18162_v51 = vpop.xlane.xlu1 %4059  ;;  %12625 = vmatprep.mubr.msk.f32.mxu1 %vm797_vm0, %v7499_v44  ;;  %v3765_v44 = vmul.f32 %v13966_v58, %v16137_v49  ;;  %13987 = vrcp.f32 %v4916_v18  ;;  %v3468_v58 = vadd.f32 %v20442_v21, %v16055_v48  ;;  %v4325_v16 = vadd.f32 %v16902_v57, %v20443_v50 }
 0x3e8   :  { %7067 = vperm.xlu0 %13409, %v13964_v20   ;;  %v13970_v32 = vpop.eup %13969  ;;  %v4919_v20 = vadd.f32 1.0, %v13968_v36  ;;  %v7503_v10 = vmul.f32 %v6908_v62, %v6603_v12  ;;  %13989 = vtanh.f32 %v3465_v3  ;;  %v7504_v9 = vmul.f32 %v18144_v63, %v6604_v26 }
 0x3e9   :  { %v13972_v35 = vpop.eup %13971  ;;  %v4172_v62 = vsel %vm3787_vm2, %v3765_v44, 0.0  ;;  %13991 = vpow2.f32 %v10550_v7  ;;  %v6027_v3 = vadd.f32 %v20444_v24, %v17791_v39  ;;  %v10552_v26 = vmul.f32 -1.442695, %v4325_v16 }
 0x3ea   :  { %4167 = vadd.xlane.f32.xlu1 %v4166_v19  ;;  %12626 = vmatmul.mubr.msk.f32.gmra.mrb[112].mxu1 %vm797_vm0, %v7500_v60  ;;  %v6022_v19 = vadd.f32 %v20441_v11, %v17791_v39  ;;  %v18186_v60 = vpop.f32.mrb[220].mxu0  ;;  %v13974_v15 = vpop.eup %13973  ;;  %v3768_v12 = vmul.f32 %v13972_v35, %v16137_v49  ;;  %13993 = vrcp.f32 %v4919_v20  ;;  %v20446_v35 = vld [vmem:[#allocation26_spill] sm:$0xff] }
 0x3eb   :  { %v6923_v41 = vpop.permute.xlu0 %6922  ;;  %v18178_v1 = vpop.xlane.xlu1 %4068  ;;  %12628 = vmatprep.mubr.msk.f32.mxu1 %vm797_vm0, %v7501_v25  ;;  %13995 = vtanh.f32 %v3468_v58  ;;  %v3467_v7 = vadd.f32 %v16055_v48, %v20446_v35  ;;  %v6607_v58 = vmax.f32 %v6027_v3, 0.0 }
 0x3ec   :  { %7082 = vperm.xlu0 %13409, %v13970_v32   ;;  %v13976_v53 = vpop.eup %13975  ;;  %v6606_v36 = vmax.f32 %v6022_v19, 0.0  ;;  %v4918_v32 = vadd.f32 1.0, %v13974_v15  ;;  %13997 = vpow2.f32 %v10549_v54  ;;  %v4181_v16 = vsel %vm3787_vm2, %v3768_v12, 0.0 }
 0x3ed   :  { %v13978_v37 = vpop.eup %13977 }
 0x3ee   :  { %4176 = vadd.xlane.f32.xlu1 %v4175_v28  ;;  %12629 = vmatmul.mubr.msk.f32.gmra.mrb[114].mxu1 %vm797_vm0, %v7502_v6  ;;  %v6032_v28 = vadd.f32 %v20445_v4, %v17791_v39  ;;  %v18203_v6 = vpop.f32.mrb[221].mxu0  ;;  %v13980_v44 = vpop.eup %13979  ;;  %v3767_v20 = vmul.f32 %v13978_v37, %v16137_v49  ;;  %v7506_v21 = vmul.f32 %v6923_v41, %v6606_v36  ;;  %13999 = vrcp.f32 %v4918_v32 }
 0x3ef   :  { %v6918_v25 = vpop.permute.xlu0 %6917  ;;  %v18193_v18 = vpop.xlane.xlu1 %4065  ;;  %12631 = vmatprep.mubr.msk.f32.mxu1 %vm797_vm0, %v7503_v10  ;;  %14001 = vtanh.f32 %v3467_v7 }
 0x3f0   :  { %7077 = vperm.xlu0 %13409, %v13976_v53   ;;  %v7505_v23 = vmul.f32 %v6918_v25, %v6605_v46  ;;  %v13982_v63 = vpop.eup %13981  ;;  %v20447_v46 = vld [vmem:[#allocation91_spill] sm:$0xff]  ;;  %v4921_v53 = vadd.f32 1.0, %v13980_v44  ;;  %v6608_v50 = vmax.f32 %v6032_v28, 0.0  ;;  %v18215_v25 = vpop.f32.mrb[0].mxu1  ;;  %14003 = vpow2.f32 %v10552_v26  ;;  %v20451_v44 = vld [vmem:[#allocation92_spill] sm:$0xff] }
 0x3f1   :  { %v13984_v10 = vpop.eup %13983  ;;  %v4324_v15 = vadd.f32 %v16902_v57, %v20447_v46  ;;  %20448 = vst [vmem:[#allocation7_spill] sm:$0xff] %v18215_v25  ;;  %v4178_v24 = vsel %vm3787_vm2, %v3767_v20, 0.0  ;;  %v6037_v35 = vadd.f32 %v20451_v44, %v17791_v39  ;;  %v20452_v26 = vld [vmem:[#allocation4_spill] sm:$0xff] }
 0x3f2   :  { %4173 = vadd.xlane.f32.xlu1 %v4172_v62  ;;  %12632 = vmatmul.mubr.msk.f32.gmra.mrb[116].mxu1 %vm797_vm0, %v7504_v9  ;;  %v13986_v62 = vpop.eup %13985  ;;  %v20449_v9 = vld [vmem:[#allocation27_spill] sm:$0xff]  ;;  %v3770_v3 = vmul.f32 %v13984_v10, %v16137_v49  ;;  %14005 = vrcp.f32 %v4921_v53  ;;  %v6042_v46 = vadd.f32 %v20452_v26, %v17791_v39  ;;  %v20453_v10 = vld [vmem:[#allocation28_spill] sm:$0xff] }
 0x3f3   :  { %v6933_v11 = vpop.permute.xlu0 %6932  ;;  %v18208_v19 = vpop.xlane.xlu1 %4074  ;;  %12634 = vmatprep.mubr.msk.f32.mxu1 %vm797_vm0, %v7505_v23  ;;  %v3470_v37 = vadd.f32 %v20449_v9, %v16055_v48  ;;  %v10551_v32 = vmul.f32 -1.442695, %v4324_v15  ;;  %v20450_v23 = vld [vmem:[#allocation93_spill] sm:$0xff]  ;;  %v4920_v7 = vadd.f32 1.0, %v13986_v62  ;;  %v3469_v15 = vadd.f32 %v16055_v48, %v20453_v10  ;;  %v20454_v9 = vld [vmem:[#allocation6_spill] sm:$0xff] }
 0x3f4   :  { %7092 = vperm.xlu0 %13409, %v13982_v63   ;;  %v13988_v54 = vpop.eup %13987  ;;  %v4327_v4 = vadd.f32 %v16902_v57, %v20450_v23  ;;  %v7508_v63 = vmul.f32 %v6933_v11, %v6608_v50  ;;  %v6610_v23 = vmax.f32 %v6042_v46, 0.0 }
 0x3f5   :  { %v13990_v12 = vpop.eup %13989  ;;  %14007 = vtanh.f32 %v3470_v37  ;;  %v4326_v37 = vadd.f32 %v16902_v57, %v20454_v9 }
 0x3f6   :  { %4182 = vadd.xlane.f32.xlu1 %v4181_v16  ;;  %12635 = vmatmul.mubr.msk.f32.gmra.mrb[118].mxu1 %vm797_vm0, %v7506_v21  ;;  %v18230_v21 = vpop.f32.mrb[1].mxu1  ;;  %v13992_v20 = vpop.eup %13991  ;;  %v3769_v11 = vmul.f32 %v13990_v12, %v16137_v49  ;;  %14009 = vpow2.f32 %v10551_v32  ;;  %v10554_v62 = vmul.f32 -1.442695, %v4327_v4 }
 0x3f7   :  { %v6928_v41 = vpop.permute.xlu0 %6927  ;;  %v18220_v36 = vpop.xlane.xlu1 %4071  ;;  %14011 = vrcp.f32 %v4920_v7  ;;  %v20457_v7 = vld [vmem:[#allocation41_spill] sm:$0xff]  ;;  %v10553_v10 = vmul.f32 -1.442695, %v4326_v37 }
 0x3f8   :  { %v7507_v28 = vmul.f32 %v6928_v41, %v6607_v58  ;;  %7087 = vperm.xlu0 %13409, %v13988_v54   ;;  %v13994_v58 = vpop.eup %13993  ;;  %v6609_v54 = vmax.f32 %v6037_v35, 0.0  ;;  %v4923_v41 = vadd.f32 1.0, %v13992_v20  ;;  %14013 = vtanh.f32 %v3469_v15 }
 0x3f9   :  { %v13996_v50 = vpop.eup %13995  ;;  %v4184_v35 = vsel %vm3787_vm2, %v3769_v11, 0.0  ;;  %v6047_v20 = vadd.f32 %v20457_v7, %v17791_v39  ;;  %14015 = vpow2.f32 %v10554_v62  ;;  %v4329_v15 = vadd.f32 %v16902_v57, %v18062_v42  ;;  %v20460_v7 = vld [vmem:[#allocation30_spill] sm:$0xff] }
 0x3fa   :  { %12637 = vmatprep.mubr.msk.f32.mxu1 %vm797_vm0, %v7507_v28  ;;  %4179 = vadd.xlane.f32.xlu1 %v4178_v24  ;;  %v4187_v24 = vsel %vm3787_vm2, %v3770_v3, 0.0  ;;  %v18242_v28 = vpop.f32.mrb[2].mxu1  ;;  %v13998_v44 = vpop.eup %13997  ;;  %v3772_v46 = vmul.f32 %v13996_v50, %v16137_v49  ;;  %14017 = vrcp.f32 %v4923_v41  ;;  %v3471_v50 = vadd.f32 %v16055_v48, %v20460_v7 }
 0x3fb   :  { %v6943_v16 = vpop.permute.xlu0 %6942  ;;  %12638 = vmatmul.mubr.msk.f32.gmra.mrb[120].mxu1 %vm797_vm0, %v7508_v63  ;;  %v18236_v53 = vpop.xlane.xlu1 %4080  ;;  %20455 = vst [vmem:[#allocation44_spill] sm:$0xff] %v18242_v28  ;;  %v20456_v63 = vld [vmem:[#allocation29_spill] sm:$0xff]  ;;  %v10556_v41 = vmul.f32 -1.442695, %v4329_v15  ;;  %v4331_v7 = vadd.f32 %v16902_v57, %v18108_v43 }
 0x3fc   :  { %7102 = vperm.xlu0 %13409, %v13994_v58   ;;  %v3472_v12 = vadd.f32 %v20456_v63, %v16055_v48  ;;  %v14000_v32 = vpop.eup %13999  ;;  %v7510_v63 = vmul.f32 %v6943_v16, %v6610_v23  ;;  %v20458_v28 = vld [vmem:[#allocation5_spill] sm:$0xff]  ;;  %v18256_v25 = vpop.f32.mrb[3].mxu1  ;;  %v4328_v23 = vadd.f32 %v16902_v57, %v18086_v5 }
 0x3fd   :  { %v14002_v3 = vpop.eup %14001  ;;  %v6052_v11 = vadd.f32 %v20458_v28, %v17791_v39  ;;  %20459 = vst [vmem:[#allocation45_spill] sm:$0xff] %v18256_v25  ;;  %v6611_v28 = vmax.f32 %v6047_v20, 0.0  ;;  %v20463_v20 = vld [vmem:[#allocation43_spill] sm:$0xff] }
 0x3fe   :  { %4188 = vadd.xlane.f32.xlu1 %v4187_v24  ;;  %v14004_v9 = vpop.eup %14003  ;;  %v4922_v24 = vadd.f32 1.0, %v13998_v44  ;;  %14019 = vtanh.f32 %v3472_v12  ;;  %v3771_v16 = vmul.f32 %v14002_v3, %v16137_v49 }
 0x3ff   :  { %v6938_v4 = vpop.permute.xlu0 %6937  ;;  %v18246_v26 = vpop.xlane.xlu1 %4077  ;;  %14021 = vpow2.f32 %v10553_v10  ;;  %v4925_v44 = vadd.f32 1.0, %v14004_v9  ;;  %v6612_v12 = vmax.f32 %v6052_v11, 0.0  ;;  %v6057_v9 = vadd.f32 %v20463_v20, %v17791_v39  ;;  %v20465_v20 = vld [vmem:[#allocation32_spill] sm:$0xff] }
 0x400   :  { %v7509_v58 = vmul.f32 %v6938_v4, %v6609_v54  ;;  %7097 = vperm.xlu0 %13409, %v14000_v32   ;;  %v14006_v62 = vpop.eup %14005  ;;  %14023 = vrcp.f32 %v4922_v24  ;;  %v4193_v32 = vsel %vm3787_vm2, %v3772_v46, 0.0  ;;  %v18268_v4 = vpop.f32.mrb[4].mxu1  ;;  %v4190_v5 = vsel %vm3787_vm2, %v3771_v16, 0.0 }
 0x401   :  { %v14008_v54 = vpop.eup %14007  ;;  %20461 = vst [vmem:[#allocation8_spill] sm:$0xff] %v18268_v4  ;;  %14025 = vtanh.f32 %v3471_v50  ;;  %v10555_v11 = vmul.f32 -1.442695, %v4328_v23  ;;  %v18282_v16 = vpop.f32.mrb[5].mxu1 }
 0x402   :  { %12640 = vmatprep.mubr.msk.f32.mxu1 %vm797_vm0, %v7509_v58  ;;  %4185 = vadd.xlane.f32.xlu1 %v4184_v35  ;;  %v14010_v35 = vpop.eup %14009  ;;  %v20462_v58 = vld [vmem:[#allocation31_spill] sm:$0xff]  ;;  %v3774_v24 = vmul.f32 %v14008_v54, %v16137_v49  ;;  %14027 = vpow2.f32 %v10556_v41  ;;  %v3473_v54 = vadd.f32 %v16055_v48, %v20465_v20 }
 0x403   :  { %v6953_v42 = vpop.permute.xlu0 %6952  ;;  %12641 = vmatmul.mubr.msk.f32.gmra.mrb[122].mxu1 %vm797_vm0, %v7510_v63  ;;  %v18262_v37 = vpop.xlane.xlu1 %4086  ;;  %v3474_v3 = vadd.f32 %v20462_v58, %v16055_v48  ;;  %14029 = vrcp.f32 %v4925_v44  ;;  %v20464_v58 = vld [vmem:[#allocation42_spill] sm:$0xff]  ;;  %v10558_v44 = vmul.f32 -1.442695, %v4331_v7 }
 0x404   :  { %7112 = vperm.xlu0 %13409, %v14006_v62   ;;  %v14012_v10 = vpop.eup %14011  ;;  %v4924_v62 = vadd.f32 1.0, %v14010_v35  ;;  %v6062_v4 = vadd.f32 %v20464_v58, %v17791_v39  ;;  %v6613_v35 = vmax.f32 %v6057_v9, 0.0 }
 0x405   :  { %v14014_v46 = vpop.eup %14013  ;;  %14031 = vtanh.f32 %v3474_v3 }
 0x406   :  { %4194 = vadd.xlane.f32.xlu1 %v4193_v32  ;;  %v7512_v32 = vmul.f32 %v6953_v42, %v6612_v12  ;;  %v14016_v25 = vpop.eup %14015  ;;  %v3773_v42 = vmul.f32 %v14014_v46, %v16137_v49  ;;  %14033 = vpow2.f32 %v10555_v11  ;;  %v4330_v12 = vadd.f32 %v16902_v57, %v18124_v55 }
 0x407   :  { %v6948_v15 = vpop.permute.xlu0 %6947  ;;  %v18272_v63 = vpop.xlane.xlu1 %4083  ;;  %14035 = vrcp.f32 %v4924_v62  ;;  %v4927_v3 = vadd.f32 1.0, %v14016_v25  ;;  %v6067_v25 = vadd.f32 %v17850_v56, %v17791_v39  ;;  %v4333_v62 = vadd.f32 %v16902_v57, %v18146_v59  ;;  %v20467_v56 = vld [vmem:[#allocation34_spill] sm:$0xff] }
 0x408   :  { %v7511_v50 = vmul.f32 %v6948_v15, %v6611_v28  ;;  %7107 = vperm.xlu0 %13409, %v14012_v10   ;;  %v14018_v41 = vpop.eup %14017  ;;  %v6614_v10 = vmax.f32 %v6062_v4, 0.0  ;;  %v4199_v15 = vsel %vm3787_vm2, %v3774_v24, 0.0  ;;  %14037 = vtanh.f32 %v3473_v54 }
 0x409   :  { %v14020_v28 = vpop.eup %14019  ;;  %v4196_v55 = vsel %vm3787_vm2, %v3773_v42, 0.0  ;;  %14039 = vpow2.f32 %v10558_v44  ;;  %v10557_v24 = vmul.f32 -1.442695, %v4330_v12 }
 0x40a   :  { %12643 = vmatprep.mubr.msk.f32.mxu1 %vm797_vm0, %v7511_v50  ;;  %4191 = vadd.xlane.f32.xlu1 %v4190_v5  ;;  %v18294_v5 = vpop.f32.mrb[6].mxu1  ;;  %v14022_v50 = vpop.eup %14021  ;;  %v3776_v4 = vmul.f32 %v14020_v28, %v16137_v49  ;;  %14041 = vrcp.f32 %v4927_v3  ;;  %v3475_v28 = vadd.f32 %v16055_v48, %v20467_v56  ;;  %v4332_v3 = vadd.f32 %v16902_v57, %v18162_v51 }
 0x40b   :  { %v6963_v43 = vpop.permute.xlu0 %6962  ;;  %12644 = vmatmul.mubr.msk.f32.gmra.mrb[124].mxu1 %vm797_vm0, %v7512_v32  ;;  %v18288_v23 = vpop.xlane.xlu1 %4092  ;;  %v20466_v32 = vld [vmem:[#allocation33_spill] sm:$0xff]  ;;  %v4926_v54 = vadd.f32 1.0, %v14022_v50 }
 0x40c   :  { %7122 = vperm.xlu0 %13409, %v14018_v41   ;;  %v3476_v46 = vadd.f32 %v20466_v32, %v16055_v48  ;;  %v14024_v11 = vpop.eup %14023  ;;  %v7514_v41 = vmul.f32 %v6963_v43, %v6614_v10  ;;  %v18308_v42 = vpop.f32.mrb[7].mxu1  ;;  %v6615_v10 = vmax.f32 %v6067_v25, 0.0  ;;  %v6077_v25 = vadd.f32 %v17872_v29, %v17791_v39  ;;  %v20469_v29 = vld [vmem:[#allocation36_spill] sm:$0xff] }
 0x40d   :  { %v14026_v9 = vpop.eup %14025 }
 0x40e   :  { %4200 = vadd.xlane.f32.xlu1 %v4199_v15  ;;  %v6072_v15 = vadd.f32 %v17845_v22, %v17791_v39  ;;  %v14028_v32 = vpop.eup %14027  ;;  %14043 = vtanh.f32 %v3476_v46  ;;  %v3775_v43 = vmul.f32 %v14026_v9, %v16137_v49  ;;  %v10560_v22 = vmul.f32 -1.442695, %v4333_v62 }
 0x40f   :  { %v6958_v7 = vpop.permute.xlu0 %6957  ;;  %v18298_v58 = vpop.xlane.xlu1 %4089  ;;  %14045 = vpow2.f32 %v10557_v24  ;;  %v4929_v50 = vadd.f32 1.0, %v14028_v32  ;;  %v4335_v32 = vadd.f32 %v16902_v57, %v18178_v1 }
 0x410   :  { %v7513_v20 = vmul.f32 %v6958_v7, %v6613_v35  ;;  %7117 = vperm.xlu0 %13409, %v14024_v11   ;;  %v14030_v44 = vpop.eup %14029  ;;  %14047 = vrcp.f32 %v4926_v54  ;;  %v6616_v46 = vmax.f32 %v6072_v15, 0.0  ;;  %v4205_v11 = vsel %vm3787_vm2, %v3776_v4, 0.0  ;;  %v18320_v7 = vpop.f32.mrb[8].mxu1 }
 0x411   :  { %v14032_v35 = vpop.eup %14031  ;;  %14049 = vtanh.f32 %v3475_v28  ;;  %v4202_v51 = vsel %vm3787_vm2, %v3775_v43, 0.0  ;;  %v10559_v15 = vmul.f32 -1.442695, %v4332_v3  ;;  %v18334_v43 = vpop.f32.mrb[9].mxu1 }
 0x412   :  { %12646 = vmatprep.mubr.msk.f32.mxu1 %vm797_vm0, %v7513_v20  ;;  %4197 = vadd.xlane.f32.xlu1 %v4196_v55  ;;  %v14034_v55 = vpop.eup %14033  ;;  %v20468_v20 = vld [vmem:[#allocation35_spill] sm:$0xff]  ;;  %v3778_v54 = vmul.f32 %v14032_v35, %v16137_v49  ;;  %14051 = vpow2.f32 %v10560_v22  ;;  %v3477_v35 = vadd.f32 %v16055_v48, %v20469_v29 }
 0x413   :  { %v6973_v59 = vpop.permute.xlu0 %6972  ;;  %12647 = vmatmul.mubr.msk.f32.gmra.mrb[126].mxu1 %vm797_vm0, %v7514_v41  ;;  %v18314_v12 = vpop.xlane.xlu1 %4098  ;;  %v3478_v9 = vadd.f32 %v20468_v20, %v16055_v48  ;;  %14053 = vrcp.f32 %v4929_v50  ;;  %v4928_v28 = vadd.f32 1.0, %v14034_v55  ;;  %v4334_v50 = vadd.f32 %v16902_v57, %v18193_v18 }
 0x414   :  { %7132 = vperm.xlu0 %13409, %v14030_v44   ;;  %v14036_v24 = vpop.eup %14035  ;;  %v7516_v44 = vmul.f32 %v6973_v59, %v6616_v46  ;;  %v6617_v46 = vmax.f32 %v6077_v25, 0.0 }
 0x415   :  { %v14038_v4 = vpop.eup %14037  ;;  %14055 = vtanh.f32 %v3478_v9  ;;  %v10561_v29 = vmul.f32 -1.442695, %v4334_v50 }
 0x416   :  { %4206 = vadd.xlane.f32.xlu1 %v4205_v11  ;;  %v6082_v11 = vadd.f32 %v17864_v2, %v17791_v39  ;;  %v14040_v20 = vpop.eup %14039  ;;  %v3777_v59 = vmul.f32 %v14038_v4, %v16137_v49  ;;  %14057 = vpow2.f32 %v10559_v15  ;;  %v10562_v2 = vmul.f32 -1.442695, %v4335_v32  ;;  %v20471_v32 = vld [vmem:[#allocation38_spill] sm:$0xff] }
 0x417   :  { %v6968_v62 = vpop.permute.xlu0 %6967  ;;  %v18324_v41 = vpop.xlane.xlu1 %4095  ;;  %14059 = vrcp.f32 %v4928_v28  ;;  %v4931_v55 = vadd.f32 1.0, %v14040_v20 }
 0x418   :  { %v7515_v56 = vmul.f32 %v6968_v62, %v6615_v10  ;;  %7127 = vperm.xlu0 %13409, %v14036_v24   ;;  %v14042_v22 = vpop.eup %14041  ;;  %v6618_v9 = vmax.f32 %v6082_v11, 0.0  ;;  %v4211_v24 = vsel %vm3787_vm2, %v3778_v54, 0.0  ;;  %v18346_v62 = vpop.f32.mrb[10].mxu1  ;;  %14061 = vtanh.f32 %v3477_v35 }
 0x419   :  { %v14044_v10 = vpop.eup %14043  ;;  %v4208_v28 = vsel %vm3787_vm2, %v3777_v59, 0.0  ;;  %v6087_v54 = vadd.f32 %v17908_v14, %v17791_v39  ;;  %14063 = vpow2.f32 %v10562_v2  ;;  %v4337_v35 = vadd.f32 %v16902_v57, %v18208_v19  ;;  %v18362_v59 = vpop.f32.mrb[11].mxu1  ;;  %v7617_v14 = vld [vmem:[%s20268_s6 + $0x10] sm:$0xff] }
 0x41a   :  { %12649 = vmatprep.mubr.msk.f32.mxu1 %vm797_vm0, %v7515_v56  ;;  %4203 = vadd.xlane.f32.xlu1 %v4202_v51  ;;  %v14046_v51 = vpop.eup %14045  ;;  %v20470_v56 = vld [vmem:[#allocation37_spill] sm:$0xff]  ;;  %v3780_v11 = vmul.f32 %v14044_v10, %v16137_v49  ;;  %14065 = vrcp.f32 %v4931_v55 }
 0x41b   :  { %v6983_v1 = vpop.permute.xlu0 %6982  ;;  %12650 = vmatmul.mubr.msk.f32.gmra.mrb[128].mxu1 %vm797_vm0, %v7516_v44  ;;  %v18340_v3 = vpop.xlane.xlu1 %4104  ;;  %v3480_v4 = vadd.f32 %v20470_v56, %v16055_v48  ;;  %v3479_v44 = vadd.f32 %v16055_v48, %v20471_v32  ;;  %v6092_v32 = vadd.f32 %v17890_v34, %v17791_v39  ;;  %v7618_v10 = vld [vmem:[%s20268_s6 + $0x18] sm:$0xff]  ;;  %v20472_v34 = vld [vmem:[#allocation39_spill] sm:$0xff] }
 0x41c   :  { %7142 = vperm.xlu0 %13409, %v14042_v22   ;;  %v14048_v15 = vpop.eup %14047  ;;  %v7518_v56 = vmul.f32 %v6983_v1, %v6618_v9  ;;  %v13092_v19 = vpack.c.bf16 %v7618_v10, %v7617_v14  ;;  %v3482_v50 = vadd.f32 %v20472_v34, %v16055_v48 }
 0x41d   :  { %v14050_v20 = vpop.eup %14049  ;;  %14067 = vtanh.f32 %v3480_v4  ;;  %v4336_v4 = vadd.f32 %v16902_v57, %v18220_v36 }
 0x41e   :  { %4212 = vadd.xlane.f32.xlu1 %v4211_v24  ;;  %v4930_v24 = vadd.f32 1.0, %v14046_v51  ;;  %v14052_v2 = vpop.eup %14051  ;;  %14069 = vtanh.f32 %v3479_v44  ;;  %v3779_v9 = vmul.f32 %v14050_v20, %v16137_v49  ;;  %13093 = vmatprep.subr.bf16.mxu1 %v13092_v19 }
 0x41f   :  { %v6978_v18 = vpop.permute.xlu0 %6977  ;;  %v18352_v25 = vpop.xlane.xlu1 %4101  ;;  %14071 = vpow2.f32 %v10561_v29  ;;  %v4933_v44 = vadd.f32 1.0, %v14052_v2  ;;  %13095 = vmatpush3.bf16.msra.mxu1 %v13092_v19  ;;  %v4339_v2 = vadd.f32 %v16902_v57, %v18236_v53 }
 0x420   :  { %v7517_v22 = vmul.f32 %v6978_v18, %v6617_v46  ;;  %7137 = vperm.xlu0 %13409, %v14048_v15   ;;  %v14054_v1 = vpop.eup %14053  ;;  %v10564_v15 = vmul.f32 -1.442695, %v4337_v35  ;;  %v6619_v18 = vmax.f32 %v6087_v54, 0.0  ;;  %14073 = vrcp.f32 %v4930_v24 }
 0x421   :  { %v14056_v51 = vpop.eup %14055  ;;  %14075 = vtanh.f32 %v3482_v50  ;;  %v4214_v36 = vsel %vm3787_vm2, %v3779_v9, 0.0  ;;  %v6097_v54 = vadd.f32 %v17944_v30, %v17791_v39  ;;  %v6102_v50 = vadd.f32 %v17926_v8, %v17791_v39  ;;  %v20473_v30 = vld [vmem:[#allocation40_spill] sm:$0xff] }
 0x422   :  { %12652 = vmatprep.mubr.msk.f32.mxu1 %vm797_vm0, %v7517_v22  ;;  %4209 = vadd.xlane.f32.xlu1 %v4208_v28  ;;  %v6620_v28 = vmax.f32 %v6092_v32, 0.0  ;;  %v4217_v22 = vsel %vm3787_vm2, %v3780_v11, 0.0  ;;  %v14058_v14 = vpop.eup %14057  ;;  %v3782_v24 = vmul.f32 %v14056_v51, %v16137_v49  ;;  %14077 = vpow2.f32 %v10564_v15 }
 0x423   :  { %v6993_v46 = vpop.permute.xlu0 %6992  ;;  %12653 = vmatmul.mubr.msk.f32.gmra.mrb[130].mxu1 %vm797_vm0, %v7518_v56  ;;  %v18374_v55 = vpop.xlane.xlu1 %4110  ;;  %v10563_v32 = vmul.f32 -1.442695, %v4336_v4  ;;  %14079 = vrcp.f32 %v4933_v44  ;;  %v3481_v51 = vadd.f32 %v16055_v48, %v20473_v30  ;;  %v10566_v44 = vmul.f32 -1.442695, %v4339_v2 }
 0x424   :  { %7152 = vperm.xlu0 %13409, %v14054_v1   ;;  %v18380_v56 = vpop.f32.mrb[12].mxu1  ;;  %v14060_v29 = vpop.eup %14059  ;;  %v4932_v1 = vadd.f32 1.0, %v14058_v14  ;;  %v7520_v34 = vmul.f32 %v6993_v46, %v6620_v28  ;;  %v4338_v28 = vadd.f32 %v16902_v57, %v18246_v26  ;;  %v6621_v48 = vmax.f32 %v6097_v54, 0.0 }
 0x425   :  { %v18382_v20 = vpop.f32.mrb[13].mxu1  ;;  %v14062_v11 = vpop.eup %14061  ;;  %14081 = vpow2.f32 %v10563_v32  ;;  %v4342_v2 = vadd.f32 %v16902_v57, %v18298_v58  ;;  %v4341_v30 = vadd.f32 %v16902_v57, %v18262_v37 }
 0x426   :  { %4218 = vadd.xlane.f32.xlu1 %v4217_v22  ;;  %v18394_v9 = vpop.f32.mrb[14].mxu1  ;;  %v14064_v22 = vpop.eup %14063  ;;  %v3781_v46 = vmul.f32 %v14062_v11, %v16137_v49  ;;  %14083 = vrcp.f32 %v4932_v1 }
 0x427   :  { %v6988_v35 = vpop.permute.xlu0 %6987  ;;  %v18384_v10 = vpop.xlane.xlu1 %4107  ;;  %14085 = vtanh.f32 %v3481_v51 }
 0x428   :  { %v7519_v19 = vmul.f32 %v6988_v35, %v6619_v18  ;;  %7147 = vperm.xlu0 %13409, %v14060_v29   ;;  %v18399_v15 = vpop.f32.mrb[15].mxu1  ;;  %v14066_v53 = vpop.eup %14065  ;;  %v4935_v29 = vadd.f32 1.0, %v14064_v22  ;;  %v6622_v35 = vmax.f32 %v6102_v50, 0.0  ;;  %v4220_v1 = vsel %vm3787_vm2, %v3781_v46, 0.0 }
 0x429   :  { %v14068_v8 = vpop.eup %14067  ;;  %v6107_v50 = vadd.f32 %v17980_v52, %v17791_v39  ;;  %14087 = vpow2.f32 %v10566_v44  ;;  %v10565_v22 = vmul.f32 -1.442695, %v4338_v28  ;;  %v10569_v44 = vmul.f32 -1.442695, %v4342_v2 }
 0x42a   :  { %12655 = vmatprep.mubr.msk.f32.mxu1 %vm797_vm0, %v7519_v19  ;;  %4215 = vadd.xlane.f32.xlu1 %v4214_v36  ;;  %v14070_v14 = vpop.eup %14069  ;;  %v4223_v36 = vsel %vm3787_vm2, %v3782_v24, 0.0  ;;  %v18408_v19 = vpop.f32.mrb[16].mxu1  ;;  %v3784_v24 = vmul.f32 %v14068_v8, %v16137_v49  ;;  %14089 = vrcp.f32 %v4935_v29  ;;  %v4347_v28 = vadd.f32 %v16902_v57, %v18340_v3 }
 0x42b   :  { %v7003_v4 = vpop.permute.xlu0 %7002  ;;  %12656 = vmatmul.mubr.msk.f32.gmra.mrb[132].mxu1 %vm797_vm0, %v7520_v34  ;;  %v18402_v18 = vpop.xlane.xlu1 %4116  ;;  %20474 = vst [vmem:[#allocation46_spill] sm:$0xff] %v18408_v19  ;;  %v6112_v19 = vadd.f32 %v17962_v61, %v17791_v39  ;;  %v3783_v52 = vmul.f32 %v14070_v14, %v16137_v49  ;;  %14091 = vpow2.f32 %v10565_v22  ;;  %v10568_v61 = vmul.f32 -1.442695, %v4341_v30 }
 0x42c   :  { %7162 = vperm.xlu0 %13409, %v14066_v53   ;;  %v14072_v34 = vpop.eup %14071  ;;  %v18410_v11 = vpop.f32.mrb[17].mxu1  ;;  %v4340_v29 = vadd.f32 %v16902_v57, %v18272_v63  ;;  %v10574_v63 = vmul.f32 -1.442695, %v4347_v28 }
 0x42d   :  { %20475 = vst [vmem:[#allocation47_spill] sm:$0xff] %v18410_v11  ;;  %v14074_v32 = vpop.eup %14073  ;;  %v4934_v58 = vadd.f32 1.0, %v14072_v34  ;;  %v18424_v46 = vpop.f32.mrb[18].mxu1  ;;  %v6624_v34 = vmax.f32 %v6112_v19, 0.0  ;;  %v4226_v3 = vsel %vm3787_vm2, %v3783_v52, 0.0 }
 0x42e   :  { %4224 = vadd.xlane.f32.xlu1 %v4223_v36  ;;  %v14076_v53 = vpop.eup %14075  ;;  %v7522_v36 = vmul.f32 %v7003_v4, %v6622_v35  ;;  %v18428_v8 = vpop.f32.mrb[19].mxu1  ;;  %v6623_v35 = vmax.f32 %v6107_v50, 0.0  ;;  %v4349_v50 = vadd.f32 %v16902_v57, %v18374_v55  ;;  %v6122_v55 = vadd.f32 %v17998_v33, %v17791_v39 }
 0x42f   :  { %v6998_v26 = vpop.permute.xlu0 %6997  ;;  %v18414_v54 = vpop.xlane.xlu1 %4113  ;;  %14093 = vrcp.f32 %v4934_v58  ;;  %v10567_v58 = vmul.f32 -1.442695, %v4340_v29 }
 0x430   :  { %v7521_v51 = vmul.f32 %v6998_v26, %v6621_v48  ;;  %7157 = vperm.xlu0 %13409, %v14074_v32   ;;  %v14078_v11 = vpop.eup %14077  ;;  %v4229_v32 = vsel %vm3787_vm2, %v3784_v24, 0.0  ;;  %v18436_v2 = vpop.f32.mrb[20].mxu1  ;;  %14095 = vpow2.f32 %v10569_v44  ;;  %v6117_v24 = vadd.f32 %v18016_v0, %v17791_v39 }
 0x431   :  { %v14080_v37 = vpop.eup %14079  ;;  %v4937_v14 = vadd.f32 1.0, %v14078_v11  ;;  %v18440_v22 = vpop.f32.mrb[21].mxu1  ;;  %14097 = vpow2.f32 %v10568_v61  ;;  %v10576_v29 = vmul.f32 -1.442695, %v4349_v50 }
 0x432   :  { %12658 = vmatprep.mubr.msk.f32.mxu1 %vm797_vm0, %v7521_v51  ;;  %4221 = vadd.xlane.f32.xlu1 %v4220_v1  ;;  %v14082_v26 = vpop.eup %14081  ;;  %v3786_v1 = vmul.f32 %v14076_v53, %v16137_v49  ;;  %v4343_v53 = vadd.f32 %v16902_v57, %v18288_v23  ;;  %v18452_v44 = vpop.f32.mrb[22].mxu1  ;;  %v4351_v23 = vadd.f32 %v16902_v57, %v18402_v18 }
 0x433   :  { %v7013_v48 = vpop.permute.xlu0 %7012  ;;  %12659 = vmatmul.mubr.msk.f32.gmra.mrb[134].mxu1 %vm797_vm0, %v7522_v36  ;;  %v4123_v4 = vpop.xlane.xlu1 %4122  ;;  %14099 = vrcp.f32 %v4937_v14  ;;  %v4936_v52 = vadd.f32 1.0, %v14082_v26 }
 0x434   :  { %7172 = vperm.xlu0 %13409, %v14080_v37   ;;  %v14084_v30 = vpop.eup %14083  ;;  %v7524_v37 = vmul.f32 %v7013_v48, %v6624_v34  ;;  %v18455_v0 = vpop.f32.mrb[23].mxu1  ;;  %14101 = vpow2.f32 %v10574_v63  ;;  %v10570_v14 = vmul.f32 -1.442695, %v4343_v53  ;;  %v4345_v34 = vadd.f32 %v16902_v57, %v18314_v12 }
 0x435   :  { %v14086_v51 = vpop.eup %14085  ;;  %14103 = vpow2.f32 %v10567_v58  ;;  %v18464_v63 = vpop.f32.mrb[24].mxu1  ;;  %v4353_v50 = vadd.f32 %v16902_v57, %v4123_v4  ;;  %v10578_v12 = vmul.f32 -1.442695, %v4351_v23  ;;  %v6127_v4 = vadd.f32 %v18052_v47, %v17791_v39 }
 0x436   :  { %4230 = vadd.xlane.f32.xlu1 %v4229_v32  ;;  %v14088_v28 = vpop.eup %14087  ;;  %v3785_v33 = vmul.f32 %v14086_v51, %v16137_v49  ;;  %v6625_v32 = vmax.f32 %v6117_v24, 0.0  ;;  %14105 = vrcp.f32 %v4936_v52  ;;  %v4344_v51 = vadd.f32 %v16902_v57, %v18324_v41 }
 0x437   :  { %v7008_v11 = vpop.permute.xlu0 %7007  ;;  %v18444_v19 = vpop.xlane.xlu1 %4119  ;;  %v4939_v26 = vadd.f32 1.0, %v14088_v28  ;;  %14107 = vpow2.f32 %v10576_v29  ;;  %v6132_v41 = vadd.f32 %v18034_v17, %v17791_v39  ;;  %v4346_v29 = vadd.f32 %v16902_v57, %v18352_v25 }
 0x438   :  { %v7523_v36 = vmul.f32 %v7008_v11, %v6623_v35  ;;  %7167 = vperm.xlu0 %13409, %v14084_v30   ;;  %v14090_v61 = vpop.eup %14089  ;;  %v4235_v30 = vsel %vm3787_vm2, %v3786_v1, 0.0  ;;  %v18467_v11 = vpop.f32.mrb[25].mxu1  ;;  %v4232_v53 = vsel %vm3787_vm2, %v3785_v33, 0.0  ;;  %14109 = vpow2.f32 %v10570_v14 }
 0x439   :  { %v14092_v18 = vpop.eup %14091  ;;  %v10572_v1 = vmul.f32 -1.442695, %v4345_v34  ;;  %14111 = vrcp.f32 %v4939_v26  ;;  %v18478_v28 = vpop.f32.mrb[26].mxu1  ;;  %v10580_v23 = vmul.f32 -1.442695, %v4353_v50  ;;  %v6627_v26 = vmax.f32 %v6127_v4, 0.0 }
 0x43a   :  { %12661 = vmatprep.mubr.msk.f32.mxu1 %vm797_vm0, %v7523_v36  ;;  %4227 = vadd.xlane.f32.xlu1 %v4226_v3  ;;  %v6626_v3 = vmax.f32 %v6122_v55, 0.0  ;;  %v14094_v49 = vpop.eup %14093  ;;  %v18483_v33 = vpop.f32.mrb[27].mxu1  ;;  %v10571_v14 = vmul.f32 -1.442695, %v4344_v51  ;;  %14113 = vpow2.f32 %v10578_v12 }
 0x43b   :  { %v7023_v35 = vpop.permute.xlu0 %7022  ;;  %12662 = vmatmul.mubr.msk.f32.gmra.mrb[136].mxu1 %vm797_vm0, %v7524_v37  ;;  %v4129_v48 = vpop.xlane.xlu1 %4128  ;;  %v4938_v37 = vadd.f32 1.0, %v14092_v18  ;;  %14115 = vpow2.f32 %v10572_v1 }
 0x43c   :  { %7182 = vperm.xlu0 %13409, %v14090_v61   ;;  %v14096_v52 = vpop.eup %14095  ;;  %v7526_v55 = vmul.f32 %v7023_v35, %v6626_v3  ;;  %v4355_v35 = vadd.f32 %v16902_v57, %v4129_v48  ;;  %v18487_v18 = vpop.f32.mrb[28].mxu1 }
 0x43d   :  { %v14098_v61 = vpop.eup %14097  ;;  %14117 = vrcp.f32 %v4938_v37  ;;  %v18490_v48 = vpop.f32.mrb[29].mxu1  ;;  %v6137_v37 = vadd.f32 %v18096_v45, %v17791_v39 }
 0x43e   :  { %4236 = vadd.xlane.f32.xlu1 %v4235_v30  ;;  %v14100_v47 = vpop.eup %14099  ;;  %v4941_v3 = vadd.f32 1.0, %v14098_v61  ;;  %v6628_v30 = vmax.f32 %v6132_v41, 0.0  ;;  %14119 = vpow2.f32 %v10580_v23  ;;  %v18500_v23 = vpop.f32.mrb[30].mxu1 }
 0x43f   :  { %v7018_v24 = vpop.permute.xlu0 %7017  ;;  %v18471_v58 = vpop.xlane.xlu1 %4125  ;;  %14121 = vpow2.f32 %v10571_v14 }
 0x440   :  { %v7525_v36 = vmul.f32 %v7018_v24, %v6625_v32  ;;  %7177 = vperm.xlu0 %13409, %v14094_v49   ;;  %v4942_v32 = vadd.f32 1.0, %v14096_v52  ;;  %v14102_v25 = vpop.eup %14101  ;;  %v10573_v49 = vmul.f32 -1.442695, %v4346_v29  ;;  %v4348_v24 = vadd.f32 %v16902_v57, %v18384_v10 }
 0x441   :  { %v14104_v50 = vpop.eup %14103  ;;  %v4947_v4 = vadd.f32 1.0, %v14102_v25  ;;  %v6142_v29 = vadd.f32 %v18070_v13, %v17791_v39 }
 0x442   :  { %12664 = vmatprep.mubr.msk.f32.mxu1 %vm797_vm0, %v7525_v36  ;;  %4233 = vadd.xlane.f32.xlu1 %v4232_v53  ;;  %v14106_v12 = vpop.eup %14105  ;;  %v10582_v53 = vmul.f32 -1.442695, %v4355_v35  ;;  %14123 = vrcp.f32 %v4942_v32  ;;  %v4940_v41 = vadd.f32 1.0, %v14104_v50  ;;  %v18505_v35 = vpop.f32.mrb[31].mxu1 }
 0x443   :  { %v7033_v34 = vpop.permute.xlu0 %7032  ;;  %12665 = vmatmul.mubr.msk.f32.gmra.mrb[138].mxu1 %vm797_vm0, %v7526_v55  ;;  %v4135_v17 = vpop.xlane.xlu1 %4134  ;;  %14125 = vrcp.f32 %v4941_v3 }
 0x444   :  { %7192 = vperm.xlu0 %13409, %v14100_v47   ;;  %v4357_v51 = vadd.f32 %v16902_v57, %v4135_v17  ;;  %v14108_v55 = vpop.eup %14107  ;;  %v7528_v61 = vmul.f32 %v7033_v34, %v6628_v30  ;;  %14127 = vpow2.f32 %v10573_v49  ;;  %v4350_v47 = vadd.f32 %v16902_v57, %v18414_v54  ;;  %v18509_v50 = vpop.f32.mrb[32].mxu1 }
 0x445   :  { %v14110_v10 = vpop.eup %14109  ;;  %v10575_v17 = vmul.f32 -1.442695, %v4348_v24  ;;  %14129 = vpow2.f32 %v10582_v53  ;;  %v4949_v13 = vadd.f32 1.0, %v14108_v55  ;;  %v6630_v30 = vmax.f32 %v6142_v29, 0.0  ;;  %v18513_v24 = vpop.f32.mrb[33].mxu1 }
 0x446   :  { %v10584_v14 = vmul.f32 -1.442695, %v4357_v51  ;;  %v14112_v45 = vpop.eup %14111  ;;  %14131 = vrcp.f32 %v4947_v4  ;;  %v4943_v54 = vadd.f32 1.0, %v14110_v10  ;;  %v10577_v51 = vmul.f32 -1.442695, %v4350_v47 }
 0x447   :  { %v7028_v1 = vpop.permute.xlu0 %7027  ;;  %v18494_v36 = vpop.xlane.xlu1 %4131  ;;  %14133 = vrcp.f32 %v4940_v41  ;;  %v6152_v47 = vadd.f32 %v18116_v31, %v17791_v39 }
 0x448   :  { %v7527_v52 = vmul.f32 %v7028_v1, %v6627_v26  ;;  %7187 = vperm.xlu0 %13409, %v14106_v12   ;;  %v6629_v26 = vmax.f32 %v6137_v37, 0.0  ;;  %v14114_v3 = vpop.eup %14113  ;;  %v4352_v12 = vadd.f32 %v16902_v57, %v18444_v19  ;;  %14135 = vpow2.f32 %v10584_v14  ;;  %v18519_v14 = vpop.f32.mrb[34].mxu1 }
 0x449   :  { %v14116_v49 = vpop.eup %14115  ;;  %14137 = vpow2.f32 %v10575_v17  ;;  %v4951_v55 = vadd.f32 1.0, %v14114_v3 }
 0x44a   :  { %12667 = vmatprep.mubr.msk.f32.mxu1 %vm797_vm0, %v7527_v52  ;;  %v14118_v53 = vpop.eup %14117  ;;  %14139 = vrcp.f32 %v4949_v13  ;;  %v4945_v10 = vadd.f32 1.0, %v14116_v49  ;;  %v10579_v17 = vmul.f32 -1.442695, %v4352_v12 }
 0x44b   :  { %v7043_v32 = vpop.permute.xlu0 %7042  ;;  %12668 = vmatmul.mubr.msk.f32.gmra.mrb[140].mxu1 %vm797_vm0, %v7528_v61  ;;  %v4141_v34 = vpop.xlane.xlu1 %4140  ;;  %v6147_v61 = vadd.f32 %v18134_v40, %v17791_v39  ;;  %14141 = vrcp.f32 %v4943_v54  ;;  %v4354_v40 = vadd.f32 %v16902_v57, %v18471_v58  ;;  %v4356_v58 = vadd.f32 %v16902_v57, %v18494_v36 }
 0x44c   :  { %7202 = vperm.xlu0 %13409, %v14112_v45   ;;  %v4359_v25 = vadd.f32 %v16902_v57, %v4141_v34  ;;  %v14120_v37 = vpop.eup %14119  ;;  %v7530_v19 = vmul.f32 %v7043_v32, %v6630_v30  ;;  %14143 = vpow2.f32 %v10577_v51  ;;  %v18522_v34 = vpop.f32.mrb[35].mxu1  ;;  %v6632_v51 = vmax.f32 %v6152_v47, 0.0 }
 0x44d   :  { %v14122_v29 = vpop.eup %14121  ;;  %v6631_v3 = vmax.f32 %v6147_v61, 0.0  ;;  %v18528_v12 = vpop.f32.mrb[36].mxu1  ;;  %v6157_v47 = vadd.f32 %v18171_v38, %v17791_v39 }
 0x44e   :  { %v10586_v1 = vmul.f32 -1.442695, %v4359_v25  ;;  %v14124_v45 = vpop.eup %14123  ;;  %v4944_v49 = vadd.f32 1.0, %v14122_v29 }
 0x44f   :  { %v7038_v4 = vpop.permute.xlu0 %7037  ;;  %v4138_v52 = vpop.xlane.xlu1 %4137 }
 0x450   :  { %v7529_v41 = vmul.f32 %v7038_v4, %v6629_v26  ;;  %7197 = vperm.xlu0 %13409, %v14118_v53   ;;  %v14126_v13 = vpop.eup %14125  ;;  %v4953_v26 = vadd.f32 1.0, %v14120_v37  ;;  %14145 = vpow2.f32 %v10586_v1  ;;  %v18532_v4 = vpop.f32.mrb[37].mxu1 }
 0x451   :  { %v14128_v31 = vpop.eup %14127  ;;  %14147 = vrcp.f32 %v4951_v55  ;;  %v10581_v55 = vmul.f32 -1.442695, %v4354_v40 }
 0x452   :  { %12670 = vmatprep.mubr.msk.f32.mxu1 %vm797_vm0, %v7529_v41  ;;  %v14130_v30 = vpop.eup %14129  ;;  %14149 = vrcp.f32 %v4945_v10  ;;  %v4946_v36 = vadd.f32 1.0, %v14128_v31 }
 0x453   :  { %v7053_v25 = vpop.permute.xlu0 %7052  ;;  %12671 = vmatmul.mubr.msk.f32.gmra.mrb[142].mxu1 %vm797_vm0, %v7530_v19  ;;  %v4147_v32 = vpop.xlane.xlu1 %4146  ;;  %7217 = vperm.xlu1 %13410, %v14124_v45   ;;  %14151 = vpow2.f32 %v10579_v17  ;;  %v4955_v10 = vadd.f32 1.0, %v14130_v30 }
 0x454   :  { %7212 = vperm.xlu0 %13409, %v14126_v13   ;;  %v4361_v54 = vadd.f32 %v16902_v57, %v4147_v32  ;;  %v14132_v53 = vpop.eup %14131  ;;  %14153 = vrcp.f32 %v4953_v26  ;;  %v7532_v17 = vmul.f32 %v7053_v25, %v6632_v51  ;;  %v6162_v13 = vadd.f32 %v18154_v27, %v17791_v39  ;;  %v18538_v26 = vpop.f32.mrb[38].mxu1 }
 0x455   :  { %v14134_v37 = vpop.eup %14133  ;;  %v10583_v32 = vmul.f32 -1.442695, %v4356_v58  ;;  %v6633_v27 = vmax.f32 %v6157_v47, 0.0 }
 0x456   :  { %v10588_v1 = vmul.f32 -1.442695, %v4361_v54  ;;  %v14136_v19 = vpop.eup %14135  ;;  %v4358_v54 = vadd.f32 %v16902_v57, %v4138_v52  ;;  %v6634_v58 = vmax.f32 %v6162_v13, 0.0 }
 0x457   :  { %v7048_v41 = vpop.permute.xlu0 %7047  ;;  %v4144_v61 = vpop.xlane.xlu1 %4143  ;;  %7242 = vperm.xlu1 %13410, %v14132_v53   ;;  %v4957_v38 = vadd.f32 1.0, %v14136_v19 }
 0x458   :  { %14155 = vpow2.f32 %v10588_v1  ;;  %v7531_v29 = vmul.f32 %v7048_v41, %v6631_v3  ;;  %7207 = vperm.xlu0 %13409, %v14134_v37   ;;  %v14138_v45 = vpop.eup %14137  ;;  %v18542_v3 = vpop.f32.mrb[39].mxu1  ;;  %v4360_v41 = vadd.f32 %v16902_v57, %v4144_v61 }
 0x459   :  { %14157 = vrcp.f32 %v4944_v49  ;;  %v14140_v40 = vpop.eup %14139  ;;  %v4948_v52 = vadd.f32 1.0, %v14138_v45  ;;  %v18546_v1 = vpop.f32.mrb[40].mxu1 }
 0x45a   :  { %12673 = vmatprep.mubr.msk.f32.mxu1 %vm797_vm0, %v7531_v29  ;;  %v14142_v30 = vpop.eup %14141  ;;  %14159 = vpow2.f32 %v10581_v55  ;;  %v10585_v55 = vmul.f32 -1.442695, %v4358_v54  ;;  %v18549_v29 = vpop.f32.mrb[41].mxu1  ;;  %v6172_v54 = vadd.f32 %v18186_v60, %v17791_v39 }
 0x45b   :  { %v7063_v53 = vpop.permute.xlu0 %7062  ;;  %12674 = vmatmul.mubr.msk.f32.gmra.mrb[144].mxu1 %vm797_vm0, %v7532_v17  ;;  %v4153_v25 = vpop.xlane.xlu1 %4152  ;;  %7252 = vperm.xlu1 %13410, %v14140_v40   ;;  %14161 = vrcp.f32 %v4955_v10 }
 0x45c   :  { %v14144_v31 = vpop.eup %14143  ;;  %7222 = vperm.xlu0 %13409, %v14142_v30   ;;  %v4363_v49 = vadd.f32 %v16902_v57, %v4153_v25  ;;  %14163 = vrcp.f32 %v4946_v36  ;;  %v6167_v36 = vadd.f32 %v18203_v6, %v17791_v39  ;;  %v7534_v61 = vmul.f32 %v7063_v53, %v6634_v58  ;;  %v18555_v25 = vpop.f32.mrb[42].mxu1 }
 0x45d   :  { %v14146_v51 = vpop.eup %14145  ;;  %14165 = vpow2.f32 %v10583_v32  ;;  %v4950_v32 = vadd.f32 1.0, %v14144_v31  ;;  %v10587_v6 = vmul.f32 -1.442695, %v4360_v41  ;;  %v18565_v53 = vpop.f32.mrb[43].mxu1 }
 0x45e   :  { %v14148_v37 = vpop.eup %14147  ;;  %v10590_v19 = vmul.f32 -1.442695, %v4363_v49  ;;  %14167 = vrcp.f32 %v4957_v38  ;;  %v4959_v30 = vadd.f32 1.0, %v14146_v51  ;;  %v7619_v38 = vld [vmem:[%s20268_s6 + $0x20] sm:$0xff]  ;;  %v18569_v41 = vpop.f32.mrb[44].mxu1 }
 0x45f   :  { %v14150_v17 = vpop.eup %14149  ;;  %v7058_v10 = vpop.permute.xlu0 %7057  ;;  %7262 = vperm.xlu1 %13410, %v14148_v37  }
 0x460   :  { %v4150_v47 = vpop.xlane.xlu1 %4149  ;;  %v14152_v40 = vpop.eup %14151  ;;  %14169 = vpow2.f32 %v10590_v19  ;;  %v7533_v45 = vmul.f32 %v7058_v10, %v6633_v27  ;;  %7232 = vperm.xlu0 %13409, %v14150_v17   ;;  %v7620_v27 = vld [vmem:[%s20268_s6 + $0x28] sm:$0xff]  ;;  %v6635_v19 = vmax.f32 %v6167_v36, 0.0 }
 0x461   :  { %v14154_v13 = vpop.eup %14153  ;;  %14171 = vrcp.f32 %v4948_v52  ;;  %v4362_v51 = vadd.f32 %v16902_v57, %v4150_v47  ;;  %v13096_v60 = vpack.c.bf16 %v7620_v27, %v7619_v38  ;;  %v4952_v10 = vadd.f32 1.0, %v14152_v40 }
 0x462   :  { %v14156_v49 = vpop.eup %14155  ;;  %14173 = vpow2.f32 %v10585_v55  ;;  %12676 = vmatprep.mubr.msk.f32.mxu1 %vm797_vm0, %v7533_v45  ;;  %v6636_v47 = vmax.f32 %v6172_v54, 0.0  ;;  %v18571_v45 = vpop.f32.mrb[45].mxu1 }
 0x463   :  { %v14158_v31 = vpop.eup %14157  ;;  %v4961_v52 = vadd.f32 1.0, %v14156_v49  ;;  %v7073_v58 = vpop.permute.xlu0 %7072  ;;  %12677 = vmatmul.mubr.msk.f32.gmra.mrb[146].mxu1 %vm797_vm0, %v7534_v61  ;;  %7272 = vperm.xlu1 %13410, %v14154_v13   ;;  %14175 = vrcp.f32 %v4959_v30  ;;  %v10589_v61 = vmul.f32 -1.442695, %v4362_v51 }
 0x464   :  { %v4159_v37 = vpop.xlane.xlu1 %4158  ;;  %7227 = vperm.xlu0 %13409, %v14158_v31   ;;  %13097 = vmatprep.subr.bf16.mxu1 %v13096_v60  ;;  %v14160_v17 = vpop.eup %14159  ;;  %14177 = vrcp.f32 %v4950_v32  ;;  %v6177_v31 = vadd.f32 %v18230_v21, %v17791_v39 }
 0x465   :  { %v4365_v55 = vadd.f32 %v16902_v57, %v4159_v37  ;;  %13099 = vmatpush3.bf16.msra.mxu1 %v13096_v60  ;;  %v14162_v38 = vpop.eup %14161  ;;  %14179 = vpow2.f32 %v10587_v6  ;;  %v18573_v13 = vpop.f32.mrb[46].mxu1  ;;  %v4954_v40 = vadd.f32 1.0, %v14160_v17  ;;  %v7536_v37 = vmul.f32 %v7073_v58, %v6636_v47 }
 0x466   :  { %20476 = vst [vmem:[#allocation9_spill] sm:$0xff] %v18573_v13  ;;  %v14164_v30 = vpop.eup %14163  ;;  %14181 = vrcp.f32 %v4961_v52  ;;  %v18578_v6 = vpop.f32.mrb[47].mxu1  ;;  %v20477_v52 = vld [vmem:[#allocation7_spill] sm:$0xff] }
 0x467   :  { %v10592_v27 = vmul.f32 -1.442695, %v4365_v55  ;;  %v7068_v36 = vpop.permute.xlu0 %7067  ;;  %7282 = vperm.xlu1 %13410, %v14162_v38   ;;  %v14166_v32 = vpop.eup %14165  ;;  %v6182_v55 = vadd.f32 %v20477_v52, %v17791_v39 }
 0x468   :  { %v4156_v49 = vpop.xlane.xlu1 %4155  ;;  %v7535_v54 = vmul.f32 %v7068_v36, %v6635_v19  ;;  %7237 = vperm.xlu0 %13409, %v14164_v30   ;;  %v14168_v51 = vpop.eup %14167 }
 0x469   :  { %14183 = vpow2.f32 %v10592_v27  ;;  %v4364_v60 = vadd.f32 %v16902_v57, %v4156_v49  ;;  %v18582_v13 = vpop.f32.mrb[48].mxu1 }
 0x46a   :  { %14185 = vrcp.f32 %v4952_v10  ;;  %20478 = vst [vmem:[#allocation48_spill] sm:$0xff] %v18582_v13  ;;  %v14170_v38 = vpop.eup %14169  ;;  %12679 = vmatprep.mubr.msk.f32.mxu1 %vm797_vm0, %v7535_v54  ;;  %v18585_v21 = vpop.f32.mrb[49].mxu1  ;;  %v6637_v10 = vmax.f32 %v6177_v31, 0.0  ;;  %v6638_v54 = vmax.f32 %v6182_v55, 0.0  ;;  %v20483_v55 = vld [vmem:[#allocation45_spill] sm:$0xff] }
 0x46b   :  { %14187 = vpow2.f32 %v10589_v61  ;;  %20479 = vst [vmem:[#allocation49_spill] sm:$0xff] %v18585_v21  ;;  %v14172_v19 = vpop.eup %14171  ;;  %v4963_v17 = vadd.f32 1.0, %v14170_v38  ;;  %v10591_v27 = vmul.f32 -1.442695, %v4364_v60  ;;  %v7083_v30 = vpop.permute.xlu0 %7082  ;;  %12680 = vmatmul.mubr.msk.f32.gmra.mrb[148].mxu1 %vm797_vm0, %v7536_v37  ;;  %7292 = vperm.xlu1 %13410, %v14168_v51   ;;  %v4956_v61 = vadd.f32 1.0, %v14166_v32 }
 0x46c   :  { %v4165_v36 = vpop.xlane.xlu1 %4164  ;;  %v14174_v58 = vpop.eup %14173  ;;  %14189 = vrcp.f32 %v4954_v40  ;;  %7247 = vperm.xlu0 %13409, %v14172_v19  }
 0x46d   :  { %v4367_v47 = vadd.f32 %v16902_v57, %v4165_v36  ;;  %v18589_v49 = vpop.f32.mrb[50].mxu1  ;;  %14191 = vrcp.f32 %v4963_v17  ;;  %v14176_v38 = vpop.eup %14175  ;;  %v4958_v21 = vadd.f32 1.0, %v14174_v58  ;;  %v6187_v17 = vadd.f32 %v20483_v55, %v17791_v39  ;;  %v20485_v58 = vld [vmem:[#allocation44_spill] sm:$0xff] }
 0x46e   :  { %20480 = vst [vmem:[#allocation10_spill] sm:$0xff] %v18589_v49  ;;  %v18591_v52 = vpop.f32.mrb[51].mxu1  ;;  %v14178_v37 = vpop.eup %14177  ;;  %14193 = vpow2.f32 %v10591_v27  ;;  %v6192_v27 = vadd.f32 %v20485_v58, %v17791_v39 }
 0x46f   :  { %20481 = vst [vmem:[#allocation50_spill] sm:$0xff] %v18591_v52  ;;  %v10594_v60 = vmul.f32 -1.442695, %v4367_v47  ;;  %v18593_v13 = vpop.f32.mrb[52].mxu1  ;;  %v7078_v51 = vpop.permute.xlu0 %7077  ;;  %7302 = vperm.xlu1 %13410, %v14176_v38  }
 0x470   :  { %20482 = vst [vmem:[#allocation51_spill] sm:$0xff] %v18593_v13  ;;  %v4162_v40 = vpop.xlane.xlu1 %4161  ;;  %v14180_v31 = vpop.eup %14179  ;;  %v7537_v19 = vmul.f32 %v7078_v51, %v6637_v10  ;;  %7257 = vperm.xlu0 %13409, %v14178_v37   ;;  %v7538_v13 = vmul.f32 %v7083_v30, %v6638_v54 }
 0x471   :  { %14195 = vpow2.f32 %v10594_v60  ;;  %v4366_v32 = vadd.f32 %v16902_v57, %v4162_v40  ;;  %v18598_v36 = vpop.f32.mrb[53].mxu1  ;;  %v14182_v47 = vpop.eup %14181 }
 0x472   :  { %20484 = vst [vmem:[#allocation11_spill] sm:$0xff] %v18598_v36  ;;  %14197 = vrcp.f32 %v4956_v61  ;;  %v18602_v49 = vpop.f32.mrb[54].mxu1  ;;  %12682 = vmatprep.mubr.msk.f32.mxu1 %vm797_vm0, %v7537_v19  ;;  %v6639_v61 = vmax.f32 %v6187_v17, 0.0  ;;  %v6640_v19 = vmax.f32 %v6192_v27, 0.0 }
 0x473   :  { %20486 = vst [vmem:[#allocation52_spill] sm:$0xff] %v18602_v49  ;;  %v14184_v38 = vpop.eup %14183  ;;  %v10593_v52 = vmul.f32 -1.442695, %v4366_v32  ;;  %v18605_v10 = vpop.f32.mrb[55].mxu1  ;;  %14199 = vrcp.f32 %v4958_v21  ;;  %12683 = vmatmul.mubr.msk.f32.gmra.mrb[150].mxu1 %vm797_vm0, %v7538_v13  ;;  %7312 = vperm.xlu1 %13410, %v14182_v47   ;;  %v4960_v32 = vadd.f32 1.0, %v14180_v31  ;;  %v6197_v31 = vadd.f32 %v18282_v16, %v17791_v39 }
 0x474   :  { %20487 = vst [vmem:[#allocation12_spill] sm:$0xff] %v18605_v10  ;;  %v14186_v60 = vpop.eup %14185  ;;  %v4965_v37 = vadd.f32 1.0, %v14184_v38  ;;  %v7093_v51 = vpop.permute.xlu0 %7092 }
 0x475   :  { %v4171_v40 = vpop.xlane.xlu1 %4170  ;;  %v14188_v30 = vpop.eup %14187  ;;  %14201 = vpow2.f32 %v10593_v52  ;;  %7267 = vperm.xlu0 %13409, %v14186_v60  }
 0x476   :  { %v4369_v54 = vadd.f32 %v16902_v57, %v4171_v40  ;;  %v18609_v55 = vpop.f32.mrb[56].mxu1  ;;  %14203 = vrcp.f32 %v4965_v37  ;;  %v14190_v21 = vpop.eup %14189  ;;  %v4962_v10 = vadd.f32 1.0, %v14188_v30  ;;  %v7540_v37 = vmul.f32 %v7093_v51, %v6640_v19  ;;  %v20490_v40 = vld [vmem:[#allocation8_spill] sm:$0xff] }
 0x477   :  { %v18611_v58 = vpop.f32.mrb[57].mxu1  ;;  %v14192_v13 = vpop.eup %14191  ;;  %v6641_v51 = vmax.f32 %v6197_v31, 0.0 }
 0x478   :  { %v10596_v38 = vmul.f32 -1.442695, %v4369_v54  ;;  %v18613_v49 = vpop.f32.mrb[58].mxu1  ;;  %v7088_v47 = vpop.permute.xlu0 %7087  ;;  %7322 = vperm.xlu1 %13410, %v14192_v13   ;;  %v6202_v54 = vadd.f32 %v20490_v40, %v17791_v39 }
 0x479   :  { %20488 = vst [vmem:[#allocation53_spill] sm:$0xff] %v18613_v49  ;;  %v4168_v36 = vpop.xlane.xlu1 %4167  ;;  %v7539_v52 = vmul.f32 %v7088_v47, %v6639_v61  ;;  %7277 = vperm.xlu0 %13409, %v14190_v21   ;;  %v18618_v27 = vpop.f32.mrb[59].mxu1 }
 0x47a   :  { %14205 = vpow2.f32 %v10596_v38  ;;  %v4368_v17 = vadd.f32 %v16902_v57, %v4168_v36  ;;  %20489 = vst [vmem:[#allocation54_spill] sm:$0xff] %v18618_v27  ;;  %v14194_v60 = vpop.eup %14193  ;;  %v18622_v30 = vpop.f32.mrb[60].mxu1 }
 0x47b   :  { %14207 = vrcp.f32 %v4960_v32  ;;  %20491 = vst [vmem:[#allocation13_spill] sm:$0xff] %v18622_v30  ;;  %v14196_v49 = vpop.eup %14195  ;;  %12685 = vmatprep.mubr.msk.f32.mxu1 %vm797_vm0, %v7539_v52  ;;  %v18625_v61 = vpop.f32.mrb[61].mxu1  ;;  %v6642_v52 = vmax.f32 %v6202_v54, 0.0 }
 0x47c   :  { %v10595_v38 = vmul.f32 -1.442695, %v4368_v17  ;;  %20492 = vst [vmem:[#allocation55_spill] sm:$0xff] %v18625_v61  ;;  %v14198_v36 = vpop.eup %14197  ;;  %14209 = vrcp.f32 %v4962_v10  ;;  %v4967_v21 = vadd.f32 1.0, %v14196_v49  ;;  %v7103_v16 = vpop.permute.xlu0 %7102  ;;  %12686 = vmatmul.mubr.msk.f32.gmra.mrb[152].mxu1 %vm797_vm0, %v7540_v37  ;;  %v4964_v17 = vadd.f32 1.0, %v14194_v60 }
 0x47d   :  { %v4177_v13 = vpop.xlane.xlu1 %4176  ;;  %7287 = vperm.xlu0 %13409, %v14198_v36   ;;  %v18629_v19 = vpop.f32.mrb[62].mxu1  ;;  %v6207_v60 = vadd.f32 %v18308_v42, %v17791_v39 }
 0x47e   :  { %14211 = vpow2.f32 %v10595_v38  ;;  %v4371_v32 = vadd.f32 %v16902_v57, %v4177_v13  ;;  %v14200_v47 = vpop.eup %14199  ;;  %v18631_v40 = vpop.f32.mrb[63].mxu1  ;;  %v6212_v13 = vadd.f32 %v18294_v5, %v17791_v39 }
 0x47f   :  { %14213 = vrcp.f32 %v4967_v21  ;;  %v14202_v30 = vpop.eup %14201  ;;  %v18633_v49 = vpop.f32.mrb[64].mxu1  ;;  %v7542_v21 = vmul.f32 %v7103_v16, %v6642_v52 }
 0x480   :  { %v10598_v10 = vmul.f32 -1.442695, %v4371_v32  ;;  %20493 = vst [vmem:[#allocation56_spill] sm:$0xff] %v18633_v49  ;;  %v14204_v61 = vpop.eup %14203  ;;  %v4966_v37 = vadd.f32 1.0, %v14202_v30  ;;  %v7098_v27 = vpop.permute.xlu0 %7097  ;;  %v6644_v52 = vmax.f32 %v6212_v13, 0.0 }
 0x481   :  { %v4174_v38 = vpop.xlane.xlu1 %4173  ;;  %v7541_v31 = vmul.f32 %v7098_v27, %v6641_v51  ;;  %7297 = vperm.xlu0 %13409, %v14200_v47   ;;  %7332 = vperm.xlu1 %13410, %v14204_v61   ;;  %v18638_v54 = vpop.f32.mrb[65].mxu1  ;;  %v6643_v47 = vmax.f32 %v6207_v60, 0.0 }
 0x482   :  { %14215 = vpow2.f32 %v10598_v10  ;;  %v4370_v36 = vadd.f32 %v16902_v57, %v4174_v38  ;;  %v18643_v10 = vpop.f32.mrb[66].mxu1 }
 0x483   :  { %14217 = vrcp.f32 %v4964_v17  ;;  %12688 = vmatprep.mubr.msk.f32.mxu1 %vm797_vm0, %v7541_v31  ;;  %20494 = vst [vmem:[#allocation14_spill] sm:$0xff] %v18643_v10  ;;  %v18647_v17 = vpop.f32.mrb[67].mxu1 }
 0x484   :  { %v14206_v32 = vpop.eup %14205  ;;  %v10597_v30 = vmul.f32 -1.442695, %v4370_v36  ;;  %14219 = vrcp.f32 %v4966_v37  ;;  %v7113_v61 = vpop.permute.xlu0 %7112  ;;  %12689 = vmatmul.mubr.msk.f32.gmra.mrb[154].mxu1 %vm797_vm0, %v7542_v21 }
 0x485   :  { %v14208_v27 = vpop.eup %14207  ;;  %v4969_v51 = vadd.f32 1.0, %v14206_v32  ;;  %v4183_v42 = vpop.xlane.xlu1 %4182  ;;  %v7544_v13 = vmul.f32 %v7113_v61, %v6644_v52 }
 0x486   :  { %14221 = vpow2.f32 %v10597_v30  ;;  %7307 = vperm.xlu0 %13409, %v14208_v27   ;;  %v4373_v16 = vadd.f32 %v16902_v57, %v4183_v42  ;;  %v14210_v5 = vpop.eup %14209  ;;  %v18649_v36 = vpop.f32.mrb[68].mxu1  ;;  %v6217_v30 = vadd.f32 %v18334_v43, %v17791_v39 }
 0x487   :  { %14223 = vrcp.f32 %v4969_v51  ;;  %20495 = vst [vmem:[#allocation57_spill] sm:$0xff] %v18649_v36  ;;  %v18654_v27 = vpop.f32.mrb[69].mxu1  ;;  %v6222_v51 = vadd.f32 %v18320_v7, %v17791_v39 }
 0x488   :  { %v14212_v38 = vpop.eup %14211  ;;  %v10600_v31 = vmul.f32 -1.442695, %v4373_v16  ;;  %v7108_v10 = vpop.permute.xlu0 %7107  ;;  %v6645_v43 = vmax.f32 %v6217_v30, 0.0 }
 0x489   :  { %v14214_v37 = vpop.eup %14213  ;;  %v4968_v32 = vadd.f32 1.0, %v14212_v38  ;;  %v4180_v49 = vpop.xlane.xlu1 %4179  ;;  %v7543_v21 = vmul.f32 %v7108_v10, %v6643_v47 }
 0x48a   :  { %14225 = vpow2.f32 %v10600_v31  ;;  %7317 = vperm.xlu0 %13409, %v14210_v5   ;;  %v4372_v60 = vadd.f32 %v16902_v57, %v4180_v49  ;;  %7342 = vperm.xlu1 %13410, %v14214_v37   ;;  %v18659_v38 = vpop.f32.mrb[70].mxu1  ;;  %v6646_v31 = vmax.f32 %v6222_v51, 0.0 }
 0x48b   :  { %14227 = vrcp.f32 %v4968_v32  ;;  %12691 = vmatprep.mubr.msk.f32.mxu1 %vm797_vm0, %v7543_v21  ;;  %20496 = vst [vmem:[#allocation58_spill] sm:$0xff] %v18659_v38  ;;  %v18663_v52 = vpop.f32.mrb[71].mxu1 }
 0x48c   :  { %v14216_v42 = vpop.eup %14215  ;;  %v10599_v16 = vmul.f32 -1.442695, %v4372_v60  ;;  %v7123_v49 = vpop.permute.xlu0 %7122  ;;  %12692 = vmatmul.mubr.msk.f32.gmra.mrb[156].mxu1 %vm797_vm0, %v7544_v13 }
 0x48d   :  { %v14218_v10 = vpop.eup %14217  ;;  %v4971_v47 = vadd.f32 1.0, %v14216_v42  ;;  %v4189_v5 = vpop.xlane.xlu1 %4188  ;;  %v7546_v51 = vmul.f32 %v7123_v49, %v6646_v31 }
 0x48e   :  { %14229 = vpow2.f32 %v10599_v16  ;;  %7327 = vperm.xlu0 %13409, %v14218_v10   ;;  %v4375_v61 = vadd.f32 %v16902_v57, %v4189_v5  ;;  %v14220_v7 = vpop.eup %14219  ;;  %v18665_v21 = vpop.f32.mrb[72].mxu1  ;;  %v6227_v16 = vadd.f32 %v18362_v59, %v17791_v39 }
 0x48f   :  { %14231 = vrcp.f32 %v4971_v47  ;;  %v18670_v10 = vpop.f32.mrb[73].mxu1  ;;  %v6232_v47 = vadd.f32 %v18346_v62, %v17791_v39 }
 0x490   :  { %v14222_v37 = vpop.eup %14221  ;;  %v10602_v32 = vmul.f32 -1.442695, %v4375_v61  ;;  %v7118_v38 = vpop.permute.xlu0 %7117  ;;  %v6647_v59 = vmax.f32 %v6227_v16, 0.0 }
 0x491   :  { %v14224_v60 = vpop.eup %14223  ;;  %v4970_v42 = vadd.f32 1.0, %v14222_v37  ;;  %v4186_v36 = vpop.xlane.xlu1 %4185  ;;  %v7545_v13 = vmul.f32 %v7118_v38, %v6645_v43  ;;  %v6648_v62 = vmax.f32 %v6232_v47, 0.0  ;;  %v6242_v47 = vadd.f32 %v18380_v56, %v17791_v39 }
 0x492   :  { %14233 = vpow2.f32 %v10602_v32  ;;  %7337 = vperm.xlu0 %13409, %v14220_v7   ;;  %v4374_v30 = vadd.f32 %v16902_v57, %v4186_v36  ;;  %7352 = vperm.xlu1 %13410, %v14224_v60   ;;  %v18675_v37 = vpop.f32.mrb[74].mxu1 }
 0x493   :  { %14235 = vrcp.f32 %v4970_v42  ;;  %12694 = vmatprep.mubr.msk.f32.mxu1 %vm797_vm0, %v7545_v13  ;;  %20497 = vst [vmem:[#allocation15_spill] sm:$0xff] %v18675_v37  ;;  %v18679_v49 = vpop.f32.mrb[75].mxu1 }
 0x494   :  { %v14226_v5 = vpop.eup %14225  ;;  %v10601_v61 = vmul.f32 -1.442695, %v4374_v30  ;;  %v7133_v36 = vpop.permute.xlu0 %7132  ;;  %12695 = vmatmul.mubr.msk.f32.gmra.mrb[158].mxu1 %vm797_vm0, %v7546_v51 }
 0x495   :  { %v14228_v38 = vpop.eup %14227  ;;  %v4973_v43 = vadd.f32 1.0, %v14226_v5  ;;  %v4195_v7 = vpop.xlane.xlu1 %4194 }
 0x496   :  { %14237 = vpow2.f32 %v10601_v61  ;;  %v4377_v32 = vadd.f32 %v16902_v57, %v4195_v7  ;;  %7347 = vperm.xlu0 %13409, %v14228_v38   ;;  %v18681_v31 = vpop.f32.mrb[76].mxu1  ;;  %v7548_v38 = vmul.f32 %v7133_v36, %v6648_v62  ;;  %v6237_v7 = vadd.f32 %v18382_v20, %v17791_v39 }
 0x497   :  { %14239 = vrcp.f32 %v4973_v43  ;;  %20498 = vst [vmem:[#allocation59_spill] sm:$0xff] %v18681_v31  ;;  %v18683_v13 = vpop.f32.mrb[77].mxu1  ;;  %v6650_v36 = vmax.f32 %v6242_v47, 0.0 }
 0x498   :  { %v14230_v60 = vpop.eup %14229  ;;  %v10604_v42 = vmul.f32 -1.442695, %v4377_v32  ;;  %20499 = vst [vmem:[#allocation60_spill] sm:$0xff] %v18683_v13  ;;  %v7128_v37 = vpop.permute.xlu0 %7127  ;;  %v6649_v62 = vmax.f32 %v6237_v7, 0.0 }
 0x499   :  { %v14232_v30 = vpop.eup %14231  ;;  %v4972_v5 = vadd.f32 1.0, %v14230_v60  ;;  %v4192_v51 = vpop.xlane.xlu1 %4191  ;;  %v7547_v61 = vmul.f32 %v7128_v37, %v6647_v59 }
 0x49a   :  { %14241 = vpow2.f32 %v10604_v42  ;;  %v4376_v16 = vadd.f32 %v16902_v57, %v4192_v51  ;;  %7362 = vperm.xlu1 %13410, %v14232_v30  }
 0x49b   :  { %14243 = vrcp.f32 %v4972_v5  ;;  %12697 = vmatprep.mubr.msk.f32.mxu1 %vm797_vm0, %v7547_v61 }
 0x49c   :  { %v14234_v43 = vpop.eup %14233  ;;  %v10603_v32 = vmul.f32 -1.442695, %v4376_v16  ;;  %v7143_v13 = vpop.permute.xlu0 %7142  ;;  %12698 = vmatmul.mubr.msk.f32.gmra.mrb[160].mxu1 %vm797_vm0, %v7548_v38 }
 0x49d   :  { %v14236_v60 = vpop.eup %14235  ;;  %v4975_v31 = vadd.f32 1.0, %v14234_v43  ;;  %v4201_v37 = vpop.xlane.xlu1 %4200  ;;  %v7550_v38 = vmul.f32 %v7143_v13, %v6650_v36 }
 0x49e   :  { %14245 = vpow2.f32 %v10603_v32  ;;  %v4379_v59 = vadd.f32 %v16902_v57, %v4201_v37  ;;  %7357 = vperm.xlu0 %13409, %v14236_v60   ;;  %v6247_v32 = vadd.f32 %v18399_v15, %v17791_v39  ;;  %v6252_v60 = vadd.f32 %v18394_v9, %v17791_v39 }
 0x49f   :  { %14247 = vrcp.f32 %v4975_v31 }
 0x4a0   :  { %v14238_v56 = vpop.eup %14237  ;;  %v10606_v42 = vmul.f32 -1.442695, %v4379_v59  ;;  %v7138_v5 = vpop.permute.xlu0 %7137  ;;  %v6651_v36 = vmax.f32 %v6247_v32, 0.0 }
 0x4a1   :  { %v14240_v30 = vpop.eup %14239  ;;  %v4974_v20 = vadd.f32 1.0, %v14238_v56  ;;  %v4198_v51 = vpop.xlane.xlu1 %4197  ;;  %v7549_v61 = vmul.f32 %v7138_v5, %v6649_v62 }
 0x4a2   :  { %14249 = vpow2.f32 %v10606_v42  ;;  %v4378_v16 = vadd.f32 %v16902_v57, %v4198_v51  ;;  %7372 = vperm.xlu1 %13410, %v14240_v30   ;;  %v6652_v30 = vmax.f32 %v6252_v60, 0.0 }
 0x4a3   :  { %14251 = vrcp.f32 %v4974_v20  ;;  %12700 = vmatprep.mubr.msk.f32.mxu1 %vm797_vm0, %v7549_v61  ;;  %v7621_v61 = vld [vmem:[%s20268_s6 + $0x30] sm:$0xff] }
 0x4a4   :  { %v14242_v43 = vpop.eup %14241  ;;  %v10605_v31 = vmul.f32 -1.442695, %v4378_v16  ;;  %v7153_v37 = vpop.permute.xlu0 %7152  ;;  %12701 = vmatmul.mubr.msk.f32.gmra.mrb[162].mxu1 %vm797_vm0, %v7550_v38  ;;  %v7622_v16 = vld [vmem:[%s20268_s6 + $0x38] sm:$0xff] }
 0x4a5   :  { %v14244_v47 = vpop.eup %14243  ;;  %v4977_v7 = vadd.f32 1.0, %v14242_v43  ;;  %v4207_v59 = vpop.xlane.xlu1 %4206  ;;  %v7552_v38 = vmul.f32 %v7153_v37, %v6652_v30  ;;  %v13100_v43 = vpack.c.bf16 %v7622_v16, %v7621_v61 }
 0x4a6   :  { %14253 = vpow2.f32 %v10605_v31  ;;  %v4381_v56 = vadd.f32 %v16902_v57, %v4207_v59  ;;  %7367 = vperm.xlu0 %13409, %v14244_v47   ;;  %v20500_v31 = vld [vmem:[#allocation47_spill] sm:$0xff] }
 0x4a7   :  { %14255 = vrcp.f32 %v4977_v7  ;;  %v6257_v47 = vadd.f32 %v20500_v31, %v17791_v39  ;;  %13101 = vmatprep.subr.bf16.mxu1 %v13100_v43 }
 0x4a8   :  { %v14246_v13 = vpop.eup %14245  ;;  %v10608_v15 = vmul.f32 -1.442695, %v4381_v56  ;;  %v7148_v20 = vpop.permute.xlu0 %7147  ;;  %v20501_v56 = vld [vmem:[#allocation46_spill] sm:$0xff]  ;;  %13103 = vmatpush3.bf16.msra.mxu1 %v13100_v43  ;;  %v6267_v43 = vadd.f32 %v18428_v8, %v17791_v39 }
 0x4a9   :  { %v14248_v62 = vpop.eup %14247  ;;  %v4976_v42 = vadd.f32 1.0, %v14246_v13  ;;  %v4204_v5 = vpop.xlane.xlu1 %4203  ;;  %v7551_v51 = vmul.f32 %v7148_v20, %v6651_v36  ;;  %v6262_v13 = vadd.f32 %v20501_v56, %v17791_v39 }
 0x4aa   :  { %14257 = vpow2.f32 %v10608_v15  ;;  %v4380_v9 = vadd.f32 %v16902_v57, %v4204_v5  ;;  %7382 = vperm.xlu1 %13410, %v14248_v62  }
 0x4ab   :  { %14259 = vrcp.f32 %v4976_v42  ;;  %12703 = vmatprep.mubr.msk.f32.mxu1 %vm797_vm0, %v7551_v51  ;;  %v6653_v42 = vmax.f32 %v6257_v47, 0.0  ;;  %v6654_v5 = vmax.f32 %v6262_v13, 0.0 }
 0x4ac   :  { %v14250_v32 = vpop.eup %14249  ;;  %v10607_v7 = vmul.f32 -1.442695, %v4380_v9  ;;  %v7163_v36 = vpop.permute.xlu0 %7162  ;;  %12704 = vmatmul.mubr.msk.f32.gmra.mrb[164].mxu1 %vm797_vm0, %v7552_v38 }
 0x4ad   :  { %v14252_v60 = vpop.eup %14251  ;;  %v4979_v59 = vadd.f32 1.0, %v14250_v32  ;;  %v4213_v15 = vpop.xlane.xlu1 %4212  ;;  %v7554_v32 = vmul.f32 %v7163_v36, %v6654_v5 }
 0x4ae   :  { %14261 = vpow2.f32 %v10607_v7  ;;  %v4383_v37 = vadd.f32 %v16902_v57, %v4213_v15  ;;  %7377 = vperm.xlu0 %13409, %v14252_v60   ;;  %v6272_v60 = vadd.f32 %v18424_v46, %v17791_v39 }
 0x4af   :  { %14263 = vrcp.f32 %v4979_v59 }
 0x4b0   :  { %v14254_v62 = vpop.eup %14253  ;;  %v10610_v30 = vmul.f32 -1.442695, %v4383_v37  ;;  %v7158_v9 = vpop.permute.xlu0 %7157  ;;  %v6655_v37 = vmax.f32 %v6267_v43, 0.0 }
 0x4b1   :  { %v14256_v20 = vpop.eup %14255  ;;  %v4978_v51 = vadd.f32 1.0, %v14254_v62  ;;  %v4210_v61 = vpop.xlane.xlu1 %4209  ;;  %v7553_v16 = vmul.f32 %v7158_v9, %v6653_v42  ;;  %v6656_v42 = vmax.f32 %v6272_v60, 0.0 }
 0x4b2   :  { %14265 = vpow2.f32 %v10610_v30  ;;  %v4382_v38 = vadd.f32 %v16902_v57, %v4210_v61  ;;  %7392 = vperm.xlu1 %13410, %v14256_v20  }
 0x4b3   :  { %14267 = vrcp.f32 %v4978_v51  ;;  %12706 = vmatprep.mubr.msk.f32.mxu1 %vm797_vm0, %v7553_v16  ;;  %v6277_v16 = vadd.f32 %v18440_v22, %v17791_v39 }
 0x4b4   :  { %v14258_v31 = vpop.eup %14257  ;;  %v10609_v7 = vmul.f32 -1.442695, %v4382_v38  ;;  %v7173_v56 = vpop.permute.xlu0 %7172  ;;  %12707 = vmatmul.mubr.msk.f32.gmra.mrb[166].mxu1 %vm797_vm0, %v7554_v32 }
 0x4b5   :  { %v14260_v47 = vpop.eup %14259  ;;  %v4981_v59 = vadd.f32 1.0, %v14258_v31  ;;  %v4219_v13 = vpop.xlane.xlu1 %4218  ;;  %v7556_v9 = vmul.f32 %v7173_v56, %v6656_v42  ;;  %v6282_v31 = vadd.f32 %v18436_v2, %v17791_v39  ;;  %v6657_v56 = vmax.f32 %v6277_v16, 0.0 }
 0x4b6   :  { %14269 = vpow2.f32 %v10609_v7  ;;  %v4385_v15 = vadd.f32 %v16902_v57, %v4219_v13  ;;  %7387 = vperm.xlu0 %13409, %v14260_v47  }
 0x4b7   :  { %14271 = vrcp.f32 %v4981_v59 }
 0x4b8   :  { %v14262_v36 = vpop.eup %14261  ;;  %v10612_v8 = vmul.f32 -1.442695, %v4385_v15  ;;  %v7168_v20 = vpop.permute.xlu0 %7167  ;;  %v6658_v15 = vmax.f32 %v6282_v31, 0.0 }
 0x4b9   :  { %v14264_v62 = vpop.eup %14263  ;;  %v4980_v30 = vadd.f32 1.0, %v14262_v36  ;;  %v4216_v5 = vpop.xlane.xlu1 %4215  ;;  %v7555_v46 = vmul.f32 %v7168_v20, %v6655_v37  ;;  %v6287_v20 = vadd.f32 %v18455_v0, %v17791_v39 }
 0x4ba   :  { %14273 = vpow2.f32 %v10612_v8  ;;  %v4384_v51 = vadd.f32 %v16902_v57, %v4216_v5  ;;  %7402 = vperm.xlu1 %13410, %v14264_v62  }
 0x4bb   :  { %14275 = vrcp.f32 %v4980_v30  ;;  %12709 = vmatprep.mubr.msk.f32.mxu1 %vm797_vm0, %v7555_v46  ;;  %v6659_v31 = vmax.f32 %v6287_v20, 0.0 }
 0x4bc   :  { %v14266_v61 = vpop.eup %14265  ;;  %v10611_v38 = vmul.f32 -1.442695, %v4384_v51  ;;  %v7183_v7 = vpop.permute.xlu0 %7182  ;;  %12710 = vmatmul.mubr.msk.f32.gmra.mrb[168].mxu1 %vm797_vm0, %v7556_v9  ;;  %v6292_v51 = vadd.f32 %v18452_v44, %v17791_v39 }
 0x4bd   :  { %v14268_v32 = vpop.eup %14267  ;;  %v4983_v43 = vadd.f32 1.0, %v14266_v61  ;;  %v4225_v47 = vpop.xlane.xlu1 %4224  ;;  %v7558_v42 = vmul.f32 %v7183_v7, %v6658_v15  ;;  %v6297_v15 = vadd.f32 %v18467_v11, %v17791_v39 }
 0x4be   :  { %14277 = vpow2.f32 %v10611_v38  ;;  %v4387_v60 = vadd.f32 %v16902_v57, %v4225_v47  ;;  %7397 = vperm.xlu0 %13409, %v14268_v32   ;;  %v6660_v7 = vmax.f32 %v6292_v51, 0.0 }
 0x4bf   :  { %14279 = vrcp.f32 %v4983_v43 }
 0x4c0   :  { %v14270_v59 = vpop.eup %14269  ;;  %v10614_v22 = vmul.f32 -1.442695, %v4387_v60  ;;  %v7178_v37 = vpop.permute.xlu0 %7177 }
 0x4c1   :  { %v14272_v13 = vpop.eup %14271  ;;  %v4982_v36 = vadd.f32 1.0, %v14270_v59  ;;  %v4222_v8 = vpop.xlane.xlu1 %4221  ;;  %v7557_v2 = vmul.f32 %v7178_v37, %v6657_v56 }
 0x4c2   :  { %14281 = vpow2.f32 %v10614_v22  ;;  %v4386_v62 = vadd.f32 %v16902_v57, %v4222_v8  ;;  %7412 = vperm.xlu1 %13410, %v14272_v13   ;;  %v6302_v8 = vadd.f32 %v18464_v63, %v17791_v39 }
 0x4c3   :  { %14283 = vrcp.f32 %v4982_v36  ;;  %12712 = vmatprep.mubr.msk.f32.mxu1 %vm797_vm0, %v7557_v2 }
 0x4c4   :  { %v14274_v30 = vpop.eup %14273  ;;  %v10613_v5 = vmul.f32 -1.442695, %v4386_v62  ;;  %v7193_v61 = vpop.permute.xlu0 %7192  ;;  %12713 = vmatmul.mubr.msk.f32.gmra.mrb[170].mxu1 %vm797_vm0, %v7558_v42  ;;  %v6662_v51 = vmax.f32 %v6302_v8, 0.0 }
 0x4c5   :  { %v14276_v46 = vpop.eup %14275  ;;  %v4985_v9 = vadd.f32 1.0, %v14274_v30  ;;  %v4231_v16 = vpop.xlane.xlu1 %4230  ;;  %v7560_v22 = vmul.f32 %v7193_v61, %v6660_v7 }
 0x4c6   :  { %14285 = vpow2.f32 %v10613_v5  ;;  %v4389_v38 = vadd.f32 %v16902_v57, %v4231_v16  ;;  %7407 = vperm.xlu0 %13409, %v14276_v46   ;;  %v6661_v5 = vmax.f32 %v6297_v15, 0.0 }
 0x4c7   :  { %14287 = vrcp.f32 %v4985_v9 }
 0x4c8   :  { %v14278_v32 = vpop.eup %14277  ;;  %v10616_v0 = vmul.f32 -1.442695, %v4389_v38  ;;  %v7188_v60 = vpop.permute.xlu0 %7187 }
 0x4c9   :  { %v14280_v43 = vpop.eup %14279  ;;  %v4984_v47 = vadd.f32 1.0, %v14278_v32  ;;  %v4228_v59 = vpop.xlane.xlu1 %4227  ;;  %v7559_v44 = vmul.f32 %v7188_v60, %v6659_v31 }
 0x4ca   :  { %14289 = vpow2.f32 %v10616_v0  ;;  %v4388_v56 = vadd.f32 %v16902_v57, %v4228_v59  ;;  %7422 = vperm.xlu1 %13410, %v14280_v43   ;;  %v6307_v0 = vadd.f32 %v18483_v33, %v17791_v39 }
 0x4cb   :  { %14291 = vrcp.f32 %v4984_v47  ;;  %12715 = vmatprep.mubr.msk.f32.mxu1 %vm797_vm0, %v7559_v44  ;;  %v6312_v47 = vadd.f32 %v18478_v28, %v17791_v39 }
 0x4cc   :  { %v14282_v13 = vpop.eup %14281  ;;  %v10615_v36 = vmul.f32 -1.442695, %v4388_v56  ;;  %v7203_v62 = vpop.permute.xlu0 %7202  ;;  %12716 = vmatmul.mubr.msk.f32.gmra.mrb[172].mxu1 %vm797_vm0, %v7560_v22  ;;  %v6663_v33 = vmax.f32 %v6307_v0, 0.0  ;;  %v6322_v22 = vadd.f32 %v18487_v18, %v17791_v39 }
 0x4cd   :  { %v14284_v37 = vpop.eup %14283  ;;  %v4987_v2 = vadd.f32 1.0, %v14282_v13  ;;  %v4237_v42 = vpop.xlane.xlu1 %4236  ;;  %v7562_v32 = vmul.f32 %v7203_v62, %v6662_v51  ;;  %v6664_v15 = vmax.f32 %v6312_v47, 0.0 }
 0x4ce   :  { %14293 = vpow2.f32 %v10615_v36  ;;  %v4391_v30 = vadd.f32 %v16902_v57, %v4237_v42  ;;  %7417 = vperm.xlu0 %13409, %v14284_v37  }
 0x4cf   :  { %14295 = vrcp.f32 %v4987_v2 }
 0x4d0   :  { %v14286_v20 = vpop.eup %14285  ;;  %v10618_v11 = vmul.f32 -1.442695, %v4391_v30  ;;  %v7198_v61 = vpop.permute.xlu0 %7197 }
 0x4d1   :  { %v14288_v46 = vpop.eup %14287  ;;  %v4986_v9 = vadd.f32 1.0, %v14286_v20  ;;  %v4234_v16 = vpop.xlane.xlu1 %4233  ;;  %v7561_v63 = vmul.f32 %v7198_v61, %v6661_v5 }
 0x4d2   :  { %14297 = vpow2.f32 %v10618_v11  ;;  %v4390_v38 = vadd.f32 %v16902_v57, %v4234_v16  ;;  %7432 = vperm.xlu1 %13410, %v14288_v46   ;;  %v6317_v57 = vadd.f32 %v18490_v48, %v17791_v39  ;;  %v6666_v48 = vmax.f32 %v6322_v22, 0.0 }
 0x4d3   :  { %14299 = vrcp.f32 %v4986_v9  ;;  %12718 = vmatprep.mubr.msk.f32.mxu1 %vm797_vm0, %v7561_v63  ;;  %v6327_v9 = vadd.f32 %v18505_v35, %v17791_v39  ;;  %v6332_v16 = vadd.f32 %v18500_v23, %v17791_v39  ;;  %v6342_v35 = vadd.f32 %v18509_v50, %v17791_v39 }
 0x4d4   :  { %v14290_v31 = vpop.eup %14289  ;;  %v10617_v43 = vmul.f32 -1.442695, %v4390_v38  ;;  %v7213_v59 = vpop.permute.xlu0 %7212  ;;  %12719 = vmatmul.mubr.msk.f32.gmra.mrb[174].mxu1 %vm797_vm0, %v7562_v32  ;;  %v6665_v8 = vmax.f32 %v6317_v57, 0.0 }
 0x4d5   :  { %v14292_v7 = vpop.eup %14291  ;;  %v4989_v60 = vadd.f32 1.0, %v14290_v31  ;;  %v7218_v44 = vpop.permute.xlu1 %7217  ;;  %v7564_v62 = vmul.f32 %v7213_v59, %v6664_v15  ;;  %v6667_v32 = vmax.f32 %v6327_v9, 0.0  ;;  %v6337_v31 = vadd.f32 %v18513_v24, %v17791_v39 }
 0x4d6   :  { %14301 = vpow2.f32 %v10617_v43  ;;  %7427 = vperm.xlu0 %13409, %v14292_v7   ;;  %v7565_v30 = vmul.f32 %v7218_v44, %v6665_v8  ;;  %v6668_v7 = vmax.f32 %v6332_v16, 0.0  ;;  %v6347_v44 = vadd.f32 %v18522_v34, %v17791_v39 }
 0x4d7   :  { %14303 = vrcp.f32 %v4989_v60  ;;  %v6669_v59 = vmax.f32 %v6337_v31, 0.0  ;;  %v6352_v24 = vadd.f32 %v18519_v14, %v17791_v39  ;;  %v6362_v8 = vadd.f32 %v18528_v12, %v17791_v39 }
 0x4d8   :  { %v14294_v56 = vpop.eup %14293  ;;  %v7208_v28 = vpop.permute.xlu0 %7207  ;;  %v6671_v15 = vmax.f32 %v6347_v44, 0.0 }
 0x4d9   :  { %v14296_v13 = vpop.eup %14295  ;;  %v4988_v36 = vadd.f32 1.0, %v14294_v56  ;;  %v7243_v37 = vpop.permute.xlu1 %7242  ;;  %v7563_v2 = vmul.f32 %v7208_v28, %v6663_v33  ;;  %v6670_v56 = vmax.f32 %v6342_v35, 0.0  ;;  %v6672_v28 = vmax.f32 %v6352_v24, 0.0 }
 0x4da   :  { %7442 = vperm.xlu1 %13410, %v14296_v13  }
 0x4db   :  { %14305 = vrcp.f32 %v4988_v36  ;;  %12721 = vmatprep.mubr.msk.f32.mxu1 %vm797_vm0, %v7563_v2  ;;  %v7570_v13 = vmul.f32 %v7243_v37, %v6670_v56  ;;  %v6357_v36 = vadd.f32 %v18532_v4, %v17791_v39  ;;  %v6367_v37 = vadd.f32 %v18542_v3, %v17791_v39 }
 0x4dc   :  { %v14298_v42 = vpop.eup %14297  ;;  %v7223_v11 = vpop.permute.xlu0 %7222  ;;  %12722 = vmatmul.mubr.msk.f32.gmra.mrb[176].mxu1 %vm797_vm0, %v7564_v62  ;;  %v6674_v4 = vmax.f32 %v6362_v8, 0.0  ;;  %v6382_v3 = vadd.f32 %v18546_v1, %v17791_v39 }
 0x4dd   :  { %v14300_v20 = vpop.eup %14299  ;;  %v4991_v5 = vadd.f32 1.0, %v14298_v42  ;;  %v7566_v18 = vmul.f32 %v7223_v11, %v6666_v48  ;;  %12724 = vmatprep.mubr.msk.f32.mxu1 %vm797_vm0, %v7565_v30  ;;  %v7253_v46 = vpop.permute.xlu1 %7252  ;;  %v6673_v42 = vmax.f32 %v6357_v36, 0.0  ;;  %v6372_v30 = vadd.f32 %v18538_v26, %v17791_v39 }
 0x4de   :  { %7437 = vperm.xlu0 %13409, %v14300_v20   ;;  %v7572_v62 = vmul.f32 %v7253_v46, %v6672_v28  ;;  %v6675_v11 = vmax.f32 %v6367_v37, 0.0 }
 0x4df   :  { %14307 = vrcp.f32 %v4991_v5  ;;  %v6676_v46 = vmax.f32 %v6372_v30, 0.0 }
 0x4e0   :  { %v14302_v51 = vpop.eup %14301  ;;  %v7233_v38 = vpop.permute.xlu0 %7232  ;;  %12725 = vmatmul.mubr.msk.f32.gmra.mrb[178].mxu1 %vm797_vm0, %v7566_v18  ;;  %v6377_v18 = vadd.f32 %v18549_v29, %v17791_v39  ;;  %v6392_v29 = vadd.f32 %v18555_v25, %v17791_v39 }
 0x4e1   :  { %v14304_v61 = vpop.eup %14303  ;;  %v4990_v63 = vadd.f32 1.0, %v14302_v51  ;;  %v7263_v0 = vpop.permute.xlu1 %7262  ;;  %v7568_v23 = vmul.f32 %v7233_v38, %v6668_v7  ;;  %v6678_v38 = vmax.f32 %v6382_v3, 0.0 }
 0x4e2   :  { %7452 = vperm.xlu1 %13410, %v14304_v61   ;;  %v7574_v5 = vmul.f32 %v7263_v0, %v6674_v4  ;;  %v6677_v16 = vmax.f32 %v6377_v18, 0.0  ;;  %v6680_v35 = vmax.f32 %v6392_v29, 0.0 }
 0x4e3   :  { %14309 = vrcp.f32 %v4990_v63  ;;  %v6387_v63 = vadd.f32 %v18565_v53, %v17791_v39  ;;  %v6402_v53 = vadd.f32 %v18569_v41, %v17791_v39 }
 0x4e4   :  { %v7228_v47 = vpop.permute.xlu0 %7227 }
 0x4e5   :  { %v14306_v43 = vpop.eup %14305  ;;  %v7567_v60 = vmul.f32 %v7228_v47, %v6667_v32  ;;  %v7273_v22 = vpop.permute.xlu1 %7272  ;;  %v6679_v0 = vmax.f32 %v6387_v63, 0.0  ;;  %v6682_v44 = vmax.f32 %v6402_v53, 0.0 }
 0x4e6   :  { %7447 = vperm.xlu0 %13409, %v14306_v43   ;;  %v7576_v61 = vmul.f32 %v7273_v22, %v6676_v46  ;;  %v6397_v43 = vadd.f32 %v18571_v45, %v17791_v39  ;;  %v20502_v45 = vld [vmem:[#allocation9_spill] sm:$0xff] }
 0x4e7   :  { %12727 = vmatprep.mubr.msk.f32.mxu1 %vm797_vm0, %v7567_v60 }
 0x4e8   :  { %v7238_v33 = vpop.permute.xlu0 %7237  ;;  %12728 = vmatmul.mubr.msk.f32.gmra.mrb[180].mxu1 %vm797_vm0, %v7568_v23  ;;  %v6681_v23 = vmax.f32 %v6397_v43, 0.0 }
 0x4e9   :  { %v14308_v57 = vpop.eup %14307  ;;  %v7569_v50 = vmul.f32 %v7238_v33, %v6669_v59  ;;  %v7283_v48 = vpop.permute.xlu1 %7282  ;;  %v6407_v59 = vadd.f32 %v18578_v6, %v17791_v39  ;;  %v20504_v6 = vld [vmem:[#allocation48_spill] sm:$0xff] }
 0x4ea   :  { %7462 = vperm.xlu1 %13410, %v14308_v57   ;;  %v7578_v31 = vmul.f32 %v7283_v48, %v6678_v38  ;;  %v6412_v57 = vadd.f32 %v20502_v45, %v17791_v39  ;;  %v6422_v36 = vadd.f32 %v20504_v6, %v17791_v39  ;;  %v20506_v48 = vld [vmem:[#allocation10_spill] sm:$0xff]  ;;  %v20509_v38 = vld [vmem:[#allocation12_spill] sm:$0xff]  ;;  %v6462_v45 = vadd.f32 %v18609_v55, %v17791_v39 }
 0x4eb   :  { %12730 = vmatprep.mubr.msk.f32.mxu1 %vm797_vm0, %v7569_v50  ;;  %v6683_v22 = vmax.f32 %v6407_v59, 0.0  ;;  %v20503_v50 = vld [vmem:[#allocation49_spill] sm:$0xff]  ;;  %v6432_v4 = vadd.f32 %v20506_v48, %v17791_v39  ;;  %v6447_v29 = vadd.f32 %v20509_v38, %v17791_v39 }
 0x4ec   :  { %v7248_v2 = vpop.permute.xlu0 %7247  ;;  %12731 = vmatmul.mubr.msk.f32.gmra.mrb[182].mxu1 %vm797_vm0, %v7570_v13  ;;  %v6417_v13 = vadd.f32 %v20503_v50, %v17791_v39  ;;  %v6686_v37 = vmax.f32 %v6422_v36, 0.0  ;;  %v20511_v50 = vld [vmem:[#allocation54_spill] sm:$0xff] }
 0x4ed   :  { %v14310_v34 = vpop.eup %14309  ;;  %v7571_v14 = vmul.f32 %v7248_v2, %v6671_v15  ;;  %v7293_v9 = vpop.permute.xlu1 %7292  ;;  %v6684_v15 = vmax.f32 %v6412_v57, 0.0  ;;  %v6688_v3 = vmax.f32 %v6432_v4, 0.0  ;;  %v6691_v53 = vmax.f32 %v6447_v29, 0.0 }
 0x4ee   :  { %7457 = vperm.xlu0 %13409, %v14310_v34   ;;  %v7580_v60 = vmul.f32 %v7293_v9, %v6680_v35  ;;  %v6685_v2 = vmax.f32 %v6417_v13, 0.0  ;;  %v6467_v13 = vadd.f32 %v20511_v50, %v17791_v39 }
 0x4ef   :  { %12733 = vmatprep.mubr.msk.f32.mxu1 %vm797_vm0, %v7571_v14  ;;  %v20505_v14 = vld [vmem:[#allocation50_spill] sm:$0xff] }
 0x4f0   :  { %v7258_v20 = vpop.permute.xlu0 %7257  ;;  %12734 = vmatmul.mubr.msk.f32.gmra.mrb[184].mxu1 %vm797_vm0, %v7572_v62  ;;  %v6427_v62 = vadd.f32 %v20505_v14, %v17791_v39  ;;  %v6695_v6 = vmax.f32 %v6467_v13, 0.0 }
 0x4f1   :  { %v7573_v12 = vmul.f32 %v7258_v20, %v6673_v42  ;;  %v7303_v7 = vpop.permute.xlu1 %7302 }
 0x4f2   :  { %v7582_v33 = vmul.f32 %v7303_v7, %v6682_v44  ;;  %v6457_v44 = vadd.f32 %v18611_v58, %v17791_v39  ;;  %v20512_v58 = vld [vmem:[#allocation53_spill] sm:$0xff] }
 0x4f3   :  { %12736 = vmatprep.mubr.msk.f32.mxu1 %vm797_vm0, %v7573_v12 }
 0x4f4   :  { %v7268_v51 = vpop.permute.xlu0 %7267  ;;  %12737 = vmatmul.mubr.msk.f32.gmra.mrb[186].mxu1 %vm797_vm0, %v7574_v5  ;;  %v6687_v5 = vmax.f32 %v6427_v62, 0.0  ;;  %v6693_v57 = vmax.f32 %v6457_v44, 0.0  ;;  %v20514_v62 = vld [vmem:[#allocation13_spill] sm:$0xff] }
 0x4f5   :  { %v7575_v26 = vmul.f32 %v7268_v51, %v6675_v11  ;;  %v7313_v24 = vpop.permute.xlu1 %7312  ;;  %v20507_v11 = vld [vmem:[#allocation11_spill] sm:$0xff] }
 0x4f6   :  { %v7584_v8 = vmul.f32 %v7313_v24, %v6684_v15  ;;  %v6437_v18 = vadd.f32 %v20507_v11, %v17791_v39  ;;  %v20508_v51 = vld [vmem:[#allocation51_spill] sm:$0xff]  ;;  %v6694_v24 = vmax.f32 %v6462_v45, 0.0  ;;  %v6472_v15 = vadd.f32 %v20512_v58, %v17791_v39 }
 0x4f7   :  { %12739 = vmatprep.mubr.msk.f32.mxu1 %vm797_vm0, %v7575_v26  ;;  %v6442_v9 = vadd.f32 %v20508_v51, %v17791_v39  ;;  %v6492_v11 = vadd.f32 %v18629_v19, %v17791_v39 }
 0x4f8   :  { %v7278_v32 = vpop.permute.xlu0 %7277  ;;  %12740 = vmatmul.mubr.msk.f32.gmra.mrb[188].mxu1 %vm797_vm0, %v7576_v61  ;;  %v6689_v63 = vmax.f32 %v6437_v18, 0.0  ;;  %v6696_v36 = vmax.f32 %v6472_v15, 0.0 }
 0x4f9   :  { %v7577_v1 = vmul.f32 %v7278_v32, %v6677_v16  ;;  %v7323_v42 = vpop.permute.xlu1 %7322 }
 0x4fa   :  { %v7586_v12 = vmul.f32 %v7323_v42, %v6686_v37  ;;  %v6482_v42 = vadd.f32 %v20514_v62, %v17791_v39  ;;  %v6547_v62 = vadd.f32 %v18679_v49, %v17791_v39  ;;  %v20521_v49 = vld [vmem:[#allocation59_spill] sm:$0xff] }
 0x4fb   :  { %12742 = vmatprep.mubr.msk.f32.mxu1 %vm797_vm0, %v7577_v1  ;;  %v6690_v1 = vmax.f32 %v6442_v9, 0.0 }
 0x4fc   :  { %v7288_v47 = vpop.permute.xlu0 %7287  ;;  %12743 = vmatmul.mubr.msk.f32.gmra.mrb[190].mxu1 %vm797_vm0, %v7578_v31  ;;  %v20510_v31 = vld [vmem:[#allocation52_spill] sm:$0xff]  ;;  %v6698_v4 = vmax.f32 %v6482_v42, 0.0 }
 0x4fd   :  { %v7579_v25 = vmul.f32 %v7288_v47, %v6679_v0  ;;  %v6452_v0 = vadd.f32 %v20510_v31, %v17791_v39  ;;  %v6507_v31 = vadd.f32 %v18647_v17, %v17791_v39  ;;  %v20517_v17 = vld [vmem:[#allocation57_spill] sm:$0xff] }
 0x4ff   :  { %12745 = vmatprep.mubr.msk.f32.mxu1 %vm797_vm0, %v7579_v25  ;;  %v6692_v25 = vmax.f32 %v6452_v0, 0.0 }
 0x500   :  { %v7298_v56 = vpop.permute.xlu0 %7297  ;;  %12746 = vmatmul.mubr.msk.f32.gmra.mrb[192].mxu1 %vm797_vm0, %v7580_v60  ;;  %v7333_v46 = vpop.permute.xlu1 %7332 }
 0x501   :  { %v7581_v41 = vmul.f32 %v7298_v56, %v6681_v23  ;;  %v7588_v16 = vmul.f32 %v7333_v46, %v6688_v3  ;;  %v6700_v3 = vmax.f32 %v6492_v11, 0.0  ;;  %v6562_v11 = vadd.f32 %v20521_v49, %v17791_v39  ;;  %v14442_v49 = vld [vmem:[%s20263_s1 + $0x1c0] sm:$0xff] }
 0x503   :  { %12748 = vmatprep.mubr.msk.f32.mxu1 %vm797_vm0, %v7581_v41 }
 0x504   :  { %12749 = vmatmul.mubr.msk.f32.gmra.mrb[194].mxu1 %vm797_vm0, %v7582_v33 }
 0x505   :  { %v7308_v34 = vpop.permute.xlu0 %7307 }
 0x506   :  { %v7583_v28 = vmul.f32 %v7308_v34, %v6683_v22 }
 0x508   :  { %12751 = vmatprep.mubr.msk.f32.mxu1 %vm797_vm0, %v7583_v28 }
 0x509   :  { %v7318_v30 = vpop.permute.xlu0 %7317  ;;  %12752 = vmatmul.mubr.msk.f32.gmra.mrb[196].mxu1 %vm797_vm0, %v7584_v8  ;;  %v7343_v32 = vpop.permute.xlu1 %7342 }
 0x50a   :  { %v7585_v20 = vmul.f32 %v7318_v30, %v6685_v2  ;;  %v7590_v35 = vmul.f32 %v7343_v32, %v6690_v1  ;;  %v20513_v2 = vld [vmem:[#allocation55_spill] sm:$0xff] }
 0x50b   :  { %v6477_v14 = vadd.f32 %v20513_v2, %v17791_v39 }
 0x50c   :  { %12754 = vmatprep.mubr.msk.f32.mxu1 %vm797_vm0, %v7585_v20 }
 0x50d   :  { %v7328_v26 = vpop.permute.xlu0 %7327  ;;  %12755 = vmatmul.mubr.msk.f32.gmra.mrb[198].mxu1 %vm797_vm0, %v7586_v12  ;;  %v6697_v37 = vmax.f32 %v6477_v14, 0.0 }
 0x50e   :  { %v7587_v61 = vmul.f32 %v7328_v26, %v6687_v5  ;;  %v6487_v5 = vadd.f32 %v18631_v40, %v17791_v39  ;;  %v20515_v40 = vld [vmem:[#allocation56_spill] sm:$0xff] }
 0x510   :  { %12757 = vmatprep.mubr.msk.f32.mxu1 %vm797_vm0, %v7587_v61  ;;  %v6699_v18 = vmax.f32 %v6487_v5, 0.0  ;;  %v6497_v61 = vadd.f32 %v18638_v54, %v17791_v39  ;;  %v20516_v54 = vld [vmem:[#allocation14_spill] sm:$0xff] }
 0x511   :  { %v7338_v43 = vpop.permute.xlu0 %7337  ;;  %12758 = vmatmul.mubr.msk.f32.gmra.mrb[200].mxu1 %vm797_vm0, %v7588_v16  ;;  %v7353_v47 = vpop.permute.xlu1 %7352  ;;  %v6502_v16 = vadd.f32 %v20515_v40, %v17791_v39  ;;  %v6512_v0 = vadd.f32 %v20516_v54, %v17791_v39  ;;  %v14388_v40 = vld [vmem:[%s20263_s1 + $0x10] sm:$0xff]  ;;  %v14397_v54 = vld [vmem:[%s20263_s1 + $0x58] sm:$0xff] }
 0x512   :  { %v7589_v7 = vmul.f32 %v7338_v43, %v6689_v63  ;;  %v7592_v59 = vmul.f32 %v7353_v47, %v6692_v25  ;;  %v6701_v63 = vmax.f32 %v6497_v61, 0.0  ;;  %v6703_v43 = vmax.f32 %v6507_v31, 0.0  ;;  %v14386_v61 = vld [vmem:[%s20263_s1] sm:$0xff]  ;;  %v14396_v31 = vld [vmem:[%s20263_s1 + $0x50] sm:$0xff] }
 0x513   :  { %v6702_v38 = vmax.f32 %v6502_v16, 0.0  ;;  %v14389_v16 = vld [vmem:[%s20263_s1 + $0x18] sm:$0xff] }
 0x514   :  { %12760 = vmatprep.mubr.msk.f32.mxu1 %vm797_vm0, %v7589_v7 }
 0x515   :  { %12761 = vmatmul.mubr.msk.f32.gmra.mrb[202].mxu1 %vm797_vm0, %v7590_v35  ;;  %v7348_v60 = vpop.permute.xlu0 %7347  ;;  %v6704_v35 = vmax.f32 %v6512_v0, 0.0  ;;  %v14398_v0 = vld [vmem:[%s20263_s1 + $0x60] sm:$0xff] }
 0x516   :  { %v7591_v23 = vmul.f32 %v7348_v60, %v6691_v53  ;;  %v6517_v60 = vadd.f32 %v18654_v27, %v17791_v39  ;;  %v20518_v27 = vld [vmem:[#allocation58_spill] sm:$0xff] }
 0x518   :  { %12763 = vmatprep.mubr.msk.f32.mxu1 %vm797_vm0, %v7591_v23  ;;  %v6522_v23 = vadd.f32 %v20517_v17, %v17791_v39  ;;  %v14406_v17 = vld [vmem:[%s20263_s1 + $0xa0] sm:$0xff] }
 0x519   :  { %12764 = vmatmul.mubr.msk.f32.gmra.mrb[204].mxu1 %vm797_vm0, %v7592_v59  ;;  %v7363_v56 = vpop.permute.xlu1 %7362  ;;  %v6705_v59 = vmax.f32 %v6517_v60, 0.0  ;;  %v14405_v60 = vld [vmem:[%s20263_s1 + $0x98] sm:$0xff] }
 0x51a   :  { %v7594_v22 = vmul.f32 %v7363_v56, %v6694_v24  ;;  %v6706_v45 = vmax.f32 %v6522_v23, 0.0  ;;  %v14407_v23 = vld [vmem:[%s20263_s1 + $0xa8] sm:$0xff] }
 0x51d   :  { %v7358_v41 = vpop.permute.xlu0 %7357 }
 0x51e   :  { %v7593_v33 = vmul.f32 %v7358_v41, %v6693_v57  ;;  %v6527_v41 = vadd.f32 %v18663_v52, %v17791_v39  ;;  %v6542_v52 = vadd.f32 %v18665_v21, %v17791_v39 }
 0x520   :  { %12766 = vmatprep.mubr.msk.f32.mxu1 %vm797_vm0, %v7593_v33  ;;  %v6532_v33 = vadd.f32 %v20518_v27, %v17791_v39  ;;  %v14415_v27 = vld [vmem:[%s20263_s1 + $0xe8] sm:$0xff] }
 0x521   :  { %12767 = vmatmul.mubr.msk.f32.gmra.mrb[206].mxu1 %vm797_vm0, %v7594_v22  ;;  %v7373_v55 = vpop.permute.xlu1 %7372  ;;  %v6707_v22 = vmax.f32 %v6527_v41, 0.0  ;;  %v14414_v41 = vld [vmem:[%s20263_s1 + $0xe0] sm:$0xff] }
 0x522   :  { %v7596_v8 = vmul.f32 %v7373_v55, %v6696_v36  ;;  %v6708_v13 = vmax.f32 %v6532_v33, 0.0  ;;  %v6537_v55 = vadd.f32 %v18670_v10, %v17791_v39  ;;  %v20519_v10 = vld [vmem:[#allocation15_spill] sm:$0xff]  ;;  %v14416_v33 = vld [vmem:[%s20263_s1 + $0xf0] sm:$0xff] }
 0x523   :  { %v6552_v42 = vadd.f32 %v20519_v10, %v17791_v39  ;;  %v14432_v10 = vld [vmem:[%s20263_s1 + $0x170] sm:$0xff] }
 0x524   :  { %v6709_v36 = vmax.f32 %v6537_v55, 0.0  ;;  %v14423_v55 = vld [vmem:[%s20263_s1 + $0x128] sm:$0xff] }
 0x525   :  { %v7368_v34 = vpop.permute.xlu0 %7367 }
 0x526   :  { %v7595_v28 = vmul.f32 %v7368_v34, %v6695_v6 }
 0x528   :  { %12769 = vmatprep.mubr.msk.f32.mxu1 %vm797_vm0, %v7595_v28  ;;  %v6710_v28 = vmax.f32 %v6542_v52, 0.0  ;;  %v14424_v52 = vld [vmem:[%s20263_s1 + $0x130] sm:$0xff] }
 0x529   :  { %12770 = vmatmul.mubr.msk.f32.gmra.mrb[208].mxu1 %vm797_vm0, %v7596_v8  ;;  %v7383_v48 = vpop.permute.xlu1 %7382 }
 0x52a   :  { %v7598_v12 = vmul.f32 %v7383_v48, %v6698_v4  ;;  %v6712_v48 = vmax.f32 %v6552_v42, 0.0  ;;  %v14433_v42 = vld [vmem:[%s20263_s1 + $0x178] sm:$0xff] }
 0x52d   :  { %v7378_v30 = vpop.permute.xlu0 %7377 }
 0x52e   :  { %v7597_v20 = vmul.f32 %v7378_v30, %v6697_v37  ;;  %v6711_v37 = vmax.f32 %v6547_v62, 0.0  ;;  %v14431_v62 = vld [vmem:[%s20263_s1 + $0x168] sm:$0xff] }
 0x530   :  { %12772 = vmatprep.mubr.msk.f32.mxu1 %vm797_vm0, %v7597_v20 }
 0x531   :  { %12773 = vmatmul.mubr.msk.f32.gmra.mrb[210].mxu1 %vm797_vm0, %v7598_v12  ;;  %v7393_v46 = vpop.permute.xlu1 %7392  ;;  %v20520_v12 = vld [vmem:[#allocation60_spill] sm:$0xff] }
 0x532   :  { %v7600_v26 = vmul.f32 %v7393_v46, %v6700_v3  ;;  %v6557_v5 = vadd.f32 %v20520_v12, %v17791_v39  ;;  %v6714_v3 = vmax.f32 %v6562_v11, 0.0  ;;  %v14387_v39 = vld [vmem:[%s20263_s1 + $0x8] sm:$0xff]  ;;  %v14440_v12 = vld [vmem:[%s20263_s1 + $0x1b0] sm:$0xff] }
 0x533   :  { %v14443_v11 = vld [vmem:[%s20263_s1 + $0x1c8] sm:$0xff] }
 0x535   :  { %v7388_v51 = vpop.permute.xlu0 %7387 }
 0x536   :  { %v7599_v9 = vmul.f32 %v7388_v51, %v6699_v18  ;;  %v6713_v18 = vmax.f32 %v6557_v5, 0.0  ;;  %v14441_v5 = vld [vmem:[%s20263_s1 + $0x1b8] sm:$0xff] }
 0x538   :  { %12775 = vmatprep.mubr.msk.f32.mxu1 %vm797_vm0, %v7599_v9 }
 0x539   :  { %12776 = vmatmul.mubr.msk.f32.gmra.mrb[212].mxu1 %vm797_vm0, %v7600_v26  ;;  %v7403_v19 = vpop.permute.xlu1 %7402 }
 0x53a   :  { %v7602_v1 = vmul.f32 %v7403_v19, %v6702_v38  ;;  %v14391_v19 = vld [vmem:[%s20263_s1 + $0x28] sm:$0xff]  ;;  %v14392_v38 = vld [vmem:[%s20263_s1 + $0x30] sm:$0xff] }
 0x53d   :  { %v7398_v29 = vpop.permute.xlu0 %7397 }
 0x53e   :  { %v7601_v32 = vmul.f32 %v7398_v29, %v6701_v63  ;;  %v14390_v63 = vld [vmem:[%s20263_s1 + $0x20] sm:$0xff]  ;;  %v14393_v29 = vld [vmem:[%s20263_s1 + $0x38] sm:$0xff] }
 0x540   :  { %12778 = vmatprep.mubr.msk.f32.mxu1 %vm797_vm0, %v7601_v32  ;;  %v14394_v32 = vld [vmem:[%s20263_s1 + $0x40] sm:$0xff] }
 0x541   :  { %12779 = vmatmul.mubr.msk.f32.gmra.mrb[214].mxu1 %vm797_vm0, %v7602_v1  ;;  %v7413_v7 = vpop.permute.xlu1 %7412  ;;  %v14395_v1 = vld [vmem:[%s20263_s1 + $0x48] sm:$0xff] }
 0x542   :  { %v7604_v25 = vmul.f32 %v7413_v7, %v6704_v35  ;;  %v14400_v7 = vld [vmem:[%s20263_s1 + $0x70] sm:$0xff]  ;;  %v14401_v35 = vld [vmem:[%s20263_s1 + $0x78] sm:$0xff] }
 0x545   :  { %v7408_v53 = vpop.permute.xlu0 %7407 }
 0x546   :  { %v7603_v47 = vmul.f32 %v7408_v53, %v6703_v43  ;;  %v14399_v43 = vld [vmem:[%s20263_s1 + $0x68] sm:$0xff]  ;;  %v14402_v53 = vld [vmem:[%s20263_s1 + $0x80] sm:$0xff] }
 0x548   :  { %12781 = vmatprep.mubr.msk.f32.mxu1 %vm797_vm0, %v7603_v47  ;;  %v14403_v47 = vld [vmem:[%s20263_s1 + $0x88] sm:$0xff] }
 0x549   :  { %12782 = vmatmul.mubr.msk.f32.gmra.mrb[216].mxu1 %vm797_vm0, %v7604_v25  ;;  %v7423_v44 = vpop.permute.xlu1 %7422  ;;  %v14404_v25 = vld [vmem:[%s20263_s1 + $0x90] sm:$0xff] }
 0x54a   :  { %v7606_v24 = vmul.f32 %v7423_v44, %v6706_v45  ;;  %v14409_v44 = vld [vmem:[%s20263_s1 + $0xb8] sm:$0xff]  ;;  %v14410_v45 = vld [vmem:[%s20263_s1 + $0xc0] sm:$0xff] }
 0x54d   :  { %v7418_v57 = vpop.permute.xlu0 %7417 }
 0x54e   :  { %v7605_v56 = vmul.f32 %v7418_v57, %v6705_v59  ;;  %v14408_v59 = vld [vmem:[%s20263_s1 + $0xb0] sm:$0xff]  ;;  %v14411_v57 = vld [vmem:[%s20263_s1 + $0xc8] sm:$0xff] }
 0x550   :  { %12784 = vmatprep.mubr.msk.f32.mxu1 %vm797_vm0, %v7605_v56  ;;  %v14412_v56 = vld [vmem:[%s20263_s1 + $0xd0] sm:$0xff] }
 0x551   :  { %12785 = vmatmul.mubr.msk.f32.gmra.mrb[218].mxu1 %vm797_vm0, %v7606_v24  ;;  %v7433_v50 = vpop.permute.xlu1 %7432  ;;  %v14413_v24 = vld [vmem:[%s20263_s1 + $0xd8] sm:$0xff] }
 0x552   :  { %v7608_v6 = vmul.f32 %v7433_v50, %v6708_v13  ;;  %v14418_v50 = vld [vmem:[%s20263_s1 + $0x100] sm:$0xff]  ;;  %v14419_v13 = vld [vmem:[%s20263_s1 + $0x108] sm:$0xff] }
 0x555   :  { %v7428_v58 = vpop.permute.xlu0 %7427 }
 0x556   :  { %v7607_v15 = vmul.f32 %v7428_v58, %v6707_v22  ;;  %v14417_v22 = vld [vmem:[%s20263_s1 + $0xf8] sm:$0xff]  ;;  %v14420_v58 = vld [vmem:[%s20263_s1 + $0x110] sm:$0xff] }
 0x558   :  { %12787 = vmatprep.mubr.msk.f32.mxu1 %vm797_vm0, %v7607_v15  ;;  %v14421_v15 = vld [vmem:[%s20263_s1 + $0x118] sm:$0xff] }
 0x559   :  { %12788 = vmatmul.mubr.msk.f32.gmra.mrb[220].mxu1 %vm797_vm0, %v7608_v6  ;;  %v7443_v34 = vpop.permute.xlu1 %7442  ;;  %v14422_v6 = vld [vmem:[%s20263_s1 + $0x120] sm:$0xff] }
 0x55a   :  { %v7610_v14 = vmul.f32 %v7443_v34, %v6710_v28  ;;  %v14426_v34 = vld [vmem:[%s20263_s1 + $0x140] sm:$0xff]  ;;  %v14427_v28 = vld [vmem:[%s20263_s1 + $0x148] sm:$0xff] }
 0x55d   :  { %v7438_v8 = vpop.permute.xlu0 %7437 }
 0x55e   :  { %v7609_v2 = vmul.f32 %v7438_v8, %v6709_v36  ;;  %v14425_v36 = vld [vmem:[%s20263_s1 + $0x138] sm:$0xff]  ;;  %v14428_v8 = vld [vmem:[%s20263_s1 + $0x150] sm:$0xff] }
 0x560   :  { %12790 = vmatprep.mubr.msk.f32.mxu1 %vm797_vm0, %v7609_v2  ;;  %v14429_v2 = vld [vmem:[%s20263_s1 + $0x158] sm:$0xff] }
 0x561   :  { %12791 = vmatmul.mubr.msk.f32.gmra.mrb[222].mxu1 %vm797_vm0, %v7610_v14  ;;  %v7453_v21 = vpop.permute.xlu1 %7452  ;;  %v14430_v14 = vld [vmem:[%s20263_s1 + $0x160] sm:$0xff] }
 0x562   :  { %v7612_v20 = vmul.f32 %v7453_v21, %v6712_v48  ;;  %v14435_v21 = vld [vmem:[%s20263_s1 + $0x188] sm:$0xff]  ;;  %v14436_v48 = vld [vmem:[%s20263_s1 + $0x190] sm:$0xff] }
 0x565   :  { %v7448_v4 = vpop.permute.xlu0 %7447 }
 0x566   :  { %v7611_v30 = vmul.f32 %v7448_v4, %v6711_v37  ;;  %v14434_v37 = vld [vmem:[%s20263_s1 + $0x180] sm:$0xff]  ;;  %v14437_v4 = vld [vmem:[%s20263_s1 + $0x198] sm:$0xff] }
 0x568   :  { %12793 = vmatprep.mubr.msk.f32.mxu1 %vm797_vm0, %v7611_v30  ;;  %v14438_v30 = vld [vmem:[%s20263_s1 + $0x1a0] sm:$0xff] }
 0x569   :  { %12794 = vmatmul.mubr.msk.f32.gmra.mrb[224].mxu1 %vm797_vm0, %v7612_v20  ;;  %v7463_v46 = vpop.permute.xlu1 %7462  ;;  %v14439_v20 = vld [vmem:[%s20263_s1 + $0x1a8] sm:$0xff] }
 0x56a   :  { %v7614_v26 = vmul.f32 %v7463_v46, %v6714_v3  ;;  %v14445_v46 = vld [vmem:[%s20263_s1 + $0x1d8] sm:$0xff]  ;;  %v14446_v3 = vld [vmem:[%s20263_s1 + $0x1e0] sm:$0xff] }
 0x56d   :  { %v7458_v51 = vpop.permute.xlu0 %7457 }
 0x56e   :  { %v7613_v9 = vmul.f32 %v7458_v51, %v6713_v18  ;;  %v14444_v18 = vld [vmem:[%s20263_s1 + $0x1d0] sm:$0xff]  ;;  %v14447_v51 = vld [vmem:[%s20263_s1 + $0x1e8] sm:$0xff] }
 0x570   :  { %12796 = vmatprep.mubr.msk.f32.mxu1 %vm797_vm0, %v7613_v9  ;;  %v14448_v9 = vld [vmem:[%s20263_s1 + $0x1f0] sm:$0xff] }
 0x571   :  { %12797 = vmatmul.mubr.msk.f32.gmra.mrb[226].mxu1 %vm797_vm0, %v7614_v26  ;;  %v14449_v26 = vld [vmem:[%s20263_s1 + $0x1f8] sm:$0xff] }
 0x572   :  { %12815 = vmatprep.mubr.msk.f32.mxu1 %vm797_vm0, %v14386_v61  ;;  %v14450_v61 = vld [vmem:[%s20263_s1 + $0x200] sm:$0xff] }
 0x575   :  { %12816 = vmatmul.mubr.msk.f32.vlgmr.msra.gmra.mrb[78].mxu1 %vm797_vm0, %v14387_v39  ;;  %v14451_v39 = vld [vmem:[%s20263_s1 + $0x208] sm:$0xff] }
 0x576   :  { %12818 = vmatprep.mubr.msk.f32.mxu1 %vm797_vm0, %v14388_v40  ;;  %v14452_v40 = vld [vmem:[%s20263_s1 + $0x210] sm:$0xff] }
 0x579   :  { %12819 = vmatmul.mubr.msk.f32.gmra.mrb[80].mxu1 %vm797_vm0, %v14389_v16  ;;  %v14453_v16 = vld [vmem:[%s20263_s1 + $0x218] sm:$0xff] }
 0x57a   :  { %12821 = vmatprep.mubr.msk.f32.mxu1 %vm797_vm0, %v14390_v63  ;;  %v14454_v63 = vld [vmem:[%s20263_s1 + $0x220] sm:$0xff] }
 0x57d   :  { %12822 = vmatmul.mubr.msk.f32.gmra.mrb[82].mxu1 %vm797_vm0, %v14391_v19  ;;  %v14455_v19 = vld [vmem:[%s20263_s1 + $0x228] sm:$0xff] }
 0x57e   :  { %12824 = vmatprep.mubr.msk.f32.mxu1 %vm797_vm0, %v14392_v38  ;;  %v14456_v38 = vld [vmem:[%s20263_s1 + $0x230] sm:$0xff] }
 0x581   :  { %12825 = vmatmul.mubr.msk.f32.gmra.mrb[84].mxu1 %vm797_vm0, %v14393_v29  ;;  %v14457_v29 = vld [vmem:[%s20263_s1 + $0x238] sm:$0xff] }
 0x582   :  { %12827 = vmatprep.mubr.msk.f32.mxu1 %vm797_vm0, %v14394_v32  ;;  %v14458_v32 = vld [vmem:[%s20263_s1 + $0x240] sm:$0xff] }
 0x585   :  { %12828 = vmatmul.mubr.msk.f32.gmra.mrb[86].mxu1 %vm797_vm0, %v14395_v1  ;;  %v14459_v1 = vld [vmem:[%s20263_s1 + $0x248] sm:$0xff] }
 0x586   :  { %12830 = vmatprep.mubr.msk.f32.mxu1 %vm797_vm0, %v14396_v31  ;;  %v14460_v31 = vld [vmem:[%s20263_s1 + $0x250] sm:$0xff] }
 0x589   :  { %12831 = vmatmul.mubr.msk.f32.gmra.mrb[88].mxu1 %vm797_vm0, %v14397_v54  ;;  %v14461_v54 = vld [vmem:[%s20263_s1 + $0x258] sm:$0xff] }
 0x58a   :  { %12833 = vmatprep.mubr.msk.f32.mxu1 %vm797_vm0, %v14398_v0  ;;  %v14462_v0 = vld [vmem:[%s20263_s1 + $0x260] sm:$0xff] }
 0x58d   :  { %12834 = vmatmul.mubr.msk.f32.gmra.mrb[90].mxu1 %vm797_vm0, %v14399_v43  ;;  %v14463_v43 = vld [vmem:[%s20263_s1 + $0x268] sm:$0xff] }
 0x58e   :  { %12836 = vmatprep.mubr.msk.f32.mxu1 %vm797_vm0, %v14400_v7  ;;  %v14464_v7 = vld [vmem:[%s20263_s1 + $0x270] sm:$0xff] }
 0x591   :  { %12837 = vmatmul.mubr.msk.f32.gmra.mrb[92].mxu1 %vm797_vm0, %v14401_v35  ;;  %v14465_v35 = vld [vmem:[%s20263_s1 + $0x278] sm:$0xff] }
 0x592   :  { %12839 = vmatprep.mubr.msk.f32.mxu1 %vm797_vm0, %v14402_v53  ;;  %v14466_v53 = vld [vmem:[%s20263_s1 + $0x280] sm:$0xff] }
 0x595   :  { %12840 = vmatmul.mubr.msk.f32.gmra.mrb[94].mxu1 %vm797_vm0, %v14403_v47  ;;  %v14467_v47 = vld [vmem:[%s20263_s1 + $0x288] sm:$0xff] }
 0x596   :  { %12842 = vmatprep.mubr.msk.f32.mxu1 %vm797_vm0, %v14404_v25  ;;  %v14468_v25 = vld [vmem:[%s20263_s1 + $0x290] sm:$0xff] }
 0x599   :  { %12843 = vmatmul.mubr.msk.f32.gmra.mrb[96].mxu1 %vm797_vm0, %v14405_v60  ;;  %v14469_v60 = vld [vmem:[%s20263_s1 + $0x298] sm:$0xff] }
 0x59a   :  { %12845 = vmatprep.mubr.msk.f32.mxu1 %vm797_vm0, %v14406_v17  ;;  %v14470_v17 = vld [vmem:[%s20263_s1 + $0x2a0] sm:$0xff] }
 0x59d   :  { %12846 = vmatmul.mubr.msk.f32.gmra.mrb[98].mxu1 %vm797_vm0, %v14407_v23  ;;  %v14471_v23 = vld [vmem:[%s20263_s1 + $0x2a8] sm:$0xff] }
 0x59e   :  { %12848 = vmatprep.mubr.msk.f32.mxu1 %vm797_vm0, %v14408_v59  ;;  %v14472_v59 = vld [vmem:[%s20263_s1 + $0x2b0] sm:$0xff] }
 0x5a1   :  { %12849 = vmatmul.mubr.msk.f32.gmra.mrb[100].mxu1 %vm797_vm0, %v14409_v44  ;;  %v14473_v44 = vld [vmem:[%s20263_s1 + $0x2b8] sm:$0xff] }
 0x5a2   :  { %12851 = vmatprep.mubr.msk.f32.mxu1 %vm797_vm0, %v14410_v45  ;;  %v14474_v45 = vld [vmem:[%s20263_s1 + $0x2c0] sm:$0xff] }
 0x5a5   :  { %12852 = vmatmul.mubr.msk.f32.gmra.mrb[102].mxu1 %vm797_vm0, %v14411_v57  ;;  %v14475_v57 = vld [vmem:[%s20263_s1 + $0x2c8] sm:$0xff] }
 0x5a6   :  { %12854 = vmatprep.mubr.msk.f32.mxu1 %vm797_vm0, %v14412_v56  ;;  %v14476_v56 = vld [vmem:[%s20263_s1 + $0x2d0] sm:$0xff] }
 0x5a9   :  { %12855 = vmatmul.mubr.msk.f32.gmra.mrb[104].mxu1 %vm797_vm0, %v14413_v24  ;;  %v14477_v24 = vld [vmem:[%s20263_s1 + $0x2d8] sm:$0xff] }
 0x5aa   :  { %12857 = vmatprep.mubr.msk.f32.mxu1 %vm797_vm0, %v14414_v41  ;;  %v14478_v41 = vld [vmem:[%s20263_s1 + $0x2e0] sm:$0xff] }
 0x5ad   :  { %12858 = vmatmul.mubr.msk.f32.gmra.mrb[106].mxu1 %vm797_vm0, %v14415_v27  ;;  %v14479_v27 = vld [vmem:[%s20263_s1 + $0x2e8] sm:$0xff] }
 0x5ae   :  { %12860 = vmatprep.mubr.msk.f32.mxu1 %vm797_vm0, %v14416_v33  ;;  %v14480_v33 = vld [vmem:[%s20263_s1 + $0x2f0] sm:$0xff] }
 0x5b1   :  { %12861 = vmatmul.mubr.msk.f32.gmra.mrb[108].mxu1 %vm797_vm0, %v14417_v22  ;;  %v14481_v22 = vld [vmem:[%s20263_s1 + $0x2f8] sm:$0xff] }
 0x5b2   :  { %12863 = vmatprep.mubr.msk.f32.mxu1 %vm797_vm0, %v14418_v50  ;;  %v14482_v50 = vld [vmem:[%s20263_s1 + $0x300] sm:$0xff] }
 0x5b5   :  { %12864 = vmatmul.mubr.msk.f32.gmra.mrb[110].mxu1 %vm797_vm0, %v14419_v13  ;;  %v14483_v13 = vld [vmem:[%s20263_s1 + $0x308] sm:$0xff] }
 0x5b6   :  { %12866 = vmatprep.mubr.msk.f32.mxu1 %vm797_vm0, %v14420_v58  ;;  %v14484_v58 = vld [vmem:[%s20263_s1 + $0x310] sm:$0xff] }
 0x5b9   :  { %12867 = vmatmul.mubr.msk.f32.gmra.mrb[112].mxu1 %vm797_vm0, %v14421_v15  ;;  %v14485_v15 = vld [vmem:[%s20263_s1 + $0x318] sm:$0xff] }
 0x5ba   :  { %12869 = vmatprep.mubr.msk.f32.mxu1 %vm797_vm0, %v14422_v6  ;;  %v14486_v6 = vld [vmem:[%s20263_s1 + $0x320] sm:$0xff] }
 0x5bd   :  { %12870 = vmatmul.mubr.msk.f32.gmra.mrb[114].mxu1 %vm797_vm0, %v14423_v55  ;;  %v14487_v55 = vld [vmem:[%s20263_s1 + $0x328] sm:$0xff] }
 0x5be   :  { %12872 = vmatprep.mubr.msk.f32.mxu1 %vm797_vm0, %v14424_v52  ;;  %v14488_v52 = vld [vmem:[%s20263_s1 + $0x330] sm:$0xff] }
 0x5c1   :  { %12873 = vmatmul.mubr.msk.f32.gmra.mrb[116].mxu1 %vm797_vm0, %v14425_v36  ;;  %v14489_v36 = vld [vmem:[%s20263_s1 + $0x338] sm:$0xff] }
 0x5c2   :  { %12875 = vmatprep.mubr.msk.f32.mxu1 %vm797_vm0, %v14426_v34  ;;  %v20522_v34 = vld [vmem:[#allocation2_spill] sm:$0xff] }
 0x5c5   :  { %12876 = vmatmul.mubr.msk.f32.gmra.mrb[118].mxu1 %vm797_vm0, %v14427_v28  ;;  %v9713_v28 = vsub.s32 6, %v20522_v34 }
 0x5c6   :  { %12878 = vmatprep.mubr.msk.f32.mxu1 %vm797_vm0, %v14428_v8  ;;  %v14490_v8 = vld [vmem:[%s20263_s1 + $0x340] sm:$0xff] }
 0x5c9   :  { %12879 = vmatmul.mubr.msk.f32.gmra.mrb[120].mxu1 %vm797_vm0, %v14429_v2  ;;  %v14491_v2 = vld [vmem:[%s20263_s1 + $0x348] sm:$0xff] }
 0x5ca   :  { %12881 = vmatprep.mubr.msk.f32.mxu1 %vm797_vm0, %v14430_v14  ;;  %v14492_v14 = vld [vmem:[%s20265_s2] sm:$0xff] }
 0x5cd   :  { %12882 = vmatmul.mubr.msk.f32.gmra.mrb[122].mxu1 %vm797_vm0, %v14431_v62  ;;  %v19334_v62 = vrot.slane %v14492_v14, %v9713_v28  ;;  %v14509_v14 = vld [vmem:[%s20263_s1 + $0x3d0] sm:$0xff] }
 0x5ce   :  { %12884 = vmatprep.mubr.msk.f32.mxu1 %vm797_vm0, %v14432_v10  ;;  %v14493_v10 = vld [vmem:[%s20263_s1 + $0x350] sm:$0xff] }
 0x5d1   :  { %12885 = vmatmul.mubr.msk.f32.gmra.mrb[124].mxu1 %vm797_vm0, %v14433_v42 }
 0x5d2   :  { %12887 = vmatprep.mubr.msk.f32.mxu1 %vm797_vm0, %v14434_v37 }
 0x5d5   :  { %12888 = vmatmul.mubr.msk.f32.gmra.mrb[126].mxu1 %vm797_vm0, %v14435_v21 }
 0x5d6   :  { %12890 = vmatprep.mubr.msk.f32.mxu1 %vm797_vm0, %v14436_v48  ;;  %v14494_v48 = vld [vmem:[%s20263_s1 + $0x358] sm:$0xff] }
 0x5d9   :  { %12891 = vmatmul.mubr.msk.f32.gmra.mrb[128].mxu1 %vm797_vm0, %v14437_v4 }
 0x5da   :  { %12893 = vmatprep.mubr.msk.f32.mxu1 %vm797_vm0, %v14438_v30  ;;  %v14495_v30 = vld [vmem:[%s20263_s1 + $0x360] sm:$0xff] }
 0x5dd   :  { %12894 = vmatmul.mubr.msk.f32.gmra.mrb[130].mxu1 %vm797_vm0, %v14439_v20 }
 0x5de   :  { %12896 = vmatprep.mubr.msk.f32.mxu1 %vm797_vm0, %v14440_v12 }
 0x5e1   :  { %12897 = vmatmul.mubr.msk.f32.gmra.mrb[132].mxu1 %vm797_vm0, %v14441_v5 }
 0x5e2   :  { %12899 = vmatprep.mubr.msk.f32.mxu1 %vm797_vm0, %v14442_v49 }
 0x5e5   :  { %12900 = vmatmul.mubr.msk.f32.gmra.mrb[134].mxu1 %vm797_vm0, %v14443_v11 }
 0x5e6   :  { %12902 = vmatprep.mubr.msk.f32.mxu1 %vm797_vm0, %v14444_v18  ;;  %v14496_v18 = vld [vmem:[%s20263_s1 + $0x368] sm:$0xff] }
 0x5e9   :  { %12903 = vmatmul.mubr.msk.f32.gmra.mrb[136].mxu1 %vm797_vm0, %v14445_v46 }
 0x5ea   :  { %12905 = vmatprep.mubr.msk.f32.mxu1 %vm797_vm0, %v14446_v3  ;;  %v14497_v3 = vld [vmem:[%s20263_s1 + $0x370] sm:$0xff] }
 0x5ed   :  { %12906 = vmatmul.mubr.msk.f32.gmra.mrb[138].mxu1 %vm797_vm0, %v14447_v51 }
 0x5ee   :  { %12908 = vmatprep.mubr.msk.f32.mxu1 %vm797_vm0, %v14448_v9 }
 0x5f1   :  { %12909 = vmatmul.mubr.msk.f32.gmra.mrb[140].mxu1 %vm797_vm0, %v14449_v26 }
 0x5f2   :  { %12911 = vmatprep.mubr.msk.f32.mxu1 %vm797_vm0, %v14450_v61 }
 0x5f5   :  { %12912 = vmatmul.mubr.msk.f32.gmra.mrb[142].mxu1 %vm797_vm0, %v14451_v39 }
 0x5f6   :  { %12914 = vmatprep.mubr.msk.f32.mxu1 %vm797_vm0, %v14452_v40  ;;  %v14498_v40 = vld [vmem:[%s20263_s1 + $0x378] sm:$0xff] }
 0x5f9   :  { %12915 = vmatmul.mubr.msk.f32.gmra.mrb[144].mxu1 %vm797_vm0, %v14453_v16 }
 0x5fa   :  { %12917 = vmatprep.mubr.msk.f32.mxu1 %vm797_vm0, %v14454_v63  ;;  %v14499_v63 = vld [vmem:[%s20263_s1 + $0x380] sm:$0xff] }
 0x5fd   :  { %12918 = vmatmul.mubr.msk.f32.gmra.mrb[146].mxu1 %vm797_vm0, %v14455_v19 }
 0x5fe   :  { %12920 = vmatprep.mubr.msk.f32.mxu1 %vm797_vm0, %v14456_v38 }
 0x601   :  { %12921 = vmatmul.mubr.msk.f32.gmra.mrb[148].mxu1 %vm797_vm0, %v14457_v29 }
 0x602   :  { %12923 = vmatprep.mubr.msk.f32.mxu1 %vm797_vm0, %v14458_v32 }
 0x605   :  { %12924 = vmatmul.mubr.msk.f32.gmra.mrb[150].mxu1 %vm797_vm0, %v14459_v1 }
 0x606   :  { %12926 = vmatprep.mubr.msk.f32.mxu1 %vm797_vm0, %v14460_v31  ;;  %v14500_v31 = vld [vmem:[%s20263_s1 + $0x388] sm:$0xff] }
 0x609   :  { %12927 = vmatmul.mubr.msk.f32.gmra.mrb[152].mxu1 %vm797_vm0, %v14461_v54 }
 0x60a   :  { %12929 = vmatprep.mubr.msk.f32.mxu1 %vm797_vm0, %v14462_v0  ;;  %v14501_v0 = vld [vmem:[%s20263_s1 + $0x390] sm:$0xff] }
 0x60d   :  { %12930 = vmatmul.mubr.msk.f32.gmra.mrb[154].mxu1 %vm797_vm0, %v14463_v43 }
 0x60e   :  { %12932 = vmatprep.mubr.msk.f32.mxu1 %vm797_vm0, %v14464_v7 }
 0x611   :  { %12933 = vmatmul.mubr.msk.f32.gmra.mrb[156].mxu1 %vm797_vm0, %v14465_v35 }
 0x612   :  { %12935 = vmatprep.mubr.msk.f32.mxu1 %vm797_vm0, %v14466_v53 }
 0x615   :  { %12936 = vmatmul.mubr.msk.f32.gmra.mrb[158].mxu1 %vm797_vm0, %v14467_v47 }
 0x616   :  { %12938 = vmatprep.mubr.msk.f32.mxu1 %vm797_vm0, %v14468_v25  ;;  %v14502_v25 = vld [vmem:[%s20263_s1 + $0x398] sm:$0xff] }
 0x619   :  { %12939 = vmatmul.mubr.msk.f32.gmra.mrb[160].mxu1 %vm797_vm0, %v14469_v60 }
 0x61a   :  { %12941 = vmatprep.mubr.msk.f32.mxu1 %vm797_vm0, %v14470_v17  ;;  %v14503_v17 = vld [vmem:[%s20263_s1 + $0x3a0] sm:$0xff] }
 0x61d   :  { %12942 = vmatmul.mubr.msk.f32.gmra.mrb[162].mxu1 %vm797_vm0, %v14471_v23 }
 0x61e   :  { %12944 = vmatprep.mubr.msk.f32.mxu1 %vm797_vm0, %v14472_v59 }
 0x621   :  { %12945 = vmatmul.mubr.msk.f32.gmra.mrb[164].mxu1 %vm797_vm0, %v14473_v44 }
 0x622   :  { %12947 = vmatprep.mubr.msk.f32.mxu1 %vm797_vm0, %v14474_v45 }
 0x625   :  { %12948 = vmatmul.mubr.msk.f32.gmra.mrb[166].mxu1 %vm797_vm0, %v14475_v57 }
 0x626   :  { %12950 = vmatprep.mubr.msk.f32.mxu1 %vm797_vm0, %v14476_v56  ;;  %v14504_v56 = vld [vmem:[%s20263_s1 + $0x3a8] sm:$0xff] }
 0x629   :  { %12951 = vmatmul.mubr.msk.f32.gmra.mrb[168].mxu1 %vm797_vm0, %v14477_v24 }
 0x62a   :  { %12953 = vmatprep.mubr.msk.f32.mxu1 %vm797_vm0, %v14478_v41  ;;  %v14505_v41 = vld [vmem:[%s20263_s1 + $0x3b0] sm:$0xff] }
 0x62d   :  { %12954 = vmatmul.mubr.msk.f32.gmra.mrb[170].mxu1 %vm797_vm0, %v14479_v27 }
 0x62e   :  { %12956 = vmatprep.mubr.msk.f32.mxu1 %vm797_vm0, %v14480_v33 }
 0x631   :  { %12957 = vmatmul.mubr.msk.f32.gmra.mrb[172].mxu1 %vm797_vm0, %v14481_v22 }
 0x632   :  { %12959 = vmatprep.mubr.msk.f32.mxu1 %vm797_vm0, %v14482_v50 }
 0x635   :  { %12960 = vmatmul.mubr.msk.f32.gmra.mrb[174].mxu1 %vm797_vm0, %v14483_v13 }
 0x636   :  { %12962 = vmatprep.mubr.msk.f32.mxu1 %vm797_vm0, %v14484_v58  ;;  %v14506_v58 = vld [vmem:[%s20263_s1 + $0x3b8] sm:$0xff] }
 0x639   :  { %12963 = vmatmul.mubr.msk.f32.gmra.mrb[176].mxu1 %vm797_vm0, %v14485_v15 }
 0x63a   :  { %12965 = vmatprep.mubr.msk.f32.mxu1 %vm797_vm0, %v14486_v6  ;;  %v14507_v6 = vld [vmem:[%s20263_s1 + $0x3c0] sm:$0xff] }
 0x63d   :  { %12966 = vmatmul.mubr.msk.f32.gmra.mrb[178].mxu1 %vm797_vm0, %v14487_v55 }
 0x63e   :  { %12968 = vmatprep.mubr.msk.f32.mxu1 %vm797_vm0, %v14488_v52 }
 0x641   :  { %12969 = vmatmul.mubr.msk.f32.gmra.mrb[180].mxu1 %vm797_vm0, %v14489_v36 }
 0x642   :  { %12971 = vmatprep.mubr.msk.f32.mxu1 %vm797_vm0, %v14490_v8  ;;  %v14508_v8 = vld [vmem:[%s20263_s1 + $0x3c8] sm:$0xff] }
 0x645   :  { %12972 = vmatmul.mubr.msk.f32.gmra.mrb[182].mxu1 %vm797_vm0, %v14491_v2 }
 0x646   :  { %12974 = vmatprep.mubr.msk.f32.mxu1 %vm797_vm0, %v14493_v10 }
 0x648   :  { %v12817_v42 = vpop.f32.mrb[78].mxu1 }
 0x649   :  { %v9716_v37 = vadd.f32 %v12817_v42, %v19334_v62  ;;  %v8962_v21 = vpop.f32.mrb[79].mxu1  ;;  %12975 = vmatmul.mubr.msk.f32.gmra.mrb[184].mxu1 %vm797_vm0, %v14494_v48 }
 0x64a   :  { %v9715_v4 = vadd.f32 %v19334_v62, %v8962_v21  ;;  %12977 = vmatprep.mubr.msk.f32.mxu1 %vm797_vm0, %v14495_v30 }
 0x64b   :  { %v9866_v20 = vmax.f32 %v9716_v37, 0.0 }
 0x64c   :  { %v9865_v12 = vmax.f32 %v9715_v4, 0.0  ;;  %v12820_v5 = vpop.f32.mrb[80].mxu1  ;;  %v14510_v4 = vld [vmem:[%s20263_s1 + $0x3d8] sm:$0xff] }
 0x64d   :  { %10016 = vst.msk [vmem:[%s20269_s7 + $0x8] sm:$0xff] %vm797_vm0, %v9866_v20  ;;  %v9718_v49 = vadd.f32 %v12820_v5, %v19334_v62  ;;  %v8972_v11 = vpop.f32.mrb[81].mxu1  ;;  %12978 = vmatmul.mubr.msk.f32.gmra.mrb[186].mxu1 %vm797_vm0, %v14496_v18  ;;  %v14511_v20 = vld [vmem:[%s20263_s1 + $0x3e0] sm:$0xff] }
 0x64e   :  { %10015 = vst.msk [vmem:[%s20269_s7] sm:$0xff] %vm797_vm0, %v9865_v12  ;;  %v9717_v46 = vadd.f32 %v19334_v62, %v8972_v11  ;;  %12980 = vmatprep.mubr.msk.f32.mxu1 %vm797_vm0, %v14497_v3 }
 0x64f   :  { %v9868_v51 = vmax.f32 %v9718_v49, 0.0 }
 0x650   :  { %v9867_v9 = vmax.f32 %v9717_v46, 0.0  ;;  %v12823_v26 = vpop.f32.mrb[82].mxu1  ;;  %v14512_v46 = vld [vmem:[%s20263_s1 + $0x3e8] sm:$0xff] }
 0x651   :  { %10018 = vst.msk [vmem:[%s20269_s7 + $0x18] sm:$0xff] %vm797_vm0, %v9868_v51  ;;  %v9720_v61 = vadd.f32 %v12823_v26, %v19334_v62  ;;  %v8982_v39 = vpop.f32.mrb[83].mxu1  ;;  %12981 = vmatmul.mubr.msk.f32.gmra.mrb[188].mxu1 %vm797_vm0, %v14498_v40  ;;  %v14513_v51 = vld [vmem:[%s20263_s1 + $0x3f0] sm:$0xff] }
 0x652   :  { %10017 = vst.msk [vmem:[%s20269_s7 + $0x10] sm:$0xff] %vm797_vm0, %v9867_v9  ;;  %v9719_v16 = vadd.f32 %v19334_v62, %v8982_v39  ;;  %12983 = vmatprep.mubr.msk.f32.mxu1 %vm797_vm0, %v14499_v63 }
 0x653   :  { %v9870_v19 = vmax.f32 %v9720_v61, 0.0 }
 0x654   :  { %v9869_v38 = vmax.f32 %v9719_v16, 0.0  ;;  %v12826_v29 = vpop.f32.mrb[84].mxu1  ;;  %v14514_v16 = vld [vmem:[%s20263_s1 + $0x3f8] sm:$0xff] }
 0x655   :  { %10020 = vst.msk [vmem:[%s20269_s7 + $0x28] sm:$0xff] %vm797_vm0, %v9870_v19  ;;  %v9722_v32 = vadd.f32 %v12826_v29, %v19334_v62  ;;  %v8992_v1 = vpop.f32.mrb[85].mxu1  ;;  %12984 = vmatmul.mubr.msk.f32.gmra.mrb[190].mxu1 %vm797_vm0, %v14500_v31  ;;  %v14515_v19 = vld [vmem:[%s20263_s1 + $0x400] sm:$0xff] }
 0x656   :  { %10019 = vst.msk [vmem:[%s20269_s7 + $0x20] sm:$0xff] %vm797_vm0, %v9869_v38  ;;  %v9721_v54 = vadd.f32 %v19334_v62, %v8992_v1  ;;  %12986 = vmatprep.mubr.msk.f32.mxu1 %vm797_vm0, %v14501_v0 }
 0x657   :  { %v9872_v43 = vmax.f32 %v9722_v32, 0.0 }
 0x658   :  { %v9871_v7 = vmax.f32 %v9721_v54, 0.0  ;;  %v12829_v35 = vpop.f32.mrb[86].mxu1  ;;  %v14516_v54 = vld [vmem:[%s20263_s1 + $0x408] sm:$0xff] }
 0x659   :  { %10022 = vst.msk [vmem:[%s20269_s7 + $0x38] sm:$0xff] %vm797_vm0, %v9872_v43  ;;  %v9724_v53 = vadd.f32 %v12829_v35, %v19334_v62  ;;  %v9002_v47 = vpop.f32.mrb[87].mxu1  ;;  %12987 = vmatmul.mubr.msk.f32.gmra.mrb[192].mxu1 %vm797_vm0, %v14502_v25  ;;  %v14517_v43 = vld [vmem:[%s20263_s1 + $0x410] sm:$0xff] }
 0x65a   :  { %10021 = vst.msk [vmem:[%s20269_s7 + $0x30] sm:$0xff] %vm797_vm0, %v9871_v7  ;;  %v9723_v60 = vadd.f32 %v19334_v62, %v9002_v47  ;;  %12989 = vmatprep.mubr.msk.f32.mxu1 %vm797_vm0, %v14503_v17 }
 0x65b   :  { %v9874_v23 = vmax.f32 %v9724_v53, 0.0 }
 0x65c   :  { %v9873_v59 = vmax.f32 %v9723_v60, 0.0  ;;  %v12832_v44 = vpop.f32.mrb[88].mxu1  ;;  %v14518_v60 = vld [vmem:[%s20263_s1 + $0x418] sm:$0xff] }
 0x65d   :  { %10024 = vst.msk [vmem:[%s20269_s7 + $0x48] sm:$0xff] %vm797_vm0, %v9874_v23  ;;  %v9726_v45 = vadd.f32 %v12832_v44, %v19334_v62  ;;  %v9012_v57 = vpop.f32.mrb[89].mxu1  ;;  %12990 = vmatmul.mubr.msk.f32.gmra.mrb[194].mxu1 %vm797_vm0, %v14504_v56  ;;  %v14519_v23 = vld [vmem:[%s20263_s1 + $0x420] sm:$0xff] }
 0x65e   :  { %10023 = vst.msk [vmem:[%s20269_s7 + $0x40] sm:$0xff] %vm797_vm0, %v9873_v59  ;;  %v9725_v24 = vadd.f32 %v19334_v62, %v9012_v57  ;;  %12992 = vmatprep.mubr.msk.f32.mxu1 %vm797_vm0, %v14505_v41 }
 0x65f   :  { %v9876_v27 = vmax.f32 %v9726_v45, 0.0 }
 0x660   :  { %v9875_v33 = vmax.f32 %v9725_v24, 0.0  ;;  %v12835_v22 = vpop.f32.mrb[90].mxu1  ;;  %v14520_v24 = vld [vmem:[%s20263_s1 + $0x428] sm:$0xff] }
 0x661   :  { %10026 = vst.msk [vmem:[%s20269_s7 + $0x58] sm:$0xff] %vm797_vm0, %v9876_v27  ;;  %v9728_v50 = vadd.f32 %v12835_v22, %v19334_v62  ;;  %v9022_v13 = vpop.f32.mrb[91].mxu1  ;;  %12993 = vmatmul.mubr.msk.f32.gmra.mrb[196].mxu1 %vm797_vm0, %v14506_v58  ;;  %v14521_v27 = vld [vmem:[%s20263_s1 + $0x430] sm:$0xff] }
 0x662   :  { %10025 = vst.msk [vmem:[%s20269_s7 + $0x50] sm:$0xff] %vm797_vm0, %v9875_v33  ;;  %v9727_v15 = vadd.f32 %v19334_v62, %v9022_v13  ;;  %12995 = vmatprep.mubr.msk.f32.mxu1 %vm797_vm0, %v14507_v6 }
 0x663   :  { %v9878_v55 = vmax.f32 %v9728_v50, 0.0 }
 0x664   :  { %v9877_v52 = vmax.f32 %v9727_v15, 0.0  ;;  %v12838_v36 = vpop.f32.mrb[92].mxu1  ;;  %v14522_v15 = vld [vmem:[%s20263_s1 + $0x438] sm:$0xff] }
 0x665   :  { %10028 = vst.msk [vmem:[%s20269_s7 + $0x68] sm:$0xff] %vm797_vm0, %v9878_v55  ;;  %v9730_v34 = vadd.f32 %v12838_v36, %v19334_v62  ;;  %v9032_v28 = vpop.f32.mrb[93].mxu1  ;;  %12996 = vmatmul.mubr.msk.f32.gmra.mrb[198].mxu1 %vm797_vm0, %v14508_v8  ;;  %v14523_v55 = vld [vmem:[%s20263_s1 + $0x440] sm:$0xff] }
 0x666   :  { %10027 = vst.msk [vmem:[%s20269_s7 + $0x60] sm:$0xff] %vm797_vm0, %v9877_v52  ;;  %v9729_v2 = vadd.f32 %v19334_v62, %v9032_v28  ;;  %12998 = vmatprep.mubr.msk.f32.mxu1 %vm797_vm0, %v14509_v14 }
 0x667   :  { %v9880_v10 = vmax.f32 %v9730_v34, 0.0 }
 0x668   :  { %v9879_v42 = vmax.f32 %v9729_v2, 0.0  ;;  %v12841_v37 = vpop.f32.mrb[94].mxu1  ;;  %v14524_v2 = vld [vmem:[%s20263_s1 + $0x448] sm:$0xff] }
 0x669   :  { %10030 = vst.msk [vmem:[%s20269_s7 + $0x78] sm:$0xff] %vm797_vm0, %v9880_v10  ;;  %v9732_v21 = vadd.f32 %v12841_v37, %v19334_v62  ;;  %v9042_v48 = vpop.f32.mrb[95].mxu1  ;;  %12999 = vmatmul.mubr.msk.f32.gmra.mrb[200].mxu1 %vm797_vm0, %v14510_v4  ;;  %v14525_v10 = vld [vmem:[%s20263_s1 + $0x450] sm:$0xff] }
 0x66a   :  { %10029 = vst.msk [vmem:[%s20269_s7 + $0x70] sm:$0xff] %vm797_vm0, %v9879_v42  ;;  %v9731_v30 = vadd.f32 %v19334_v62, %v9042_v48  ;;  %13001 = vmatprep.mubr.msk.f32.mxu1 %vm797_vm0, %v14511_v20 }
 0x66b   :  { %v9882_v12 = vmax.f32 %v9732_v21, 0.0 }
 0x66c   :  { %v9881_v5 = vmax.f32 %v9731_v30, 0.0  ;;  %v12844_v49 = vpop.f32.mrb[96].mxu1  ;;  %v14526_v30 = vld [vmem:[%s20263_s1 + $0x458] sm:$0xff] }
 0x66d   :  { %10032 = vst.msk [vmem:[%s20269_s7 + $0x88] sm:$0xff] %vm797_vm0, %v9882_v12  ;;  %v9734_v11 = vadd.f32 %v12844_v49, %v19334_v62  ;;  %v9052_v18 = vpop.f32.mrb[97].mxu1  ;;  %13002 = vmatmul.mubr.msk.f32.gmra.mrb[202].mxu1 %vm797_vm0, %v14512_v46  ;;  %v14527_v12 = vld [vmem:[%s20263_s1 + $0x460] sm:$0xff] }
 0x66e   :  { %10031 = vst.msk [vmem:[%s20269_s7 + $0x80] sm:$0xff] %vm797_vm0, %v9881_v5  ;;  %v9733_v3 = vadd.f32 %v19334_v62, %v9052_v18  ;;  %13004 = vmatprep.mubr.msk.f32.mxu1 %vm797_vm0, %v14513_v51 }
 0x66f   :  { %v9884_v9 = vmax.f32 %v9734_v11, 0.0 }
 0x670   :  { %v9883_v26 = vmax.f32 %v9733_v3, 0.0  ;;  %v12847_v61 = vpop.f32.mrb[98].mxu1  ;;  %v14528_v3 = vld [vmem:[%s20263_s1 + $0x468] sm:$0xff] }
 0x671   :  { %10034 = vst.msk [vmem:[%s20269_s7 + $0x98] sm:$0xff] %vm797_vm0, %v9884_v9  ;;  %v9736_v39 = vadd.f32 %v12847_v61, %v19334_v62  ;;  %v9062_v40 = vpop.f32.mrb[99].mxu1  ;;  %13005 = vmatmul.mubr.msk.f32.gmra.mrb[204].mxu1 %vm797_vm0, %v14514_v16  ;;  %v14529_v9 = vld [vmem:[%s20263_s1 + $0x470] sm:$0xff] }
 0x672   :  { %10033 = vst.msk [vmem:[%s20269_s7 + $0x90] sm:$0xff] %vm797_vm0, %v9883_v26  ;;  %v9735_v63 = vadd.f32 %v19334_v62, %v9062_v40  ;;  %13007 = vmatprep.mubr.msk.f32.mxu1 %vm797_vm0, %v14515_v19 }
 0x673   :  { %v9886_v38 = vmax.f32 %v9736_v39, 0.0 }
 0x674   :  { %v9885_v29 = vmax.f32 %v9735_v63, 0.0  ;;  %v12850_v32 = vpop.f32.mrb[100].mxu1  ;;  %v14530_v63 = vld [vmem:[%s20263_s1 + $0x478] sm:$0xff] }
 0x675   :  { %10036 = vst.msk [vmem:[%s20269_s7 + $0xa8] sm:$0xff] %vm797_vm0, %v9886_v38  ;;  %v9738_v1 = vadd.f32 %v12850_v32, %v19334_v62  ;;  %v9072_v31 = vpop.f32.mrb[101].mxu1  ;;  %13008 = vmatmul.mubr.msk.f32.gmra.mrb[206].mxu1 %vm797_vm0, %v14516_v54  ;;  %v14531_v38 = vld [vmem:[%s20263_s1 + $0x480] sm:$0xff] }
 0x676   :  { %10035 = vst.msk [vmem:[%s20269_s7 + $0xa0] sm:$0xff] %vm797_vm0, %v9885_v29  ;;  %v9737_v0 = vadd.f32 %v19334_v62, %v9072_v31  ;;  %13010 = vmatprep.mubr.msk.f32.mxu1 %vm797_vm0, %v14517_v43 }
 0x677   :  { %v9888_v7 = vmax.f32 %v9738_v1, 0.0 }
 0x678   :  { %v9887_v35 = vmax.f32 %v9737_v0, 0.0  ;;  %v12853_v53 = vpop.f32.mrb[102].mxu1  ;;  %v14532_v0 = vld [vmem:[%s20263_s1 + $0x488] sm:$0xff] }
 0x679   :  { %10038 = vst.msk [vmem:[%s20269_s7 + $0xb8] sm:$0xff] %vm797_vm0, %v9888_v7  ;;  %v9740_v47 = vadd.f32 %v12853_v53, %v19334_v62  ;;  %v9082_v25 = vpop.f32.mrb[103].mxu1  ;;  %13011 = vmatmul.mubr.msk.f32.gmra.mrb[208].mxu1 %vm797_vm0, %v14518_v60  ;;  %v14533_v7 = vld [vmem:[%s20263_s1 + $0x490] sm:$0xff] }
 0x67a   :  { %10037 = vst.msk [vmem:[%s20269_s7 + $0xb0] sm:$0xff] %vm797_vm0, %v9887_v35  ;;  %v9739_v17 = vadd.f32 %v19334_v62, %v9082_v25  ;;  %13013 = vmatprep.mubr.msk.f32.mxu1 %vm797_vm0, %v14519_v23 }
 0x67b   :  { %v9890_v59 = vmax.f32 %v9740_v47, 0.0 }
 0x67c   :  { %v9889_v44 = vmax.f32 %v9739_v17, 0.0  ;;  %v12856_v45 = vpop.f32.mrb[104].mxu1  ;;  %v14534_v17 = vld [vmem:[%s20263_s1 + $0x498] sm:$0xff] }
 0x67d   :  { %10040 = vst.msk [vmem:[%s20269_s7 + $0xc8] sm:$0xff] %vm797_vm0, %v9890_v59  ;;  %v9742_v57 = vadd.f32 %v12856_v45, %v19334_v62  ;;  %v9092_v56 = vpop.f32.mrb[105].mxu1  ;;  %13014 = vmatmul.mubr.msk.f32.gmra.mrb[210].mxu1 %vm797_vm0, %v14520_v24  ;;  %v14535_v59 = vld [vmem:[%s20263_s1 + $0x4a0] sm:$0xff] }
 0x67e   :  { %10039 = vst.msk [vmem:[%s20269_s7 + $0xc0] sm:$0xff] %vm797_vm0, %v9889_v44  ;;  %v9741_v41 = vadd.f32 %v19334_v62, %v9092_v56  ;;  %13016 = vmatprep.mubr.msk.f32.mxu1 %vm797_vm0, %v14521_v27 }
 0x67f   :  { %v9892_v33 = vmax.f32 %v9742_v57, 0.0 }
 0x680   :  { %v9891_v22 = vmax.f32 %v9741_v41, 0.0  ;;  %v12859_v50 = vpop.f32.mrb[106].mxu1  ;;  %v14536_v41 = vld [vmem:[%s20263_s1 + $0x4a8] sm:$0xff] }
 0x681   :  { %10042 = vst.msk [vmem:[%s20269_s7 + $0xd8] sm:$0xff] %vm797_vm0, %v9892_v33  ;;  %v9744_v13 = vadd.f32 %v12859_v50, %v19334_v62  ;;  %v9102_v58 = vpop.f32.mrb[107].mxu1  ;;  %13017 = vmatmul.mubr.msk.f32.gmra.mrb[212].mxu1 %vm797_vm0, %v14522_v15 }
 0x682   :  { %10041 = vst.msk [vmem:[%s20269_s7 + $0xd0] sm:$0xff] %vm797_vm0, %v9891_v22  ;;  %v9743_v6 = vadd.f32 %v19334_v62, %v9102_v58  ;;  %13019 = vmatprep.mubr.msk.f32.mxu1 %vm797_vm0, %v14523_v55 }
 0x683   :  { %v9894_v52 = vmax.f32 %v9744_v13, 0.0 }
 0x684   :  { %v9893_v36 = vmax.f32 %v9743_v6, 0.0  ;;  %v12862_v34 = vpop.f32.mrb[108].mxu1 }
 0x685   :  { %10044 = vst.msk [vmem:[%s20269_s7 + $0xe8] sm:$0xff] %vm797_vm0, %v9894_v52  ;;  %v9746_v28 = vadd.f32 %v12862_v34, %v19334_v62  ;;  %v9112_v8 = vpop.f32.mrb[109].mxu1  ;;  %13020 = vmatmul.mubr.msk.f32.gmra.mrb[214].mxu1 %vm797_vm0, %v14524_v2 }
 0x686   :  { %10043 = vst.msk [vmem:[%s20269_s7 + $0xe0] sm:$0xff] %vm797_vm0, %v9893_v36  ;;  %v9745_v14 = vadd.f32 %v19334_v62, %v9112_v8  ;;  %13022 = vmatprep.mubr.msk.f32.mxu1 %vm797_vm0, %v14525_v10 }
 0x687   :  { %v9896_v42 = vmax.f32 %v9746_v28, 0.0 }
 0x688   :  { %v9895_v37 = vmax.f32 %v9745_v14, 0.0  ;;  %v12865_v21 = vpop.f32.mrb[110].mxu1 }
 0x689   :  { %10046 = vst.msk [vmem:[%s20269_s7 + $0xf8] sm:$0xff] %vm797_vm0, %v9896_v42  ;;  %v9748_v48 = vadd.f32 %v12865_v21, %v19334_v62  ;;  %v9122_v4 = vpop.f32.mrb[111].mxu1  ;;  %13023 = vmatmul.mubr.msk.f32.gmra.mrb[216].mxu1 %vm797_vm0, %v14526_v30 }
 0x68a   :  { %10045 = vst.msk [vmem:[%s20269_s7 + $0xf0] sm:$0xff] %vm797_vm0, %v9895_v37  ;;  %v9747_v20 = vadd.f32 %v19334_v62, %v9122_v4  ;;  %13025 = vmatprep.mubr.msk.f32.mxu1 %vm797_vm0, %v14527_v12 }
 0x68b   :  { %v9898_v5 = vmax.f32 %v9748_v48, 0.0 }
 0x68c   :  { %v9897_v49 = vmax.f32 %v9747_v20, 0.0  ;;  %v12868_v11 = vpop.f32.mrb[112].mxu1 }
 0x68d   :  { %10048 = vst.msk [vmem:[%s20269_s7 + $0x108] sm:$0xff] %vm797_vm0, %v9898_v5  ;;  %v9750_v18 = vadd.f32 %v12868_v11, %v19334_v62  ;;  %v9132_v46 = vpop.f32.mrb[113].mxu1  ;;  %13026 = vmatmul.mubr.msk.f32.gmra.mrb[218].mxu1 %vm797_vm0, %v14528_v3 }
 0x68e   :  { %10047 = vst.msk [vmem:[%s20269_s7 + $0x100] sm:$0xff] %vm797_vm0, %v9897_v49  ;;  %v9749_v51 = vadd.f32 %v19334_v62, %v9132_v46  ;;  %13028 = vmatprep.mubr.msk.f32.mxu1 %vm797_vm0, %v14529_v9 }
 0x68f   :  { %v9900_v26 = vmax.f32 %v9750_v18, 0.0 }
 0x690   :  { %v9899_v61 = vmax.f32 %v9749_v51, 0.0  ;;  %v12871_v39 = vpop.f32.mrb[114].mxu1 }
 0x691   :  { %10050 = vst.msk [vmem:[%s20269_s7 + $0x118] sm:$0xff] %vm797_vm0, %v9900_v26  ;;  %v9752_v40 = vadd.f32 %v12871_v39, %v19334_v62  ;;  %v9142_v16 = vpop.f32.mrb[115].mxu1  ;;  %13029 = vmatmul.mubr.msk.f32.gmra.mrb[220].mxu1 %vm797_vm0, %v14530_v63 }
 0x692   :  { %10049 = vst.msk [vmem:[%s20269_s7 + $0x110] sm:$0xff] %vm797_vm0, %v9899_v61  ;;  %v9751_v19 = vadd.f32 %v19334_v62, %v9142_v16  ;;  %13031 = vmatprep.mubr.msk.f32.mxu1 %vm797_vm0, %v14531_v38 }
 0x693   :  { %v9902_v29 = vmax.f32 %v9752_v40, 0.0 }
 0x694   :  { %v9901_v32 = vmax.f32 %v9751_v19, 0.0  ;;  %v12874_v1 = vpop.f32.mrb[116].mxu1 }
 0x695   :  { %10052 = vst.msk [vmem:[%s20269_s7 + $0x128] sm:$0xff] %vm797_vm0, %v9902_v29  ;;  %v9754_v31 = vadd.f32 %v12874_v1, %v19334_v62  ;;  %v9152_v54 = vpop.f32.mrb[117].mxu1  ;;  %13032 = vmatmul.mubr.msk.f32.gmra.mrb[222].mxu1 %vm797_vm0, %v14532_v0 }
 0x696   :  { %10051 = vst.msk [vmem:[%s20269_s7 + $0x120] sm:$0xff] %vm797_vm0, %v9901_v32  ;;  %v9753_v43 = vadd.f32 %v19334_v62, %v9152_v54  ;;  %13034 = vmatprep.mubr.msk.f32.mxu1 %vm797_vm0, %v14533_v7 }
 0x697   :  { %v9904_v35 = vmax.f32 %v9754_v31, 0.0 }
 0x698   :  { %v9903_v53 = vmax.f32 %v9753_v43, 0.0  ;;  %v12877_v47 = vpop.f32.mrb[118].mxu1 }
 0x699   :  { %10054 = vst.msk [vmem:[%s20269_s7 + $0x138] sm:$0xff] %vm797_vm0, %v9904_v35  ;;  %v9756_v25 = vadd.f32 %v12877_v47, %v19334_v62  ;;  %v9162_v60 = vpop.f32.mrb[119].mxu1  ;;  %13035 = vmatmul.mubr.msk.f32.gmra.mrb[224].mxu1 %vm797_vm0, %v14534_v17 }
 0x69a   :  { %10053 = vst.msk [vmem:[%s20269_s7 + $0x130] sm:$0xff] %vm797_vm0, %v9903_v53  ;;  %v9755_v23 = vadd.f32 %v19334_v62, %v9162_v60  ;;  %13037 = vmatprep.mubr.msk.f32.mxu1 %vm797_vm0, %v14535_v59 }
 0x69b   :  { %v9906_v44 = vmax.f32 %v9756_v25, 0.0 }
 0x69c   :  { %v9905_v45 = vmax.f32 %v9755_v23, 0.0  ;;  %v12880_v57 = vpop.f32.mrb[120].mxu1 }
 0x69d   :  { %10056 = vst.msk [vmem:[%s20269_s7 + $0x148] sm:$0xff] %vm797_vm0, %v9906_v44  ;;  %v9758_v56 = vadd.f32 %v12880_v57, %v19334_v62  ;;  %v9172_v24 = vpop.f32.mrb[121].mxu1  ;;  %13038 = vmatmul.mubr.msk.f32.gmra.mrb[226].mxu1 %vm797_vm0, %v14536_v41 }
 0x69e   :  { %10055 = vst.msk [vmem:[%s20269_s7 + $0x140] sm:$0xff] %vm797_vm0, %v9905_v45  ;;  %v9757_v27 = vadd.f32 %v19334_v62, %v9172_v24 }
 0x69f   :  { %v9908_v33 = vmax.f32 %v9758_v56, 0.0 }
 0x6a0   :  { %v9907_v22 = vmax.f32 %v9757_v27, 0.0  ;;  %v12883_v50 = vpop.f32.mrb[122].mxu1 }
 0x6a1   :  { %10058 = vst.msk [vmem:[%s20269_s7 + $0x158] sm:$0xff] %vm797_vm0, %v9908_v33  ;;  %v9760_v13 = vadd.f32 %v12883_v50, %v19334_v62  ;;  %v9182_v58 = vpop.f32.mrb[123].mxu1 }
 0x6a2   :  { %10057 = vst.msk [vmem:[%s20269_s7 + $0x150] sm:$0xff] %vm797_vm0, %v9907_v22  ;;  %v9759_v15 = vadd.f32 %v19334_v62, %v9182_v58 }
 0x6a3   :  { %v9910_v6 = vmax.f32 %v9760_v13, 0.0 }
 0x6a4   :  { %v9909_v55 = vmax.f32 %v9759_v15, 0.0  ;;  %v12886_v52 = vpop.f32.mrb[124].mxu1 }
 0x6a5   :  { %10060 = vst.msk [vmem:[%s20269_s7 + $0x168] sm:$0xff] %vm797_vm0, %v9910_v6  ;;  %v9762_v36 = vadd.f32 %v12886_v52, %v19334_v62  ;;  %v9192_v34 = vpop.f32.mrb[125].mxu1 }
 0x6a6   :  { %10059 = vst.msk [vmem:[%s20269_s7 + $0x160] sm:$0xff] %vm797_vm0, %v9909_v55  ;;  %v9761_v28 = vadd.f32 %v19334_v62, %v9192_v34 }
 0x6a7   :  { %v9912_v8 = vmax.f32 %v9762_v36, 0.0 }
 0x6a8   :  { %v9911_v2 = vmax.f32 %v9761_v28, 0.0  ;;  %v12889_v14 = vpop.f32.mrb[126].mxu1 }
 0x6a9   :  { %10062 = vst.msk [vmem:[%s20269_s7 + $0x178] sm:$0xff] %vm797_vm0, %v9912_v8  ;;  %v9764_v10 = vadd.f32 %v12889_v14, %v19334_v62  ;;  %v9202_v42 = vpop.f32.mrb[127].mxu1 }
 0x6aa   :  { %10061 = vst.msk [vmem:[%s20269_s7 + $0x170] sm:$0xff] %vm797_vm0, %v9911_v2  ;;  %v9763_v37 = vadd.f32 %v19334_v62, %v9202_v42 }
 0x6ab   :  { %v9914_v21 = vmax.f32 %v9764_v10, 0.0 }
 0x6ac   :  { %v9913_v48 = vmax.f32 %v9763_v37, 0.0  ;;  %v12892_v4 = vpop.f32.mrb[128].mxu1 }
 0x6ad   :  { %10064 = vst.msk [vmem:[%s20269_s7 + $0x188] sm:$0xff] %vm797_vm0, %v9914_v21  ;;  %v9766_v30 = vadd.f32 %v12892_v4, %v19334_v62  ;;  %v9212_v20 = vpop.f32.mrb[129].mxu1 }
 0x6ae   :  { %10063 = vst.msk [vmem:[%s20269_s7 + $0x180] sm:$0xff] %vm797_vm0, %v9913_v48  ;;  %v9765_v12 = vadd.f32 %v19334_v62, %v9212_v20 }
 0x6af   :  { %v9916_v5 = vmax.f32 %v9766_v30, 0.0 }
 0x6b0   :  { %v9915_v49 = vmax.f32 %v9765_v12, 0.0  ;;  %v12895_v11 = vpop.f32.mrb[130].mxu1 }
 0x6b1   :  { %10066 = vst.msk [vmem:[%s20269_s7 + $0x198] sm:$0xff] %vm797_vm0, %v9916_v5  ;;  %v9768_v18 = vadd.f32 %v12895_v11, %v19334_v62  ;;  %v9222_v46 = vpop.f32.mrb[131].mxu1 }
 0x6b2   :  { %10065 = vst.msk [vmem:[%s20269_s7 + $0x190] sm:$0xff] %vm797_vm0, %v9915_v49  ;;  %v9767_v3 = vadd.f32 %v19334_v62, %v9222_v46 }
 0x6b3   :  { %v9918_v51 = vmax.f32 %v9768_v18, 0.0 }
 0x6b4   :  { %v9917_v9 = vmax.f32 %v9767_v3, 0.0  ;;  %v12898_v26 = vpop.f32.mrb[132].mxu1 }
 0x6b5   :  { %10068 = vst.msk [vmem:[%s20269_s7 + $0x1a8] sm:$0xff] %vm797_vm0, %v9918_v51  ;;  %v9770_v61 = vadd.f32 %v12898_v26, %v19334_v62  ;;  %v9232_v39 = vpop.f32.mrb[133].mxu1 }
 0x6b6   :  { %10067 = vst.msk [vmem:[%s20269_s7 + $0x1a0] sm:$0xff] %vm797_vm0, %v9917_v9  ;;  %v9769_v40 = vadd.f32 %v19334_v62, %v9232_v39 }
 0x6b7   :  { %v9920_v16 = vmax.f32 %v9770_v61, 0.0 }
 0x6b8   :  { %v9919_v63 = vmax.f32 %v9769_v40, 0.0  ;;  %v12901_v19 = vpop.f32.mrb[134].mxu1 }
 0x6b9   :  { %10070 = vst.msk [vmem:[%s20269_s7 + $0x1b8] sm:$0xff] %vm797_vm0, %v9920_v16  ;;  %v9772_v38 = vadd.f32 %v12901_v19, %v19334_v62  ;;  %v9242_v29 = vpop.f32.mrb[135].mxu1 }
 0x6ba   :  { %10069 = vst.msk [vmem:[%s20269_s7 + $0x1b0] sm:$0xff] %vm797_vm0, %v9919_v63  ;;  %v9771_v32 = vadd.f32 %v19334_v62, %v9242_v29 }
 0x6bb   :  { %v9922_v1 = vmax.f32 %v9772_v38, 0.0 }
 0x6bc   :  { %v9921_v31 = vmax.f32 %v9771_v32, 0.0  ;;  %v12904_v54 = vpop.f32.mrb[136].mxu1 }
 0x6bd   :  { %10072 = vst.msk [vmem:[%s20269_s7 + $0x1c8] sm:$0xff] %vm797_vm0, %v9922_v1  ;;  %v9774_v0 = vadd.f32 %v12904_v54, %v19334_v62  ;;  %v9252_v43 = vpop.f32.mrb[137].mxu1 }
 0x6be   :  { %10071 = vst.msk [vmem:[%s20269_s7 + $0x1c0] sm:$0xff] %vm797_vm0, %v9921_v31  ;;  %v9773_v7 = vadd.f32 %v19334_v62, %v9252_v43 }
 0x6bf   :  { %v9924_v35 = vmax.f32 %v9774_v0, 0.0 }
 0x6c0   :  { %v9923_v53 = vmax.f32 %v9773_v7, 0.0  ;;  %v12907_v47 = vpop.f32.mrb[138].mxu1 }
 0x6c1   :  { %10074 = vst.msk [vmem:[%s20269_s7 + $0x1d8] sm:$0xff] %vm797_vm0, %v9924_v35  ;;  %v9776_v25 = vadd.f32 %v12907_v47, %v19334_v62  ;;  %v9262_v60 = vpop.f32.mrb[139].mxu1 }
 0x6c2   :  { %10073 = vst.msk [vmem:[%s20269_s7 + $0x1d0] sm:$0xff] %vm797_vm0, %v9923_v53  ;;  %v9775_v17 = vadd.f32 %v19334_v62, %v9262_v60 }
 0x6c3   :  { %v9926_v23 = vmax.f32 %v9776_v25, 0.0 }
 0x6c4   :  { %v9925_v59 = vmax.f32 %v9775_v17, 0.0  ;;  %v12910_v44 = vpop.f32.mrb[140].mxu1 }
 0x6c5   :  { %10076 = vst.msk [vmem:[%s20269_s7 + $0x1e8] sm:$0xff] %vm797_vm0, %v9926_v23  ;;  %v9778_v45 = vadd.f32 %v12910_v44, %v19334_v62  ;;  %v9272_v57 = vpop.f32.mrb[141].mxu1 }
 0x6c6   :  { %10075 = vst.msk [vmem:[%s20269_s7 + $0x1e0] sm:$0xff] %vm797_vm0, %v9925_v59  ;;  %v9777_v56 = vadd.f32 %v19334_v62, %v9272_v57 }
 0x6c7   :  { %v9928_v24 = vmax.f32 %v9778_v45, 0.0 }
 0x6c8   :  { %v9927_v41 = vmax.f32 %v9777_v56, 0.0  ;;  %v12913_v27 = vpop.f32.mrb[142].mxu1 }
 0x6c9   :  { %10078 = vst.msk [vmem:[%s20269_s7 + $0x1f8] sm:$0xff] %vm797_vm0, %v9928_v24  ;;  %v9780_v33 = vadd.f32 %v12913_v27, %v19334_v62  ;;  %v9282_v22 = vpop.f32.mrb[143].mxu1 }
 0x6ca   :  { %10077 = vst.msk [vmem:[%s20269_s7 + $0x1f0] sm:$0xff] %vm797_vm0, %v9927_v41  ;;  %v9779_v50 = vadd.f32 %v19334_v62, %v9282_v22 }
 0x6cb   :  { %v9930_v13 = vmax.f32 %v9780_v33, 0.0 }
 0x6cc   :  { %v9929_v58 = vmax.f32 %v9779_v50, 0.0  ;;  %v12916_v15 = vpop.f32.mrb[144].mxu1 }
 0x6cd   :  { %10080 = vst.msk [vmem:[%s20269_s7 + $0x208] sm:$0xff] %vm797_vm0, %v9930_v13  ;;  %v9782_v6 = vadd.f32 %v12916_v15, %v19334_v62  ;;  %v9292_v55 = vpop.f32.mrb[145].mxu1 }
 0x6ce   :  { %10079 = vst.msk [vmem:[%s20269_s7 + $0x200] sm:$0xff] %vm797_vm0, %v9929_v58  ;;  %v9781_v52 = vadd.f32 %v19334_v62, %v9292_v55 }
 0x6cf   :  { %v9932_v36 = vmax.f32 %v9782_v6, 0.0 }
 0x6d0   :  { %v9931_v34 = vmax.f32 %v9781_v52, 0.0  ;;  %v12919_v28 = vpop.f32.mrb[146].mxu1 }
 0x6d1   :  { %10082 = vst.msk [vmem:[%s20269_s7 + $0x218] sm:$0xff] %vm797_vm0, %v9932_v36  ;;  %v9784_v8 = vadd.f32 %v12919_v28, %v19334_v62  ;;  %v9302_v2 = vpop.f32.mrb[147].mxu1 }
 0x6d2   :  { %10081 = vst.msk [vmem:[%s20269_s7 + $0x210] sm:$0xff] %vm797_vm0, %v9931_v34  ;;  %v9783_v14 = vadd.f32 %v19334_v62, %v9302_v2 }
 0x6d3   :  { %v9934_v10 = vmax.f32 %v9784_v8, 0.0 }
 0x6d4   :  { %v9933_v42 = vmax.f32 %v9783_v14, 0.0  ;;  %v12922_v37 = vpop.f32.mrb[148].mxu1 }
 0x6d5   :  { %10084 = vst.msk [vmem:[%s20269_s7 + $0x228] sm:$0xff] %vm797_vm0, %v9934_v10  ;;  %v9786_v21 = vadd.f32 %v12922_v37, %v19334_v62  ;;  %v9312_v48 = vpop.f32.mrb[149].mxu1 }
 0x6d6   :  { %10083 = vst.msk [vmem:[%s20269_s7 + $0x220] sm:$0xff] %vm797_vm0, %v9933_v42  ;;  %v9785_v4 = vadd.f32 %v19334_v62, %v9312_v48 }
 0x6d7   :  { %v9936_v30 = vmax.f32 %v9786_v21, 0.0 }
 0x6d8   :  { %v9935_v20 = vmax.f32 %v9785_v4, 0.0  ;;  %v12925_v12 = vpop.f32.mrb[150].mxu1 }
 0x6d9   :  { %10086 = vst.msk [vmem:[%s20269_s7 + $0x238] sm:$0xff] %vm797_vm0, %v9936_v30  ;;  %v9788_v5 = vadd.f32 %v12925_v12, %v19334_v62  ;;  %v9322_v49 = vpop.f32.mrb[151].mxu1 }
 0x6da   :  { %10085 = vst.msk [vmem:[%s20269_s7 + $0x230] sm:$0xff] %vm797_vm0, %v9935_v20  ;;  %v9787_v11 = vadd.f32 %v19334_v62, %v9322_v49 }
 0x6db   :  { %v9938_v18 = vmax.f32 %v9788_v5, 0.0 }
 0x6dc   :  { %v9937_v46 = vmax.f32 %v9787_v11, 0.0  ;;  %v12928_v3 = vpop.f32.mrb[152].mxu1 }
 0x6dd   :  { %10088 = vst.msk [vmem:[%s20269_s7 + $0x248] sm:$0xff] %vm797_vm0, %v9938_v18  ;;  %v9790_v51 = vadd.f32 %v12928_v3, %v19334_v62  ;;  %v9332_v9 = vpop.f32.mrb[153].mxu1 }
 0x6de   :  { %10087 = vst.msk [vmem:[%s20269_s7 + $0x240] sm:$0xff] %vm797_vm0, %v9937_v46  ;;  %v9789_v26 = vadd.f32 %v19334_v62, %v9332_v9 }
 0x6df   :  { %v9940_v61 = vmax.f32 %v9790_v51, 0.0 }
 0x6e0   :  { %v9939_v39 = vmax.f32 %v9789_v26, 0.0  ;;  %v12931_v40 = vpop.f32.mrb[154].mxu1 }
 0x6e1   :  { %10090 = vst.msk [vmem:[%s20269_s7 + $0x258] sm:$0xff] %vm797_vm0, %v9940_v61  ;;  %v9792_v16 = vadd.f32 %v12931_v40, %v19334_v62  ;;  %v9342_v63 = vpop.f32.mrb[155].mxu1 }
 0x6e2   :  { %10089 = vst.msk [vmem:[%s20269_s7 + $0x250] sm:$0xff] %vm797_vm0, %v9939_v39  ;;  %v9791_v19 = vadd.f32 %v19334_v62, %v9342_v63 }
 0x6e3   :  { %v9942_v38 = vmax.f32 %v9792_v16, 0.0 }
 0x6e4   :  { %v9941_v29 = vmax.f32 %v9791_v19, 0.0  ;;  %v12934_v32 = vpop.f32.mrb[156].mxu1 }
 0x6e5   :  { %10092 = vst.msk [vmem:[%s20269_s7 + $0x268] sm:$0xff] %vm797_vm0, %v9942_v38  ;;  %v9794_v1 = vadd.f32 %v12934_v32, %v19334_v62  ;;  %v9352_v31 = vpop.f32.mrb[157].mxu1 }
 0x6e6   :  { %10091 = vst.msk [vmem:[%s20269_s7 + $0x260] sm:$0xff] %vm797_vm0, %v9941_v29  ;;  %v9793_v54 = vadd.f32 %v19334_v62, %v9352_v31 }
 0x6e7   :  { %v9944_v0 = vmax.f32 %v9794_v1, 0.0 }
 0x6e8   :  { %v9943_v43 = vmax.f32 %v9793_v54, 0.0  ;;  %v12937_v7 = vpop.f32.mrb[158].mxu1 }
 0x6e9   :  { %10094 = vst.msk [vmem:[%s20269_s7 + $0x278] sm:$0xff] %vm797_vm0, %v9944_v0  ;;  %v9796_v35 = vadd.f32 %v12937_v7, %v19334_v62  ;;  %v9362_v53 = vpop.f32.mrb[159].mxu1 }
 0x6ea   :  { %10093 = vst.msk [vmem:[%s20269_s7 + $0x270] sm:$0xff] %vm797_vm0, %v9943_v43  ;;  %v9795_v47 = vadd.f32 %v19334_v62, %v9362_v53 }
 0x6eb   :  { %v9946_v25 = vmax.f32 %v9796_v35, 0.0 }
 0x6ec   :  { %v9945_v60 = vmax.f32 %v9795_v47, 0.0  ;;  %v12940_v17 = vpop.f32.mrb[160].mxu1 }
 0x6ed   :  { %10096 = vst.msk [vmem:[%s20269_s7 + $0x288] sm:$0xff] %vm797_vm0, %v9946_v25  ;;  %v9798_v23 = vadd.f32 %v12940_v17, %v19334_v62  ;;  %v9372_v59 = vpop.f32.mrb[161].mxu1 }
 0x6ee   :  { %10095 = vst.msk [vmem:[%s20269_s7 + $0x280] sm:$0xff] %vm797_vm0, %v9945_v60  ;;  %v9797_v44 = vadd.f32 %v19334_v62, %v9372_v59 }
 0x6ef   :  { %v9948_v45 = vmax.f32 %v9798_v23, 0.0 }
 0x6f0   :  { %v9947_v57 = vmax.f32 %v9797_v44, 0.0  ;;  %v12943_v56 = vpop.f32.mrb[162].mxu1 }
 0x6f1   :  { %10098 = vst.msk [vmem:[%s20269_s7 + $0x298] sm:$0xff] %vm797_vm0, %v9948_v45  ;;  %v9800_v24 = vadd.f32 %v12943_v56, %v19334_v62  ;;  %v9382_v41 = vpop.f32.mrb[163].mxu1 }
 0x6f2   :  { %10097 = vst.msk [vmem:[%s20269_s7 + $0x290] sm:$0xff] %vm797_vm0, %v9947_v57  ;;  %v9799_v27 = vadd.f32 %v19334_v62, %v9382_v41 }
 0x6f3   :  { %v9950_v33 = vmax.f32 %v9800_v24, 0.0 }
 0x6f4   :  { %v9949_v22 = vmax.f32 %v9799_v27, 0.0  ;;  %v12946_v50 = vpop.f32.mrb[164].mxu1 }
 0x6f5   :  { %10100 = vst.msk [vmem:[%s20269_s7 + $0x2a8] sm:$0xff] %vm797_vm0, %v9950_v33  ;;  %v9802_v13 = vadd.f32 %v12946_v50, %v19334_v62  ;;  %v9392_v58 = vpop.f32.mrb[165].mxu1 }
 0x6f6   :  { %10099 = vst.msk [vmem:[%s20269_s7 + $0x2a0] sm:$0xff] %vm797_vm0, %v9949_v22  ;;  %v9801_v15 = vadd.f32 %v19334_v62, %v9392_v58 }
 0x6f7   :  { %v9952_v6 = vmax.f32 %v9802_v13, 0.0 }
 0x6f8   :  { %v9951_v55 = vmax.f32 %v9801_v15, 0.0  ;;  %v12949_v52 = vpop.f32.mrb[166].mxu1 }
 0x6f9   :  { %10102 = vst.msk [vmem:[%s20269_s7 + $0x2b8] sm:$0xff] %vm797_vm0, %v9952_v6  ;;  %v9804_v36 = vadd.f32 %v12949_v52, %v19334_v62  ;;  %v9402_v34 = vpop.f32.mrb[167].mxu1 }
 0x6fa   :  { %10101 = vst.msk [vmem:[%s20269_s7 + $0x2b0] sm:$0xff] %vm797_vm0, %v9951_v55  ;;  %v9803_v28 = vadd.f32 %v19334_v62, %v9402_v34 }
 0x6fb   :  { %v9954_v8 = vmax.f32 %v9804_v36, 0.0 }
 0x6fc   :  { %v9953_v2 = vmax.f32 %v9803_v28, 0.0  ;;  %v12952_v14 = vpop.f32.mrb[168].mxu1 }
 0x6fd   :  { %10104 = vst.msk [vmem:[%s20269_s7 + $0x2c8] sm:$0xff] %vm797_vm0, %v9954_v8  ;;  %v9806_v10 = vadd.f32 %v12952_v14, %v19334_v62  ;;  %v9412_v42 = vpop.f32.mrb[169].mxu1 }
 0x6fe   :  { %10103 = vst.msk [vmem:[%s20269_s7 + $0x2c0] sm:$0xff] %vm797_vm0, %v9953_v2  ;;  %v9805_v37 = vadd.f32 %v19334_v62, %v9412_v42 }
 0x6ff   :  { %v9956_v21 = vmax.f32 %v9806_v10, 0.0 }
 0x700   :  { %v9955_v48 = vmax.f32 %v9805_v37, 0.0  ;;  %v12955_v4 = vpop.f32.mrb[170].mxu1 }
 0x701   :  { %10106 = vst.msk [vmem:[%s20269_s7 + $0x2d8] sm:$0xff] %vm797_vm0, %v9956_v21  ;;  %v9808_v30 = vadd.f32 %v12955_v4, %v19334_v62  ;;  %v9422_v20 = vpop.f32.mrb[171].mxu1 }
 0x702   :  { %10105 = vst.msk [vmem:[%s20269_s7 + $0x2d0] sm:$0xff] %vm797_vm0, %v9955_v48  ;;  %v9807_v12 = vadd.f32 %v19334_v62, %v9422_v20 }
 0x703   :  { %v9958_v5 = vmax.f32 %v9808_v30, 0.0 }
 0x704   :  { %v9957_v49 = vmax.f32 %v9807_v12, 0.0  ;;  %v12958_v11 = vpop.f32.mrb[172].mxu1 }
 0x705   :  { %10108 = vst.msk [vmem:[%s20269_s7 + $0x2e8] sm:$0xff] %vm797_vm0, %v9958_v5  ;;  %v9810_v18 = vadd.f32 %v12958_v11, %v19334_v62  ;;  %v9432_v46 = vpop.f32.mrb[173].mxu1 }
 0x706   :  { %10107 = vst.msk [vmem:[%s20269_s7 + $0x2e0] sm:$0xff] %vm797_vm0, %v9957_v49  ;;  %v9809_v3 = vadd.f32 %v19334_v62, %v9432_v46 }
 0x707   :  { %v9960_v51 = vmax.f32 %v9810_v18, 0.0 }
 0x708   :  { %v9959_v9 = vmax.f32 %v9809_v3, 0.0  ;;  %v12961_v26 = vpop.f32.mrb[174].mxu1 }
 0x709   :  { %10110 = vst.msk [vmem:[%s20269_s7 + $0x2f8] sm:$0xff] %vm797_vm0, %v9960_v51  ;;  %v9812_v61 = vadd.f32 %v12961_v26, %v19334_v62  ;;  %v9442_v39 = vpop.f32.mrb[175].mxu1 }
 0x70a   :  { %10109 = vst.msk [vmem:[%s20269_s7 + $0x2f0] sm:$0xff] %vm797_vm0, %v9959_v9  ;;  %v9811_v40 = vadd.f32 %v19334_v62, %v9442_v39 }
 0x70b   :  { %v9962_v16 = vmax.f32 %v9812_v61, 0.0 }
 0x70c   :  { %v9961_v63 = vmax.f32 %v9811_v40, 0.0  ;;  %v12964_v19 = vpop.f32.mrb[176].mxu1 }
 0x70d   :  { %10112 = vst.msk [vmem:[%s20269_s7 + $0x308] sm:$0xff] %vm797_vm0, %v9962_v16  ;;  %v9814_v38 = vadd.f32 %v12964_v19, %v19334_v62  ;;  %v9452_v29 = vpop.f32.mrb[177].mxu1 }
 0x70e   :  { %10111 = vst.msk [vmem:[%s20269_s7 + $0x300] sm:$0xff] %vm797_vm0, %v9961_v63  ;;  %v9813_v32 = vadd.f32 %v19334_v62, %v9452_v29 }
 0x70f   :  { %v9964_v1 = vmax.f32 %v9814_v38, 0.0 }
 0x710   :  { %v9963_v31 = vmax.f32 %v9813_v32, 0.0  ;;  %v12967_v54 = vpop.f32.mrb[178].mxu1 }
 0x711   :  { %10114 = vst.msk [vmem:[%s20269_s7 + $0x318] sm:$0xff] %vm797_vm0, %v9964_v1  ;;  %v9816_v0 = vadd.f32 %v12967_v54, %v19334_v62  ;;  %v9462_v43 = vpop.f32.mrb[179].mxu1 }
 0x712   :  { %10113 = vst.msk [vmem:[%s20269_s7 + $0x310] sm:$0xff] %vm797_vm0, %v9963_v31  ;;  %v9815_v7 = vadd.f32 %v19334_v62, %v9462_v43 }
 0x713   :  { %v9966_v35 = vmax.f32 %v9816_v0, 0.0 }
 0x714   :  { %v9965_v53 = vmax.f32 %v9815_v7, 0.0  ;;  %v12970_v47 = vpop.f32.mrb[180].mxu1 }
 0x715   :  { %10116 = vst.msk [vmem:[%s20269_s7 + $0x328] sm:$0xff] %vm797_vm0, %v9966_v35  ;;  %v9818_v25 = vadd.f32 %v12970_v47, %v19334_v62  ;;  %v9472_v60 = vpop.f32.mrb[181].mxu1 }
 0x716   :  { %10115 = vst.msk [vmem:[%s20269_s7 + $0x320] sm:$0xff] %vm797_vm0, %v9965_v53  ;;  %v9817_v17 = vadd.f32 %v19334_v62, %v9472_v60 }
 0x717   :  { %v9968_v23 = vmax.f32 %v9818_v25, 0.0 }
 0x718   :  { %v9967_v59 = vmax.f32 %v9817_v17, 0.0  ;;  %v12973_v44 = vpop.f32.mrb[182].mxu1 }
 0x719   :  { %10118 = vst.msk [vmem:[%s20269_s7 + $0x338] sm:$0xff] %vm797_vm0, %v9968_v23  ;;  %v9820_v45 = vadd.f32 %v12973_v44, %v19334_v62  ;;  %v9482_v57 = vpop.f32.mrb[183].mxu1 }
 0x71a   :  { %10117 = vst.msk [vmem:[%s20269_s7 + $0x330] sm:$0xff] %vm797_vm0, %v9967_v59  ;;  %v9819_v56 = vadd.f32 %v19334_v62, %v9482_v57 }
 0x71b   :  { %v9970_v24 = vmax.f32 %v9820_v45, 0.0 }
 0x71c   :  { %v9969_v41 = vmax.f32 %v9819_v56, 0.0  ;;  %v12976_v27 = vpop.f32.mrb[184].mxu1 }
 0x71d   :  { %10120 = vst.msk [vmem:[%s20269_s7 + $0x348] sm:$0xff] %vm797_vm0, %v9970_v24  ;;  %v9822_v33 = vadd.f32 %v12976_v27, %v19334_v62  ;;  %v9492_v22 = vpop.f32.mrb[185].mxu1 }
 0x71e   :  { %10119 = vst.msk [vmem:[%s20269_s7 + $0x340] sm:$0xff] %vm797_vm0, %v9969_v41  ;;  %v9821_v50 = vadd.f32 %v19334_v62, %v9492_v22 }
 0x71f   :  { %v9972_v13 = vmax.f32 %v9822_v33, 0.0 }
 0x720   :  { %v9971_v58 = vmax.f32 %v9821_v50, 0.0  ;;  %v12979_v15 = vpop.f32.mrb[186].mxu1 }
 0x721   :  { %10122 = vst.msk [vmem:[%s20269_s7 + $0x358] sm:$0xff] %vm797_vm0, %v9972_v13  ;;  %v9824_v6 = vadd.f32 %v12979_v15, %v19334_v62  ;;  %v9502_v55 = vpop.f32.mrb[187].mxu1 }
 0x722   :  { %10121 = vst.msk [vmem:[%s20269_s7 + $0x350] sm:$0xff] %vm797_vm0, %v9971_v58  ;;  %v9823_v52 = vadd.f32 %v19334_v62, %v9502_v55 }
 0x723   :  { %v9974_v36 = vmax.f32 %v9824_v6, 0.0 }
 0x724   :  { %v9973_v34 = vmax.f32 %v9823_v52, 0.0  ;;  %v12982_v28 = vpop.f32.mrb[188].mxu1 }
 0x725   :  { %10124 = vst.msk [vmem:[%s20269_s7 + $0x368] sm:$0xff] %vm797_vm0, %v9974_v36  ;;  %v9826_v8 = vadd.f32 %v12982_v28, %v19334_v62  ;;  %v9512_v2 = vpop.f32.mrb[189].mxu1 }
 0x726   :  { %10123 = vst.msk [vmem:[%s20269_s7 + $0x360] sm:$0xff] %vm797_vm0, %v9973_v34  ;;  %v9825_v14 = vadd.f32 %v19334_v62, %v9512_v2 }
 0x727   :  { %v9976_v10 = vmax.f32 %v9826_v8, 0.0 }
 0x728   :  { %v9975_v42 = vmax.f32 %v9825_v14, 0.0  ;;  %v12985_v37 = vpop.f32.mrb[190].mxu1 }
 0x729   :  { %10126 = vst.msk [vmem:[%s20269_s7 + $0x378] sm:$0xff] %vm797_vm0, %v9976_v10  ;;  %v9828_v21 = vadd.f32 %v12985_v37, %v19334_v62  ;;  %v9522_v48 = vpop.f32.mrb[191].mxu1 }
 0x72a   :  { %10125 = vst.msk [vmem:[%s20269_s7 + $0x370] sm:$0xff] %vm797_vm0, %v9975_v42  ;;  %v9827_v4 = vadd.f32 %v19334_v62, %v9522_v48 }
 0x72b   :  { %v9978_v30 = vmax.f32 %v9828_v21, 0.0 }
 0x72c   :  { %v9977_v20 = vmax.f32 %v9827_v4, 0.0  ;;  %v12988_v12 = vpop.f32.mrb[192].mxu1 }
 0x72d   :  { %10128 = vst.msk [vmem:[%s20269_s7 + $0x388] sm:$0xff] %vm797_vm0, %v9978_v30  ;;  %v9830_v5 = vadd.f32 %v12988_v12, %v19334_v62  ;;  %v9532_v49 = vpop.f32.mrb[193].mxu1 }
 0x72e   :  { %10127 = vst.msk [vmem:[%s20269_s7 + $0x380] sm:$0xff] %vm797_vm0, %v9977_v20  ;;  %v9829_v11 = vadd.f32 %v19334_v62, %v9532_v49 }
 0x72f   :  { %v9980_v18 = vmax.f32 %v9830_v5, 0.0 }
 0x730   :  { %v9979_v46 = vmax.f32 %v9829_v11, 0.0  ;;  %v12991_v3 = vpop.f32.mrb[194].mxu1 }
 0x731   :  { %10130 = vst.msk [vmem:[%s20269_s7 + $0x398] sm:$0xff] %vm797_vm0, %v9980_v18  ;;  %v9832_v51 = vadd.f32 %v12991_v3, %v19334_v62  ;;  %v9542_v9 = vpop.f32.mrb[195].mxu1 }
 0x732   :  { %10129 = vst.msk [vmem:[%s20269_s7 + $0x390] sm:$0xff] %vm797_vm0, %v9979_v46  ;;  %v9831_v26 = vadd.f32 %v19334_v62, %v9542_v9 }
 0x733   :  { %v9982_v61 = vmax.f32 %v9832_v51, 0.0 }
 0x734   :  { %v9981_v39 = vmax.f32 %v9831_v26, 0.0  ;;  %v12994_v40 = vpop.f32.mrb[196].mxu1 }
 0x735   :  { %10132 = vst.msk [vmem:[%s20269_s7 + $0x3a8] sm:$0xff] %vm797_vm0, %v9982_v61  ;;  %v9834_v16 = vadd.f32 %v12994_v40, %v19334_v62  ;;  %v9552_v63 = vpop.f32.mrb[197].mxu1 }
 0x736   :  { %10131 = vst.msk [vmem:[%s20269_s7 + $0x3a0] sm:$0xff] %vm797_vm0, %v9981_v39  ;;  %v9833_v19 = vadd.f32 %v19334_v62, %v9552_v63 }
 0x737   :  { %v9984_v38 = vmax.f32 %v9834_v16, 0.0 }
 0x738   :  { %v9983_v29 = vmax.f32 %v9833_v19, 0.0  ;;  %v12997_v32 = vpop.f32.mrb[198].mxu1 }
 0x739   :  { %10134 = vst.msk [vmem:[%s20269_s7 + $0x3b8] sm:$0xff] %vm797_vm0, %v9984_v38  ;;  %v9836_v1 = vadd.f32 %v12997_v32, %v19334_v62  ;;  %v9562_v31 = vpop.f32.mrb[199].mxu1 }
 0x73a   :  { %10133 = vst.msk [vmem:[%s20269_s7 + $0x3b0] sm:$0xff] %vm797_vm0, %v9983_v29  ;;  %v9835_v54 = vadd.f32 %v19334_v62, %v9562_v31 }
 0x73b   :  { %v9986_v0 = vmax.f32 %v9836_v1, 0.0 }
 0x73c   :  { %v9985_v43 = vmax.f32 %v9835_v54, 0.0  ;;  %v13000_v7 = vpop.f32.mrb[200].mxu1 }
 0x73d   :  { %10136 = vst.msk [vmem:[%s20269_s7 + $0x3c8] sm:$0xff] %vm797_vm0, %v9986_v0  ;;  %v9838_v35 = vadd.f32 %v13000_v7, %v19334_v62  ;;  %v9572_v53 = vpop.f32.mrb[201].mxu1 }
 0x73e   :  { %10135 = vst.msk [vmem:[%s20269_s7 + $0x3c0] sm:$0xff] %vm797_vm0, %v9985_v43  ;;  %v9837_v47 = vadd.f32 %v19334_v62, %v9572_v53 }
 0x73f   :  { %v9988_v25 = vmax.f32 %v9838_v35, 0.0 }
 0x740   :  { %v9987_v60 = vmax.f32 %v9837_v47, 0.0  ;;  %v13003_v17 = vpop.f32.mrb[202].mxu1 }
 0x741   :  { %10138 = vst.msk [vmem:[%s20269_s7 + $0x3d8] sm:$0xff] %vm797_vm0, %v9988_v25  ;;  %v9840_v23 = vadd.f32 %v13003_v17, %v19334_v62  ;;  %v9582_v59 = vpop.f32.mrb[203].mxu1 }
 0x742   :  { %10137 = vst.msk [vmem:[%s20269_s7 + $0x3d0] sm:$0xff] %vm797_vm0, %v9987_v60  ;;  %v9839_v44 = vadd.f32 %v19334_v62, %v9582_v59 }
 0x743   :  { %v9990_v45 = vmax.f32 %v9840_v23, 0.0 }
 0x744   :  { %v9989_v57 = vmax.f32 %v9839_v44, 0.0  ;;  %v13006_v56 = vpop.f32.mrb[204].mxu1 }
 0x745   :  { %10140 = vst.msk [vmem:[%s20269_s7 + $0x3e8] sm:$0xff] %vm797_vm0, %v9990_v45  ;;  %v9842_v24 = vadd.f32 %v13006_v56, %v19334_v62  ;;  %v9592_v41 = vpop.f32.mrb[205].mxu1 }
 0x746   :  { %10139 = vst.msk [vmem:[%s20269_s7 + $0x3e0] sm:$0xff] %vm797_vm0, %v9989_v57  ;;  %v9841_v27 = vadd.f32 %v19334_v62, %v9592_v41 }
 0x747   :  { %v9992_v33 = vmax.f32 %v9842_v24, 0.0 }
 0x748   :  { %v9991_v22 = vmax.f32 %v9841_v27, 0.0  ;;  %v13009_v50 = vpop.f32.mrb[206].mxu1 }
 0x749   :  { %10142 = vst.msk [vmem:[%s20269_s7 + $0x3f8] sm:$0xff] %vm797_vm0, %v9992_v33  ;;  %v9844_v13 = vadd.f32 %v13009_v50, %v19334_v62  ;;  %v9602_v58 = vpop.f32.mrb[207].mxu1 }
 0x74a   :  { %10141 = vst.msk [vmem:[%s20269_s7 + $0x3f0] sm:$0xff] %vm797_vm0, %v9991_v22  ;;  %v9843_v15 = vadd.f32 %v19334_v62, %v9602_v58 }
 0x74b   :  { %v9994_v6 = vmax.f32 %v9844_v13, 0.0 }
 0x74c   :  { %v9993_v55 = vmax.f32 %v9843_v15, 0.0  ;;  %v13012_v52 = vpop.f32.mrb[208].mxu1 }
 0x74d   :  { %10144 = vst.msk [vmem:[%s20269_s7 + $0x408] sm:$0xff] %vm797_vm0, %v9994_v6  ;;  %v9846_v36 = vadd.f32 %v13012_v52, %v19334_v62  ;;  %v9612_v34 = vpop.f32.mrb[209].mxu1 }
 0x74e   :  { %10143 = vst.msk [vmem:[%s20269_s7 + $0x400] sm:$0xff] %vm797_vm0, %v9993_v55  ;;  %v9845_v28 = vadd.f32 %v19334_v62, %v9612_v34 }
 0x74f   :  { %v9996_v8 = vmax.f32 %v9846_v36, 0.0 }
 0x750   :  { %v9995_v2 = vmax.f32 %v9845_v28, 0.0  ;;  %v13015_v14 = vpop.f32.mrb[210].mxu1 }
 0x751   :  { %10146 = vst.msk [vmem:[%s20269_s7 + $0x418] sm:$0xff] %vm797_vm0, %v9996_v8  ;;  %v9848_v10 = vadd.f32 %v13015_v14, %v19334_v62  ;;  %v9622_v42 = vpop.f32.mrb[211].mxu1 }
 0x752   :  { %10145 = vst.msk [vmem:[%s20269_s7 + $0x410] sm:$0xff] %vm797_vm0, %v9995_v2  ;;  %v9847_v37 = vadd.f32 %v19334_v62, %v9622_v42 }
 0x753   :  { %v9998_v21 = vmax.f32 %v9848_v10, 0.0 }
 0x754   :  { %v9997_v48 = vmax.f32 %v9847_v37, 0.0  ;;  %v13018_v4 = vpop.f32.mrb[212].mxu1 }
 0x755   :  { %10148 = vst.msk [vmem:[%s20269_s7 + $0x428] sm:$0xff] %vm797_vm0, %v9998_v21  ;;  %v9850_v30 = vadd.f32 %v13018_v4, %v19334_v62  ;;  %v9632_v20 = vpop.f32.mrb[213].mxu1 }
 0x756   :  { %10147 = vst.msk [vmem:[%s20269_s7 + $0x420] sm:$0xff] %vm797_vm0, %v9997_v48  ;;  %v9849_v12 = vadd.f32 %v19334_v62, %v9632_v20 }
 0x757   :  { %v10000_v5 = vmax.f32 %v9850_v30, 0.0 }
 0x758   :  { %v9999_v49 = vmax.f32 %v9849_v12, 0.0  ;;  %v13021_v11 = vpop.f32.mrb[214].mxu1 }
 0x759   :  { %10150 = vst.msk [vmem:[%s20269_s7 + $0x438] sm:$0xff] %vm797_vm0, %v10000_v5  ;;  %v9852_v18 = vadd.f32 %v13021_v11, %v19334_v62  ;;  %v9642_v46 = vpop.f32.mrb[215].mxu1 }
 0x75a   :  { %10149 = vst.msk [vmem:[%s20269_s7 + $0x430] sm:$0xff] %vm797_vm0, %v9999_v49  ;;  %v9851_v3 = vadd.f32 %v19334_v62, %v9642_v46 }
 0x75b   :  { %v10002_v51 = vmax.f32 %v9852_v18, 0.0 }
 0x75c   :  { %v10001_v9 = vmax.f32 %v9851_v3, 0.0  ;;  %v13024_v26 = vpop.f32.mrb[216].mxu1 }
 0x75d   :  { %10152 = vst.msk [vmem:[%s20269_s7 + $0x448] sm:$0xff] %vm797_vm0, %v10002_v51  ;;  %v9854_v61 = vadd.f32 %v13024_v26, %v19334_v62  ;;  %v9652_v39 = vpop.f32.mrb[217].mxu1 }
 0x75e   :  { %10151 = vst.msk [vmem:[%s20269_s7 + $0x440] sm:$0xff] %vm797_vm0, %v10001_v9  ;;  %v9853_v40 = vadd.f32 %v19334_v62, %v9652_v39 }
 0x75f   :  { %v10004_v16 = vmax.f32 %v9854_v61, 0.0 }
 0x760   :  { %v10003_v63 = vmax.f32 %v9853_v40, 0.0  ;;  %v13027_v19 = vpop.f32.mrb[218].mxu1 }
 0x761   :  { %10154 = vst.msk [vmem:[%s20269_s7 + $0x458] sm:$0xff] %vm797_vm0, %v10004_v16  ;;  %v9856_v38 = vadd.f32 %v13027_v19, %v19334_v62  ;;  %v9662_v29 = vpop.f32.mrb[219].mxu1 }
 0x762   :  { %10153 = vst.msk [vmem:[%s20269_s7 + $0x450] sm:$0xff] %vm797_vm0, %v10003_v63  ;;  %v9855_v32 = vadd.f32 %v19334_v62, %v9662_v29 }
 0x763   :  { %v10006_v1 = vmax.f32 %v9856_v38, 0.0 }
 0x764   :  { %v10005_v31 = vmax.f32 %v9855_v32, 0.0  ;;  %v13030_v54 = vpop.f32.mrb[220].mxu1 }
 0x765   :  { %10156 = vst.msk [vmem:[%s20269_s7 + $0x468] sm:$0xff] %vm797_vm0, %v10006_v1  ;;  %v9858_v0 = vadd.f32 %v13030_v54, %v19334_v62  ;;  %v9672_v43 = vpop.f32.mrb[221].mxu1 }
 0x766   :  { %10155 = vst.msk [vmem:[%s20269_s7 + $0x460] sm:$0xff] %vm797_vm0, %v10005_v31  ;;  %v9857_v7 = vadd.f32 %v19334_v62, %v9672_v43 }
 0x767   :  { %v10008_v35 = vmax.f32 %v9858_v0, 0.0 }
 0x768   :  { %v10007_v53 = vmax.f32 %v9857_v7, 0.0  ;;  %v13033_v47 = vpop.f32.mrb[222].mxu1 }
 0x769   :  { %10158 = vst.msk [vmem:[%s20269_s7 + $0x478] sm:$0xff] %vm797_vm0, %v10008_v35  ;;  %v9860_v25 = vadd.f32 %v13033_v47, %v19334_v62  ;;  %v9682_v60 = vpop.f32.mrb[223].mxu1 }
 0x76a   :  { %10157 = vst.msk [vmem:[%s20269_s7 + $0x470] sm:$0xff] %vm797_vm0, %v10007_v53  ;;  %v9859_v17 = vadd.f32 %v19334_v62, %v9682_v60 }
 0x76b   :  { %v10010_v23 = vmax.f32 %v9860_v25, 0.0 }
 0x76c   :  { %v10009_v59 = vmax.f32 %v9859_v17, 0.0  ;;  %v13036_v44 = vpop.f32.mrb[224].mxu1 }
 0x76d   :  { %10160 = vst.msk [vmem:[%s20269_s7 + $0x488] sm:$0xff] %vm797_vm0, %v10010_v23  ;;  %v9862_v45 = vadd.f32 %v13036_v44, %v19334_v62  ;;  %v9692_v57 = vpop.f32.mrb[225].mxu1 }
 0x76e   :  { %10159 = vst.msk [vmem:[%s20269_s7 + $0x480] sm:$0xff] %vm797_vm0, %v10009_v59  ;;  %v9861_v56 = vadd.f32 %v19334_v62, %v9692_v57 }
 0x76f   :  { %v10012_v24 = vmax.f32 %v9862_v45, 0.0 }
 0x770   :  { %v10011_v41 = vmax.f32 %v9861_v56, 0.0  ;;  %v13039_v27 = vpop.f32.mrb[226].mxu1 }
 0x771   :  { %10162 = vst.msk [vmem:[%s20269_s7 + $0x498] sm:$0xff] %vm797_vm0, %v10012_v24  ;;  %v9864_v33 = vadd.f32 %v13039_v27, %v19334_v62  ;;  %v9702_v22 = vpop.f32.mrb[227].mxu1 }
 0x772   :  { %10161 = vst.msk [vmem:[%s20269_s7 + $0x490] sm:$0xff] %vm797_vm0, %v10011_v41  ;;  %v9863_v50 = vadd.f32 %v19334_v62, %v9702_v22 }
 0x773   :  { %v10014_v13 = vmax.f32 %v9864_v33, 0.0 }
 0x774   :  { %v10013_v58 = vmax.f32 %v9863_v50, 0.0 }
 0x775   :  { %10164 = vst.msk [vmem:[%s20269_s7 + $0x4a8] sm:$0xff] %vm797_vm0, %v10014_v13 }
 0x776   :  { %10163 = vst.msk [vmem:[%s20269_s7 + $0x4a0] sm:$0xff] %vm797_vm0, %v10013_v58 }

</bundles_post_ra>
